<compile_context>
chip_gen: v7x
topology: tpu7x:2x2x1
jax: 0.10.0
libtpu: 0.0.40
codegen_flags: <defaults>
</compile_context>

<pallas_src>
import jax
import jax.numpy as jnp
from jax.experimental import pallas as pl
from jax.experimental.pallas import tpu as pltpu

CP = 128          # all channel dims padded to one lane width
EPS = 1e-5


# ----------------------------------------------------------------------------
# Kernel factory: fused (im2col @ W + bias [+ residual | + 1x1 shortcut])
# followed by the next layer's BN+ReLU, optionally followed by the pooled head.
# ----------------------------------------------------------------------------
def _make_kernel(res_mode, want_trunk, want_act, has_head):
    """res_mode: None | 'add' (identity residual) | 'conv' (fused 1x1 shortcut).

    Coefficient operand layout (f32, shape (8, CP)):
      row 0: conv bias    row 1: BN scale   row 2: BN shift
      row 3: shortcut bias  row 4: FC bias  rows 5-7: zero pad
    """
    def kernel(*refs):
        it = iter(refs)
        x_ref, w_ref, coef_ref = next(it), next(it), next(it)
        res_ref = xsc_ref = wsc_ref = pool_ref = fcw_ref = None
        if res_mode == 'add':
            res_ref = next(it)
        elif res_mode == 'conv':
            xsc_ref, wsc_ref = next(it), next(it)
        if has_head:
            pool_ref, fcw_ref = next(it), next(it)
        outs = list(it)

        coefs = coef_ref[...]                                    # (8, CP) f32
        pre = jnp.dot(x_ref[...], w_ref[...],
                      preferred_element_type=jnp.float32) + coefs[0:1]
        if res_mode == 'add':
            pre = pre + res_ref[...].astype(jnp.float32)
        elif res_mode == 'conv':
            pre = (pre
                   + jnp.dot(xsc_ref[...], wsc_ref[...],
                             preferred_element_type=jnp.float32)
                   + coefs[3:4])

        oi = 0
        if want_trunk:                       # residual trunk, stored as bf16
            outs[oi][...] = pre.astype(outs[oi].dtype)
            oi += 1
        act = jnp.maximum(pre * coefs[1:2] + coefs[2:3], 0.0)    # next BN+ReLU
        if want_act:
            outs[oi][...] = act.astype(outs[oi].dtype)
            oi += 1
        if has_head:
            # Global average pool as a tiny matmul with a constant pooling
            # matrix, then the final Linear -- all on the block already in VMEM.
            pooled = jnp.dot(pool_ref[...], act,
                             preferred_element_type=jnp.float32)
            outs[oi][...] = (jnp.dot(pooled, fcw_ref[...],
                                     preferred_element_type=jnp.float32)
                             + coefs[4:5])
    return kernel


# ----------------------------------------------------------------------------
# pallas_call wrapper
# ----------------------------------------------------------------------------
def _pick_tm(m):
    # Prefer >=2 grid steps (megacore sharding on v7x, DMA/compute overlap on
    # every chip) with the LARGEST tile that still gives that, to amortize the
    # per-grid-step overhead on v5e/v6e.
    for tm in (1024, 512, 256, 128, 64, 32, 16, 8):
        if m % tm == 0 and m // tm >= 2:
            return tm
    return m  # tiny / indivisible M: single whole-array block


def conv_fused(xcol, w, coef, *, res=None, sc=None, head=None, want_trunk=True):
    """(M,K)@(K,CP) + bias [+res | +xsc@wsc+sc_bias], then relu(.*scale+shift).

    Optional head=(pool, fcw): fuse avg-pool (pool @ act) + Linear, emitting
    only the logits.  Returns a tuple of outputs:
      [trunk bf16 (M,CP)] [act bf16 (M,CP)] [logits f32 (B, CP)]
    """
    m, k = xcol.shape
    n = w.shape[1]
    tm = m if head is not None else _pick_tm(m)   # head needs all rows at once
    grid = (m // tm,)

    arrays = [xcol, w, coef]
    in_specs = [pl.BlockSpec((tm, k), lambda i: (i, 0)),
                pl.BlockSpec((k, n), lambda i: (0, 0)),
                pl.BlockSpec((8, n), lambda i: (0, 0))]
    res_mode = None
    if res is not None:
        res_mode = 'add'
        arrays.append(res)
        in_specs.append(pl.BlockSpec((tm, n), lambda i: (i, 0)))
    elif sc is not None:
        res_mode = 'conv'
        xsc, wsc = sc
        arrays += [xsc, wsc]
        in_specs += [pl.BlockSpec((tm, xsc.shape[1]), lambda i: (i, 0)),
                     pl.BlockSpec((xsc.shape[1], n), lambda i: (0, 0))]
    want_act = head is None
    if head is not None:
        pool, fcw = head
        arrays += [pool, fcw]
        in_specs += [pl.BlockSpec(pool.shape, lambda i: (0, 0)),
                     pl.BlockSpec(fcw.shape, lambda i: (0, 0))]

    out_shapes, out_specs = [], []
    if want_trunk:
        out_shapes.append(jax.ShapeDtypeStruct((m, n), jnp.bfloat16))
        out_specs.append(pl.BlockSpec((tm, n), lambda i: (i, 0)))
    if want_act:
        out_shapes.append(jax.ShapeDtypeStruct((m, n), jnp.bfloat16))
        out_specs.append(pl.BlockSpec((tm, n), lambda i: (i, 0)))
    if head is not None:
        b, nout = head[0].shape[0], head[1].shape[1]
        out_shapes.append(jax.ShapeDtypeStruct((b, nout), jnp.float32))
        out_specs.append(pl.BlockSpec((b, nout), lambda i: (0, 0)))

    outs = pl.pallas_call(
        _make_kernel(res_mode, want_trunk, want_act, head is not None),
        out_shape=tuple(out_shapes),
        grid_spec=pltpu.PrefetchScalarGridSpec(
            num_scalar_prefetch=0,
            grid=grid,
            in_specs=in_specs,
            out_specs=out_specs),
        compiler_params=pltpu.CompilerParams(
            dimension_semantics=("parallel",),
            vmem_limit_bytes=32 * 1024 * 1024),
    )(*arrays)
    return outs if isinstance(outs, tuple) else (outs,)


# ----------------------------------------------------------------------------
# Glue: im2col (XLA), weight / coefficient preprocessing (pad to 128 lanes)
# ----------------------------------------------------------------------------
def _im2col(a_bhwc, cin, stride):
    """3x3 / pad=1 im2col of the first `cin` channels, strided output rows only.
    Returns (B*Ho*Wo, 9*cin) bf16."""
    bsz, h, w, _ = a_bhwc.shape
    a = a_bhwc[..., :cin]
    ap = jnp.pad(a, ((0, 0), (1, 1), (1, 1), (0, 0)))
    ho, wo = h // stride, w // stride
    cols = [ap[:, dy:dy + h:stride, dx:dx + w:stride, :]
            for dy in range(3) for dx in range(3)]
    cols = jnp.concatenate(cols, axis=-1)
    return cols.reshape(bsz * ho * wo, 9 * cin).astype(jnp.bfloat16)


def _prep_w3(w_oihw):
    cout, cin = w_oihw.shape[0], w_oihw.shape[1]
    w = jnp.transpose(w_oihw, (2, 3, 1, 0)).reshape(9 * cin, cout)
    return jnp.pad(w, ((0, 0), (0, CP - cout))).astype(jnp.bfloat16)


def _prep_w1(w_oihw):
    cout, cin = w_oihw.shape[0], w_oihw.shape[1]
    w = jnp.transpose(w_oihw.reshape(cout, cin), (1, 0))
    return jnp.pad(w, ((0, CP - cin), (0, CP - cout))).astype(jnp.bfloat16)


def _prep_fcw(fc_w):
    ncls, feat = fc_w.shape
    return jnp.pad(jnp.transpose(fc_w),
                   ((0, CP - feat), (0, CP - ncls))).astype(jnp.float32)


def _pack_coefs(conv_b, bn, sc_b=None, fc_b=None):
    """Pack all per-call epilogue vectors into one (8, CP) f32 operand."""
    scale = bn['gamma'] / jnp.sqrt(bn['var'] + EPS)
    shift = bn['beta'] - bn['mean'] * scale
    zero = jnp.zeros((CP,), jnp.float32)

    def row(v):
        if v is None:
            return zero
        return jnp.pad(v.astype(jnp.float32), (0, CP - v.shape[0]))

    rows = [row(conv_b), row(scale), row(shift), row(sc_b), row(fc_b),
            zero, zero, zero]
    return jnp.stack(rows, axis=0)


# ----------------------------------------------------------------------------
# Forward pass
# ----------------------------------------------------------------------------
def wide_resnet_forward(x_nchw, params):
    x = jnp.transpose(x_nchw, (0, 2, 3, 1)).astype(jnp.float32)   # NCHW -> NHWC
    bsz, h, w, cin0 = x.shape
    blocks = [blk for li in (1, 2, 3) for blk in params[f'layer{li}']]
    ncls = params['fc_b'].shape[0]

    # Stem conv, fused with the first block's bn1+relu epilogue.
    trunk, act = conv_fused(_im2col(x, cin0, 1),
                            _prep_w3(params['conv1_w']),
                            _pack_coefs(params['conv1_b'], blocks[0]['bn1']))
    trunk = trunk.reshape(bsz, h, w, CP)
    act = act.reshape(bsz, h, w, CP)

    for bi, blk in enumerate(blocks):
        stride = blk['stride']
        cin = blk['conv1_w'].shape[1]
        planes = blk['conv1_w'].shape[0]
        last = bi + 1 == len(blocks)

        # conv1 (stride 1), fused with bn2+relu; its trunk is never used so it
        # is not emitted at all.
        (act1,) = conv_fused(_im2col(act, cin, 1),
                             _prep_w3(blk['conv1_w']),
                             _pack_coefs(blk['conv1_b'], blk['bn2']),
                             want_trunk=False)
        act1 = act1.reshape(bsz, h, w, CP)

        # conv2 (stride s) + residual (identity or fused 1x1 shortcut conv),
        # fused with the next block's bn1+relu, or -- for the last block --
        # with bn_final+relu+avgpool+Linear (the whole head).
        ho, wo = h // stride, w // stride
        next_bn = params['bn_final'] if last else blocks[bi + 1]['bn1']
        # TODO(synk): the stride-2 trunk gather is still an XLA strided slice
        #             (bf16 now); folding it into the producing kernel would
        #             need a non-rectangular output BlockSpec.
        sliced = trunk[:, ::stride, ::stride, :].reshape(bsz * ho * wo, CP)
        xcol2 = _im2col(act1, planes, stride)
        w2 = _prep_w3(blk['conv2_w'])
        coef2 = _pack_coefs(blk['conv2_b'], next_bn, sc_b=blk.get('sc_b'),
                            fc_b=params['fc_b'] if last else None)
        res_kw = (dict(sc=(sliced, _prep_w1(blk['sc_w']))) if 'sc_w' in blk
                  else dict(res=sliced))

        if last:
            s = ho * wo
            pool = jnp.repeat(jnp.eye(bsz, dtype=jnp.float32), s, axis=1) * (1.0 / s)
            fcw = _prep_fcw(params['fc_w'])
            (logits,) = conv_fused(xcol2, w2, coef2, head=(pool, fcw),
                                   want_trunk=False, **res_kw)
            return logits[:, :ncls]

        trunk, act = conv_fused(xcol2, w2, coef2, **res_kw)
        h, w = ho, wo
        trunk = trunk.reshape(bsz, h, w, CP)
        act = act.reshape(bsz, h, w, CP)


# ----------------------------------------------------------------------------
# Deterministic synthetic parameters (mirrors the PyTorch module's shapes)
# ----------------------------------------------------------------------------
def _make_bn(key, c):
    k1, k2, k3, k4 = jax.random.split(key, 4)
    return dict(
        gamma=jax.random.uniform(k1, (c,), jnp.float32, 0.8, 1.2),
        beta=jax.random.normal(k2, (c,), jnp.float32) * 0.1,
        mean=jax.random.normal(k3, (c,), jnp.float32) * 0.1,
        var=jax.random.uniform(k4, (c,), jnp.float32, 0.8, 1.2),
    )


def _make_conv(key, cin, cout, k):
    k1, k2 = jax.random.split(key)
    std = (2.0 / (cin * k * k)) ** 0.5
    w = jax.random.normal(k1, (cout, cin, k, k), jnp.float32) * std  # OIHW
    b = jax.random.normal(k2, (cout,), jnp.float32) * 0.01
    return w, b


def init_params(key, depth=10, widen_factor=1, num_classes=10):
    assert (depth - 4) % 6 == 0
    n = (depth - 4) // 6
    stages = [16, 16 * widen_factor, 32 * widen_factor, 64 * widen_factor]
    keys = iter(jax.random.split(key, 256))
    params = {}
    params['conv1_w'], params['conv1_b'] = _make_conv(next(keys), 3, stages[0], 3)
    in_planes = stages[0]
    for li, (planes, stride) in enumerate(
            [(stages[1], 1), (stages[2], 2), (stages[3], 2)], start=1):
        blocks = []
        for s in [stride] + [1] * (n - 1):
            blk = {'stride': s}
            blk['bn1'] = _make_bn(next(keys), in_planes)
            blk['conv1_w'], blk['conv1_b'] = _make_conv(next(keys), in_planes, planes, 3)
            blk['bn2'] = _make_bn(next(keys), planes)
            blk['conv2_w'], blk['conv2_b'] = _make_conv(next(keys), planes, planes, 3)
            if s != 1 or in_planes != planes:
                blk['sc_w'], blk['sc_b'] = _make_conv(next(keys), in_planes, planes, 1)
            blocks.append(blk)
            in_planes = planes
        params[f'layer{li}'] = blocks
    params['bn_final'] = _make_bn(next(keys), stages[3])
    kw, kb = jax.random.split(next(keys))
    bound = 1.0 / (stages[3] ** 0.5)
    params['fc_w'] = jax.random.uniform(kw, (num_classes, stages[3]), jnp.float32,
                                        -bound, bound)
    params['fc_b'] = jax.random.uniform(kb, (num_classes,), jnp.float32, -bound, bound)
    return params


# ----------------------------------------------------------------------------
# Pure-JAX f32 reference (correctness check only)
# ----------------------------------------------------------------------------
def _ref_conv(x, w_oihw, b, stride, pad):
    y = jax.lax.conv_general_dilated(
        x, jnp.transpose(w_oihw, (2, 3, 1, 0)),
        window_strides=(stride, stride),
        padding=[(pad, pad), (pad, pad)],
        dimension_numbers=('NHWC', 'HWIO', 'NHWC'),
        precision=jax.lax.Precision.HIGHEST)
    return y + b.reshape(1, 1, 1, -1)


def _ref_bnrelu(x, bn, eps=EPS):
    scale = bn['gamma'] / jnp.sqrt(bn['var'] + eps)
    shift = bn['beta'] - bn['mean'] * scale
    return jnp.maximum(x * scale + shift, 0.0)


def ref_forward(x_nchw, params):
    x = jnp.transpose(x_nchw, (0, 2, 3, 1))
    out = _ref_conv(x, params['conv1_w'], params['conv1_b'], 1, 1)
    for li in (1, 2, 3):
        for blk in params[f'layer{li}']:
            h = _ref_bnrelu(out, blk['bn1'])
            h = _ref_conv(h, blk['conv1_w'], blk['conv1_b'], 1, 1)
            h = _ref_bnrelu(h, blk['bn2'])
            h = _ref_conv(h, blk['conv2_w'], blk['conv2_b'], blk['stride'], 1)
            if 'sc_w' in blk:
                sc = _ref_conv(out, blk['sc_w'], blk['sc_b'], blk['stride'], 0)
            else:
                sc = out
            out = h + sc
    out = _ref_bnrelu(out, params['bn_final'])
    out = jnp.mean(out, axis=(1, 2))
    return out @ jnp.transpose(params['fc_w']) + params['fc_b']


# ----------------------------------------------------------------------------
if __name__ == "__main__":
    key = jax.random.PRNGKey(0)
    kx, kp = jax.random.split(key)

    # CIFAR-like input: avg_pool2d(8) after two stride-2 stages implies 32x32.
    x = jax.random.normal(kx, (2, 3, 32, 32), jnp.float32)   # NCHW (PyTorch)
    params = init_params(kp, depth=10, widen_factor=1, num_classes=10)

    fwd = jax.jit(lambda inp: wide_resnet_forward(inp, params))
    logits = jax.block_until_ready(fwd(x))

    ref = jax.block_until_ready(ref_forward(x, params))
    err = float(jnp.max(jnp.abs(logits - ref)))
    scale = float(jnp.max(jnp.abs(ref)))
    assert logits.shape == (2, 10), logits.shape
    assert bool(jnp.all(jnp.isfinite(logits)))
    # bf16 MXU operands + bf16 residual-trunk storage through 8 stacked convs
    # -> allow a few % deviation from the f32 HIGHEST-precision reference.
    assert err <= 7e-2 * (1.0 + scale), f"mismatch: max|diff|={err}, max|ref|={scale}"
    print("KERNEL_OK")
</pallas_src>

<mosaic_0001>
module attributes {stable_mosaic.version = 11 : i64} {
  func.func @kernel(%arg0: i32, %arg1: memref<1024x27xbf16, #tpu.memory_space<vmem>>, %arg2: memref<27x128xbf16, #tpu.memory_space<vmem>>, %arg3: memref<8x128xf32, #tpu.memory_space<vmem>>, %arg4: memref<1024x128xbf16, #tpu.memory_space<vmem>>, %arg5: memref<1024x128xbf16, #tpu.memory_space<vmem>>) attributes {dimension_semantics = [#tpu.dimension_semantics<parallel>], iteration_bounds = array<i64: 2>, scalar_prefetch = 0 : i64, scratch_operands = 0 : i64, tpu.core_type = #tpu.core_type<tc>, window_params = [{transform_indices = @transform_0, window_bounds = array<i64: 1024, 27>}, {pipeline_mode = #tpu.pipeline_mode<synchronous>, transform_indices = @transform_1, window_bounds = array<i64: 27, 128>}, {pipeline_mode = #tpu.pipeline_mode<synchronous>, transform_indices = @transform_2, window_bounds = array<i64: 8, 128>}, {transform_indices = @transform_3, window_bounds = array<i64: 1024, 128>}, {transform_indices = @transform_4, window_bounds = array<i64: 1024, 128>}]} {
    %c0 = arith.constant 0 : index
    %c0_0 = arith.constant 0 : index
    %0 = vector.load %arg3[%c0, %c0_0] : memref<8x128xf32, #tpu.memory_space<vmem>>, vector<8x128xf32>
    %c0_1 = arith.constant 0 : index
    %c0_2 = arith.constant 0 : index
    %1 = vector.load %arg1[%c0_1, %c0_2] : memref<1024x27xbf16, #tpu.memory_space<vmem>>, vector<1024x27xbf16>
    %c0_3 = arith.constant 0 : index
    %c0_4 = arith.constant 0 : index
    %2 = vector.load %arg2[%c0_3, %c0_4] : memref<27x128xbf16, #tpu.memory_space<vmem>>, vector<27x128xbf16>
    %cst = arith.constant dense<0.000000e+00> : vector<1024x128xf32>
    %3 = tpu.matmul %1, %2, %cst {dimension_numbers = #tpu.dot_dimension_numbers<[1], [0], [0], [1], [0, 0, 1, 1], [], []>} : vector<1024x27xbf16>, vector<27x128xbf16>, vector<1024x128xf32> -> vector<1024x128xf32>
    %4 = vector.extract_strided_slice %0 {offsets = [0, 0], sizes = [1, 128], strides = [1, 1]} : vector<8x128xf32> to vector<1x128xf32>
    %5 = vector.broadcast %4 : vector<1x128xf32> to vector<1024x128xf32>
    %6 = arith.addf %3, %5 : vector<1024x128xf32>
    %7 = arith.truncf %6 : vector<1024x128xf32> to vector<1024x128xbf16>
    %c0_5 = arith.constant 0 : index
    %c0_6 = arith.constant 0 : index
    %8 = vector.load %arg4[%c0_5, %c0_6] : memref<1024x128xbf16, #tpu.memory_space<vmem>>, vector<1024x128xbf16>
    tpu.vector_store %arg4[%c0_5, %c0_6], %7 {strides = array<i32>} : memref<1024x128xbf16, #tpu.memory_space<vmem>>, vector<1024x128xbf16>,
    %9 = vector.extract_strided_slice %0 {offsets = [1, 0], sizes = [1, 128], strides = [1, 1]} : vector<8x128xf32> to vector<1x128xf32>
    %10 = vector.broadcast %9 : vector<1x128xf32> to vector<1024x128xf32>
    %11 = arith.mulf %6, %10 : vector<1024x128xf32>
    %12 = vector.extract_strided_slice %0 {offsets = [2, 0], sizes = [1, 128], strides = [1, 1]} : vector<8x128xf32> to vector<1x128xf32>
    %13 = vector.broadcast %12 : vector<1x128xf32> to vector<1024x128xf32>
    %14 = arith.addf %11, %13 : vector<1024x128xf32>
    %cst_7 = arith.constant 0.000000e+00 : f32
    %15 = vector.broadcast %cst_7 : f32 to vector<1024x128xf32>
    %16 = arith.maximumf %14, %15 : vector<1024x128xf32>
    %17 = arith.truncf %16 : vector<1024x128xf32> to vector<1024x128xbf16>
    %c0_8 = arith.constant 0 : index
    %c0_9 = arith.constant 0 : index
    %18 = vector.load %arg5[%c0_8, %c0_9] : memref<1024x128xbf16, #tpu.memory_space<vmem>>, vector<1024x128xbf16>
    tpu.vector_store %arg5[%c0_8, %c0_9], %17 {strides = array<i32>} : memref<1024x128xbf16, #tpu.memory_space<vmem>>, vector<1024x128xbf16>,
    return
  }
  func.func @transform_0(%arg0: i32) -> (i32, i32) {
    %c0_i32 = arith.constant 0 : i32
    %c0_i32_0 = arith.constant 0 : i32
    return %arg0, %c0_i32 : i32, i32
  }
  func.func @transform_1(%arg0: i32) -> (i32, i32) {
    %c0_i32 = arith.constant 0 : i32
    %c0_i32_0 = arith.constant 0 : i32
    %c0_i32_1 = arith.constant 0 : i32
    return %c0_i32, %c0_i32_0 : i32, i32
  }
  func.func @transform_2(%arg0: i32) -> (i32, i32) {
    %c0_i32 = arith.constant 0 : i32
    %c0_i32_0 = arith.constant 0 : i32
    %c0_i32_1 = arith.constant 0 : i32
    return %c0_i32, %c0_i32_0 : i32, i32
  }
  func.func @transform_3(%arg0: i32) -> (i32, i32) {
    %c0_i32 = arith.constant 0 : i32
    %c0_i32_0 = arith.constant 0 : i32
    return %arg0, %c0_i32 : i32, i32
  }
  func.func @transform_4(%arg0: i32) -> (i32, i32) {
    %c0_i32 = arith.constant 0 : i32
    %c0_i32_0 = arith.constant 0 : i32
    return %arg0, %c0_i32 : i32, i32
  }
}

module attributes {stable_mosaic.version = 11 : i64} {
  func.func @kernel(%arg0: i32, %arg1: memref<1024x144xbf16, #tpu.memory_space<vmem>>, %arg2: memref<144x128xbf16, #tpu.memory_space<vmem>>, %arg3: memref<8x128xf32, #tpu.memory_space<vmem>>, %arg4: memref<1024x128xbf16, #tpu.memory_space<vmem>>) attributes {dimension_semantics = [#tpu.dimension_semantics<parallel>], iteration_bounds = array<i64: 2>, scalar_prefetch = 0 : i64, scratch_operands = 0 : i64, tpu.core_type = #tpu.core_type<tc>, window_params = [{transform_indices = @transform_0, window_bounds = array<i64: 1024, 144>}, {pipeline_mode = #tpu.pipeline_mode<synchronous>, transform_indices = @transform_1, window_bounds = array<i64: 144, 128>}, {pipeline_mode = #tpu.pipeline_mode<synchronous>, transform_indices = @transform_2, window_bounds = array<i64: 8, 128>}, {transform_indices = @transform_3, window_bounds = array<i64: 1024, 128>}]} {
    %c0 = arith.constant 0 : index
    %c0_0 = arith.constant 0 : index
    %0 = vector.load %arg3[%c0, %c0_0] : memref<8x128xf32, #tpu.memory_space<vmem>>, vector<8x128xf32>
    %c0_1 = arith.constant 0 : index
    %c0_2 = arith.constant 0 : index
    %1 = vector.load %arg1[%c0_1, %c0_2] : memref<1024x144xbf16, #tpu.memory_space<vmem>>, vector<1024x144xbf16>
    %c0_3 = arith.constant 0 : index
    %c0_4 = arith.constant 0 : index
    %2 = vector.load %arg2[%c0_3, %c0_4] : memref<144x128xbf16, #tpu.memory_space<vmem>>, vector<144x128xbf16>
    %cst = arith.constant dense<0.000000e+00> : vector<1024x128xf32>
    %3 = tpu.matmul %1, %2, %cst {dimension_numbers = #tpu.dot_dimension_numbers<[1], [0], [0], [1], [0, 0, 1, 1], [], []>} : vector<1024x144xbf16>, vector<144x128xbf16>, vector<1024x128xf32> -> vector<1024x128xf32>
    %4 = vector.extract_strided_slice %0 {offsets = [0, 0], sizes = [1, 128], strides = [1, 1]} : vector<8x128xf32> to vector<1x128xf32>
    %5 = vector.broadcast %4 : vector<1x128xf32> to vector<1024x128xf32>
    %6 = arith.addf %3, %5 : vector<1024x128xf32>
    %7 = vector.extract_strided_slice %0 {offsets = [1, 0], sizes = [1, 128], strides = [1, 1]} : vector<8x128xf32> to vector<1x128xf32>
    %8 = vector.broadcast %7 : vector<1x128xf32> to vector<1024x128xf32>
    %9 = arith.mulf %6, %8 : vector<1024x128xf32>
    %10 = vector.extract_strided_slice %0 {offsets = [2, 0], sizes = [1, 128], strides = [1, 1]} : vector<8x128xf32> to vector<1x128xf32>
    %11 = vector.broadcast %10 : vector<1x128xf32> to vector<1024x128xf32>
    %12 = arith.addf %9, %11 : vector<1024x128xf32>
    %cst_5 = arith.constant 0.000000e+00 : f32
    %13 = vector.broadcast %cst_5 : f32 to vector<1024x128xf32>
    %14 = arith.maximumf %12, %13 : vector<1024x128xf32>
    %15 = arith.truncf %14 : vector<1024x128xf32> to vector<1024x128xbf16>
    %c0_6 = arith.constant 0 : index
    %c0_7 = arith.constant 0 : index
    %16 = vector.load %arg4[%c0_6, %c0_7] : memref<1024x128xbf16, #tpu.memory_space<vmem>>, vector<1024x128xbf16>
    tpu.vector_store %arg4[%c0_6, %c0_7], %15 {strides = array<i32>} : memref<1024x128xbf16, #tpu.memory_space<vmem>>, vector<1024x128xbf16>,
    return
  }
  func.func @transform_0(%arg0: i32) -> (i32, i32) {
    %c0_i32 = arith.constant 0 : i32
    %c0_i32_0 = arith.constant 0 : i32
    return %arg0, %c0_i32 : i32, i32
  }
  func.func @transform_1(%arg0: i32) -> (i32, i32) {
    %c0_i32 = arith.constant 0 : i32
    %c0_i32_0 = arith.constant 0 : i32
    %c0_i32_1 = arith.constant 0 : i32
    return %c0_i32, %c0_i32_0 : i32, i32
  }
  func.func @transform_2(%arg0: i32) -> (i32, i32) {
    %c0_i32 = arith.constant 0 : i32
    %c0_i32_0 = arith.constant 0 : i32
    %c0_i32_1 = arith.constant 0 : i32
    return %c0_i32, %c0_i32_0 : i32, i32
  }
  func.func @transform_3(%arg0: i32) -> (i32, i32) {
    %c0_i32 = arith.constant 0 : i32
    %c0_i32_0 = arith.constant 0 : i32
    return %arg0, %c0_i32 : i32, i32
  }
}

module attributes {stable_mosaic.version = 11 : i64} {
  func.func @kernel(%arg0: i32, %arg1: memref<1024x144xbf16, #tpu.memory_space<vmem>>, %arg2: memref<144x128xbf16, #tpu.memory_space<vmem>>, %arg3: memref<8x128xf32, #tpu.memory_space<vmem>>, %arg4: memref<1024x128xbf16, #tpu.memory_space<vmem>>, %arg5: memref<1024x128xbf16, #tpu.memory_space<vmem>>, %arg6: memref<1024x128xbf16, #tpu.memory_space<vmem>>) attributes {dimension_semantics = [#tpu.dimension_semantics<parallel>], iteration_bounds = array<i64: 2>, scalar_prefetch = 0 : i64, scratch_operands = 0 : i64, tpu.core_type = #tpu.core_type<tc>, window_params = [{transform_indices = @transform_0, window_bounds = array<i64: 1024, 144>}, {pipeline_mode = #tpu.pipeline_mode<synchronous>, transform_indices = @transform_1, window_bounds = array<i64: 144, 128>}, {pipeline_mode = #tpu.pipeline_mode<synchronous>, transform_indices = @transform_2, window_bounds = array<i64: 8, 128>}, {transform_indices = @transform_3, window_bounds = array<i64: 1024, 128>}, {transform_indices = @transform_4, window_bounds = array<i64: 1024, 128>}, {transform_indices = @transform_5, window_bounds = array<i64: 1024, 128>}]} {
    %c0 = arith.constant 0 : index
    %c0_0 = arith.constant 0 : index
    %0 = vector.load %arg3[%c0, %c0_0] : memref<8x128xf32, #tpu.memory_space<vmem>>, vector<8x128xf32>
    %c0_1 = arith.constant 0 : index
    %c0_2 = arith.constant 0 : index
    %1 = vector.load %arg1[%c0_1, %c0_2] : memref<1024x144xbf16, #tpu.memory_space<vmem>>, vector<1024x144xbf16>
    %c0_3 = arith.constant 0 : index
    %c0_4 = arith.constant 0 : index
    %2 = vector.load %arg2[%c0_3, %c0_4] : memref<144x128xbf16, #tpu.memory_space<vmem>>, vector<144x128xbf16>
    %cst = arith.constant dense<0.000000e+00> : vector<1024x128xf32>
    %3 = tpu.matmul %1, %2, %cst {dimension_numbers = #tpu.dot_dimension_numbers<[1], [0], [0], [1], [0, 0, 1, 1], [], []>} : vector<1024x144xbf16>, vector<144x128xbf16>, vector<1024x128xf32> -> vector<1024x128xf32>
    %4 = vector.extract_strided_slice %0 {offsets = [0, 0], sizes = [1, 128], strides = [1, 1]} : vector<8x128xf32> to vector<1x128xf32>
    %5 = vector.broadcast %4 : vector<1x128xf32> to vector<1024x128xf32>
    %6 = arith.addf %3, %5 : vector<1024x128xf32>
    %c0_5 = arith.constant 0 : index
    %c0_6 = arith.constant 0 : index
    %7 = vector.load %arg4[%c0_5, %c0_6] : memref<1024x128xbf16, #tpu.memory_space<vmem>>, vector<1024x128xbf16>
    %8 = arith.extf %7 : vector<1024x128xbf16> to vector<1024x128xf32>
    %9 = arith.addf %6, %8 : vector<1024x128xf32>
    %10 = arith.truncf %9 : vector<1024x128xf32> to vector<1024x128xbf16>
    %c0_7 = arith.constant 0 : index
    %c0_8 = arith.constant 0 : index
    %11 = vector.load %arg5[%c0_7, %c0_8] : memref<1024x128xbf16, #tpu.memory_space<vmem>>, vector<1024x128xbf16>
    tpu.vector_store %arg5[%c0_7, %c0_8], %10 {strides = array<i32>} : memref<1024x128xbf16, #tpu.memory_space<vmem>>, vector<1024x128xbf16>,
    %12 = vector.extract_strided_slice %0 {offsets = [1, 0], sizes = [1, 128], strides = [1, 1]} : vector<8x128xf32> to vector<1x128xf32>
    %13 = vector.broadcast %12 : vector<1x128xf32> to vector<1024x128xf32>
    %14 = arith.mulf %9, %13 : vector<1024x128xf32>
    %15 = vector.extract_strided_slice %0 {offsets = [2, 0], sizes = [1, 128], strides = [1, 1]} : vector<8x128xf32> to vector<1x128xf32>
    %16 = vector.broadcast %15 : vector<1x128xf32> to vector<1024x128xf32>
    %17 = arith.addf %14, %16 : vector<1024x128xf32>
    %cst_9 = arith.constant 0.000000e+00 : f32
    %18 = vector.broadcast %cst_9 : f32 to vector<1024x128xf32>
    %19 = arith.maximumf %17, %18 : vector<1024x128xf32>
    %20 = arith.truncf %19 : vector<1024x128xf32> to vector<1024x128xbf16>
    %c0_10 = arith.constant 0 : index
    %c0_11 = arith.constant 0 : index
    %21 = vector.load %arg6[%c0_10, %c0_11] : memref<1024x128xbf16, #tpu.memory_space<vmem>>, vector<1024x128xbf16>
    tpu.vector_store %arg6[%c0_10, %c0_11], %20 {strides = array<i32>} : memref<1024x128xbf16, #tpu.memory_space<vmem>>, vector<1024x128xbf16>,
    return
  }
  func.func @transform_0(%arg0: i32) -> (i32, i32) {
    %c0_i32 = arith.constant 0 : i32
    %c0_i32_0 = arith.constant 0 : i32
    return %arg0, %c0_i32 : i32, i32
  }
  func.func @transform_1(%arg0: i32) -> (i32, i32) {
    %c0_i32 = arith.constant 0 : i32
    %c0_i32_0 = arith.constant 0 : i32
    %c0_i32_1 = arith.constant 0 : i32
    return %c0_i32, %c0_i32_0 : i32, i32
  }
  func.func @transform_2(%arg0: i32) -> (i32, i32) {
    %c0_i32 = arith.constant 0 : i32
    %c0_i32_0 = arith.constant 0 : i32
    %c0_i32_1 = arith.constant 0 : i32
    return %c0_i32, %c0_i32_0 : i32, i32
  }
  func.func @transform_3(%arg0: i32) -> (i32, i32) {
    %c0_i32 = arith.constant 0 : i32
    %c0_i32_0 = arith.constant 0 : i32
    return %arg0, %c0_i32 : i32, i32
  }
  func.func @transform_4(%arg0: i32) -> (i32, i32) {
    %c0_i32 = arith.constant 0 : i32
    %c0_i32_0 = arith.constant 0 : i32
    return %arg0, %c0_i32 : i32, i32
  }
  func.func @transform_5(%arg0: i32) -> (i32, i32) {
    %c0_i32 = arith.constant 0 : i32
    %c0_i32_0 = arith.constant 0 : i32
    return %arg0, %c0_i32 : i32, i32
  }
}

module attributes {stable_mosaic.version = 11 : i64} {
  func.func @kernel(%arg0: i32, %arg1: memref<256x288xbf16, #tpu.memory_space<vmem>>, %arg2: memref<288x128xbf16, #tpu.memory_space<vmem>>, %arg3: memref<8x128xf32, #tpu.memory_space<vmem>>, %arg4: memref<256x128xbf16, #tpu.memory_space<vmem>>, %arg5: memref<128x128xbf16, #tpu.memory_space<vmem>>, %arg6: memref<256x128xbf16, #tpu.memory_space<vmem>>, %arg7: memref<256x128xbf16, #tpu.memory_space<vmem>>) attributes {dimension_semantics = [#tpu.dimension_semantics<parallel>], iteration_bounds = array<i64: 2>, scalar_prefetch = 0 : i64, scratch_operands = 0 : i64, tpu.core_type = #tpu.core_type<tc>, window_params = [{transform_indices = @transform_0, window_bounds = array<i64: 256, 288>}, {pipeline_mode = #tpu.pipeline_mode<synchronous>, transform_indices = @transform_1, window_bounds = array<i64: 288, 128>}, {pipeline_mode = #tpu.pipeline_mode<synchronous>, transform_indices = @transform_2, window_bounds = array<i64: 8, 128>}, {transform_indices = @transform_3, window_bounds = array<i64: 256, 128>}, {pipeline_mode = #tpu.pipeline_mode<synchronous>, transform_indices = @transform_4, window_bounds = array<i64: 128, 128>}, {transform_indices = @transform_5, window_bounds = array<i64: 256, 128>}, {transform_indices = @transform_6, window_bounds = array<i64: 256, 128>}]} {
    %c0 = arith.constant 0 : index
    %c0_0 = arith.constant 0 : index
    %0 = vector.load %arg3[%c0, %c0_0] : memref<8x128xf32, #tpu.memory_space<vmem>>, vector<8x128xf32>
    %c0_1 = arith.constant 0 : index
    %c0_2 = arith.constant 0 : index
    %1 = vector.load %arg1[%c0_1, %c0_2] : memref<256x288xbf16, #tpu.memory_space<vmem>>, vector<256x288xbf16>
    %c0_3 = arith.constant 0 : index
    %c0_4 = arith.constant 0 : index
    %2 = vector.load %arg2[%c0_3, %c0_4] : memref<288x128xbf16, #tpu.memory_space<vmem>>, vector<288x128xbf16>
    %cst = arith.constant dense<0.000000e+00> : vector<256x128xf32>
    %3 = tpu.matmul %1, %2, %cst {dimension_numbers = #tpu.dot_dimension_numbers<[1], [0], [0], [1], [0, 0, 1, 1], [], []>} : vector<256x288xbf16>, vector<288x128xbf16>, vector<256x128xf32> -> vector<256x128xf32>
    %4 = vector.extract_strided_slice %0 {offsets = [0, 0], sizes = [1, 128], strides = [1, 1]} : vector<8x128xf32> to vector<1x128xf32>
    %5 = vector.broadcast %4 : vector<1x128xf32> to vector<256x128xf32>
    %6 = arith.addf %3, %5 : vector<256x128xf32>
    %c0_5 = arith.constant 0 : index
    %c0_6 = arith.constant 0 : index
    %7 = vector.load %arg4[%c0_5, %c0_6] : memref<256x128xbf16, #tpu.memory_space<vmem>>, vector<256x128xbf16>
    %c0_7 = arith.constant 0 : index
    %c0_8 = arith.constant 0 : index
    %8 = vector.load %arg5[%c0_7, %c0_8] : memref<128x128xbf16, #tpu.memory_space<vmem>>, vector<128x128xbf16>
    %cst_9 = arith.constant dense<0.000000e+00> : vector<256x128xf32>
    %9 = tpu.matmul %7, %8, %cst_9 {dimension_numbers = #tpu.dot_dimension_numbers<[1], [0], [0], [1], [0, 0, 1, 1], [], []>} : vector<256x128xbf16>, vector<128x128xbf16>, vector<256x128xf32> -> vector<256x128xf32>
    %10 = arith.addf %6, %9 : vector<256x128xf32>
    %11 = vector.extract_strided_slice %0 {offsets = [3, 0], sizes = [1, 128], strides = [1, 1]} : vector<8x128xf32> to vector<1x128xf32>
    %12 = vector.broadcast %11 : vector<1x128xf32> to vector<256x128xf32>
    %13 = arith.addf %10, %12 : vector<256x128xf32>
    %14 = arith.truncf %13 : vector<256x128xf32> to vector<256x128xbf16>
    %c0_10 = arith.constant 0 : index
    %c0_11 = arith.constant 0 : index
    %15 = vector.load %arg6[%c0_10, %c0_11] : memref<256x128xbf16, #tpu.memory_space<vmem>>, vector<256x128xbf16>
    tpu.vector_store %arg6[%c0_10, %c0_11], %14 {strides = array<i32>} : memref<256x128xbf16, #tpu.memory_space<vmem>>, vector<256x128xbf16>,
    %16 = vector.extract_strided_slice %0 {offsets = [1, 0], sizes = [1, 128], strides = [1, 1]} : vector<8x128xf32> to vector<1x128xf32>
    %17 = vector.broadcast %16 : vector<1x128xf32> to vector<256x128xf32>
    %18 = arith.mulf %13, %17 : vector<256x128xf32>
    %19 = vector.extract_strided_slice %0 {offsets = [2, 0], sizes = [1, 128], strides = [1, 1]} : vector<8x128xf32> to vector<1x128xf32>
    %20 = vector.broadcast %19 : vector<1x128xf32> to vector<256x128xf32>
    %21 = arith.addf %18, %20 : vector<256x128xf32>
    %cst_12 = arith.constant 0.000000e+00 : f32
    %22 = vector.broadcast %cst_12 : f32 to vector<256x128xf32>
    %23 = arith.maximumf %21, %22 : vector<256x128xf32>
    %24 = arith.truncf %23 : vector<256x128xf32> to vector<256x128xbf16>
    %c0_13 = arith.constant 0 : index
    %c0_14 = arith.constant 0 : index
    %25 = vector.load %arg7[%c0_13, %c0_14] : memref<256x128xbf16, #tpu.memory_space<vmem>>, vector<256x128xbf16>
    tpu.vector_store %arg7[%c0_13, %c0_14], %24 {strides = array<i32>} : memref<256x128xbf16, #tpu.memory_space<vmem>>, vector<256x128xbf16>,
    return
  }
  func.func @transform_0(%arg0: i32) -> (i32, i32) {
    %c0_i32 = arith.constant 0 : i32
    %c0_i32_0 = arith.constant 0 : i32
    return %arg0, %c0_i32 : i32, i32
  }
  func.func @transform_1(%arg0: i32) -> (i32, i32) {
    %c0_i32 = arith.constant 0 : i32
    %c0_i32_0 = arith.constant 0 : i32
    %c0_i32_1 = arith.constant 0 : i32
    return %c0_i32, %c0_i32_0 : i32, i32
  }
  func.func @transform_2(%arg0: i32) -> (i32, i32) {
    %c0_i32 = arith.constant 0 : i32
    %c0_i32_0 = arith.constant 0 : i32
    %c0_i32_1 = arith.constant 0 : i32
    return %c0_i32, %c0_i32_0 : i32, i32
  }
  func.func @transform_3(%arg0: i32) -> (i32, i32) {
    %c0_i32 = arith.constant 0 : i32
    %c0_i32_0 = arith.constant 0 : i32
    return %arg0, %c0_i32 : i32, i32
  }
  func.func @transform_4(%arg0: i32) -> (i32, i32) {
    %c0_i32 = arith.constant 0 : i32
    %c0_i32_0 = arith.constant 0 : i32
    %c0_i32_1 = arith.constant 0 : i32
    return %c0_i32, %c0_i32_0 : i32, i32
  }
  func.func @transform_5(%arg0: i32) -> (i32, i32) {
    %c0_i32 = arith.constant 0 : i32
    %c0_i32_0 = arith.constant 0 : i32
    return %arg0, %c0_i32 : i32, i32
  }
  func.func @transform_6(%arg0: i32) -> (i32, i32) {
    %c0_i32 = arith.constant 0 : i32
    %c0_i32_0 = arith.constant 0 : i32
    return %arg0, %c0_i32 : i32, i32
  }
}

module attributes {stable_mosaic.version = 11 : i64} {
  func.func @kernel(%arg0: i32, %arg1: memref<256x288xbf16, #tpu.memory_space<vmem>>, %arg2: memref<288x128xbf16, #tpu.memory_space<vmem>>, %arg3: memref<8x128xf32, #tpu.memory_space<vmem>>, %arg4: memref<256x128xbf16, #tpu.memory_space<vmem>>) attributes {dimension_semantics = [#tpu.dimension_semantics<parallel>], iteration_bounds = array<i64: 2>, scalar_prefetch = 0 : i64, scratch_operands = 0 : i64, tpu.core_type = #tpu.core_type<tc>, window_params = [{transform_indices = @transform_0, window_bounds = array<i64: 256, 288>}, {pipeline_mode = #tpu.pipeline_mode<synchronous>, transform_indices = @transform_1, window_bounds = array<i64: 288, 128>}, {pipeline_mode = #tpu.pipeline_mode<synchronous>, transform_indices = @transform_2, window_bounds = array<i64: 8, 128>}, {transform_indices = @transform_3, window_bounds = array<i64: 256, 128>}]} {
    %c0 = arith.constant 0 : index
    %c0_0 = arith.constant 0 : index
    %0 = vector.load %arg3[%c0, %c0_0] : memref<8x128xf32, #tpu.memory_space<vmem>>, vector<8x128xf32>
    %c0_1 = arith.constant 0 : index
    %c0_2 = arith.constant 0 : index
    %1 = vector.load %arg1[%c0_1, %c0_2] : memref<256x288xbf16, #tpu.memory_space<vmem>>, vector<256x288xbf16>
    %c0_3 = arith.constant 0 : index
    %c0_4 = arith.constant 0 : index
    %2 = vector.load %arg2[%c0_3, %c0_4] : memref<288x128xbf16, #tpu.memory_space<vmem>>, vector<288x128xbf16>
    %cst = arith.constant dense<0.000000e+00> : vector<256x128xf32>
    %3 = tpu.matmul %1, %2, %cst {dimension_numbers = #tpu.dot_dimension_numbers<[1], [0], [0], [1], [0, 0, 1, 1], [], []>} : vector<256x288xbf16>, vector<288x128xbf16>, vector<256x128xf32> -> vector<256x128xf32>
    %4 = vector.extract_strided_slice %0 {offsets = [0, 0], sizes = [1, 128], strides = [1, 1]} : vector<8x128xf32> to vector<1x128xf32>
    %5 = vector.broadcast %4 : vector<1x128xf32> to vector<256x128xf32>
    %6 = arith.addf %3, %5 : vector<256x128xf32>
    %7 = vector.extract_strided_slice %0 {offsets = [1, 0], sizes = [1, 128], strides = [1, 1]} : vector<8x128xf32> to vector<1x128xf32>
    %8 = vector.broadcast %7 : vector<1x128xf32> to vector<256x128xf32>
    %9 = arith.mulf %6, %8 : vector<256x128xf32>
    %10 = vector.extract_strided_slice %0 {offsets = [2, 0], sizes = [1, 128], strides = [1, 1]} : vector<8x128xf32> to vector<1x128xf32>
    %11 = vector.broadcast %10 : vector<1x128xf32> to vector<256x128xf32>
    %12 = arith.addf %9, %11 : vector<256x128xf32>
    %cst_5 = arith.constant 0.000000e+00 : f32
    %13 = vector.broadcast %cst_5 : f32 to vector<256x128xf32>
    %14 = arith.maximumf %12, %13 : vector<256x128xf32>
    %15 = arith.truncf %14 : vector<256x128xf32> to vector<256x128xbf16>
    %c0_6 = arith.constant 0 : index
    %c0_7 = arith.constant 0 : index
    %16 = vector.load %arg4[%c0_6, %c0_7] : memref<256x128xbf16, #tpu.memory_space<vmem>>, vector<256x128xbf16>
    tpu.vector_store %arg4[%c0_6, %c0_7], %15 {strides = array<i32>} : memref<256x128xbf16, #tpu.memory_space<vmem>>, vector<256x128xbf16>,
    return
  }
  func.func @transform_0(%arg0: i32) -> (i32, i32) {
    %c0_i32 = arith.constant 0 : i32
    %c0_i32_0 = arith.constant 0 : i32
    return %arg0, %c0_i32 : i32, i32
  }
  func.func @transform_1(%arg0: i32) -> (i32, i32) {
    %c0_i32 = arith.constant 0 : i32
    %c0_i32_0 = arith.constant 0 : i32
    %c0_i32_1 = arith.constant 0 : i32
    return %c0_i32, %c0_i32_0 : i32, i32
  }
  func.func @transform_2(%arg0: i32) -> (i32, i32) {
    %c0_i32 = arith.constant 0 : i32
    %c0_i32_0 = arith.constant 0 : i32
    %c0_i32_1 = arith.constant 0 : i32
    return %c0_i32, %c0_i32_0 : i32, i32
  }
  func.func @transform_3(%arg0: i32) -> (i32, i32) {
    %c0_i32 = arith.constant 0 : i32
    %c0_i32_0 = arith.constant 0 : i32
    return %arg0, %c0_i32 : i32, i32
  }
}

module attributes {stable_mosaic.version = 11 : i64} {
  func.func @kernel(%arg0: i32, %arg1: memref<128x576xbf16, #tpu.memory_space<vmem>>, %arg2: memref<576x128xbf16, #tpu.memory_space<vmem>>, %arg3: memref<8x128xf32, #tpu.memory_space<vmem>>, %arg4: memref<128x128xbf16, #tpu.memory_space<vmem>>, %arg5: memref<128x128xbf16, #tpu.memory_space<vmem>>, %arg6: memref<2x128xf32, #tpu.memory_space<vmem>>, %arg7: memref<128x128xf32, #tpu.memory_space<vmem>>, %arg8: memref<2x128xf32, #tpu.memory_space<vmem>>) attributes {dimension_semantics = [#tpu.dimension_semantics<parallel>], iteration_bounds = array<i64: 1>, scalar_prefetch = 0 : i64, scratch_operands = 0 : i64, tpu.core_type = #tpu.core_type<tc>, window_params = [{transform_indices = @transform_0, window_bounds = array<i64: 128, 576>}, {pipeline_mode = #tpu.pipeline_mode<synchronous>, transform_indices = @transform_1, window_bounds = array<i64: 576, 128>}, {pipeline_mode = #tpu.pipeline_mode<synchronous>, transform_indices = @transform_2, window_bounds = array<i64: 8, 128>}, {transform_indices = @transform_3, window_bounds = array<i64: 128, 128>}, {pipeline_mode = #tpu.pipeline_mode<synchronous>, transform_indices = @transform_4, window_bounds = array<i64: 128, 128>}, {pipeline_mode = #tpu.pipeline_mode<synchronous>, transform_indices = @transform_5, window_bounds = array<i64: 2, 128>}, {pipeline_mode = #tpu.pipeline_mode<synchronous>, transform_indices = @transform_6, window_bounds = array<i64: 128, 128>}, {pipeline_mode = #tpu.pipeline_mode<synchronous>, transform_indices = @transform_7, window_bounds = array<i64: 2, 128>}]} {
    %c0 = arith.constant 0 : index
    %c0_0 = arith.constant 0 : index
    %0 = vector.load %arg3[%c0, %c0_0] : memref<8x128xf32, #tpu.memory_space<vmem>>, vector<8x128xf32>
    %c0_1 = arith.constant 0 : index
    %c0_2 = arith.constant 0 : index
    %1 = vector.load %arg1[%c0_1, %c0_2] : memref<128x576xbf16, #tpu.memory_space<vmem>>, vector<128x576xbf16>
    %c0_3 = arith.constant 0 : index
    %c0_4 = arith.constant 0 : index
    %2 = vector.load %arg2[%c0_3, %c0_4] : memref<576x128xbf16, #tpu.memory_space<vmem>>, vector<576x128xbf16>
    %cst = arith.constant dense<0.000000e+00> : vector<128x128xf32>
    %3 = tpu.matmul %1, %2, %cst {dimension_numbers = #tpu.dot_dimension_numbers<[1], [0], [0], [1], [0, 0, 1, 1], [], []>} : vector<128x576xbf16>, vector<576x128xbf16>, vector<128x128xf32> -> vector<128x128xf32>
    %4 = vector.extract_strided_slice %0 {offsets = [0, 0], sizes = [1, 128], strides = [1, 1]} : vector<8x128xf32> to vector<1x128xf32>
    %5 = vector.broadcast %4 : vector<1x128xf32> to vector<128x128xf32>
    %6 = arith.addf %3, %5 : vector<128x128xf32>
    %c0_5 = arith.constant 0 : index
    %c0_6 = arith.constant 0 : index
    %7 = vector.load %arg4[%c0_5, %c0_6] : memref<128x128xbf16, #tpu.memory_space<vmem>>, vector<128x128xbf16>
    %c0_7 = arith.constant 0 : index
    %c0_8 = arith.constant 0 : index
    %8 = vector.load %arg5[%c0_7, %c0_8] : memref<128x128xbf16, #tpu.memory_space<vmem>>, vector<128x128xbf16>
    %cst_9 = arith.constant dense<0.000000e+00> : vector<128x128xf32>
    %9 = tpu.matmul %7, %8, %cst_9 {dimension_numbers = #tpu.dot_dimension_numbers<[1], [0], [0], [1], [0, 0, 1, 1], [], []>} : vector<128x128xbf16>, vector<128x128xbf16>, vector<128x128xf32> -> vector<128x128xf32>
    %10 = arith.addf %6, %9 : vector<128x128xf32>
    %11 = vector.extract_strided_slice %0 {offsets = [3, 0], sizes = [1, 128], strides = [1, 1]} : vector<8x128xf32> to vector<1x128xf32>
    %12 = vector.broadcast %11 : vector<1x128xf32> to vector<128x128xf32>
    %13 = arith.addf %10, %12 : vector<128x128xf32>
    %14 = vector.extract_strided_slice %0 {offsets = [1, 0], sizes = [1, 128], strides = [1, 1]} : vector<8x128xf32> to vector<1x128xf32>
    %15 = vector.broadcast %14 : vector<1x128xf32> to vector<128x128xf32>
    %16 = arith.mulf %13, %15 : vector<128x128xf32>
    %17 = vector.extract_strided_slice %0 {offsets = [2, 0], sizes = [1, 128], strides = [1, 1]} : vector<8x128xf32> to vector<1x128xf32>
    %18 = vector.broadcast %17 : vector<1x128xf32> to vector<128x128xf32>
    %19 = arith.addf %16, %18 : vector<128x128xf32>
    %cst_10 = arith.constant 0.000000e+00 : f32
    %20 = vector.broadcast %cst_10 : f32 to vector<128x128xf32>
    %21 = arith.maximumf %19, %20 : vector<128x128xf32>
    %c0_11 = arith.constant 0 : index
    %c0_12 = arith.constant 0 : index
    %22 = vector.load %arg6[%c0_11, %c0_12] : memref<2x128xf32, #tpu.memory_space<vmem>>, vector<2x128xf32>
    %cst_13 = arith.constant dense<0.000000e+00> : vector<2x128xf32>
    %23 = tpu.matmul %22, %21, %cst_13 {dimension_numbers = #tpu.dot_dimension_numbers<[1], [0], [0], [1], [0, 0, 1, 1], [], []>} : vector<2x128xf32>, vector<128x128xf32>, vector<2x128xf32> -> vector<2x128xf32>
    %c0_14 = arith.constant 0 : index
    %c0_15 = arith.constant 0 : index
    %24 = vector.load %arg7[%c0_14, %c0_15] : memref<128x128xf32, #tpu.memory_space<vmem>>, vector<128x128xf32>
    %cst_16 = arith.constant dense<0.000000e+00> : vector<2x128xf32>
    %25 = tpu.matmul %23, %24, %cst_16 {dimension_numbers = #tpu.dot_dimension_numbers<[1], [0], [0], [1], [0, 0, 1, 1], [], []>} : vector<2x128xf32>, vector<128x128xf32>, vector<2x128xf32> -> vector<2x128xf32>
    %26 = vector.extract_strided_slice %0 {offsets = [4, 0], sizes = [1, 128], strides = [1, 1]} : vector<8x128xf32> to vector<1x128xf32>
    %27 = vector.broadcast %26 : vector<1x128xf32> to vector<2x128xf32>
    %28 = arith.addf %25, %27 : vector<2x128xf32>
    %c0_17 = arith.constant 0 : index
    %c0_18 = arith.constant 0 : index
    %29 = vector.load %arg8[%c0_17, %c0_18] : memref<2x128xf32, #tpu.memory_space<vmem>>, vector<2x128xf32>
    tpu.vector_store %arg8[%c0_17, %c0_18], %28 {strides = array<i32>} : memref<2x128xf32, #tpu.memory_space<vmem>>, vector<2x128xf32>,
    return
  }
  func.func @transform_0(%arg0: i32) -> (i32, i32) {
    %c0_i32 = arith.constant 0 : i32
    %c0_i32_0 = arith.constant 0 : i32
    return %arg0, %c0_i32 : i32, i32
  }
  func.func @transform_1(%arg0: i32) -> (i32, i32) {
    %c0_i32 = arith.constant 0 : i32
    %c0_i32_0 = arith.constant 0 : i32
    %c0_i32_1 = arith.constant 0 : i32
    return %c0_i32, %c0_i32_0 : i32, i32
  }
  func.func @transform_2(%arg0: i32) -> (i32, i32) {
    %c0_i32 = arith.constant 0 : i32
    %c0_i32_0 = arith.constant 0 : i32
    %c0_i32_1 = arith.constant 0 : i32
    return %c0_i32, %c0_i32_0 : i32, i32
  }
  func.func @transform_3(%arg0: i32) -> (i32, i32) {
    %c0_i32 = arith.constant 0 : i32
    %c0_i32_0 = arith.constant 0 : i32
    return %arg0, %c0_i32 : i32, i32
  }
  func.func @transform_4(%arg0: i32) -> (i32, i32) {
    %c0_i32 = arith.constant 0 : i32
    %c0_i32_0 = arith.constant 0 : i32
    %c0_i32_1 = arith.constant 0 : i32
    return %c0_i32, %c0_i32_0 : i32, i32
  }
  func.func @transform_5(%arg0: i32) -> (i32, i32) {
    %c0_i32 = arith.constant 0 : i32
    %c0_i32_0 = arith.constant 0 : i32
    %c0_i32_1 = arith.constant 0 : i32
    return %c0_i32, %c0_i32_0 : i32, i32
  }
  func.func @transform_6(%arg0: i32) -> (i32, i32) {
    %c0_i32 = arith.constant 0 : i32
    %c0_i32_0 = arith.constant 0 : i32
    %c0_i32_1 = arith.constant 0 : i32
    return %c0_i32, %c0_i32_0 : i32, i32
  }
  func.func @transform_7(%arg0: i32) -> (i32, i32) {
    %c0_i32 = arith.constant 0 : i32
    %c0_i32_0 = arith.constant 0 : i32
    %c0_i32_1 = arith.constant 0 : i32
    return %c0_i32, %c0_i32_0 : i32, i32
  }
}

</mosaic_0001>

<bundles_post_ra>
// kernel: _lambda_.7
= control target key start
LH: loop header
LB: loop body
LE: loop exit
PB: predicated region body
PF: predicated region fallthrough
CT: control target
= control target key end

     0   :  { %s4923_s15 = smov 0   ;;  %s5861_s0 = inlined_call_operand.vmem [shape: bf16[2048,27], index: 0, kind: input, shape index: {}]   ;;  %s5862_s1 = inlined_call_operand.vmem [shape: bf16[27,128], index: 1, kind: input, shape index: {}]   ;;  %s5863_s2 = inlined_call_operand.vmem [shape: f32[8,128], index: 2, kind: input, shape index: {}]   ;;  %s5864_s3 = inlined_call_operand.vmem [shape: bf16[2048,128], index: 3, kind: output, shape index: {0}]   ;;  %s5865_s4 = inlined_call_operand.vmem [shape: bf16[2048,128], index: 4, kind: output, shape index: {1}]  }
   0x1 LB: > { %s3191_s16 = sadd.s32 4294967295, %s4895_s15   ;;  %p3195_p0 = scmp.ge.s32.totalorder %s4895_s15, 1  ;;  %s4895_s15 = sphi %s4923_s15, %s15_s15  }
   0x2   : > { %p166_p1 = scmp.lt.s32.totalorder %s4895_s15, 3 }
   0x4   : > { %p167_p2 = pnand %p3195_p0, %p166_p1 }
   0x5   : > { %v4823_v0 = vld [vmem:[%s5862_s1] sm:$0xff] (!%p167_p2)   ;;  %vm877_vm0 = vcmask (!%p167_p2), 1044480   ;;  %v4824_v1 = vld [vmem:[%s5862_s1 + $0x8] sm:$0x3f] (!%p167_p2)   ;;  %vm878_vm1 = vcmask (!%p167_p2), 1045504   ;;  %s3196_s21 = sshll.u32 (!%p167_p2), %s3191_s16, 7 }
   0x6   : > { %170 = sbr.rel (%p167_p2) target bundleno = 398 (0x18e), region = 32  ;;  %4678 = vmatprep.subr.bf16.mxu0 (!%p167_p2), %v4823_v0  ;;  %4810 = vmatprep.subr.bf16.mxu1 (!%p167_p2), %v4823_v0  ;;  %v4897_v2 = vmov (!%p167_p2), 65535   ;;  %p198_p3 = scmp.lt.s32.totalorder (!%p167_p2), %s3196_s21, 255  ;;  %vm684_vm2 = vcmask (!%p167_p2), 220160  }
   0x7   : > { %4679 = vmatpush3.bf16.msra.mxu0 (!%p167_p2), %v4823_v0  ;;  %4812 = vmatpush3.bf16.msra.mxu1 (!%p167_p2), %v4823_v0  ;;  %v879_v3 = vsel (!%p167_p2), %vm877_vm0, 4294967295, %v4897_v2 }
   0x8   : > { %v880_v4 = vsel (!%p167_p2), %vm878_vm1, %v879_v3, 0 }
   0x9   : > { %v882_v5 = vand.u32 (!%p167_p2), %v4824_v1, %v880_v4 }
   0xb   : > { %4680 = vmatprep.subr.bf16.mxu0 (!%p167_p2), %v882_v5  ;;  %4811 = vmatprep.subr.bf16.mxu1 (!%p167_p2), %v882_v5 }
   0xc   : > { %4681 = vmatpush3.bf16.msra.mxu0 (!%p167_p2), %v882_v5  ;;  %4813 = vmatpush3.bf16.msra.mxu1 (!%p167_p2), %v882_v5 }
   0xd   : > { %s5867_s21 = smov (!%p198_p3, %s3196_s21), 255 }
   0xe   : > { %s4937_s22 = sshll.u32 %s5867_s21, 2 }
   0xf   : > { %s4943_s25 = scalar_lea.vmem %s5861_s0, %s4937_s22  ;;  %s5094_s30 = scalar_lea.vmem %s5864_s3, %s4937_s22 }
  0x10   : > { %v4825_v6 = vld [vmem:[%s4943_s25] sm:$0xff]   ;;  %v4827_v8 = vld [vmem:[%s4943_s25 + $0x8] sm:$0xff]   ;;  %v4829_v10 = vld [vmem:[%s4943_s25 + $0x10] sm:$0xff]   ;;  %s5117_s7 = scalar_lea.vmem %s5865_s4, %s4937_s22 }
  0x11   : > { %v4826_v7 = vld [vmem:[%s4943_s25 + $0x100] sm:$0xff]   ;;  %4682 = vmatprep.mubr.msk.bf16.mxu0 %vm684_vm2, %v4825_v6  ;;  %v4828_v9 = vld [vmem:[%s4943_s25 + $0x108] sm:$0xff]   ;;  %v4830_v11 = vld [vmem:[%s4943_s25 + $0x110] sm:$0xff]   ;;  %v349_v6 = vlaneseq }
  0x12   : > { %4746 = vmatprep.mubr.msk.bf16.mxu1 %vm684_vm2, %v4826_v7  ;;  %4683 = vmatmul.mubr.msk.bf16.vlgmr.msra.gmra.mrb[0].mxu0 %vm684_vm2, %v4827_v8  ;;  %v4831_v12 = vld [vmem:[%s4943_s25 + $0x18] sm:$0xff]   ;;  %v4833_v14 = vld [vmem:[%s4943_s25 + $0x20] sm:$0xff]   ;;  %v4835_v16 = vld [vmem:[%s4943_s25 + $0x28] sm:$0xff]  }
  0x13   : > { %4747 = vmatmul.mubr.msk.bf16.vlgmr.msra.gmra.mrb[0].mxu1 %vm684_vm2, %v4828_v9  ;;  %4686 = vmatprep.mubr.msk.bf16.mxu0 %vm684_vm2, %v4829_v10  ;;  %v4832_v13 = vld [vmem:[%s4943_s25 + $0x118] sm:$0xff]   ;;  %v4834_v15 = vld [vmem:[%s4943_s25 + $0x120] sm:$0xff]   ;;  %v4836_v17 = vld [vmem:[%s4943_s25 + $0x128] sm:$0xff]   ;;  %v350_v7 = vshrl.u32 %v349_v6, 7 }
  0x14   : > { %4750 = vmatprep.mubr.msk.bf16.mxu1 %vm684_vm2, %v4830_v11  ;;  %v4837_v18 = vld [vmem:[%s4943_s25 + $0x30] sm:$0xff]   ;;  %v4839_v20 = vld [vmem:[%s4943_s25 + $0x38] sm:$0xff]   ;;  %v4841_v22 = vld [vmem:[%s4943_s25 + $0x40] sm:$0xff]  }
  0x15   : > { %v4838_v19 = vld [vmem:[%s4943_s25 + $0x130] sm:$0xff]   ;;  %v4840_v21 = vld [vmem:[%s4943_s25 + $0x138] sm:$0xff]   ;;  %v4842_v23 = vld [vmem:[%s4943_s25 + $0x140] sm:$0xff]   ;;  %v351_v8 = vsub.s32 0, %v350_v7  ;;  %v2071_v10 = vsub.s32 1, %v350_v7 }
  0x16   : > { %v4843_v24 = vld [vmem:[%s4943_s25 + $0x48] sm:$0xff]   ;;  %v4845_v26 = vld [vmem:[%s4943_s25 + $0x50] sm:$0xff]   ;;  %v4847_v28 = vld [vmem:[%s4943_s25 + $0x58] sm:$0xff]  }
  0x17   : > { %v4844_v25 = vld [vmem:[%s4943_s25 + $0x148] sm:$0xff]   ;;  %v4846_v27 = vld [vmem:[%s4943_s25 + $0x150] sm:$0xff]   ;;  %v4848_v29 = vld [vmem:[%s4943_s25 + $0x158] sm:$0xff]  }
  0x18   : > { %v4849_v30 = vld [vmem:[%s4943_s25 + $0x60] sm:$0xff]   ;;  %v4851_v32 = vld [vmem:[%s4943_s25 + $0x68] sm:$0xff]   ;;  %v4853_v34 = vld [vmem:[%s4943_s25 + $0x70] sm:$0xff]  }
  0x19   : > { %v4850_v31 = vld [vmem:[%s4943_s25 + $0x160] sm:$0xff]   ;;  %v4852_v33 = vld [vmem:[%s4943_s25 + $0x168] sm:$0xff]   ;;  %v4854_v35 = vld [vmem:[%s4943_s25 + $0x170] sm:$0xff]  }
  0x1a   : > { %4687 = vmatmul.mubr.msk.bf16.gmra.mrb[4].mxu0 %vm684_vm2, %v4831_v12  ;;  %v4855_v36 = vld [vmem:[%s4943_s25 + $0x78] sm:$0xff]   ;;  %v4857_v38 = vld [vmem:[%s4943_s25 + $0x80] sm:$0xff]   ;;  %v4859_v40 = vld [vmem:[%s4943_s25 + $0x88] sm:$0xff]   ;;  %v2203_v12 = vsub.s32 2, %v350_v7 }
  0x1b   : > { %4751 = vmatmul.mubr.msk.bf16.gmra.mrb[4].mxu1 %vm684_vm2, %v4832_v13  ;;  %4690 = vmatprep.mubr.msk.bf16.mxu0 %vm684_vm2, %v4833_v14  ;;  %v4856_v37 = vld [vmem:[%s4943_s25 + $0x178] sm:$0xff]   ;;  %v4858_v39 = vld [vmem:[%s4943_s25 + $0x180] sm:$0xff]   ;;  %v4860_v41 = vld [vmem:[%s4943_s25 + $0x188] sm:$0xff]  }
  0x1c   : > { %4754 = vmatprep.mubr.msk.bf16.mxu1 %vm684_vm2, %v4834_v15  ;;  %v4861_v42 = vld [vmem:[%s4943_s25 + $0x90] sm:$0xff]   ;;  %v4863_v44 = vld [vmem:[%s4943_s25 + $0x98] sm:$0xff]   ;;  %v4865_v46 = vld [vmem:[%s4943_s25 + $0xa0] sm:$0xff]  }
  0x1d   : > { %v4862_v43 = vld [vmem:[%s4943_s25 + $0x190] sm:$0xff]   ;;  %v4864_v45 = vld [vmem:[%s4943_s25 + $0x198] sm:$0xff]   ;;  %v4866_v47 = vld [vmem:[%s4943_s25 + $0x1a0] sm:$0xff]  }
  0x1e   : > { %v4867_v48 = vld [vmem:[%s4943_s25 + $0xa8] sm:$0xff]   ;;  %v4869_v50 = vld [vmem:[%s4943_s25 + $0xb0] sm:$0xff]   ;;  %v4871_v52 = vld [vmem:[%s4943_s25 + $0xb8] sm:$0xff]  }
  0x1f   : > { %v4868_v49 = vld [vmem:[%s4943_s25 + $0x1a8] sm:$0xff]   ;;  %v4870_v51 = vld [vmem:[%s4943_s25 + $0x1b0] sm:$0xff]   ;;  %v4872_v53 = vld [vmem:[%s4943_s25 + $0x1b8] sm:$0xff]  }
  0x20   : > { %v4873_v54 = vld [vmem:[%s4943_s25 + $0xc0] sm:$0xff]   ;;  %v4875_v56 = vld [vmem:[%s4943_s25 + $0xc8] sm:$0xff]   ;;  %v4877_v58 = vld [vmem:[%s4943_s25 + $0xd0] sm:$0xff]  }
  0x21   : > { %v4874_v55 = vld [vmem:[%s4943_s25 + $0x1c0] sm:$0xff]   ;;  %v4876_v57 = vld [vmem:[%s4943_s25 + $0x1c8] sm:$0xff]   ;;  %v4878_v59 = vld [vmem:[%s4943_s25 + $0x1d0] sm:$0xff]  }
  0x22   : > { %4691 = vmatmul.mubr.msk.bf16.gmra.mrb[8].mxu0 %vm684_vm2, %v4835_v16  ;;  %v4879_v60 = vld [vmem:[%s4943_s25 + $0xd8] sm:$0xff]   ;;  %v4881_v62 = vld [vmem:[%s4943_s25 + $0xe0] sm:$0xff]   ;;  %v4883_v0 = vld [vmem:[%s4943_s25 + $0xe8] sm:$0xff]  }
  0x23   : > { %4755 = vmatmul.mubr.msk.bf16.gmra.mrb[8].mxu1 %vm684_vm2, %v4836_v17  ;;  %4694 = vmatprep.mubr.msk.bf16.mxu0 %vm684_vm2, %v4837_v18  ;;  %v4880_v61 = vld [vmem:[%s4943_s25 + $0x1d8] sm:$0xff]   ;;  %v4882_v63 = vld [vmem:[%s4943_s25 + $0x1e0] sm:$0xff]   ;;  %v4884_v1 = vld [vmem:[%s4943_s25 + $0x1e8] sm:$0xff]  }
  0x24   : > { %4758 = vmatprep.mubr.msk.bf16.mxu1 %vm684_vm2, %v4838_v19  ;;  %v4885_v2 = vld [vmem:[%s4943_s25 + $0xf0] sm:$0xff]   ;;  %v4887_v4 = vld [vmem:[%s4943_s25 + $0xf8] sm:$0xff]   ;;  %v216_v9 = vld [vmem:[%s5863_s2] sm:$0xff] }
  0x25   : > { %v4886_v3 = vld [vmem:[%s4943_s25 + $0x1f0] sm:$0xff]   ;;  %v4888_v5 = vld [vmem:[%s4943_s25 + $0x1f8] sm:$0xff]   ;;  %v5076_v11 = vrot.slane %v216_v9, %v351_v8  ;;  %v5078_v13 = vrot.slane %v216_v9, %v2071_v10  ;;  %v5081_v16 = vrot.slane %v216_v9, %v2203_v12 }
  0x2a   : > { %4695 = vmatmul.mubr.msk.bf16.gmra.mrb[12].mxu0 %vm684_vm2, %v4839_v20 }
  0x2b   : > { %4759 = vmatmul.mubr.msk.bf16.gmra.mrb[12].mxu1 %vm684_vm2, %v4840_v21  ;;  %4698 = vmatprep.mubr.msk.bf16.mxu0 %vm684_vm2, %v4841_v22 }
  0x2c   : > { %4762 = vmatprep.mubr.msk.bf16.mxu1 %vm684_vm2, %v4842_v23 }
  0x32   : > { %4699 = vmatmul.mubr.msk.bf16.gmra.mrb[16].mxu0 %vm684_vm2, %v4843_v24 }
  0x33   : > { %4763 = vmatmul.mubr.msk.bf16.gmra.mrb[16].mxu1 %vm684_vm2, %v4844_v25  ;;  %4702 = vmatprep.mubr.msk.bf16.mxu0 %vm684_vm2, %v4845_v26 }
  0x34   : > { %4766 = vmatprep.mubr.msk.bf16.mxu1 %vm684_vm2, %v4846_v27 }
  0x3a   : > { %4703 = vmatmul.mubr.msk.bf16.gmra.mrb[20].mxu0 %vm684_vm2, %v4847_v28 }
  0x3b   : > { %4767 = vmatmul.mubr.msk.bf16.gmra.mrb[20].mxu1 %vm684_vm2, %v4848_v29  ;;  %4706 = vmatprep.mubr.msk.bf16.mxu0 %vm684_vm2, %v4849_v30 }
  0x3c   : > { %4770 = vmatprep.mubr.msk.bf16.mxu1 %vm684_vm2, %v4850_v31 }
  0x42   : > { %4707 = vmatmul.mubr.msk.bf16.gmra.mrb[24].mxu0 %vm684_vm2, %v4851_v32 }
  0x43   : > { %4771 = vmatmul.mubr.msk.bf16.gmra.mrb[24].mxu1 %vm684_vm2, %v4852_v33  ;;  %4710 = vmatprep.mubr.msk.bf16.mxu0 %vm684_vm2, %v4853_v34 }
  0x44   : > { %4774 = vmatprep.mubr.msk.bf16.mxu1 %vm684_vm2, %v4854_v35 }
  0x4a   : > { %4711 = vmatmul.mubr.msk.bf16.gmra.mrb[28].mxu0 %vm684_vm2, %v4855_v36 }
  0x4b   : > { %4775 = vmatmul.mubr.msk.bf16.gmra.mrb[28].mxu1 %vm684_vm2, %v4856_v37  ;;  %4714 = vmatprep.mubr.msk.bf16.mxu0 %vm684_vm2, %v4857_v38 }
  0x4c   : > { %4778 = vmatprep.mubr.msk.bf16.mxu1 %vm684_vm2, %v4858_v39 }
  0x52   : > { %4715 = vmatmul.mubr.msk.bf16.gmra.mrb[32].mxu0 %vm684_vm2, %v4859_v40 }
  0x53   : > { %4779 = vmatmul.mubr.msk.bf16.gmra.mrb[32].mxu1 %vm684_vm2, %v4860_v41  ;;  %4718 = vmatprep.mubr.msk.bf16.mxu0 %vm684_vm2, %v4861_v42 }
  0x54   : > { %4782 = vmatprep.mubr.msk.bf16.mxu1 %vm684_vm2, %v4862_v43 }
  0x5a   : > { %4719 = vmatmul.mubr.msk.bf16.gmra.mrb[36].mxu0 %vm684_vm2, %v4863_v44 }
  0x5b   : > { %4783 = vmatmul.mubr.msk.bf16.gmra.mrb[36].mxu1 %vm684_vm2, %v4864_v45  ;;  %4722 = vmatprep.mubr.msk.bf16.mxu0 %vm684_vm2, %v4865_v46 }
  0x5c   : > { %4786 = vmatprep.mubr.msk.bf16.mxu1 %vm684_vm2, %v4866_v47 }
  0x62   : > { %4723 = vmatmul.mubr.msk.bf16.gmra.mrb[40].mxu0 %vm684_vm2, %v4867_v48 }
  0x63   : > { %4787 = vmatmul.mubr.msk.bf16.gmra.mrb[40].mxu1 %vm684_vm2, %v4868_v49  ;;  %4726 = vmatprep.mubr.msk.bf16.mxu0 %vm684_vm2, %v4869_v50 }
  0x64   : > { %4790 = vmatprep.mubr.msk.bf16.mxu1 %vm684_vm2, %v4870_v51 }
  0x6a   : > { %4727 = vmatmul.mubr.msk.bf16.gmra.mrb[44].mxu0 %vm684_vm2, %v4871_v52 }
  0x6b   : > { %4791 = vmatmul.mubr.msk.bf16.gmra.mrb[44].mxu1 %vm684_vm2, %v4872_v53  ;;  %4730 = vmatprep.mubr.msk.bf16.mxu0 %vm684_vm2, %v4873_v54 }
  0x6c   : > { %4794 = vmatprep.mubr.msk.bf16.mxu1 %vm684_vm2, %v4874_v55 }
  0x72   : > { %4731 = vmatmul.mubr.msk.bf16.gmra.mrb[48].mxu0 %vm684_vm2, %v4875_v56 }
  0x73   : > { %4795 = vmatmul.mubr.msk.bf16.gmra.mrb[48].mxu1 %vm684_vm2, %v4876_v57  ;;  %4734 = vmatprep.mubr.msk.bf16.mxu0 %vm684_vm2, %v4877_v58 }
  0x74   : > { %4798 = vmatprep.mubr.msk.bf16.mxu1 %vm684_vm2, %v4878_v59 }
  0x7a   : > { %4735 = vmatmul.mubr.msk.bf16.gmra.mrb[52].mxu0 %vm684_vm2, %v4879_v60 }
  0x7b   : > { %4799 = vmatmul.mubr.msk.bf16.gmra.mrb[52].mxu1 %vm684_vm2, %v4880_v61  ;;  %4738 = vmatprep.mubr.msk.bf16.mxu0 %vm684_vm2, %v4881_v62 }
  0x7c   : > { %4802 = vmatprep.mubr.msk.bf16.mxu1 %vm684_vm2, %v4882_v63 }
  0x82   : > { %4739 = vmatmul.mubr.msk.bf16.gmra.mrb[56].mxu0 %vm684_vm2, %v4883_v0 }
  0x83   : > { %4803 = vmatmul.mubr.msk.bf16.gmra.mrb[56].mxu1 %vm684_vm2, %v4884_v1  ;;  %4742 = vmatprep.mubr.msk.bf16.mxu0 %vm684_vm2, %v4885_v2 }
  0x84   : > { %4806 = vmatprep.mubr.msk.bf16.mxu1 %vm684_vm2, %v4886_v3 }
  0x8a   : > { %4743 = vmatmul.mubr.msk.bf16.gmra.mrb[60].mxu0 %vm684_vm2, %v4887_v4 }
  0x8b   : > { %4807 = vmatmul.mubr.msk.bf16.gmra.mrb[60].mxu1 %vm684_vm2, %v4888_v5 }
  0xe5   : > { %v4684_v14 = vpop.f32.mrb[0].mxu0 }
  0xe6   : > { %v927_v15 = vadd.f32 %v4684_v14, %v5076_v11  ;;  %v4748_v17 = vpop.f32.mrb[0].mxu1  ;;  %v918_v18 = vpop.f32.mrb[1].mxu0 }
  0xe7   : > { %v1183_v19 = vadd.f32 %v4748_v17, %v5076_v11  ;;  %v919_v20 = vadd.f32 %v918_v18, %v5076_v11  ;;  %v1174_v21 = vpop.f32.mrb[1].mxu1  ;;  %v4685_v22 = vpop.f32.mrb[2].mxu0 }
  0xe8   : > { %v2075_v23 = vmul.f32 %v5078_v13, %v927_v15  ;;  %v1175_v24 = vadd.f32 %v1174_v21, %v5076_v11  ;;  %v930_v25 = vadd.f32 %v4685_v22, %v5076_v11  ;;  %v4749_v26 = vpop.f32.mrb[2].mxu1  ;;  %v921_v27 = vpop.f32.mrb[3].mxu0 }
  0xe9   : > { %v2139_v28 = vmul.f32 %v5078_v13, %v1183_v19  ;;  %v2073_v29 = vmul.f32 %v5078_v13, %v919_v20  ;;  %v1186_v30 = vadd.f32 %v4749_v26, %v5076_v11  ;;  %v922_v31 = vadd.f32 %v921_v27, %v5076_v11  ;;  %v1177_v32 = vpop.f32.mrb[3].mxu1 }
  0xea   : > { %v2207_v33 = vadd.f32 %v5081_v16, %v2075_v23  ;;  %v2137_v34 = vmul.f32 %v5078_v13, %v1175_v24  ;;  %v3854_v35 = vpack.c.bf16 %v930_v25, %v927_v15  ;;  %v2076_v36 = vmul.f32 %v5078_v13, %v930_v25 }
  0xeb   : > { %v2271_v37 = vadd.f32 %v5081_v16, %v2139_v28  ;;  %v2205_v38 = vadd.f32 %v5081_v16, %v2073_v29  ;;  %v4014_v39 = vpack.c.bf16 %v1186_v30, %v1183_v19  ;;  %v2140_v40 = vmul.f32 %v5078_v13, %v1186_v30 }
  0xec   : > { %v2335_v41 = vmax.f32 %v2207_v33, 0.0  ;;  %4486 = vst [vmem:[%s5094_s30 + $0x8] sm:$0xff] %v3854_v35   ;;  %v2208_v42 = vadd.f32 %v5081_v16, %v2076_v36  ;;  %v3849_v43 = vpack.c.bf16 %v922_v31, %v919_v20  ;;  %v2269_v45 = vadd.f32 %v5081_v16, %v2137_v34 }
  0xed   : > { %v2399_v44 = vmax.f32 %v2271_v37, 0.0  ;;  %4518 = vst [vmem:[%s5094_s30 + $0x108] sm:$0xff] %v4014_v39   ;;  %v2272_v46 = vadd.f32 %v5081_v16, %v2140_v40  ;;  %v2074_v47 = vmul.f32 %v5078_v13, %v922_v31  ;;  %v4688_v48 = vpop.f32.mrb[4].mxu0  ;;  %v2333_v49 = vmax.f32 %v2205_v38, 0.0 }
  0xee   : > { %v2336_v50 = vmax.f32 %v2208_v42, 0.0  ;;  %3850 = vst [vmem:[%s5094_s30] sm:$0xff] %v3849_v43   ;;  %v1178_v51 = vadd.f32 %v1177_v32, %v5076_v11  ;;  %v943_v52 = vadd.f32 %v4688_v48, %v5076_v11  ;;  %v4752_v53 = vpop.f32.mrb[4].mxu1  ;;  %v934_v54 = vpop.f32.mrb[5].mxu0  ;;  %v2397_v19 = vmax.f32 %v2269_v45, 0.0 }
  0xef   : > { %v2400_v55 = vmax.f32 %v2272_v46, 0.0  ;;  %v2206_v56 = vadd.f32 %v5081_v16, %v2074_v47  ;;  %v1199_v57 = vadd.f32 %v4752_v53, %v5076_v11  ;;  %v935_v58 = vadd.f32 %v934_v54, %v5076_v11  ;;  %v1190_v59 = vpop.f32.mrb[5].mxu1  ;;  %v4689_v60 = vpop.f32.mrb[6].mxu0 }
  0xf0   : > { %v4174_v61 = vpack.c.bf16 %v2336_v50, %v2335_v41  ;;  %v4009_v62 = vpack.c.bf16 %v1178_v51, %v1175_v24  ;;  %v2138_v63 = vmul.f32 %v5078_v13, %v1178_v51  ;;  %v2079_v0 = vmul.f32 %v5078_v13, %v943_v52  ;;  %v4753_v1 = vpop.f32.mrb[6].mxu1  ;;  %v937_v2 = vpop.f32.mrb[7].mxu0 }
  0xf1   : > { %v4334_v3 = vpack.c.bf16 %v2400_v55, %v2399_v44  ;;  %v2334_v4 = vmax.f32 %v2206_v56, 0.0  ;;  %v2143_v5 = vmul.f32 %v5078_v13, %v1199_v57  ;;  %v2077_v6 = vmul.f32 %v5078_v13, %v935_v58  ;;  %v1193_v7 = vpop.f32.mrb[7].mxu1 }
  0xf2   : > { %4549 = vst [vmem:[%s5117_s7 + $0x8] sm:$0xff] %v4174_v61   ;;  %4517 = vst [vmem:[%s5094_s30 + $0x100] sm:$0xff] %v4009_v62   ;;  %v2270_v8 = vadd.f32 %v5081_v16, %v2138_v63  ;;  %v2211_v9 = vadd.f32 %v5081_v16, %v2079_v0  ;;  %v1191_v10 = vadd.f32 %v1190_v59, %v5076_v11 }
  0xf3   : > { %v946_v12 = vadd.f32 %v4689_v60, %v5076_v11  ;;  %4581 = vst [vmem:[%s5117_s7 + $0x108] sm:$0xff] %v4334_v3   ;;  %v4169_v14 = vpack.c.bf16 %v2334_v4, %v2333_v49  ;;  %v2275_v15 = vadd.f32 %v5081_v16, %v2143_v5  ;;  %v2209_v17 = vadd.f32 %v5081_v16, %v2077_v6 }
  0xf4   : > { %v1202_v18 = vadd.f32 %v4753_v1, %v5076_v11  ;;  %v2398_v20 = vmax.f32 %v2270_v8, 0.0  ;;  %v2141_v21 = vmul.f32 %v5078_v13, %v1191_v10  ;;  %v2339_v23 = vmax.f32 %v2211_v9, 0.0 }
  0xf5   : > { %v3864_v22 = vpack.c.bf16 %v946_v12, %v943_v52  ;;  %4170 = vst [vmem:[%s5117_s7] sm:$0xff] %v4169_v14   ;;  %v2403_v24 = vmax.f32 %v2275_v15, 0.0  ;;  %v2080_v25 = vmul.f32 %v5078_v13, %v946_v12  ;;  %v4692_v27 = vpop.f32.mrb[8].mxu0  ;;  %v2337_v29 = vmax.f32 %v2209_v17, 0.0 }
  0xf6   : > { %v4024_v26 = vpack.c.bf16 %v1202_v18, %v1199_v57  ;;  %v4329_v28 = vpack.c.bf16 %v2398_v20, %v2397_v19  ;;  %v2144_v30 = vmul.f32 %v5078_v13, %v1202_v18  ;;  %v938_v31 = vadd.f32 %v937_v2, %v5076_v11  ;;  %v4756_v32 = vpop.f32.mrb[8].mxu1  ;;  %v950_v33 = vpop.f32.mrb[9].mxu0 }
  0xf7   : > { %4488 = vst [vmem:[%s5094_s30 + $0x18] sm:$0xff] %v3864_v22   ;;  %v2212_v34 = vadd.f32 %v5081_v16, %v2080_v25  ;;  %v1194_v35 = vadd.f32 %v1193_v7, %v5076_v11  ;;  %v959_v36 = vadd.f32 %v4692_v27, %v5076_v11  ;;  %v1215_v37 = vadd.f32 %v4756_v32, %v5076_v11  ;;  %v1206_v38 = vpop.f32.mrb[9].mxu1  ;;  %v4693_v39 = vpop.f32.mrb[10].mxu0 }
  0xf8   : > { %4520 = vst [vmem:[%s5094_s30 + $0x118] sm:$0xff] %v4024_v26   ;;  %4580 = vst [vmem:[%s5117_s7 + $0x100] sm:$0xff] %v4329_v28   ;;  %v2273_v40 = vadd.f32 %v5081_v16, %v2141_v21  ;;  %v2276_v41 = vadd.f32 %v5081_v16, %v2144_v30  ;;  %v3859_v42 = vpack.c.bf16 %v938_v31, %v935_v58  ;;  %v4757_v44 = vpop.f32.mrb[10].mxu1  ;;  %v953_v45 = vpop.f32.mrb[11].mxu0 }
  0xf9   : > { %v2078_v43 = vmul.f32 %v5078_v13, %v938_v31  ;;  %v2340_v46 = vmax.f32 %v2212_v34, 0.0  ;;  %v4019_v47 = vpack.c.bf16 %v1194_v35, %v1191_v10  ;;  %v2142_v48 = vmul.f32 %v5078_v13, %v1194_v35  ;;  %v1209_v50 = vpop.f32.mrb[11].mxu1 }
  0xfa   : > { %v2083_v49 = vmul.f32 %v5078_v13, %v959_v36  ;;  %v2404_v51 = vmax.f32 %v2276_v41, 0.0  ;;  %4487 = vst [vmem:[%s5094_s30 + $0x10] sm:$0xff] %v3859_v42   ;;  %v2147_v53 = vmul.f32 %v5078_v13, %v1215_v37  ;;  %v951_v54 = vadd.f32 %v950_v33, %v5076_v11 }
  0xfb   : > { %v2210_v52 = vadd.f32 %v5081_v16, %v2078_v43  ;;  %v4184_v55 = vpack.c.bf16 %v2340_v46, %v2339_v23  ;;  %4519 = vst [vmem:[%s5094_s30 + $0x110] sm:$0xff] %v4019_v47   ;;  %v2274_v56 = vadd.f32 %v5081_v16, %v2142_v48  ;;  %v1207_v58 = vadd.f32 %v1206_v38, %v5076_v11 }
  0xfc   : > { %v2215_v57 = vadd.f32 %v5081_v16, %v2083_v49  ;;  %v4344_v59 = vpack.c.bf16 %v2404_v51, %v2403_v24  ;;  %v2279_v61 = vadd.f32 %v5081_v16, %v2147_v53  ;;  %v2081_v62 = vmul.f32 %v5078_v13, %v951_v54 }
  0xfd   : > { %v2338_v60 = vmax.f32 %v2210_v52, 0.0  ;;  %v2401_v63 = vmax.f32 %v2273_v40, 0.0  ;;  %4551 = vst [vmem:[%s5117_s7 + $0x18] sm:$0xff] %v4184_v55   ;;  %v2402_v0 = vmax.f32 %v2274_v56, 0.0  ;;  %v2145_v1 = vmul.f32 %v5078_v13, %v1207_v58  ;;  %v4696_v3 = vpop.f32.mrb[12].mxu0 }
  0xfe   : > { %v962_v2 = vadd.f32 %v4693_v39, %v5076_v11  ;;  %4583 = vst [vmem:[%s5117_s7 + $0x118] sm:$0xff] %v4344_v59   ;;  %v2343_v5 = vmax.f32 %v2215_v57, 0.0  ;;  %v2213_v6 = vadd.f32 %v5081_v16, %v2081_v62  ;;  %v1218_v7 = vadd.f32 %v4757_v44, %v5076_v11  ;;  %v4760_v8 = vpop.f32.mrb[12].mxu1  ;;  %v966_v9 = vpop.f32.mrb[13].mxu0 }
  0xff   : > { %v4179_v4 = vpack.c.bf16 %v2338_v60, %v2337_v29  ;;  %v4339_v10 = vpack.c.bf16 %v2402_v0, %v2401_v63  ;;  %v2407_v12 = vmax.f32 %v2279_v61, 0.0  ;;  %v1222_v17 = vpop.f32.mrb[13].mxu1  ;;  %v4697_v18 = vpop.f32.mrb[14].mxu0  ;;  %v2277_v19 = vadd.f32 %v5081_v16, %v2145_v1 }
 0x100   : > { %v3874_v14 = vpack.c.bf16 %v962_v2, %v959_v36  ;;  %v2084_v15 = vmul.f32 %v5078_v13, %v962_v2  ;;  %v4034_v20 = vpack.c.bf16 %v1218_v7, %v1215_v37  ;;  %v2148_v21 = vmul.f32 %v5078_v13, %v1218_v7  ;;  %v4761_v23 = vpop.f32.mrb[14].mxu1  ;;  %v969_v24 = vpop.f32.mrb[15].mxu0 }
 0x101   : > { %4550 = vst [vmem:[%s5117_s7 + $0x10] sm:$0xff] %v4179_v4   ;;  %v954_v22 = vadd.f32 %v953_v45, %v5076_v11  ;;  %4582 = vst [vmem:[%s5117_s7 + $0x110] sm:$0xff] %v4339_v10   ;;  %v2341_v25 = vmax.f32 %v2213_v6, 0.0  ;;  %v1210_v27 = vadd.f32 %v1209_v50, %v5076_v11  ;;  %v975_v28 = vadd.f32 %v4696_v3, %v5076_v11  ;;  %v1225_v29 = vpop.f32.mrb[15].mxu1 }
 0x102   : > { %4490 = vst [vmem:[%s5094_s30 + $0x28] sm:$0xff] %v3874_v14   ;;  %v2216_v26 = vadd.f32 %v5081_v16, %v2084_v15  ;;  %4522 = vst [vmem:[%s5094_s30 + $0x128] sm:$0xff] %v4034_v20   ;;  %v2280_v30 = vadd.f32 %v5081_v16, %v2148_v21  ;;  %v1231_v33 = vadd.f32 %v4760_v8, %v5076_v11  ;;  %v2405_v53 = vmax.f32 %v2277_v19, 0.0 }
 0x103   : > { %v3869_v31 = vpack.c.bf16 %v954_v22, %v951_v54  ;;  %v2082_v32 = vmul.f32 %v5078_v13, %v954_v22  ;;  %v4029_v35 = vpack.c.bf16 %v1210_v27, %v1207_v58  ;;  %v2146_v36 = vmul.f32 %v5078_v13, %v1210_v27 }
 0x104   : > { %v2344_v34 = vmax.f32 %v2216_v26, 0.0  ;;  %v2087_v37 = vmul.f32 %v5078_v13, %v975_v28  ;;  %v2408_v38 = vmax.f32 %v2280_v30, 0.0  ;;  %v2151_v40 = vmul.f32 %v5078_v13, %v1231_v33 }
 0x105   : > { %4489 = vst [vmem:[%s5094_s30 + $0x20] sm:$0xff] %v3869_v31   ;;  %v2214_v39 = vadd.f32 %v5081_v16, %v2082_v32  ;;  %v967_v41 = vadd.f32 %v966_v9, %v5076_v11  ;;  %4521 = vst [vmem:[%s5094_s30 + $0x120] sm:$0xff] %v4029_v35   ;;  %v2278_v43 = vadd.f32 %v5081_v16, %v2146_v36  ;;  %v4700_v46 = vpop.f32.mrb[16].mxu0 }
 0x106   : > { %v4194_v42 = vpack.c.bf16 %v2344_v34, %v2343_v5  ;;  %v2219_v44 = vadd.f32 %v5081_v16, %v2087_v37  ;;  %v1223_v45 = vadd.f32 %v1222_v17, %v5076_v11  ;;  %v4354_v47 = vpack.c.bf16 %v2408_v38, %v2407_v12  ;;  %v4764_v51 = vpop.f32.mrb[16].mxu1  ;;  %v982_v52 = vpop.f32.mrb[17].mxu0 }
 0x107   : > { %v2342_v48 = vmax.f32 %v2214_v39, 0.0  ;;  %v2283_v49 = vadd.f32 %v5081_v16, %v2151_v40  ;;  %v2085_v50 = vmul.f32 %v5078_v13, %v967_v41  ;;  %v2406_v54 = vmax.f32 %v2278_v43, 0.0  ;;  %v1238_v57 = vpop.f32.mrb[17].mxu1  ;;  %v4701_v58 = vpop.f32.mrb[18].mxu0 }
 0x108   : > { %4553 = vst [vmem:[%s5117_s7 + $0x28] sm:$0xff] %v4194_v42   ;;  %v2149_v55 = vmul.f32 %v5078_v13, %v1223_v45  ;;  %v978_v56 = vadd.f32 %v4697_v18, %v5076_v11  ;;  %4585 = vst [vmem:[%s5117_s7 + $0x128] sm:$0xff] %v4354_v47   ;;  %v2347_v60 = vmax.f32 %v2219_v44, 0.0  ;;  %v1234_v62 = vadd.f32 %v4761_v23, %v5076_v11  ;;  %v4765_v63 = vpop.f32.mrb[18].mxu1  ;;  %v5201_v0 = vpop.f32.mrb[19].mxu0 }
 0x109   : > { %v4189_v59 = vpack.c.bf16 %v2342_v48, %v2341_v25  ;;  %v2217_v61 = vadd.f32 %v5081_v16, %v2085_v50  ;;  %v4349_v1 = vpack.c.bf16 %v2406_v54, %v2405_v53  ;;  %v2411_v2 = vmax.f32 %v2283_v49, 0.0  ;;  %v5204_v5 = vpop.f32.mrb[19].mxu1 }
 0x10a   : > { %v3884_v3 = vpack.c.bf16 %v978_v56, %v975_v28  ;;  %v2088_v4 = vmul.f32 %v5078_v13, %v978_v56  ;;  %v2281_v6 = vadd.f32 %v5081_v16, %v2149_v55  ;;  %v4044_v7 = vpack.c.bf16 %v1234_v62, %v1231_v33 }
 0x10b   : > { %4552 = vst [vmem:[%s5117_s7 + $0x20] sm:$0xff] %v4189_v59   ;;  %v2152_v8 = vmul.f32 %v5078_v13, %v1234_v62  ;;  %v970_v9 = vadd.f32 %v969_v24, %v5076_v11  ;;  %4584 = vst [vmem:[%s5117_s7 + $0x120] sm:$0xff] %v4349_v1   ;;  %v2345_v10 = vmax.f32 %v2217_v61, 0.0  ;;  %v1226_v14 = vadd.f32 %v1225_v29, %v5076_v11 }
 0x10c   : > { %4492 = vst [vmem:[%s5094_s30 + $0x38] sm:$0xff] %v3884_v3   ;;  %v2220_v12 = vadd.f32 %v5081_v16, %v2088_v4  ;;  %v991_v15 = vadd.f32 %v4700_v46, %v5076_v11  ;;  %4524 = vst [vmem:[%s5094_s30 + $0x138] sm:$0xff] %v4044_v7   ;;  %v1247_v20 = vadd.f32 %v4764_v51, %v5076_v11  ;;  %v2409_v44 = vmax.f32 %v2281_v6, 0.0 }
 0x10d   : > { %v2284_v17 = vadd.f32 %v5081_v16, %v2152_v8  ;;  %v3879_v18 = vpack.c.bf16 %v970_v9, %v967_v41  ;;  %v2086_v19 = vmul.f32 %v5078_v13, %v970_v9  ;;  %v4039_v22 = vpack.c.bf16 %v1226_v14, %v1223_v45  ;;  %v4704_v25 = vpop.f32.mrb[20].mxu0 }
 0x10e   : > { %v2348_v21 = vmax.f32 %v2220_v12, 0.0  ;;  %v2150_v23 = vmul.f32 %v5078_v13, %v1226_v14  ;;  %v2091_v24 = vmul.f32 %v5078_v13, %v991_v15  ;;  %v2155_v28 = vmul.f32 %v5078_v13, %v1247_v20  ;;  %v4768_v30 = vpop.f32.mrb[20].mxu1  ;;  %v998_v31 = vpop.f32.mrb[21].mxu0 }
 0x10f   : > { %v2412_v26 = vmax.f32 %v2284_v17, 0.0  ;;  %4491 = vst [vmem:[%s5094_s30 + $0x30] sm:$0xff] %v3879_v18   ;;  %v2218_v27 = vadd.f32 %v5081_v16, %v2086_v19  ;;  %v983_v29 = vadd.f32 %v982_v52, %v5076_v11  ;;  %4523 = vst [vmem:[%s5094_s30 + $0x130] sm:$0xff] %v4039_v22   ;;  %v1239_v35 = vadd.f32 %v1238_v57, %v5076_v11  ;;  %v1254_v36 = vpop.f32.mrb[21].mxu1  ;;  %v5229_v37 = vpop.f32.mrb[22].mxu0 }
 0x110   : > { %v4204_v32 = vpack.c.bf16 %v2348_v21, %v2347_v60  ;;  %v2282_v33 = vadd.f32 %v5081_v16, %v2150_v23  ;;  %v2223_v34 = vadd.f32 %v5081_v16, %v2091_v24  ;;  %v2287_v40 = vadd.f32 %v5081_v16, %v2155_v28  ;;  %v5233_v42 = vpop.f32.mrb[22].mxu1  ;;  %v5235_v43 = vpop.f32.mrb[23].mxu0 }
 0x111   : > { %v4364_v38 = vpack.c.bf16 %v2412_v26, %v2411_v2  ;;  %v2346_v39 = vmax.f32 %v2218_v27, 0.0  ;;  %v2089_v41 = vmul.f32 %v5078_v13, %v983_v29  ;;  %v2153_v46 = vmul.f32 %v5078_v13, %v1239_v35  ;;  %v5240_v48 = vpop.f32.mrb[23].mxu1 }
 0x112   : > { %4555 = vst [vmem:[%s5117_s7 + $0x38] sm:$0xff] %v4204_v32   ;;  %v2410_v45 = vmax.f32 %v2282_v33, 0.0  ;;  %v994_v47 = vadd.f32 %v4701_v58, %v5076_v11  ;;  %v2351_v50 = vmax.f32 %v2223_v34, 0.0  ;;  %v1250_v52 = vadd.f32 %v4765_v63, %v5076_v11 }
 0x113   : > { %4587 = vst [vmem:[%s5117_s7 + $0x138] sm:$0xff] %v4364_v38   ;;  %v4199_v49 = vpack.c.bf16 %v2346_v39, %v2345_v10  ;;  %v2221_v51 = vadd.f32 %v5081_v16, %v2089_v41  ;;  %v2415_v54 = vmax.f32 %v2287_v40, 0.0  ;;  %v2285_v57 = vadd.f32 %v5081_v16, %v2153_v46 }
 0x114   : > { %v4359_v53 = vpack.c.bf16 %v2410_v45, %v2409_v44  ;;  %v3894_v55 = vpack.c.bf16 %v994_v47, %v991_v15  ;;  %v2092_v56 = vmul.f32 %v5078_v13, %v994_v47  ;;  %v4054_v58 = vpack.c.bf16 %v1250_v52, %v1247_v20 }
 0x115   : > { %4554 = vst [vmem:[%s5117_s7 + $0x30] sm:$0xff] %v4199_v49   ;;  %v2156_v59 = vmul.f32 %v5078_v13, %v1250_v52  ;;  %v986_v60 = vadd.f32 %v5201_v0, %v5076_v11  ;;  %v2349_v61 = vmax.f32 %v2221_v51, 0.0  ;;  %v1242_v63 = vadd.f32 %v5204_v5, %v5076_v11  ;;  %v4708_v2 = vpop.f32.mrb[24].mxu0 }
 0x116   : > { %4586 = vst [vmem:[%s5117_s7 + $0x130] sm:$0xff] %v4359_v53   ;;  %4494 = vst [vmem:[%s5094_s30 + $0x48] sm:$0xff] %v3894_v55   ;;  %v2224_v62 = vadd.f32 %v5081_v16, %v2092_v56  ;;  %v1007_v1 = vadd.f32 %v4704_v25, %v5076_v11  ;;  %v1263_v0 = vadd.f32 %v4768_v30, %v5076_v11  ;;  %v4772_v7 = vpop.f32.mrb[24].mxu1  ;;  %v5261_v8 = vpop.f32.mrb[25].mxu0  ;;  %v2413_v32 = vmax.f32 %v2285_v57, 0.0 }
 0x117   : > { %4526 = vst [vmem:[%s5094_s30 + $0x148] sm:$0xff] %v4054_v58   ;;  %v2288_v3 = vadd.f32 %v5081_v16, %v2156_v59  ;;  %v3889_v4 = vpack.c.bf16 %v986_v60, %v983_v29  ;;  %v2090_v6 = vmul.f32 %v5078_v13, %v986_v60  ;;  %v4049_v10 = vpack.c.bf16 %v1242_v63, %v1239_v35  ;;  %v5265_v14 = vpop.f32.mrb[25].mxu1  ;;  %v5267_v15 = vpop.f32.mrb[26].mxu0 }
 0x118   : > { %v2352_v9 = vmax.f32 %v2224_v62, 0.0  ;;  %v2154_v5 = vmul.f32 %v5078_v13, %v1242_v63  ;;  %v2095_v12 = vmul.f32 %v5078_v13, %v1007_v1  ;;  %v2159_v19 = vmul.f32 %v5078_v13, %v1263_v0  ;;  %v5273_v21 = vpop.f32.mrb[26].mxu1  ;;  %v5275_v22 = vpop.f32.mrb[27].mxu0 }
 0x119   : > { %v2416_v17 = vmax.f32 %v2288_v3, 0.0  ;;  %4493 = vst [vmem:[%s5094_s30 + $0x40] sm:$0xff] %v3889_v4   ;;  %v2222_v18 = vadd.f32 %v5081_v16, %v2090_v6  ;;  %v999_v20 = vadd.f32 %v998_v31, %v5076_v11  ;;  %4525 = vst [vmem:[%s5094_s30 + $0x140] sm:$0xff] %v4049_v10   ;;  %v1255_v26 = vadd.f32 %v1254_v36, %v5076_v11  ;;  %v5281_v27 = vpop.f32.mrb[27].mxu1 }
 0x11a   : > { %v4214_v23 = vpack.c.bf16 %v2352_v9, %v2351_v50  ;;  %v2286_v24 = vadd.f32 %v5081_v16, %v2154_v5  ;;  %v2227_v25 = vadd.f32 %v5081_v16, %v2095_v12  ;;  %v2291_v30 = vadd.f32 %v5081_v16, %v2159_v19 }
 0x11b   : > { %v4374_v28 = vpack.c.bf16 %v2416_v17, %v2415_v54  ;;  %v2350_v29 = vmax.f32 %v2222_v18, 0.0  ;;  %v2093_v31 = vmul.f32 %v5078_v13, %v999_v20  ;;  %v2157_v34 = vmul.f32 %v5078_v13, %v1255_v26 }
 0x11c   : > { %4557 = vst [vmem:[%s5117_s7 + $0x48] sm:$0xff] %v4214_v23   ;;  %v2414_v33 = vmax.f32 %v2286_v24, 0.0  ;;  %v1010_v35 = vadd.f32 %v5229_v37, %v5076_v11  ;;  %v2355_v36 = vmax.f32 %v2227_v25, 0.0  ;;  %v1266_v40 = vadd.f32 %v5233_v42, %v5076_v11 }
 0x11d   : > { %4589 = vst [vmem:[%s5117_s7 + $0x148] sm:$0xff] %v4374_v28   ;;  %v4209_v38 = vpack.c.bf16 %v2350_v29, %v2349_v61  ;;  %v2225_v39 = vadd.f32 %v5081_v16, %v2093_v31  ;;  %v2419_v44 = vmax.f32 %v2291_v30, 0.0  ;;  %v5294_v47 = vpop.f32.mrb[28].mxu0  ;;  %v2289_v37 = vadd.f32 %v5081_v16, %v2157_v34 }
 0x11e   : > { %v4369_v41 = vpack.c.bf16 %v2414_v33, %v2413_v32  ;;  %v3904_v45 = vpack.c.bf16 %v1010_v35, %v1007_v1  ;;  %v2096_v46 = vmul.f32 %v5078_v13, %v1010_v35  ;;  %v4064_v49 = vpack.c.bf16 %v1266_v40, %v1263_v0  ;;  %v5301_v52 = vpop.f32.mrb[28].mxu1  ;;  %v5303_v42 = vpop.f32.mrb[29].mxu0 }
 0x11f   : > { %4556 = vst [vmem:[%s5117_s7 + $0x40] sm:$0xff] %v4209_v38   ;;  %v2160_v50 = vmul.f32 %v5078_v13, %v1266_v40  ;;  %v1002_v51 = vadd.f32 %v5235_v43, %v5076_v11  ;;  %v2353_v53 = vmax.f32 %v2225_v39, 0.0  ;;  %v1258_v55 = vadd.f32 %v5240_v48, %v5076_v11  ;;  %v5311_v57 = vpop.f32.mrb[29].mxu1  ;;  %v5313_v58 = vpop.f32.mrb[30].mxu0 }
 0x120   : > { %4588 = vst [vmem:[%s5117_s7 + $0x140] sm:$0xff] %v4369_v41   ;;  %4496 = vst [vmem:[%s5094_s30 + $0x58] sm:$0xff] %v3904_v45   ;;  %v2228_v54 = vadd.f32 %v5081_v16, %v2096_v46  ;;  %v1023_v56 = vadd.f32 %v4708_v2, %v5076_v11  ;;  %v1279_v61 = vadd.f32 %v4772_v7, %v5076_v11  ;;  %v5319_v62 = vpop.f32.mrb[30].mxu1  ;;  %v5321_v63 = vpop.f32.mrb[31].mxu0  ;;  %v2417_v24 = vmax.f32 %v2289_v37, 0.0 }
 0x121   : > { %4528 = vst [vmem:[%s5094_s30 + $0x158] sm:$0xff] %v4064_v49   ;;  %v2292_v43 = vadd.f32 %v5081_v16, %v2160_v50  ;;  %v3899_v59 = vpack.c.bf16 %v1002_v51, %v999_v20  ;;  %v2094_v60 = vmul.f32 %v5078_v13, %v1002_v51  ;;  %v4059_v1 = vpack.c.bf16 %v1258_v55, %v1255_v26  ;;  %v5325_v4 = vpop.f32.mrb[31].mxu1 }
 0x122   : > { %v2356_v48 = vmax.f32 %v2228_v54, 0.0  ;;  %v2158_v2 = vmul.f32 %v5078_v13, %v1258_v55  ;;  %v2099_v3 = vmul.f32 %v5078_v13, %v1023_v56  ;;  %v2163_v9 = vmul.f32 %v5078_v13, %v1279_v61 }
 0x123   : > { %v2420_v6 = vmax.f32 %v2292_v43, 0.0  ;;  %4495 = vst [vmem:[%s5094_s30 + $0x50] sm:$0xff] %v3899_v59   ;;  %v2226_v0 = vadd.f32 %v5081_v16, %v2094_v60  ;;  %v1015_v7 = vadd.f32 %v5261_v8, %v5076_v11  ;;  %4527 = vst [vmem:[%s5094_s30 + $0x150] sm:$0xff] %v4059_v1   ;;  %v1271_v17 = vadd.f32 %v5265_v14, %v5076_v11 }
 0x124   : > { %v4224_v10 = vpack.c.bf16 %v2356_v48, %v2355_v36  ;;  %v2290_v5 = vadd.f32 %v5081_v16, %v2158_v2  ;;  %v2231_v12 = vadd.f32 %v5081_v16, %v2099_v3  ;;  %v2295_v20 = vadd.f32 %v5081_v16, %v2163_v9 }
 0x125   : > { %v4384_v18 = vpack.c.bf16 %v2420_v6, %v2419_v44  ;;  %v2354_v19 = vmax.f32 %v2226_v0, 0.0  ;;  %v2097_v23 = vmul.f32 %v5078_v13, %v1015_v7  ;;  %v2161_v8 = vmul.f32 %v5078_v13, %v1271_v17  ;;  %v5343_v28 = vpop.f32.mrb[32].mxu0 }
 0x126   : > { %4559 = vst [vmem:[%s5117_s7 + $0x58] sm:$0xff] %v4224_v10   ;;  %v2418_v25 = vmax.f32 %v2290_v5, 0.0  ;;  %v1026_v26 = vadd.f32 %v5267_v15, %v5076_v11  ;;  %v2359_v14 = vmax.f32 %v2231_v12, 0.0  ;;  %v1282_v31 = vadd.f32 %v5273_v21, %v5076_v11  ;;  %v5349_v32 = vpop.f32.mrb[32].mxu1  ;;  %v5351_v33 = vpop.f32.mrb[33].mxu0 }
 0x127   : > { %4591 = vst [vmem:[%s5117_s7 + $0x158] sm:$0xff] %v4384_v18   ;;  %v4219_v29 = vpack.c.bf16 %v2354_v19, %v2353_v53  ;;  %v2229_v30 = vadd.f32 %v5081_v16, %v2097_v23  ;;  %v2423_v35 = vmax.f32 %v2295_v20, 0.0  ;;  %v5354_v36 = vpop.f32.mrb[33].mxu1  ;;  %v5356_v39 = vpop.f32.mrb[34].mxu0  ;;  %v2293_v40 = vadd.f32 %v5081_v16, %v2161_v8 }
 0x128   : > { %v4379_v34 = vpack.c.bf16 %v2418_v25, %v2417_v24  ;;  %v3914_v38 = vpack.c.bf16 %v1026_v26, %v1023_v56  ;;  %v2100_v15 = vmul.f32 %v5078_v13, %v1026_v26  ;;  %v4074_v21 = vpack.c.bf16 %v1282_v31, %v1279_v61  ;;  %v5363_v45 = vpop.f32.mrb[34].mxu1  ;;  %v5365_v46 = vpop.f32.mrb[35].mxu0 }
 0x129   : > { %4558 = vst [vmem:[%s5117_s7 + $0x50] sm:$0xff] %v4219_v29   ;;  %v2164_v41 = vmul.f32 %v5078_v13, %v1282_v31  ;;  %v1018_v44 = vadd.f32 %v5275_v22, %v5076_v11  ;;  %v2357_v37 = vmax.f32 %v2229_v30, 0.0  ;;  %v1274_v50 = vadd.f32 %v5281_v27, %v5076_v11  ;;  %v5374_v53 = vpop.f32.mrb[35].mxu1 }
 0x12a   : > { %4590 = vst [vmem:[%s5117_s7 + $0x150] sm:$0xff] %v4379_v34   ;;  %4498 = vst [vmem:[%s5094_s30 + $0x68] sm:$0xff] %v3914_v38   ;;  %v2232_v49 = vadd.f32 %v5081_v16, %v2100_v15  ;;  %v1039_v51 = vadd.f32 %v5294_v47, %v5076_v11  ;;  %v1295_v56 = vadd.f32 %v5301_v52, %v5076_v11 }
 0x12b   : > { %4530 = vst [vmem:[%s5094_s30 + $0x168] sm:$0xff] %v4074_v21   ;;  %v2296_v22 = vadd.f32 %v5081_v16, %v2164_v41  ;;  %v3909_v54 = vpack.c.bf16 %v1018_v44, %v1015_v7  ;;  %v2098_v55 = vmul.f32 %v5078_v13, %v1018_v44  ;;  %v4069_v59 = vpack.c.bf16 %v1274_v50, %v1271_v17 }
 0x12c   : > { %v2360_v43 = vmax.f32 %v2232_v49, 0.0  ;;  %v2162_v60 = vmul.f32 %v5078_v13, %v1274_v50  ;;  %v2103_v27 = vmul.f32 %v5078_v13, %v1039_v51  ;;  %v2167_v48 = vmul.f32 %v5078_v13, %v1295_v56 }
 0x12d   : > { %v2424_v61 = vmax.f32 %v2296_v22, 0.0  ;;  %4497 = vst [vmem:[%s5094_s30 + $0x60] sm:$0xff] %v3909_v54   ;;  %v2230_v47 = vadd.f32 %v5081_v16, %v2098_v55  ;;  %v1031_v1 = vadd.f32 %v5303_v42, %v5076_v11  ;;  %4529 = vst [vmem:[%s5094_s30 + $0x160] sm:$0xff] %v4069_v59   ;;  %v1287_v6 = vadd.f32 %v5311_v57, %v5076_v11  ;;  %v5393_v0 = vpop.f32.mrb[36].mxu0 }
 0x12e   : > { %v4234_v2 = vpack.c.bf16 %v2360_v43, %v2359_v14  ;;  %v2294_v52 = vadd.f32 %v5081_v16, %v2162_v60  ;;  %v2235_v3 = vadd.f32 %v5081_v16, %v2103_v27  ;;  %v2299_v10 = vadd.f32 %v5081_v16, %v2167_v48  ;;  %v5397_v12 = vpop.f32.mrb[36].mxu1  ;;  %v5399_v42 = vpop.f32.mrb[37].mxu0 }
 0x12f   : > { %v4394_v9 = vpack.c.bf16 %v2424_v61, %v2423_v35  ;;  %v2358_v7 = vmax.f32 %v2230_v47, 0.0  ;;  %v2101_v5 = vmul.f32 %v5078_v13, %v1031_v1  ;;  %v2421_v17 = vmax.f32 %v2293_v40, 0.0  ;;  %v5405_v20 = vpop.f32.mrb[37].mxu1  ;;  %v5407_v23 = vpop.f32.mrb[38].mxu0 }
 0x130   : > { %4561 = vst [vmem:[%s5117_s7 + $0x68] sm:$0xff] %v4234_v2   ;;  %v2422_v18 = vmax.f32 %v2294_v52, 0.0  ;;  %v2165_v19 = vmul.f32 %v5078_v13, %v1287_v6  ;;  %v1042_v57 = vadd.f32 %v5313_v58, %v5076_v11  ;;  %v2363_v25 = vmax.f32 %v2235_v3, 0.0  ;;  %v5413_v29 = vpop.f32.mrb[38].mxu1  ;;  %v5415_v14 = vpop.f32.mrb[39].mxu0 }
 0x131   : > { %4593 = vst [vmem:[%s5117_s7 + $0x168] sm:$0xff] %v4394_v9   ;;  %v4229_v24 = vpack.c.bf16 %v2358_v7, %v2357_v37  ;;  %v2233_v8 = vadd.f32 %v5081_v16, %v2101_v5  ;;  %v1298_v26 = vadd.f32 %v5319_v62, %v5076_v11  ;;  %v2427_v58 = vmax.f32 %v2299_v10, 0.0  ;;  %v5418_v35 = vpop.f32.mrb[39].mxu1 }
 0x132   : > { %v4389_v30 = vpack.c.bf16 %v2422_v18, %v2421_v17  ;;  %v3924_v31 = vpack.c.bf16 %v1042_v57, %v1039_v51  ;;  %v2104_v34 = vmul.f32 %v5078_v13, %v1042_v57  ;;  %v2297_v38 = vadd.f32 %v5081_v16, %v2165_v19 }
 0x133   : > { %4560 = vst [vmem:[%s5117_s7 + $0x60] sm:$0xff] %v4229_v24   ;;  %v4084_v15 = vpack.c.bf16 %v1298_v26, %v1295_v56  ;;  %v2168_v40 = vmul.f32 %v5078_v13, %v1298_v26  ;;  %v1034_v62 = vadd.f32 %v5321_v63, %v5076_v11  ;;  %v2361_v21 = vmax.f32 %v2233_v8, 0.0 }
 0x134   : > { %4592 = vst [vmem:[%s5117_s7 + $0x160] sm:$0xff] %v4389_v30   ;;  %4500 = vst [vmem:[%s5094_s30 + $0x78] sm:$0xff] %v3924_v31   ;;  %v2236_v41 = vadd.f32 %v5081_v16, %v2104_v34  ;;  %v1290_v44 = vadd.f32 %v5325_v4, %v5076_v11  ;;  %v1055_v37 = vadd.f32 %v5343_v28, %v5076_v11  ;;  %v2425_v5 = vmax.f32 %v2297_v38, 0.0 }
 0x135   : > { %4532 = vst [vmem:[%s5094_s30 + $0x178] sm:$0xff] %v4084_v15   ;;  %v2300_v49 = vadd.f32 %v5081_v16, %v2168_v40  ;;  %v3919_v50 = vpack.c.bf16 %v1034_v62, %v1031_v1  ;;  %v2102_v51 = vmul.f32 %v5078_v13, %v1034_v62  ;;  %v1311_v63 = vadd.f32 %v5349_v32, %v5076_v11  ;;  %v5439_v4 = vpop.f32.mrb[40].mxu0 }
 0x136   : > { %v2364_v22 = vmax.f32 %v2236_v41, 0.0  ;;  %v4079_v54 = vpack.c.bf16 %v1290_v44, %v1287_v6  ;;  %v2166_v55 = vmul.f32 %v5078_v13, %v1290_v44  ;;  %v2107_v56 = vmul.f32 %v5078_v13, %v1055_v37  ;;  %v5446_v27 = vpop.f32.mrb[40].mxu1  ;;  %v5448_v32 = vpop.f32.mrb[41].mxu0 }
 0x137   : > { %v2428_v43 = vmax.f32 %v2300_v49, 0.0  ;;  %4499 = vst [vmem:[%s5094_s30 + $0x70] sm:$0xff] %v3919_v50   ;;  %v2234_v28 = vadd.f32 %v5081_v16, %v2102_v51  ;;  %v2171_v59 = vmul.f32 %v5078_v13, %v1311_v63  ;;  %v1047_v60 = vadd.f32 %v5351_v33, %v5076_v11  ;;  %v5455_v2 = vpop.f32.mrb[41].mxu1  ;;  %v5457_v52 = vpop.f32.mrb[42].mxu0 }
 0x138   : > { %v4244_v61 = vpack.c.bf16 %v2364_v22, %v2363_v25  ;;  %4531 = vst [vmem:[%s5094_s30 + $0x170] sm:$0xff] %v4079_v54   ;;  %v2298_v47 = vadd.f32 %v5081_v16, %v2166_v55  ;;  %v2239_v48 = vadd.f32 %v5081_v16, %v2107_v56  ;;  %v1303_v1 = vadd.f32 %v5354_v36, %v5076_v11  ;;  %v5461_v7 = vpop.f32.mrb[42].mxu1  ;;  %v5463_v10 = vpop.f32.mrb[43].mxu0 }
 0x139   : > { %v4404_v33 = vpack.c.bf16 %v2428_v43, %v2427_v58  ;;  %v2362_v3 = vmax.f32 %v2234_v28, 0.0  ;;  %v2303_v6 = vadd.f32 %v5081_v16, %v2171_v59  ;;  %v2105_v9 = vmul.f32 %v5078_v13, %v1047_v60  ;;  %v5469_v19 = vpop.f32.mrb[43].mxu1 }
 0x13a   : > { %4563 = vst [vmem:[%s5117_s7 + $0x78] sm:$0xff] %v4244_v61   ;;  %v2426_v17 = vmax.f32 %v2298_v47, 0.0  ;;  %v2169_v36 = vmul.f32 %v5078_v13, %v1303_v1  ;;  %v1058_v18 = vadd.f32 %v5356_v39, %v5076_v11  ;;  %v2367_v24 = vmax.f32 %v2239_v48, 0.0 }
 0x13b   : > { %4595 = vst [vmem:[%s5117_s7 + $0x178] sm:$0xff] %v4404_v33   ;;  %v4239_v57 = vpack.c.bf16 %v2362_v3, %v2361_v21  ;;  %v2237_v25 = vadd.f32 %v5081_v16, %v2105_v9  ;;  %v1314_v8 = vadd.f32 %v5363_v45, %v5076_v11  ;;  %v2431_v30 = vmax.f32 %v2303_v6, 0.0 }
 0x13c   : > { %v4399_v26 = vpack.c.bf16 %v2426_v17, %v2425_v5  ;;  %v3934_v58 = vpack.c.bf16 %v1058_v18, %v1055_v37  ;;  %v2108_v31 = vmul.f32 %v5078_v13, %v1058_v18  ;;  %v2301_v39 = vadd.f32 %v5081_v16, %v2169_v36 }
 0x13d   : > { %4562 = vst [vmem:[%s5117_s7 + $0x70] sm:$0xff] %v4239_v57   ;;  %v4094_v34 = vpack.c.bf16 %v1314_v8, %v1311_v63  ;;  %v2172_v38 = vmul.f32 %v5078_v13, %v1314_v8  ;;  %v1050_v15 = vadd.f32 %v5365_v46, %v5076_v11  ;;  %v2365_v40 = vmax.f32 %v2237_v25, 0.0  ;;  %v5488_v41 = vpop.f32.mrb[44].mxu0 }
 0x13e   : > { %4594 = vst [vmem:[%s5117_s7 + $0x170] sm:$0xff] %v4399_v26   ;;  %4502 = vst [vmem:[%s5094_s30 + $0x88] sm:$0xff] %v3934_v58   ;;  %v2240_v45 = vadd.f32 %v5081_v16, %v2108_v31  ;;  %v1306_v62 = vadd.f32 %v5374_v53, %v5076_v11  ;;  %v1071_v21 = vadd.f32 %v5393_v0, %v5076_v11  ;;  %v5495_v50 = vpop.f32.mrb[44].mxu1  ;;  %v5497_v51 = vpop.f32.mrb[45].mxu0  ;;  %v2429_v5 = vmax.f32 %v2301_v39, 0.0 }
 0x13f   : > { %4534 = vst [vmem:[%s5094_s30 + $0x188] sm:$0xff] %v4094_v34   ;;  %v2304_v44 = vadd.f32 %v5081_v16, %v2172_v38  ;;  %v3929_v37 = vpack.c.bf16 %v1050_v15, %v1047_v60  ;;  %v2106_v46 = vmul.f32 %v5078_v13, %v1050_v15  ;;  %v1327_v49 = vadd.f32 %v5397_v12, %v5076_v11  ;;  %v5501_v54 = vpop.f32.mrb[45].mxu1  ;;  %v5503_v55 = vpop.f32.mrb[46].mxu0 }
 0x140   : > { %v2368_v53 = vmax.f32 %v2240_v45, 0.0  ;;  %v4089_v63 = vpack.c.bf16 %v1306_v62, %v1303_v1  ;;  %v2170_v0 = vmul.f32 %v5078_v13, %v1306_v62  ;;  %v2111_v22 = vmul.f32 %v5078_v13, %v1071_v21  ;;  %v5510_v59 = vpop.f32.mrb[46].mxu1  ;;  %v5512_v60 = vpop.f32.mrb[47].mxu0 }
 0x141   : > { %v2432_v56 = vmax.f32 %v2304_v44, 0.0  ;;  %4501 = vst [vmem:[%s5094_s30 + $0x80] sm:$0xff] %v3929_v37   ;;  %v2238_v43 = vadd.f32 %v5081_v16, %v2106_v46  ;;  %v2175_v12 = vmul.f32 %v5078_v13, %v1327_v49  ;;  %v1063_v28 = vadd.f32 %v5399_v42, %v5076_v11  ;;  %v5519_v33 = vpop.f32.mrb[47].mxu1 }
 0x142   : > { %v4254_v61 = vpack.c.bf16 %v2368_v53, %v2367_v24  ;;  %4533 = vst [vmem:[%s5094_s30 + $0x180] sm:$0xff] %v4089_v63   ;;  %v2302_v47 = vadd.f32 %v5081_v16, %v2170_v0  ;;  %v2243_v48 = vadd.f32 %v5081_v16, %v2111_v22  ;;  %v1319_v1 = vadd.f32 %v5405_v20, %v5076_v11 }
 0x143   : > { %v4414_v3 = vpack.c.bf16 %v2432_v56, %v2431_v30  ;;  %v2366_v6 = vmax.f32 %v2238_v43, 0.0  ;;  %v2307_v42 = vadd.f32 %v5081_v16, %v2175_v12  ;;  %v2109_v9 = vmul.f32 %v5078_v13, %v1063_v28 }
 0x144   : > { %4565 = vst [vmem:[%s5117_s7 + $0x88] sm:$0xff] %v4254_v61   ;;  %v2430_v17 = vmax.f32 %v2302_v47, 0.0  ;;  %v2173_v36 = vmul.f32 %v5078_v13, %v1319_v1  ;;  %v1074_v18 = vadd.f32 %v5407_v23, %v5076_v11  ;;  %v2371_v20 = vmax.f32 %v2243_v48, 0.0 }
 0x145   : > { %4597 = vst [vmem:[%s5117_s7 + $0x188] sm:$0xff] %v4414_v3   ;;  %v4249_v57 = vpack.c.bf16 %v2366_v6, %v2365_v40  ;;  %v2241_v24 = vadd.f32 %v5081_v16, %v2109_v9  ;;  %v1330_v25 = vadd.f32 %v5413_v29, %v5076_v11  ;;  %v2435_v26 = vmax.f32 %v2307_v42, 0.0  ;;  %v5532_v31 = vpop.f32.mrb[48].mxu0 }
 0x146   : > { %v4409_v8 = vpack.c.bf16 %v2430_v17, %v2429_v5  ;;  %v3944_v30 = vpack.c.bf16 %v1074_v18, %v1071_v21  ;;  %v2112_v58 = vmul.f32 %v5078_v13, %v1074_v18  ;;  %v2305_v23 = vadd.f32 %v5081_v16, %v2173_v36  ;;  %v5539_v15 = vpop.f32.mrb[48].mxu1  ;;  %v5541_v29 = vpop.f32.mrb[49].mxu0 }
 0x147   : > { %4564 = vst [vmem:[%s5117_s7 + $0x80] sm:$0xff] %v4249_v57   ;;  %v4104_v39 = vpack.c.bf16 %v1330_v25, %v1327_v49  ;;  %v2176_v34 = vmul.f32 %v5078_v13, %v1330_v25  ;;  %v1066_v38 = vadd.f32 %v5415_v14, %v5076_v11  ;;  %v2369_v40 = vmax.f32 %v2241_v24, 0.0  ;;  %v5550_v44 = vpop.f32.mrb[49].mxu1  ;;  %v5552_v37 = vpop.f32.mrb[50].mxu0 }
 0x148   : > { %4596 = vst [vmem:[%s5117_s7 + $0x180] sm:$0xff] %v4409_v8   ;;  %4504 = vst [vmem:[%s5094_s30 + $0x98] sm:$0xff] %v3944_v30   ;;  %v2244_v45 = vadd.f32 %v5081_v16, %v2112_v58  ;;  %v1322_v62 = vadd.f32 %v5418_v35, %v5076_v11  ;;  %v1087_v21 = vadd.f32 %v5439_v4, %v5076_v11  ;;  %v5559_v63 = vpop.f32.mrb[50].mxu1  ;;  %v5561_v35 = vpop.f32.mrb[51].mxu0  ;;  %v2433_v17 = vmax.f32 %v2305_v23, 0.0 }
 0x149   : > { %4536 = vst [vmem:[%s5094_s30 + $0x198] sm:$0xff] %v4104_v39   ;;  %v2308_v14 = vadd.f32 %v5081_v16, %v2176_v34  ;;  %v3939_v46 = vpack.c.bf16 %v1066_v38, %v1063_v28  ;;  %v2110_v49 = vmul.f32 %v5078_v13, %v1066_v38  ;;  %v1343_v53 = vadd.f32 %v5446_v27, %v5076_v11  ;;  %v5565_v43 = vpop.f32.mrb[51].mxu1 }
 0x14a   : > { %v2372_v4 = vmax.f32 %v2244_v45, 0.0  ;;  %v4099_v0 = vpack.c.bf16 %v1322_v62, %v1319_v1  ;;  %v2174_v22 = vmul.f32 %v5078_v13, %v1322_v62  ;;  %v2115_v56 = vmul.f32 %v5078_v13, %v1087_v21 }
 0x14b   : > { %v2436_v12 = vmax.f32 %v2308_v14, 0.0  ;;  %4503 = vst [vmem:[%s5094_s30 + $0x90] sm:$0xff] %v3939_v46   ;;  %v2242_v28 = vadd.f32 %v5081_v16, %v2110_v49  ;;  %v2179_v61 = vmul.f32 %v5078_v13, %v1343_v53  ;;  %v1079_v27 = vadd.f32 %v5448_v32, %v5076_v11 }
 0x14c   : > { %v4264_v47 = vpack.c.bf16 %v2372_v4, %v2371_v20  ;;  %4535 = vst [vmem:[%s5094_s30 + $0x190] sm:$0xff] %v4099_v0   ;;  %v2306_v48 = vadd.f32 %v5081_v16, %v2174_v22  ;;  %v2247_v1 = vadd.f32 %v5081_v16, %v2115_v56  ;;  %v1335_v3 = vadd.f32 %v5455_v2, %v5076_v11 }
 0x14d   : > { %v4424_v6 = vpack.c.bf16 %v2436_v12, %v2435_v26  ;;  %v2370_v42 = vmax.f32 %v2242_v28, 0.0  ;;  %v2311_v9 = vadd.f32 %v5081_v16, %v2179_v61  ;;  %v2113_v5 = vmul.f32 %v5078_v13, %v1079_v27  ;;  %v5583_v57 = vpop.f32.mrb[52].mxu0 }
 0x14e   : > { %4567 = vst [vmem:[%s5117_s7 + $0x98] sm:$0xff] %v4264_v47   ;;  %v2434_v36 = vmax.f32 %v2306_v48, 0.0  ;;  %v2177_v32 = vmul.f32 %v5078_v13, %v1335_v3  ;;  %v1090_v18 = vadd.f32 %v5457_v52, %v5076_v11  ;;  %v2375_v2 = vmax.f32 %v2247_v1, 0.0  ;;  %v5589_v8 = vpop.f32.mrb[52].mxu1  ;;  %v5591_v26 = vpop.f32.mrb[53].mxu0 }
 0x14f   : > { %4599 = vst [vmem:[%s5117_s7 + $0x198] sm:$0xff] %v4424_v6   ;;  %v4259_v20 = vpack.c.bf16 %v2370_v42, %v2369_v40  ;;  %v2245_v24 = vadd.f32 %v5081_v16, %v2113_v5  ;;  %v1346_v25 = vadd.f32 %v5461_v7, %v5076_v11  ;;  %v2439_v58 = vmax.f32 %v2311_v9, 0.0  ;;  %v5594_v39 = vpop.f32.mrb[53].mxu1  ;;  %v5596_v34 = vpop.f32.mrb[54].mxu0 }
 0x150   : > { %v4419_v30 = vpack.c.bf16 %v2434_v36, %v2433_v17  ;;  %v3954_v23 = vpack.c.bf16 %v1090_v18, %v1087_v21  ;;  %v2116_v52 = vmul.f32 %v5078_v13, %v1090_v18  ;;  %v2309_v38 = vadd.f32 %v5081_v16, %v2177_v32  ;;  %v5603_v62 = vpop.f32.mrb[54].mxu1  ;;  %v5605_v14 = vpop.f32.mrb[55].mxu0 }
 0x151   : > { %4566 = vst [vmem:[%s5117_s7 + $0x90] sm:$0xff] %v4259_v20   ;;  %v4114_v7 = vpack.c.bf16 %v1346_v25, %v1343_v53  ;;  %v2180_v40 = vmul.f32 %v5078_v13, %v1346_v25  ;;  %v1082_v45 = vadd.f32 %v5463_v10, %v5076_v11  ;;  %v2373_v21 = vmax.f32 %v2245_v24, 0.0  ;;  %v5614_v4 = vpop.f32.mrb[55].mxu1 }
 0x152   : > { %4598 = vst [vmem:[%s5117_s7 + $0x190] sm:$0xff] %v4419_v30   ;;  %4506 = vst [vmem:[%s5094_s30 + $0xa8] sm:$0xff] %v3954_v23   ;;  %v2248_v46 = vadd.f32 %v5081_v16, %v2116_v52  ;;  %v1338_v49 = vadd.f32 %v5469_v19, %v5076_v11  ;;  %v1103_v53 = vadd.f32 %v5488_v41, %v5076_v11  ;;  %v2437_v18 = vmax.f32 %v2309_v38, 0.0 }
 0x153   : > { %4538 = vst [vmem:[%s5094_s30 + $0x1a8] sm:$0xff] %v4114_v7   ;;  %v2312_v10 = vadd.f32 %v5081_v16, %v2180_v40  ;;  %v3949_v0 = vpack.c.bf16 %v1082_v45, %v1079_v27  ;;  %v2114_v22 = vmul.f32 %v5078_v13, %v1082_v45  ;;  %v1359_v56 = vadd.f32 %v5495_v50, %v5076_v11 }
 0x154   : > { %v2376_v12 = vmax.f32 %v2248_v46, 0.0  ;;  %v4109_v28 = vpack.c.bf16 %v1338_v49, %v1335_v3  ;;  %v2178_v61 = vmul.f32 %v5078_v13, %v1338_v49  ;;  %v2119_v19 = vmul.f32 %v5078_v13, %v1103_v53 }
 0x155   : > { %v2440_v47 = vmax.f32 %v2312_v10, 0.0  ;;  %4505 = vst [vmem:[%s5094_s30 + $0xa0] sm:$0xff] %v3949_v0   ;;  %v2246_v41 = vadd.f32 %v5081_v16, %v2114_v22  ;;  %v2183_v48 = vmul.f32 %v5078_v13, %v1359_v56  ;;  %v1095_v27 = vadd.f32 %v5497_v51, %v5076_v11  ;;  %v5633_v42 = vpop.f32.mrb[56].mxu0 }
 0x156   : > { %v4274_v1 = vpack.c.bf16 %v2376_v12, %v2375_v2  ;;  %4537 = vst [vmem:[%s5094_s30 + $0x1a0] sm:$0xff] %v4109_v28   ;;  %v2310_v50 = vadd.f32 %v5081_v16, %v2178_v61  ;;  %v2251_v3 = vadd.f32 %v5081_v16, %v2119_v19  ;;  %v1351_v6 = vadd.f32 %v5501_v54, %v5076_v11  ;;  %v5637_v32 = vpop.f32.mrb[56].mxu1  ;;  %v5639_v51 = vpop.f32.mrb[57].mxu0 }
 0x157   : > { %v4434_v9 = vpack.c.bf16 %v2440_v47, %v2439_v58  ;;  %v2374_v5 = vmax.f32 %v2246_v41, 0.0  ;;  %v2315_v17 = vadd.f32 %v5081_v16, %v2183_v48  ;;  %v2117_v36 = vmul.f32 %v5078_v13, %v1095_v27  ;;  %v5645_v24 = vpop.f32.mrb[57].mxu1  ;;  %v5647_v25 = vpop.f32.mrb[58].mxu0 }
 0x158   : > { %4569 = vst [vmem:[%s5117_s7 + $0xa8] sm:$0xff] %v4274_v1   ;;  %v2438_v20 = vmax.f32 %v2310_v50, 0.0  ;;  %v2181_v2 = vmul.f32 %v5078_v13, %v1351_v6  ;;  %v1106_v54 = vadd.f32 %v5503_v55, %v5076_v11  ;;  %v2379_v58 = vmax.f32 %v2251_v3, 0.0  ;;  %v5653_v38 = vpop.f32.mrb[58].mxu1  ;;  %v5655_v7 = vpop.f32.mrb[59].mxu0 }
 0x159   : > { %4601 = vst [vmem:[%s5117_s7 + $0x1a8] sm:$0xff] %v4434_v9   ;;  %v4269_v30 = vpack.c.bf16 %v2374_v5, %v2373_v21  ;;  %v2249_v23 = vadd.f32 %v5081_v16, %v2117_v36  ;;  %v1362_v52 = vadd.f32 %v5510_v59, %v5076_v11  ;;  %v2443_v55 = vmax.f32 %v2315_v17, 0.0  ;;  %v5658_v49 = vpop.f32.mrb[59].mxu1 }
 0x15a   : > { %v4429_v40 = vpack.c.bf16 %v2438_v20, %v2437_v18  ;;  %v3964_v45 = vpack.c.bf16 %v1106_v54, %v1103_v53  ;;  %v2120_v46 = vmul.f32 %v5078_v13, %v1106_v54  ;;  %v2313_v21 = vadd.f32 %v5081_v16, %v2181_v2 }
 0x15b   : > { %4568 = vst [vmem:[%s5117_s7 + $0xa0] sm:$0xff] %v4269_v30   ;;  %v4124_v10 = vpack.c.bf16 %v1362_v52, %v1359_v56  ;;  %v2184_v0 = vmul.f32 %v5078_v13, %v1362_v52  ;;  %v1098_v59 = vadd.f32 %v5512_v60, %v5076_v11  ;;  %v2377_v22 = vmax.f32 %v2249_v23, 0.0 }
 0x15c   : > { %4600 = vst [vmem:[%s5117_s7 + $0x1a0] sm:$0xff] %v4429_v40   ;;  %4508 = vst [vmem:[%s5094_s30 + $0xb8] sm:$0xff] %v3964_v45   ;;  %v2252_v12 = vadd.f32 %v5081_v16, %v2120_v46  ;;  %v1354_v53 = vadd.f32 %v5519_v33, %v5076_v11  ;;  %v1119_v28 = vadd.f32 %v5532_v31, %v5076_v11  ;;  %v2441_v52 = vmax.f32 %v2313_v21, 0.0 }
 0x15d   : > { %4540 = vst [vmem:[%s5094_s30 + $0x1b8] sm:$0xff] %v4124_v10   ;;  %v2316_v56 = vadd.f32 %v5081_v16, %v2184_v0  ;;  %v3959_v61 = vpack.c.bf16 %v1098_v59, %v1095_v27  ;;  %v2118_v19 = vmul.f32 %v5078_v13, %v1098_v59  ;;  %v1375_v60 = vadd.f32 %v5539_v15, %v5076_v11  ;;  %v5679_v33 = vpop.f32.mrb[60].mxu0 }
 0x15e   : > { %v2380_v47 = vmax.f32 %v2252_v12, 0.0  ;;  %v4119_v41 = vpack.c.bf16 %v1354_v53, %v1351_v6  ;;  %v2182_v48 = vmul.f32 %v5078_v13, %v1354_v53  ;;  %v2123_v1 = vmul.f32 %v5078_v13, %v1119_v28  ;;  %v5686_v9 = vpop.f32.mrb[60].mxu1  ;;  %v5688_v15 = vpop.f32.mrb[61].mxu0 }
 0x15f   : > { %v2444_v50 = vmax.f32 %v2316_v56, 0.0  ;;  %4507 = vst [vmem:[%s5094_s30 + $0xb0] sm:$0xff] %v3959_v61   ;;  %v2250_v31 = vadd.f32 %v5081_v16, %v2118_v19  ;;  %v2187_v27 = vmul.f32 %v5078_v13, %v1375_v60  ;;  %v1111_v3 = vadd.f32 %v5541_v29, %v5076_v11  ;;  %v5695_v18 = vpop.f32.mrb[61].mxu1  ;;  %v5697_v20 = vpop.f32.mrb[62].mxu0 }
 0x160   : > { %v4284_v6 = vpack.c.bf16 %v2380_v47, %v2379_v58  ;;  %4539 = vst [vmem:[%s5094_s30 + $0x1b0] sm:$0xff] %v4119_v41   ;;  %v2314_v5 = vadd.f32 %v5081_v16, %v2182_v48  ;;  %v2255_v17 = vadd.f32 %v5081_v16, %v2123_v1  ;;  %v1367_v36 = vadd.f32 %v5550_v44, %v5076_v11  ;;  %v5701_v58 = vpop.f32.mrb[62].mxu1  ;;  %v5703_v23 = vpop.f32.mrb[63].mxu0 }
 0x161   : > { %v4444_v29 = vpack.c.bf16 %v2444_v50, %v2443_v55  ;;  %v2378_v2 = vmax.f32 %v2250_v31, 0.0  ;;  %v2319_v54 = vadd.f32 %v5081_v16, %v2187_v27  ;;  %v2121_v30 = vmul.f32 %v5078_v13, %v1111_v3  ;;  %v5709_v55 = vpop.f32.mrb[63].mxu1 }
 0x162   : > { %4571 = vst [vmem:[%s5117_s7 + $0xb8] sm:$0xff] %v4284_v6   ;;  %v2442_v40 = vmax.f32 %v2314_v5, 0.0  ;;  %v2185_v44 = vmul.f32 %v5078_v13, %v1367_v36  ;;  %v1122_v45 = vadd.f32 %v5552_v37, %v5076_v11  ;;  %v2383_v10 = vmax.f32 %v2255_v17, 0.0 }
 0x163   : > { %4603 = vst [vmem:[%s5117_s7 + $0x1b8] sm:$0xff] %v4444_v29   ;;  %v4279_v46 = vpack.c.bf16 %v2378_v2, %v2377_v22  ;;  %v2253_v0 = vadd.f32 %v5081_v16, %v2121_v30  ;;  %v1378_v59 = vadd.f32 %v5559_v63, %v5076_v11  ;;  %v2447_v12 = vmax.f32 %v2319_v54, 0.0 }
 0x164   : > { %v4439_v21 = vpack.c.bf16 %v2442_v40, %v2441_v52  ;;  %v3974_v53 = vpack.c.bf16 %v1122_v45, %v1119_v28  ;;  %v2124_v56 = vmul.f32 %v5078_v13, %v1122_v45  ;;  %v2317_v37 = vadd.f32 %v5081_v16, %v2185_v44 }
 0x165   : > { %4570 = vst [vmem:[%s5117_s7 + $0xb0] sm:$0xff] %v4279_v46   ;;  %v4134_v61 = vpack.c.bf16 %v1378_v59, %v1375_v60  ;;  %v2188_v19 = vmul.f32 %v5078_v13, %v1378_v59  ;;  %v1114_v22 = vadd.f32 %v5561_v35, %v5076_v11  ;;  %v2381_v47 = vmax.f32 %v2253_v0, 0.0 }
 0x166   : > { %4602 = vst [vmem:[%s5117_s7 + $0x1b0] sm:$0xff] %v4439_v21   ;;  %4510 = vst [vmem:[%s5094_s30 + $0xc8] sm:$0xff] %v3974_v53   ;;  %v2256_v63 = vadd.f32 %v5081_v16, %v2124_v56  ;;  %v1370_v28 = vadd.f32 %v5565_v43, %v5076_v11  ;;  %v1135_v41 = vadd.f32 %v5583_v57, %v5076_v11  ;;  %v2445_v40 = vmax.f32 %v2317_v37, 0.0 }
 0x167   : > { %4542 = vst [vmem:[%s5094_s30 + $0x1c8] sm:$0xff] %v4134_v61   ;;  %v2320_v60 = vadd.f32 %v5081_v16, %v2188_v19  ;;  %v3969_v48 = vpack.c.bf16 %v1114_v22, %v1111_v3  ;;  %v2122_v1 = vmul.f32 %v5078_v13, %v1114_v22  ;;  %v1391_v35 = vadd.f32 %v5589_v8, %v5076_v11 }
 0x168   : > { %v2384_v50 = vmax.f32 %v2256_v63, 0.0  ;;  %v4129_v31 = vpack.c.bf16 %v1370_v28, %v1367_v36  ;;  %v2186_v27 = vmul.f32 %v5078_v13, %v1370_v28  ;;  %v2127_v6 = vmul.f32 %v5078_v13, %v1135_v41 }
 0x169   : > { %v2448_v43 = vmax.f32 %v2320_v60, 0.0  ;;  %4509 = vst [vmem:[%s5094_s30 + $0xc0] sm:$0xff] %v3969_v48   ;;  %v2254_v57 = vadd.f32 %v5081_v16, %v2122_v1  ;;  %v2191_v5 = vmul.f32 %v5078_v13, %v1391_v35  ;;  %v1127_v3 = vadd.f32 %v5591_v26, %v5076_v11 }
 0x16a   : > { %v4294_v17 = vpack.c.bf16 %v2384_v50, %v2383_v10  ;;  %4541 = vst [vmem:[%s5094_s30 + $0x1c0] sm:$0xff] %v4129_v31   ;;  %v2318_v8 = vadd.f32 %v5081_v16, %v2186_v27  ;;  %v2259_v36 = vadd.f32 %v5081_v16, %v2127_v6  ;;  %v1383_v29 = vadd.f32 %v5594_v39, %v5076_v11 }
 0x16b   : > { %v4454_v2 = vpack.c.bf16 %v2448_v43, %v2447_v12  ;;  %v2382_v54 = vmax.f32 %v2254_v57, 0.0  ;;  %v2323_v30 = vadd.f32 %v5081_v16, %v2191_v5  ;;  %v2125_v52 = vmul.f32 %v5078_v13, %v1127_v3 }
 0x16c   : > { %4573 = vst [vmem:[%s5117_s7 + $0xc8] sm:$0xff] %v4294_v17   ;;  %v2446_v44 = vmax.f32 %v2318_v8, 0.0  ;;  %v2189_v26 = vmul.f32 %v5078_v13, %v1383_v29  ;;  %v1138_v45 = vadd.f32 %v5596_v34, %v5076_v11  ;;  %v2387_v39 = vmax.f32 %v2259_v36, 0.0 }
 0x16d   : > { %4605 = vst [vmem:[%s5117_s7 + $0x1c8] sm:$0xff] %v4454_v2   ;;  %v4289_v46 = vpack.c.bf16 %v2382_v54, %v2381_v47  ;;  %v1394_v10 = vadd.f32 %v5603_v62, %v5076_v11  ;;  %v2451_v59 = vmax.f32 %v2323_v30, 0.0  ;;  %v2257_v53 = vadd.f32 %v5081_v16, %v2125_v52 }
 0x16e   : > { %v4449_v0 = vpack.c.bf16 %v2446_v44, %v2445_v40  ;;  %v3984_v21 = vpack.c.bf16 %v1138_v45, %v1135_v41  ;;  %v2128_v12 = vmul.f32 %v5078_v13, %v1138_v45  ;;  %v1130_v34 = vadd.f32 %v5605_v14, %v5076_v11 }
 0x16f   : > { %4572 = vst [vmem:[%s5117_s7 + $0xc0] sm:$0xff] %v4289_v46   ;;  %v4144_v56 = vpack.c.bf16 %v1394_v10, %v1391_v35  ;;  %v2192_v37 = vmul.f32 %v5078_v13, %v1394_v10  ;;  %v2321_v61 = vadd.f32 %v5081_v16, %v2189_v26  ;;  %v1386_v19 = vadd.f32 %v5614_v4, %v5076_v11 }
 0x170   : > { %4604 = vst [vmem:[%s5117_s7 + $0x1c0] sm:$0xff] %v4449_v0   ;;  %4512 = vst [vmem:[%s5094_s30 + $0xd8] sm:$0xff] %v3984_v21   ;;  %v2260_v62 = vadd.f32 %v5081_v16, %v2128_v12  ;;  %v1151_v22 = vadd.f32 %v5633_v42, %v5076_v11  ;;  %v3979_v63 = vpack.c.bf16 %v1130_v34, %v1127_v3  ;;  %v2385_v43 = vmax.f32 %v2257_v53, 0.0 }
 0x171   : > { %4544 = vst [vmem:[%s5094_s30 + $0x1d8] sm:$0xff] %v4144_v56   ;;  %v2324_v47 = vadd.f32 %v5081_v16, %v2192_v37  ;;  %v2126_v14 = vmul.f32 %v5078_v13, %v1130_v34  ;;  %v1407_v28 = vadd.f32 %v5637_v32, %v5076_v11  ;;  %v4139_v60 = vpack.c.bf16 %v1386_v19, %v1383_v29 }
 0x172   : > { %v2388_v41 = vmax.f32 %v2260_v62, 0.0  ;;  %v2190_v48 = vmul.f32 %v5078_v13, %v1386_v19  ;;  %v2131_v1 = vmul.f32 %v5078_v13, %v1151_v22  ;;  %4511 = vst [vmem:[%s5094_s30 + $0xd0] sm:$0xff] %v3979_v63   ;;  %v1143_v50 = vadd.f32 %v5639_v51, %v5076_v11 }
 0x173   : > { %v2452_v4 = vmax.f32 %v2324_v47, 0.0  ;;  %v2258_v42 = vadd.f32 %v5081_v16, %v2126_v14  ;;  %v2195_v35 = vmul.f32 %v5078_v13, %v1407_v28  ;;  %4543 = vst [vmem:[%s5094_s30 + $0x1d0] sm:$0xff] %v4139_v60   ;;  %v1399_v6 = vadd.f32 %v5645_v24, %v5076_v11 }
 0x174   : > { %v4304_v31 = vpack.c.bf16 %v2388_v41, %v2387_v39  ;;  %v2322_v32 = vadd.f32 %v5081_v16, %v2190_v48  ;;  %v2263_v27 = vadd.f32 %v5081_v16, %v2131_v1  ;;  %v2129_v3 = vmul.f32 %v5078_v13, %v1143_v50 }
 0x175   : > { %v4464_v57 = vpack.c.bf16 %v2452_v4, %v2451_v59  ;;  %v2386_v5 = vmax.f32 %v2258_v42, 0.0  ;;  %v2449_v17 = vmax.f32 %v2321_v61, 0.0  ;;  %v2193_v51 = vmul.f32 %v5078_v13, %v1399_v6 }
 0x176   : > { %4575 = vst [vmem:[%s5117_s7 + $0xd8] sm:$0xff] %v4304_v31   ;;  %v2450_v8 = vmax.f32 %v2322_v32, 0.0  ;;  %v1154_v36 = vadd.f32 %v5647_v25, %v5076_v11  ;;  %v2327_v24 = vadd.f32 %v5081_v16, %v2195_v35  ;;  %v1410_v2 = vadd.f32 %v5653_v38, %v5076_v11 }
 0x177   : > { %4607 = vst [vmem:[%s5117_s7 + $0x1d8] sm:$0xff] %v4464_v57   ;;  %v4299_v29 = vpack.c.bf16 %v2386_v5, %v2385_v43  ;;  %v2391_v30 = vmax.f32 %v2263_v27, 0.0  ;;  %v2261_v44 = vadd.f32 %v5081_v16, %v2129_v3  ;;  %v1146_v45 = vadd.f32 %v5655_v7, %v5076_v11 }
 0x178   : > { %v4459_v54 = vpack.c.bf16 %v2450_v8, %v2449_v17  ;;  %v3994_v52 = vpack.c.bf16 %v1154_v36, %v1151_v22  ;;  %v2132_v40 = vmul.f32 %v5078_v13, %v1154_v36  ;;  %v4154_v26 = vpack.c.bf16 %v1410_v2, %v1407_v28 }
 0x179   : > { %4574 = vst [vmem:[%s5117_s7 + $0xd0] sm:$0xff] %v4299_v29   ;;  %v2196_v25 = vmul.f32 %v5078_v13, %v1410_v2  ;;  %v2325_v46 = vadd.f32 %v5081_v16, %v2193_v51  ;;  %v1402_v39 = vadd.f32 %v5658_v49, %v5076_v11  ;;  %v1167_v10 = vadd.f32 %v5679_v33, %v5076_v11 }
 0x17a   : > { %4606 = vst [vmem:[%s5117_s7 + $0x1d0] sm:$0xff] %v4459_v54   ;;  %4514 = vst [vmem:[%s5094_s30 + $0xe8] sm:$0xff] %v3994_v52   ;;  %v2264_v38 = vadd.f32 %v5081_v16, %v2132_v40  ;;  %v3989_v59 = vpack.c.bf16 %v1146_v45, %v1143_v50  ;;  %v2130_v7 = vmul.f32 %v5078_v13, %v1146_v45  ;;  %v2455_v37 = vmax.f32 %v2327_v24, 0.0 }
 0x17b   : > { %4546 = vst [vmem:[%s5094_s30 + $0x1e8] sm:$0xff] %v4154_v26   ;;  %v2328_v0 = vadd.f32 %v5081_v16, %v2196_v25  ;;  %v1423_v21 = vadd.f32 %v5686_v9, %v5076_v11  ;;  %v4149_v53 = vpack.c.bf16 %v1402_v39, %v1399_v6  ;;  %v2194_v56 = vmul.f32 %v5078_v13, %v1402_v39 }
 0x17c   : > { %v2392_v12 = vmax.f32 %v2264_v38, 0.0  ;;  %v2135_v49 = vmul.f32 %v5078_v13, %v1167_v10  ;;  %4513 = vst [vmem:[%s5094_s30 + $0xe0] sm:$0xff] %v3989_v59   ;;  %v2262_v33 = vadd.f32 %v5081_v16, %v2130_v7  ;;  %v1159_v61 = vadd.f32 %v5688_v15, %v5076_v11 }
 0x17d   : > { %v2456_v34 = vmax.f32 %v2328_v0, 0.0  ;;  %4545 = vst [vmem:[%s5094_s30 + $0x1e0] sm:$0xff] %v4149_v53   ;;  %v2326_v9 = vadd.f32 %v5081_v16, %v2194_v56  ;;  %v1415_v19 = vadd.f32 %v5695_v18, %v5076_v11  ;;  %v2389_v22 = vmax.f32 %v2261_v44, 0.0 }
 0x17e   : > { %v4314_v62 = vpack.c.bf16 %v2392_v12, %v2391_v30  ;;  %v2390_v63 = vmax.f32 %v2262_v33, 0.0  ;;  %v2199_v14 = vmul.f32 %v5078_v13, %v1423_v21  ;;  %v2453_v28 = vmax.f32 %v2325_v46, 0.0 }
 0x17f   : > { %v4474_v47 = vpack.c.bf16 %v2456_v34, %v2455_v37  ;;  %v2454_v41 = vmax.f32 %v2326_v9, 0.0  ;;  %v2267_v60 = vadd.f32 %v5081_v16, %v2135_v49  ;;  %v1170_v15 = vadd.f32 %v5697_v20, %v5076_v11 }
 0x180   : > { %4577 = vst [vmem:[%s5117_s7 + $0xe8] sm:$0xff] %v4314_v62   ;;  %v4309_v48 = vpack.c.bf16 %v2390_v63, %v2389_v22  ;;  %v2133_v18 = vmul.f32 %v5078_v13, %v1159_v61  ;;  %v1426_v1 = vadd.f32 %v5701_v58, %v5076_v11  ;;  %v2197_v42 = vmul.f32 %v5078_v13, %v1415_v19 }
 0x181   : > { %4609 = vst [vmem:[%s5117_s7 + $0x1e8] sm:$0xff] %v4474_v47   ;;  %v4469_v4 = vpack.c.bf16 %v2454_v41, %v2453_v28  ;;  %v4004_v35 = vpack.c.bf16 %v1170_v15, %v1167_v10  ;;  %v2136_v50 = vmul.f32 %v5078_v13, %v1170_v15  ;;  %v2331_v31 = vadd.f32 %v5081_v16, %v2199_v14 }
 0x182   : > { %4576 = vst [vmem:[%s5117_s7 + $0xe0] sm:$0xff] %v4309_v48   ;;  %v4164_v32 = vpack.c.bf16 %v1426_v1, %v1423_v21  ;;  %v2200_v20 = vmul.f32 %v5078_v13, %v1426_v1  ;;  %v1162_v27 = vadd.f32 %v5703_v23, %v5076_v11  ;;  %v2395_v6 = vmax.f32 %v2267_v60, 0.0 }
 0x183   : > { %4608 = vst [vmem:[%s5117_s7 + $0x1e0] sm:$0xff] %v4469_v4   ;;  %4516 = vst [vmem:[%s5094_s30 + $0xf8] sm:$0xff] %v4004_v35   ;;  %v2268_v58 = vadd.f32 %v5081_v16, %v2136_v50  ;;  %v1418_v43 = vadd.f32 %v5709_v55, %v5076_v11  ;;  %v2265_v57 = vadd.f32 %v5081_v16, %v2133_v18  ;;  %v2459_v29 = vmax.f32 %v2331_v31, 0.0 }
 0x184   : > { %4548 = vst [vmem:[%s5094_s30 + $0x1f8] sm:$0xff] %v4164_v32   ;;  %v2332_v5 = vadd.f32 %v5081_v16, %v2200_v20  ;;  %v3999_v3 = vpack.c.bf16 %v1162_v27, %v1159_v61  ;;  %v2134_v17 = vmul.f32 %v5078_v13, %v1162_v27  ;;  %v2329_v23 = vadd.f32 %v5081_v16, %v2197_v42 }
 0x185   : > { %v2396_v8 = vmax.f32 %v2268_v58, 0.0  ;;  %v4159_v51 = vpack.c.bf16 %v1418_v43, %v1415_v19  ;;  %v2198_v36 = vmul.f32 %v5078_v13, %v1418_v43  ;;  %v2393_v54 = vmax.f32 %v2265_v57, 0.0 }
 0x186   : > { %v2460_v24 = vmax.f32 %v2332_v5, 0.0  ;;  %4515 = vst [vmem:[%s5094_s30 + $0xf0] sm:$0xff] %v3999_v3   ;;  %v2266_v11 = vadd.f32 %v5081_v16, %v2134_v17  ;;  %v2457_v40 = vmax.f32 %v2329_v23, 0.0 }
 0x187   : > { %v4324_v55 = vpack.c.bf16 %v2396_v8, %v2395_v6  ;;  %4547 = vst [vmem:[%s5094_s30 + $0x1f0] sm:$0xff] %v4159_v51   ;;  %v2330_v2 = vadd.f32 %v5081_v16, %v2198_v36 }
 0x188   : > { %v4484_v30 = vpack.c.bf16 %v2460_v24, %v2459_v29  ;;  %v2394_v52 = vmax.f32 %v2266_v11, 0.0 }
 0x189   : > { %4579 = vst [vmem:[%s5117_s7 + $0xf8] sm:$0xff] %v4324_v55   ;;  %v2458_v44 = vmax.f32 %v2330_v2, 0.0 }
 0x18a   : > { %4611 = vst [vmem:[%s5117_s7 + $0x1f8] sm:$0xff] %v4484_v30   ;;  %v4319_v26 = vpack.c.bf16 %v2394_v52, %v2393_v54 }
 0x18b   : > { %v4479_v13 = vpack.c.bf16 %v2458_v44, %v2457_v40 }
 0x18c   : > { %4578 = vst [vmem:[%s5117_s7 + $0xf0] sm:$0xff] %v4319_v26  }
 0x18d   : > { %4610 = vst [vmem:[%s5117_s7 + $0x1f0] sm:$0xff] %v4479_v13  }
 0x18e PF: > { %s15_s15 = sadd.s32 1, %s4895_s15  }
 0x18f   : > { %p12_p4 = scmp.ge.s32.totalorder %s15_s15, 4  }
 0x191   :  { %14 = sbr.rel (!%p12_p4) target bundleno = 1 (0x1), region = 74 }

// kernel: _lambda_.8
= control target key start
LH: loop header
LB: loop body
LE: loop exit
PB: predicated region body
PF: predicated region fallthrough
CT: control target
= control target key end

     0   :  { %s3895_s12 = smov 0   ;;  %s4596_s0 = inlined_call_operand.vmem [shape: bf16[2048,144], index: 0, kind: input, shape index: {}]   ;;  %s4597_s1 = inlined_call_operand.vmem [shape: bf16[144,128], index: 1, kind: input, shape index: {}]   ;;  %s4598_s2 = inlined_call_operand.vmem [shape: f32[8,128], index: 2, kind: input, shape index: {}]   ;;  %s4599_s3 = inlined_call_operand.vmem [shape: bf16[2048,128], index: 3, kind: output, shape index: {}]  }
   0x1 LB: > { %s2785_s13 = sadd.s32 4294967295, %s3872_s12   ;;  %p2789_p0 = scmp.ge.s32.totalorder %s3872_s12, 1  ;;  %s3872_s12 = sphi %s3895_s12, %s13_s12  }
   0x2   : > { %p139_p1 = scmp.lt.s32.totalorder %s3872_s12, 3 }
   0x4   : > { %p140_p2 = pnand %p2789_p0, %p139_p1 }
   0x5   : > { %v3665_v0 = vld [vmem:[%s4597_s1] sm:$0xff] (!%p140_p2)   ;;  %v3874_v1 = vmov (!%p140_p2), 0   ;;  %s2790_s16 = sshll.u32 (!%p140_p2), %s2785_s13, 7  ;;  %v3666_v2 = vld [vmem:[%s4597_s1 + $0x8] sm:$0xff] (!%p140_p2)   ;;  %v3667_v3 = vld [vmem:[%s4597_s1 + $0x10] sm:$0xff] (!%p140_p2)   ;;  %vm959_vm0 = vcmask (!%p140_p2), 130048  }
   0x6   : > { %143 = sbr.rel (%p140_p2) target bundleno = 516 (0x204), region = 32  ;;  %1152 = vmatprep.subr.bf16.mxu0 (!%p140_p2), %v3874_v1  ;;  %3638 = vmatprep.subr.bf16.mxu1 (!%p140_p2), %v3874_v1  ;;  %p165_p3 = scmp.lt.s32.totalorder (!%p140_p2), %s2790_s16, 255  ;;  %v3668_v4 = vld [vmem:[%s4597_s1 + $0x18] sm:$0xff] (!%p140_p2)   ;;  %v3669_v7 = vld [vmem:[%s4597_s1 + $0x20] sm:$0xff] (!%p140_p2)   ;;  %v3670_v8 = vld [vmem:[%s4597_s1 + $0x28] sm:$0xff] (!%p140_p2)  }
   0x7   : > { %1153 = vmatpush1.bf16.msra.mxu0 (!%p140_p2), %v3665_v0  ;;  %3647 = vmatpush1.bf16.msra.mxu1 (!%p140_p2), %v3665_v0  ;;  %v3671_v9 = vld [vmem:[%s4597_s1 + $0x30] sm:$0xff] (!%p140_p2)   ;;  %v3672_v10 = vld [vmem:[%s4597_s1 + $0x38] sm:$0xff] (!%p140_p2)   ;;  %v3673_v11 = vld [vmem:[%s4597_s1 + $0x40] sm:$0xff] (!%p140_p2)  }
   0x8   : > { %1154 = vmatprep.subr.bf16.mxu0 (!%p140_p2), %v3874_v1  ;;  %3639 = vmatprep.subr.bf16.mxu1 (!%p140_p2), %v3874_v1 }
   0xb   : > { %1155 = vmatpush1.bf16.msra.mxu0 (!%p140_p2), %v3666_v2  ;;  %3648 = vmatpush1.bf16.msra.mxu1 (!%p140_p2), %v3666_v2 }
   0xc   : > { %1156 = vmatprep.subr.bf16.mxu0 (!%p140_p2), %v3874_v1  ;;  %3640 = vmatprep.subr.bf16.mxu1 (!%p140_p2), %v3874_v1 }
   0xd   : > { %s4601_s16 = smov (!%p165_p3, %s2790_s16), 255 }
   0xe   : > { %s3126_s21 = sshll.u32 %s4601_s16, 3  ;;  %s2794_s13 = sshll.u32 %s4601_s16, 2 }
   0xf   : > { %s3918_s24 = scalar_lea.vmem %s4596_s0, %s3126_s21  ;;  %1157 = vmatpush1.bf16.msra.mxu0 %v3667_v3  ;;  %3649 = vmatpush1.bf16.msra.mxu1 %v3667_v3  ;;  %s4138_s16 = scalar_lea.vmem %s4599_s3, %s2794_s13 }
  0x10   : > { %v3676_v5 = vld [vmem:[%s3918_s24 + $0x4] ss:$8 sps:$4 sm:$0xff]   ;;  %1158 = vmatprep.subr.bf16.mxu0 %v3874_v1  ;;  %3641 = vmatprep.subr.bf16.mxu1 %v3874_v1  ;;  %v3674_v12 = vld [vmem:[%s3918_s24] ss:$8 sps:$4 sm:$0xff]   ;;  %v3680_v14 = vld [vmem:[%s3918_s24 + $0x14] ss:$8 sps:$4 sm:$0xff]  }
  0x11   : > { %v3679_v6 = vld [vmem:[%s3918_s24 + $0x204] ss:$8 sps:$4 sm:$0xff]   ;;  %2932 = vmatprep.mubr.msk.bf16.mxu0 %vm959_vm0, %v3676_v5  ;;  %v3677_v13 = vld [vmem:[%s3918_s24 + $0x200] ss:$8 sps:$4 sm:$0xff]   ;;  %v3682_v15 = vld [vmem:[%s3918_s24 + $0x214] ss:$8 sps:$4 sm:$0xff]  }
  0x12   : > { %2964 = vmatprep.mubr.msk.bf16.mxu1 %vm959_vm0, %v3679_v6  ;;  %v3684_v16 = vld [vmem:[%s3918_s24 + $0x10] ss:$8 sps:$4 sm:$0xff]   ;;  %v3686_v18 = vld [vmem:[%s3918_s24 + $0x24] ss:$8 sps:$4 sm:$0xff]   ;;  %v3690_v20 = vld [vmem:[%s3918_s24 + $0x20] ss:$8 sps:$4 sm:$0xff]  }
  0x13   : > { %1159 = vmatpush1.bf16.msra.mxu0 %v3668_v4  ;;  %3650 = vmatpush1.bf16.msra.mxu1 %v3668_v4  ;;  %v3685_v17 = vld [vmem:[%s3918_s24 + $0x210] ss:$8 sps:$4 sm:$0xff]   ;;  %v3688_v19 = vld [vmem:[%s3918_s24 + $0x224] ss:$8 sps:$4 sm:$0xff]   ;;  %v3691_v21 = vld [vmem:[%s3918_s24 + $0x220] ss:$8 sps:$4 sm:$0xff]  }
  0x14   : > { %1160 = vmatprep.subr.bf16.mxu0 %v3874_v1  ;;  %3642 = vmatprep.subr.bf16.mxu1 %v3874_v1  ;;  %v3692_v22 = vld [vmem:[%s3918_s24 + $0x34] ss:$8 sps:$4 sm:$0xff]   ;;  %v3696_v24 = vld [vmem:[%s3918_s24 + $0x30] ss:$8 sps:$4 sm:$0xff]   ;;  %v3698_v26 = vld [vmem:[%s3918_s24 + $0x44] ss:$8 sps:$4 sm:$0xff]  }
  0x15   : > { %v3694_v23 = vld [vmem:[%s3918_s24 + $0x234] ss:$8 sps:$4 sm:$0xff]   ;;  %v3697_v25 = vld [vmem:[%s3918_s24 + $0x230] ss:$8 sps:$4 sm:$0xff]   ;;  %v3700_v27 = vld [vmem:[%s3918_s24 + $0x244] ss:$8 sps:$4 sm:$0xff]  }
  0x16   : > { %v3702_v28 = vld [vmem:[%s3918_s24 + $0x40] ss:$8 sps:$4 sm:$0xff]   ;;  %v3704_v30 = vld [vmem:[%s3918_s24 + $0x54] ss:$8 sps:$4 sm:$0xff]   ;;  %v3708_v32 = vld [vmem:[%s3918_s24 + $0x50] ss:$8 sps:$4 sm:$0xff]  }
  0x17   : > { %1161 = vmatpush1.bf16.msra.mxu0 %v3669_v7  ;;  %3651 = vmatpush1.bf16.msra.mxu1 %v3669_v7  ;;  %v3703_v29 = vld [vmem:[%s3918_s24 + $0x240] ss:$8 sps:$4 sm:$0xff]   ;;  %v3706_v31 = vld [vmem:[%s3918_s24 + $0x254] ss:$8 sps:$4 sm:$0xff]   ;;  %v3709_v33 = vld [vmem:[%s3918_s24 + $0x250] ss:$8 sps:$4 sm:$0xff]  }
  0x18   : > { %1162 = vmatprep.subr.bf16.mxu0 %v3874_v1  ;;  %3643 = vmatprep.subr.bf16.mxu1 %v3874_v1  ;;  %v3710_v34 = vld [vmem:[%s3918_s24 + $0x64] ss:$8 sps:$4 sm:$0xff]   ;;  %v3714_v36 = vld [vmem:[%s3918_s24 + $0x60] ss:$8 sps:$4 sm:$0xff]   ;;  %v3716_v38 = vld [vmem:[%s3918_s24 + $0x74] ss:$8 sps:$4 sm:$0xff]  }
  0x19   : > { %v3712_v35 = vld [vmem:[%s3918_s24 + $0x264] ss:$8 sps:$4 sm:$0xff]   ;;  %v3715_v37 = vld [vmem:[%s3918_s24 + $0x260] ss:$8 sps:$4 sm:$0xff]   ;;  %v3718_v39 = vld [vmem:[%s3918_s24 + $0x274] ss:$8 sps:$4 sm:$0xff]  }
  0x1a   : > { %v3720_v40 = vld [vmem:[%s3918_s24 + $0x70] ss:$8 sps:$4 sm:$0xff]   ;;  %v3722_v42 = vld [vmem:[%s3918_s24 + $0x84] ss:$8 sps:$4 sm:$0xff]   ;;  %v3726_v44 = vld [vmem:[%s3918_s24 + $0x80] ss:$8 sps:$4 sm:$0xff]  }
  0x1b   : > { %1163 = vmatpush1.bf16.msra.mxu0 %v3670_v8  ;;  %3652 = vmatpush1.bf16.msra.mxu1 %v3670_v8  ;;  %v3721_v41 = vld [vmem:[%s3918_s24 + $0x270] ss:$8 sps:$4 sm:$0xff]   ;;  %v3724_v43 = vld [vmem:[%s3918_s24 + $0x284] ss:$8 sps:$4 sm:$0xff]   ;;  %v3727_v45 = vld [vmem:[%s3918_s24 + $0x280] ss:$8 sps:$4 sm:$0xff]  }
  0x1c   : > { %1164 = vmatprep.subr.bf16.mxu0 %v3874_v1  ;;  %3644 = vmatprep.subr.bf16.mxu1 %v3874_v1  ;;  %v3728_v46 = vld [vmem:[%s3918_s24 + $0x94] ss:$8 sps:$4 sm:$0xff]   ;;  %v3732_v48 = vld [vmem:[%s3918_s24 + $0x90] ss:$8 sps:$4 sm:$0xff]   ;;  %v3734_v50 = vld [vmem:[%s3918_s24 + $0xa4] ss:$8 sps:$4 sm:$0xff]  }
  0x1d   : > { %v3730_v47 = vld [vmem:[%s3918_s24 + $0x294] ss:$8 sps:$4 sm:$0xff]   ;;  %v3733_v49 = vld [vmem:[%s3918_s24 + $0x290] ss:$8 sps:$4 sm:$0xff]   ;;  %v3736_v51 = vld [vmem:[%s3918_s24 + $0x2a4] ss:$8 sps:$4 sm:$0xff]  }
  0x1e   : > { %v3738_v52 = vld [vmem:[%s3918_s24 + $0xa0] ss:$8 sps:$4 sm:$0xff]   ;;  %v3740_v54 = vld [vmem:[%s3918_s24 + $0xb4] ss:$8 sps:$4 sm:$0xff]   ;;  %v3744_v56 = vld [vmem:[%s3918_s24 + $0xb0] ss:$8 sps:$4 sm:$0xff]  }
  0x1f   : > { %1165 = vmatpush1.bf16.msra.mxu0 %v3671_v9  ;;  %3653 = vmatpush1.bf16.msra.mxu1 %v3671_v9  ;;  %v3739_v53 = vld [vmem:[%s3918_s24 + $0x2a0] ss:$8 sps:$4 sm:$0xff]   ;;  %v3742_v55 = vld [vmem:[%s3918_s24 + $0x2b4] ss:$8 sps:$4 sm:$0xff]   ;;  %v3745_v57 = vld [vmem:[%s3918_s24 + $0x2b0] ss:$8 sps:$4 sm:$0xff]  }
  0x20   : > { %1166 = vmatprep.subr.bf16.mxu0 %v3874_v1  ;;  %3645 = vmatprep.subr.bf16.mxu1 %v3874_v1  ;;  %v3746_v58 = vld [vmem:[%s3918_s24 + $0xc4] ss:$8 sps:$4 sm:$0xff]   ;;  %v3750_v60 = vld [vmem:[%s3918_s24 + $0xc0] ss:$8 sps:$4 sm:$0xff]   ;;  %v3752_v62 = vld [vmem:[%s3918_s24 + $0xd4] ss:$8 sps:$4 sm:$0xff]  }
  0x21   : > { %v3748_v59 = vld [vmem:[%s3918_s24 + $0x2c4] ss:$8 sps:$4 sm:$0xff]   ;;  %v3751_v61 = vld [vmem:[%s3918_s24 + $0x2c0] ss:$8 sps:$4 sm:$0xff]   ;;  %v3754_v63 = vld [vmem:[%s3918_s24 + $0x2d4] ss:$8 sps:$4 sm:$0xff]  }
  0x22   : > { %v3756_v0 = vld [vmem:[%s3918_s24 + $0xd0] ss:$8 sps:$4 sm:$0xff]   ;;  %v3758_v2 = vld [vmem:[%s3918_s24 + $0xe4] ss:$8 sps:$4 sm:$0xff]   ;;  %v3762_v4 = vld [vmem:[%s3918_s24 + $0xe0] ss:$8 sps:$4 sm:$0xff]  }
  0x23   : > { %1167 = vmatpush1.bf16.msra.mxu0 %v3672_v10  ;;  %3654 = vmatpush1.bf16.msra.mxu1 %v3672_v10  ;;  %v3760_v3 = vld [vmem:[%s3918_s24 + $0x2e4] ss:$8 sps:$4 sm:$0xff]   ;;  %v3763_v5 = vld [vmem:[%s3918_s24 + $0x2e0] ss:$8 sps:$4 sm:$0xff]   ;;  %v3764_v6 = vld [vmem:[%s3918_s24 + $0xf4] ss:$8 sps:$4 sm:$0xff]  }
  0x24   : > { %1168 = vmatprep.subr.bf16.mxu0 %v3874_v1  ;;  %3646 = vmatprep.subr.bf16.mxu1 %v3874_v1  ;;  %v3757_v1 = vld [vmem:[%s3918_s24 + $0x2d0] ss:$8 sps:$4 sm:$0xff]   ;;  %v3766_v7 = vld [vmem:[%s3918_s24 + $0x2f4] ss:$8 sps:$4 sm:$0xff]   ;;  %v3770_v10 = vld [vmem:[%s3918_s24 + $0x104] ss:$8 sps:$4 sm:$0xff]  }
  0x25   : > { %v3768_v8 = vld [vmem:[%s3918_s24 + $0xf0] ss:$8 sps:$4 sm:$0xff]  }
  0x26   : > { %v3769_v9 = vld [vmem:[%s3918_s24 + $0x2f0] ss:$8 sps:$4 sm:$0xff]  }
  0x27   : > { %1169 = vmatpush1.bf16.msra.mxu0 %v3673_v11  ;;  %3655 = vmatpush1.bf16.msra.mxu1 %v3673_v11  ;;  %v3772_v11 = vld [vmem:[%s3918_s24 + $0x304] ss:$8 sps:$4 sm:$0xff]  }
  0x2a   : > { %1185 = vmatmul.mubr.bf16.vlgmr.msra.gmra.mrb[0].mxu0 %v3674_v12  ;;  %1441 = vmatmul.mubr.bf16.vlgmr.msra.gmra.mrb[0].mxu1 %v3677_v13  ;;  %v3774_v12 = vld [vmem:[%s3918_s24 + $0x100] ss:$8 sps:$4 sm:$0xff]  }
  0x2b   : > { %2933 = vmatprep.mubr.msk.bf16.mxu0 %vm959_vm0, %v3680_v14  ;;  %2965 = vmatprep.mubr.msk.bf16.mxu1 %vm959_vm0, %v3682_v15  ;;  %v3775_v13 = vld [vmem:[%s3918_s24 + $0x300] ss:$8 sps:$4 sm:$0xff]   ;;  %v3776_v14 = vld [vmem:[%s3918_s24 + $0x114] ss:$8 sps:$4 sm:$0xff]  }
  0x2c   : > { %v3778_v15 = vld [vmem:[%s3918_s24 + $0x314] ss:$8 sps:$4 sm:$0xff]  }
  0x32   : > { %1193 = vmatmul.mubr.bf16.gmra.mrb[4].mxu0 %v3684_v16  ;;  %1449 = vmatmul.mubr.bf16.gmra.mrb[4].mxu1 %v3685_v17  ;;  %v3780_v16 = vld [vmem:[%s3918_s24 + $0x110] ss:$8 sps:$4 sm:$0xff]  }
  0x33   : > { %2934 = vmatprep.mubr.msk.bf16.mxu0 %vm959_vm0, %v3686_v18  ;;  %2966 = vmatprep.mubr.msk.bf16.mxu1 %vm959_vm0, %v3688_v19  ;;  %v3781_v17 = vld [vmem:[%s3918_s24 + $0x310] ss:$8 sps:$4 sm:$0xff]   ;;  %v3782_v18 = vld [vmem:[%s3918_s24 + $0x124] ss:$8 sps:$4 sm:$0xff]  }
  0x34   : > { %v3784_v19 = vld [vmem:[%s3918_s24 + $0x324] ss:$8 sps:$4 sm:$0xff]  }
  0x3a   : > { %1201 = vmatmul.mubr.bf16.gmra.mrb[8].mxu0 %v3690_v20  ;;  %1457 = vmatmul.mubr.bf16.gmra.mrb[8].mxu1 %v3691_v21  ;;  %v3786_v20 = vld [vmem:[%s3918_s24 + $0x120] ss:$8 sps:$4 sm:$0xff]  }
  0x3b   : > { %2935 = vmatprep.mubr.msk.bf16.mxu0 %vm959_vm0, %v3692_v22  ;;  %2967 = vmatprep.mubr.msk.bf16.mxu1 %vm959_vm0, %v3694_v23  ;;  %v3787_v21 = vld [vmem:[%s3918_s24 + $0x320] ss:$8 sps:$4 sm:$0xff]   ;;  %v3788_v22 = vld [vmem:[%s3918_s24 + $0x134] ss:$8 sps:$4 sm:$0xff]  }
  0x3c   : > { %v3790_v23 = vld [vmem:[%s3918_s24 + $0x334] ss:$8 sps:$4 sm:$0xff]  }
  0x42   : > { %1209 = vmatmul.mubr.bf16.gmra.mrb[12].mxu0 %v3696_v24  ;;  %1465 = vmatmul.mubr.bf16.gmra.mrb[12].mxu1 %v3697_v25  ;;  %v3792_v24 = vld [vmem:[%s3918_s24 + $0x130] ss:$8 sps:$4 sm:$0xff]  }
  0x43   : > { %2936 = vmatprep.mubr.msk.bf16.mxu0 %vm959_vm0, %v3698_v26  ;;  %2968 = vmatprep.mubr.msk.bf16.mxu1 %vm959_vm0, %v3700_v27  ;;  %v3793_v25 = vld [vmem:[%s3918_s24 + $0x330] ss:$8 sps:$4 sm:$0xff]   ;;  %v3794_v26 = vld [vmem:[%s3918_s24 + $0x144] ss:$8 sps:$4 sm:$0xff]  }
  0x44   : > { %v3796_v27 = vld [vmem:[%s3918_s24 + $0x344] ss:$8 sps:$4 sm:$0xff]  }
  0x4a   : > { %1217 = vmatmul.mubr.bf16.gmra.mrb[16].mxu0 %v3702_v28  ;;  %1473 = vmatmul.mubr.bf16.gmra.mrb[16].mxu1 %v3703_v29  ;;  %v3798_v28 = vld [vmem:[%s3918_s24 + $0x140] ss:$8 sps:$4 sm:$0xff]  }
  0x4b   : > { %2937 = vmatprep.mubr.msk.bf16.mxu0 %vm959_vm0, %v3704_v30  ;;  %2969 = vmatprep.mubr.msk.bf16.mxu1 %vm959_vm0, %v3706_v31  ;;  %v3799_v29 = vld [vmem:[%s3918_s24 + $0x340] ss:$8 sps:$4 sm:$0xff]   ;;  %v3800_v30 = vld [vmem:[%s3918_s24 + $0x154] ss:$8 sps:$4 sm:$0xff]  }
  0x4c   : > { %v3802_v31 = vld [vmem:[%s3918_s24 + $0x354] ss:$8 sps:$4 sm:$0xff]  }
  0x52   : > { %1225 = vmatmul.mubr.bf16.gmra.mrb[20].mxu0 %v3708_v32  ;;  %1481 = vmatmul.mubr.bf16.gmra.mrb[20].mxu1 %v3709_v33  ;;  %v3804_v32 = vld [vmem:[%s3918_s24 + $0x150] ss:$8 sps:$4 sm:$0xff]  }
  0x53   : > { %2938 = vmatprep.mubr.msk.bf16.mxu0 %vm959_vm0, %v3710_v34  ;;  %2970 = vmatprep.mubr.msk.bf16.mxu1 %vm959_vm0, %v3712_v35  ;;  %v3805_v33 = vld [vmem:[%s3918_s24 + $0x350] ss:$8 sps:$4 sm:$0xff]   ;;  %v3806_v34 = vld [vmem:[%s3918_s24 + $0x164] ss:$8 sps:$4 sm:$0xff]  }
  0x54   : > { %v3808_v35 = vld [vmem:[%s3918_s24 + $0x364] ss:$8 sps:$4 sm:$0xff]  }
  0x5a   : > { %1233 = vmatmul.mubr.bf16.gmra.mrb[24].mxu0 %v3714_v36  ;;  %1489 = vmatmul.mubr.bf16.gmra.mrb[24].mxu1 %v3715_v37  ;;  %v3810_v36 = vld [vmem:[%s3918_s24 + $0x160] ss:$8 sps:$4 sm:$0xff]  }
  0x5b   : > { %2939 = vmatprep.mubr.msk.bf16.mxu0 %vm959_vm0, %v3716_v38  ;;  %2971 = vmatprep.mubr.msk.bf16.mxu1 %vm959_vm0, %v3718_v39  ;;  %v3811_v37 = vld [vmem:[%s3918_s24 + $0x360] ss:$8 sps:$4 sm:$0xff]   ;;  %v3812_v38 = vld [vmem:[%s3918_s24 + $0x174] ss:$8 sps:$4 sm:$0xff]  }
  0x5c   : > { %v3814_v39 = vld [vmem:[%s3918_s24 + $0x374] ss:$8 sps:$4 sm:$0xff]  }
  0x62   : > { %1241 = vmatmul.mubr.bf16.gmra.mrb[28].mxu0 %v3720_v40  ;;  %1497 = vmatmul.mubr.bf16.gmra.mrb[28].mxu1 %v3721_v41  ;;  %v3816_v40 = vld [vmem:[%s3918_s24 + $0x170] ss:$8 sps:$4 sm:$0xff]  }
  0x63   : > { %2940 = vmatprep.mubr.msk.bf16.mxu0 %vm959_vm0, %v3722_v42  ;;  %2972 = vmatprep.mubr.msk.bf16.mxu1 %vm959_vm0, %v3724_v43  ;;  %v3817_v41 = vld [vmem:[%s3918_s24 + $0x370] ss:$8 sps:$4 sm:$0xff]   ;;  %v3818_v42 = vld [vmem:[%s3918_s24 + $0x184] ss:$8 sps:$4 sm:$0xff]  }
  0x64   : > { %v3820_v43 = vld [vmem:[%s3918_s24 + $0x384] ss:$8 sps:$4 sm:$0xff]  }
  0x6a   : > { %1249 = vmatmul.mubr.bf16.gmra.mrb[32].mxu0 %v3726_v44  ;;  %1505 = vmatmul.mubr.bf16.gmra.mrb[32].mxu1 %v3727_v45  ;;  %v3822_v44 = vld [vmem:[%s3918_s24 + $0x180] ss:$8 sps:$4 sm:$0xff]  }
  0x6b   : > { %2941 = vmatprep.mubr.msk.bf16.mxu0 %vm959_vm0, %v3728_v46  ;;  %2973 = vmatprep.mubr.msk.bf16.mxu1 %vm959_vm0, %v3730_v47  ;;  %v3823_v45 = vld [vmem:[%s3918_s24 + $0x380] ss:$8 sps:$4 sm:$0xff]   ;;  %v3824_v46 = vld [vmem:[%s3918_s24 + $0x194] ss:$8 sps:$4 sm:$0xff]  }
  0x6c   : > { %v3826_v47 = vld [vmem:[%s3918_s24 + $0x394] ss:$8 sps:$4 sm:$0xff]  }
  0x72   : > { %1257 = vmatmul.mubr.bf16.gmra.mrb[36].mxu0 %v3732_v48  ;;  %1513 = vmatmul.mubr.bf16.gmra.mrb[36].mxu1 %v3733_v49  ;;  %v3828_v48 = vld [vmem:[%s3918_s24 + $0x190] ss:$8 sps:$4 sm:$0xff]  }
  0x73   : > { %2942 = vmatprep.mubr.msk.bf16.mxu0 %vm959_vm0, %v3734_v50  ;;  %2974 = vmatprep.mubr.msk.bf16.mxu1 %vm959_vm0, %v3736_v51  ;;  %v3829_v49 = vld [vmem:[%s3918_s24 + $0x390] ss:$8 sps:$4 sm:$0xff]   ;;  %v325_v50 = vlaneseq  ;;  %v3830_v51 = vld [vmem:[%s3918_s24 + $0x1a4] ss:$8 sps:$4 sm:$0xff]  }
  0x7a   : > { %1265 = vmatmul.mubr.bf16.gmra.mrb[40].mxu0 %v3738_v52  ;;  %1521 = vmatmul.mubr.bf16.gmra.mrb[40].mxu1 %v3739_v53  ;;  %v3832_v52 = vld [vmem:[%s3918_s24 + $0x3a4] ss:$8 sps:$4 sm:$0xff]   ;;  %v326_v53 = vshrl.u32 %v325_v50, 7 }
  0x7b   : > { %2943 = vmatprep.mubr.msk.bf16.mxu0 %vm959_vm0, %v3740_v54  ;;  %2975 = vmatprep.mubr.msk.bf16.mxu1 %vm959_vm0, %v3742_v55  ;;  %v3834_v54 = vld [vmem:[%s3918_s24 + $0x1a0] ss:$8 sps:$4 sm:$0xff]  }
  0x7c   : > { %v3835_v55 = vld [vmem:[%s3918_s24 + $0x3a0] ss:$8 sps:$4 sm:$0xff]  }
  0x82   : > { %1273 = vmatmul.mubr.bf16.gmra.mrb[44].mxu0 %v3744_v56  ;;  %1529 = vmatmul.mubr.bf16.gmra.mrb[44].mxu1 %v3745_v57  ;;  %v327_v56 = vsub.s32 0, %v326_v53  ;;  %v178_v57 = vld [vmem:[%s4598_s2] sm:$0xff] }
  0x83   : > { %2944 = vmatprep.mubr.msk.bf16.mxu0 %vm959_vm0, %v3746_v58  ;;  %2976 = vmatprep.mubr.msk.bf16.mxu1 %vm959_vm0, %v3748_v59  ;;  %v3836_v58 = vld [vmem:[%s3918_s24 + $0x1b4] ss:$8 sps:$4 sm:$0xff]  }
  0x84   : > { %v3838_v59 = vld [vmem:[%s3918_s24 + $0x3b4] ss:$8 sps:$4 sm:$0xff]  }
  0x8a   : > { %1281 = vmatmul.mubr.bf16.gmra.mrb[48].mxu0 %v3750_v60  ;;  %1537 = vmatmul.mubr.bf16.gmra.mrb[48].mxu1 %v3751_v61  ;;  %v1699_v60 = vsub.s32 1, %v326_v53  ;;  %v4105_v61 = vrot.slane %v178_v57, %v327_v56 }
  0x8b   : > { %2945 = vmatprep.mubr.msk.bf16.mxu0 %vm959_vm0, %v3752_v62  ;;  %2977 = vmatprep.mubr.msk.bf16.mxu1 %vm959_vm0, %v3754_v63  ;;  %v1831_v62 = vsub.s32 2, %v326_v53 }
  0x8c   : > { %v4109_v63 = vrot.slane %v178_v57, %v1699_v60 }
  0x92   : > { %1289 = vmatmul.mubr.bf16.gmra.mrb[52].mxu0 %v3756_v0  ;;  %1545 = vmatmul.mubr.bf16.gmra.mrb[52].mxu1 %v3757_v1 }
  0x93   : > { %2946 = vmatprep.mubr.msk.bf16.mxu0 %vm959_vm0, %v3758_v2  ;;  %2978 = vmatprep.mubr.msk.bf16.mxu1 %vm959_vm0, %v3760_v3  ;;  %v4112_v3 = vrot.slane %v178_v57, %v1831_v62  ;;  %v3852_v57 = vld [vmem:[%s3918_s24 + $0x1d0] ss:$8 sps:$4 sm:$0xff]  }
  0x9a   : > { %1297 = vmatmul.mubr.bf16.gmra.mrb[56].mxu0 %v3762_v4  ;;  %1553 = vmatmul.mubr.bf16.gmra.mrb[56].mxu1 %v3763_v5 }
  0x9b   : > { %2947 = vmatprep.mubr.msk.bf16.mxu0 %vm959_vm0, %v3764_v6  ;;  %2979 = vmatprep.mubr.msk.bf16.mxu1 %vm959_vm0, %v3766_v7  ;;  %v3840_v7 = vld [vmem:[%s3918_s24 + $0x1b0] ss:$8 sps:$4 sm:$0xff]  }
  0xa2   : > { %1305 = vmatmul.mubr.bf16.gmra.mrb[60].mxu0 %v3768_v8  ;;  %1561 = vmatmul.mubr.bf16.gmra.mrb[60].mxu1 %v3769_v9 }
  0xa3   : > { %2948 = vmatprep.mubr.msk.bf16.mxu0 %vm959_vm0, %v3770_v10  ;;  %2980 = vmatprep.mubr.msk.bf16.mxu1 %vm959_vm0, %v3772_v11  ;;  %v3841_v10 = vld [vmem:[%s3918_s24 + $0x3b0] ss:$8 sps:$4 sm:$0xff]   ;;  %v3842_v11 = vld [vmem:[%s3918_s24 + $0x1c4] ss:$8 sps:$4 sm:$0xff]  }
  0xaa   : > { %1313 = vmatmul.mubr.bf16.gmra.mrb[64].mxu0 %v3774_v12  ;;  %1569 = vmatmul.mubr.bf16.gmra.mrb[64].mxu1 %v3775_v13 }
  0xab   : > { %2949 = vmatprep.mubr.msk.bf16.mxu0 %vm959_vm0, %v3776_v14  ;;  %2981 = vmatprep.mubr.msk.bf16.mxu1 %vm959_vm0, %v3778_v15 }
  0xb2   : > { %1321 = vmatmul.mubr.bf16.gmra.mrb[68].mxu0 %v3780_v16  ;;  %1577 = vmatmul.mubr.bf16.gmra.mrb[68].mxu1 %v3781_v17 }
  0xb3   : > { %2950 = vmatprep.mubr.msk.bf16.mxu0 %vm959_vm0, %v3782_v18  ;;  %2982 = vmatprep.mubr.msk.bf16.mxu1 %vm959_vm0, %v3784_v19  ;;  %v3844_v18 = vld [vmem:[%s3918_s24 + $0x3c4] ss:$8 sps:$4 sm:$0xff]  }
  0xba   : > { %1329 = vmatmul.mubr.bf16.gmra.mrb[72].mxu0 %v3786_v20  ;;  %1585 = vmatmul.mubr.bf16.gmra.mrb[72].mxu1 %v3787_v21 }
  0xbb   : > { %2951 = vmatprep.mubr.msk.bf16.mxu0 %vm959_vm0, %v3788_v22  ;;  %2983 = vmatprep.mubr.msk.bf16.mxu1 %vm959_vm0, %v3790_v23 }
  0xc2   : > { %1337 = vmatmul.mubr.bf16.gmra.mrb[76].mxu0 %v3792_v24  ;;  %1593 = vmatmul.mubr.bf16.gmra.mrb[76].mxu1 %v3793_v25 }
  0xc3   : > { %2952 = vmatprep.mubr.msk.bf16.mxu0 %vm959_vm0, %v3794_v26  ;;  %2984 = vmatprep.mubr.msk.bf16.mxu1 %vm959_vm0, %v3796_v27 }
  0xca   : > { %1345 = vmatmul.mubr.bf16.gmra.mrb[80].mxu0 %v3798_v28  ;;  %1601 = vmatmul.mubr.bf16.gmra.mrb[80].mxu1 %v3799_v29 }
  0xcb   : > { %2953 = vmatprep.mubr.msk.bf16.mxu0 %vm959_vm0, %v3800_v30  ;;  %2985 = vmatprep.mubr.msk.bf16.mxu1 %vm959_vm0, %v3802_v31 }
  0xd2   : > { %1353 = vmatmul.mubr.bf16.gmra.mrb[84].mxu0 %v3804_v32  ;;  %1609 = vmatmul.mubr.bf16.gmra.mrb[84].mxu1 %v3805_v33 }
  0xd3   : > { %2954 = vmatprep.mubr.msk.bf16.mxu0 %vm959_vm0, %v3806_v34  ;;  %2986 = vmatprep.mubr.msk.bf16.mxu1 %vm959_vm0, %v3808_v35  ;;  %v3846_v35 = vld [vmem:[%s3918_s24 + $0x1c0] ss:$8 sps:$4 sm:$0xff]  }
  0xda   : > { %1361 = vmatmul.mubr.bf16.gmra.mrb[88].mxu0 %v3810_v36  ;;  %1617 = vmatmul.mubr.bf16.gmra.mrb[88].mxu1 %v3811_v37 }
  0xdb   : > { %2955 = vmatprep.mubr.msk.bf16.mxu0 %vm959_vm0, %v3812_v38  ;;  %2987 = vmatprep.mubr.msk.bf16.mxu1 %vm959_vm0, %v3814_v39  ;;  %v3847_v38 = vld [vmem:[%s3918_s24 + $0x3c0] ss:$8 sps:$4 sm:$0xff]   ;;  %v3848_v39 = vld [vmem:[%s3918_s24 + $0x1d4] ss:$8 sps:$4 sm:$0xff]  }
  0xe2   : > { %1369 = vmatmul.mubr.bf16.gmra.mrb[92].mxu0 %v3816_v40  ;;  %1625 = vmatmul.mubr.bf16.gmra.mrb[92].mxu1 %v3817_v41 }
  0xe3   : > { %2956 = vmatprep.mubr.msk.bf16.mxu0 %vm959_vm0, %v3818_v42  ;;  %2988 = vmatprep.mubr.msk.bf16.mxu1 %vm959_vm0, %v3820_v43 }
  0xea   : > { %1377 = vmatmul.mubr.bf16.gmra.mrb[96].mxu0 %v3822_v44  ;;  %1633 = vmatmul.mubr.bf16.gmra.mrb[96].mxu1 %v3823_v45 }
  0xeb   : > { %2957 = vmatprep.mubr.msk.bf16.mxu0 %vm959_vm0, %v3824_v46  ;;  %2989 = vmatprep.mubr.msk.bf16.mxu1 %vm959_vm0, %v3826_v47  ;;  %v3850_v46 = vld [vmem:[%s3918_s24 + $0x3d4] ss:$8 sps:$4 sm:$0xff]  }
  0xf2   : > { %1385 = vmatmul.mubr.bf16.gmra.mrb[100].mxu0 %v3828_v48  ;;  %1641 = vmatmul.mubr.bf16.gmra.mrb[100].mxu1 %v3829_v49 }
  0xf3   : > { %2958 = vmatprep.mubr.msk.bf16.mxu0 %vm959_vm0, %v3830_v51  ;;  %2990 = vmatprep.mubr.msk.bf16.mxu1 %vm959_vm0, %v3832_v52 }
  0xfa   : > { %1393 = vmatmul.mubr.bf16.gmra.mrb[104].mxu0 %v3834_v54  ;;  %1649 = vmatmul.mubr.bf16.gmra.mrb[104].mxu1 %v3835_v55 }
  0xfb   : > { %2959 = vmatprep.mubr.msk.bf16.mxu0 %vm959_vm0, %v3836_v58  ;;  %2991 = vmatprep.mubr.msk.bf16.mxu1 %vm959_vm0, %v3838_v59 }
  0xfd   : > { %v1186_v0 = vpop.f32.mrb[0].mxu0  ;;  %v1442_v1 = vpop.f32.mrb[0].mxu1 }
  0xfe   : > { %v1187_v2 = vadd.f32 %v1186_v0, %v4105_v61  ;;  %v1443_v4 = vadd.f32 %v1442_v1, %v4105_v61  ;;  %v1188_v5 = vpop.f32.mrb[1].mxu0  ;;  %v1444_v6 = vpop.f32.mrb[1].mxu1  ;;  %v3853_v0 = vld [vmem:[%s3918_s24 + $0x3d0] ss:$8 sps:$4 sm:$0xff]   ;;  %v3854_v1 = vld [vmem:[%s3918_s24 + $0x1e4] ss:$8 sps:$4 sm:$0xff]  }
  0xff   : > { %v1189_v8 = vpop.f32.mrb[2].mxu0  ;;  %v1445_v9 = vpop.f32.mrb[2].mxu1 }
 0x100   : > { %v1701_v12 = vmul.f32 %v4109_v63, %v1187_v2  ;;  %v1765_v13 = vmul.f32 %v4109_v63, %v1443_v4  ;;  %v1190_v14 = vadd.f32 %v1189_v8, %v4105_v61  ;;  %v1446_v15 = vadd.f32 %v1445_v9, %v4105_v61  ;;  %v1191_v16 = vpop.f32.mrb[3].mxu0  ;;  %v1447_v17 = vpop.f32.mrb[3].mxu1 }
 0x102   : > { %v1833_v19 = vadd.f32 %v4112_v3, %v1701_v12  ;;  %v1897_v20 = vadd.f32 %v4112_v3, %v1765_v13  ;;  %v1702_v21 = vmul.f32 %v4109_v63, %v1190_v14  ;;  %v1766_v22 = vmul.f32 %v4109_v63, %v1446_v15  ;;  %1401 = vmatmul.mubr.bf16.gmra.mrb[108].mxu0 %v3840_v7  ;;  %v3856_v15 = vld [vmem:[%s3918_s24 + $0x3e4] ss:$8 sps:$4 sm:$0xff]  }
 0x103   : > { %1657 = vmatmul.mubr.bf16.gmra.mrb[108].mxu1 %v3841_v10  ;;  %2960 = vmatprep.mubr.msk.bf16.mxu0 %vm959_vm0, %v3842_v11 }
 0x104   : > { %v1834_v23 = vadd.f32 %v4112_v3, %v1702_v21  ;;  %v1898_v24 = vadd.f32 %v4112_v3, %v1766_v22  ;;  %2992 = vmatprep.mubr.msk.bf16.mxu1 %vm959_vm0, %v3844_v18  ;;  %v1961_v25 = vmax.f32 %v1833_v19, 0.0  ;;  %v2025_v26 = vmax.f32 %v1897_v20, 0.0 }
 0x105   : > { %v1194_v27 = vpop.f32.mrb[4].mxu0  ;;  %v1450_v28 = vpop.f32.mrb[4].mxu1 }
 0x106   : > { %v1962_v29 = vmax.f32 %v1834_v23, 0.0  ;;  %v2026_v30 = vmax.f32 %v1898_v24, 0.0  ;;  %v1195_v31 = vadd.f32 %v1194_v27, %v4105_v61  ;;  %v1451_v32 = vadd.f32 %v1450_v28, %v4105_v61  ;;  %v1196_v33 = vpop.f32.mrb[5].mxu0  ;;  %v1452_v34 = vpop.f32.mrb[5].mxu1 }
 0x107   : > { %v1197_v36 = vpop.f32.mrb[6].mxu0  ;;  %v1453_v37 = vpop.f32.mrb[6].mxu1  ;;  %v3858_v34 = vld [vmem:[%s3918_s24 + $0x1e0] ss:$8 sps:$4 sm:$0xff]  }
 0x108   : > { %v3258_v40 = vpack.c.bf16 %v1962_v29, %v1961_v25  ;;  %v3418_v41 = vpack.c.bf16 %v2026_v30, %v2025_v26  ;;  %v1703_v42 = vmul.f32 %v4109_v63, %v1195_v31  ;;  %v1767_v43 = vmul.f32 %v4109_v63, %v1451_v32  ;;  %v1199_v44 = vpop.f32.mrb[7].mxu0  ;;  %v1455_v45 = vpop.f32.mrb[7].mxu1 }
 0x109   : > { %v1198_v47 = vadd.f32 %v1197_v36, %v4105_v61  ;;  %v1454_v48 = vadd.f32 %v1453_v37, %v4105_v61  ;;  %v3859_v37 = vld [vmem:[%s3918_s24 + $0x3e0] ss:$8 sps:$4 sm:$0xff]   ;;  %v3862_v45 = vld [vmem:[%s3918_s24 + $0x3f4] ss:$8 sps:$4 sm:$0xff]  }
 0x10a   : > { %3259 = vst [vmem:[%s4138_s16] sm:$0xff] %v3258_v40   ;;  %3606 = vst [vmem:[%s4138_s16 + $0x100] sm:$0xff] %v3418_v41   ;;  %v1835_v49 = vadd.f32 %v4112_v3, %v1703_v42  ;;  %1409 = vmatmul.mubr.bf16.gmra.mrb[112].mxu0 %v3846_v35  ;;  %v1899_v50 = vadd.f32 %v4112_v3, %v1767_v43 }
 0x10b   : > { %v1704_v51 = vmul.f32 %v4109_v63, %v1198_v47  ;;  %v1768_v52 = vmul.f32 %v4109_v63, %v1454_v48  ;;  %1665 = vmatmul.mubr.bf16.gmra.mrb[112].mxu1 %v3847_v38  ;;  %2961 = vmatprep.mubr.msk.bf16.mxu0 %vm959_vm0, %v3848_v39  ;;  %v3860_v38 = vld [vmem:[%s3918_s24 + $0x1f4] ss:$8 sps:$4 sm:$0xff]  }
 0x10c   : > { %2993 = vmatprep.mubr.msk.bf16.mxu1 %vm959_vm0, %v3850_v46  ;;  %v1963_v2 = vmax.f32 %v1835_v49, 0.0  ;;  %v2027_v4 = vmax.f32 %v1899_v50, 0.0 }
 0x10d   : > { %v1836_v53 = vadd.f32 %v4112_v3, %v1704_v51  ;;  %v1900_v54 = vadd.f32 %v4112_v3, %v1768_v52  ;;  %v1202_v55 = vpop.f32.mrb[8].mxu0  ;;  %v1458_v56 = vpop.f32.mrb[8].mxu1 }
 0x10e   : > { %v1203_v58 = vadd.f32 %v1202_v55, %v4105_v61  ;;  %v1459_v59 = vadd.f32 %v1458_v56, %v4105_v61  ;;  %v1204_v60 = vpop.f32.mrb[9].mxu0  ;;  %v1460_v62 = vpop.f32.mrb[9].mxu1 }
 0x10f   : > { %v1964_v5 = vmax.f32 %v1836_v53, 0.0  ;;  %v2028_v6 = vmax.f32 %v1900_v54, 0.0  ;;  %v1205_v7 = vpop.f32.mrb[10].mxu0  ;;  %v1461_v8 = vpop.f32.mrb[10].mxu1  ;;  %v3864_v60 = vld [vmem:[%s3918_s24 + $0x1f0] ss:$8 sps:$4 sm:$0xff]  }
 0x110   : > { %v1705_v9 = vmul.f32 %v4109_v63, %v1203_v58  ;;  %v1769_v10 = vmul.f32 %v4109_v63, %v1459_v59  ;;  %v1206_v11 = vadd.f32 %v1205_v7, %v4105_v61  ;;  %v1462_v12 = vadd.f32 %v1461_v8, %v4105_v61  ;;  %v1207_v13 = vpop.f32.mrb[11].mxu0  ;;  %v1463_v14 = vpop.f32.mrb[11].mxu1  ;;  %v3865_v62 = vld [vmem:[%s3918_s24 + $0x3f0] ss:$8 sps:$4 sm:$0xff]  }
 0x111   : > { %v3263_v16 = vpack.c.bf16 %v1964_v5, %v1963_v2  ;;  %v3423_v17 = vpack.c.bf16 %v2028_v6, %v2027_v4 }
 0x112   : > { %v1837_v18 = vadd.f32 %v4112_v3, %v1705_v9  ;;  %v1901_v19 = vadd.f32 %v4112_v3, %v1769_v10  ;;  %v1706_v20 = vmul.f32 %v4109_v63, %v1206_v11  ;;  %v1770_v21 = vmul.f32 %v4109_v63, %v1462_v12  ;;  %1417 = vmatmul.mubr.bf16.gmra.mrb[116].mxu0 %v3852_v57 }
 0x113   : > { %3575 = vst [vmem:[%s4138_s16 + $0x8] sm:$0xff] %v3263_v16   ;;  %3607 = vst [vmem:[%s4138_s16 + $0x108] sm:$0xff] %v3423_v17   ;;  %1673 = vmatmul.mubr.bf16.gmra.mrb[116].mxu1 %v3853_v0  ;;  %2962 = vmatprep.mubr.msk.bf16.mxu0 %vm959_vm0, %v3854_v1 }
 0x114   : > { %v1838_v22 = vadd.f32 %v4112_v3, %v1706_v20  ;;  %v1902_v23 = vadd.f32 %v4112_v3, %v1770_v21  ;;  %2994 = vmatprep.mubr.msk.bf16.mxu1 %vm959_vm0, %v3856_v15  ;;  %v1965_v24 = vmax.f32 %v1837_v18, 0.0  ;;  %v2029_v25 = vmax.f32 %v1901_v19, 0.0 }
 0x115   : > { %v1210_v26 = vpop.f32.mrb[12].mxu0  ;;  %v1466_v27 = vpop.f32.mrb[12].mxu1 }
 0x116   : > { %v1966_v28 = vmax.f32 %v1838_v22, 0.0  ;;  %v2030_v29 = vmax.f32 %v1902_v23, 0.0  ;;  %v1211_v30 = vadd.f32 %v1210_v26, %v4105_v61  ;;  %v1467_v31 = vadd.f32 %v1466_v27, %v4105_v61  ;;  %v1212_v32 = vpop.f32.mrb[13].mxu0  ;;  %v1468_v33 = vpop.f32.mrb[13].mxu1 }
 0x117   : > { %v1213_v35 = vpop.f32.mrb[14].mxu0  ;;  %v1469_v36 = vpop.f32.mrb[14].mxu1 }
 0x118   : > { %v3268_v39 = vpack.c.bf16 %v1966_v28, %v1965_v24  ;;  %v3428_v40 = vpack.c.bf16 %v2030_v29, %v2029_v25  ;;  %v1707_v41 = vmul.f32 %v4109_v63, %v1211_v30  ;;  %v1771_v42 = vmul.f32 %v4109_v63, %v1467_v31  ;;  %v1215_v43 = vpop.f32.mrb[15].mxu0  ;;  %v1471_v44 = vpop.f32.mrb[15].mxu1 }
 0x119   : > { %v1214_v46 = vadd.f32 %v1213_v35, %v4105_v61  ;;  %v1470_v47 = vadd.f32 %v1469_v36, %v4105_v61 }
 0x11a   : > { %3576 = vst [vmem:[%s4138_s16 + $0x10] sm:$0xff] %v3268_v39   ;;  %3608 = vst [vmem:[%s4138_s16 + $0x110] sm:$0xff] %v3428_v40   ;;  %v1839_v48 = vadd.f32 %v4112_v3, %v1707_v41  ;;  %1425 = vmatmul.mubr.bf16.gmra.mrb[120].mxu0 %v3858_v34  ;;  %v1903_v49 = vadd.f32 %v4112_v3, %v1771_v42 }
 0x11b   : > { %v1708_v50 = vmul.f32 %v4109_v63, %v1214_v46  ;;  %v1772_v51 = vmul.f32 %v4109_v63, %v1470_v47  ;;  %1681 = vmatmul.mubr.bf16.gmra.mrb[120].mxu1 %v3859_v37  ;;  %2963 = vmatprep.mubr.msk.bf16.mxu0 %vm959_vm0, %v3860_v38 }
 0x11c   : > { %2995 = vmatprep.mubr.msk.bf16.mxu1 %vm959_vm0, %v3862_v45  ;;  %v1967_v0 = vmax.f32 %v1839_v48, 0.0  ;;  %v2031_v1 = vmax.f32 %v1903_v49, 0.0 }
 0x11d   : > { %v1840_v52 = vadd.f32 %v4112_v3, %v1708_v50  ;;  %v1904_v53 = vadd.f32 %v4112_v3, %v1772_v51  ;;  %v1218_v54 = vpop.f32.mrb[16].mxu0  ;;  %v1474_v55 = vpop.f32.mrb[16].mxu1 }
 0x11e   : > { %v1219_v56 = vadd.f32 %v1218_v54, %v4105_v61  ;;  %v1475_v57 = vadd.f32 %v1474_v55, %v4105_v61  ;;  %v1220_v58 = vpop.f32.mrb[17].mxu0  ;;  %v1476_v59 = vpop.f32.mrb[17].mxu1 }
 0x11f   : > { %v1968_v2 = vmax.f32 %v1840_v52, 0.0  ;;  %v2032_v4 = vmax.f32 %v1904_v53, 0.0  ;;  %v1221_v5 = vpop.f32.mrb[18].mxu0  ;;  %v1477_v6 = vpop.f32.mrb[18].mxu1 }
 0x120   : > { %v1709_v7 = vmul.f32 %v4109_v63, %v1219_v56  ;;  %v1773_v8 = vmul.f32 %v4109_v63, %v1475_v57  ;;  %v1222_v9 = vadd.f32 %v1221_v5, %v4105_v61  ;;  %v1478_v10 = vadd.f32 %v1477_v6, %v4105_v61  ;;  %v1223_v11 = vpop.f32.mrb[19].mxu0  ;;  %v1479_v12 = vpop.f32.mrb[19].mxu1 }
 0x121   : > { %v3273_v13 = vpack.c.bf16 %v1968_v2, %v1967_v0  ;;  %v3433_v14 = vpack.c.bf16 %v2032_v4, %v2031_v1 }
 0x122   : > { %v1841_v15 = vadd.f32 %v4112_v3, %v1709_v7  ;;  %v1905_v16 = vadd.f32 %v4112_v3, %v1773_v8  ;;  %v1710_v17 = vmul.f32 %v4109_v63, %v1222_v9  ;;  %v1774_v18 = vmul.f32 %v4109_v63, %v1478_v10  ;;  %1433 = vmatmul.mubr.bf16.gmra.mrb[124].mxu0 %v3864_v60 }
 0x123   : > { %3577 = vst [vmem:[%s4138_s16 + $0x18] sm:$0xff] %v3273_v13   ;;  %3609 = vst [vmem:[%s4138_s16 + $0x118] sm:$0xff] %v3433_v14   ;;  %1689 = vmatmul.mubr.bf16.gmra.mrb[124].mxu1 %v3865_v62 }
 0x124   : > { %v1842_v19 = vadd.f32 %v4112_v3, %v1710_v17  ;;  %v1906_v20 = vadd.f32 %v4112_v3, %v1774_v18  ;;  %v1969_v21 = vmax.f32 %v1841_v15, 0.0  ;;  %v2033_v22 = vmax.f32 %v1905_v16, 0.0 }
 0x125   : > { %v1226_v23 = vpop.f32.mrb[20].mxu0  ;;  %v1482_v24 = vpop.f32.mrb[20].mxu1 }
 0x126   : > { %v1970_v25 = vmax.f32 %v1842_v19, 0.0  ;;  %v2034_v26 = vmax.f32 %v1906_v20, 0.0  ;;  %v1227_v27 = vadd.f32 %v1226_v23, %v4105_v61  ;;  %v1483_v28 = vadd.f32 %v1482_v24, %v4105_v61  ;;  %v1228_v29 = vpop.f32.mrb[21].mxu0  ;;  %v1484_v30 = vpop.f32.mrb[21].mxu1 }
 0x127   : > { %v1229_v31 = vpop.f32.mrb[22].mxu0  ;;  %v1485_v32 = vpop.f32.mrb[22].mxu1 }
 0x128   : > { %v3278_v33 = vpack.c.bf16 %v1970_v25, %v1969_v21  ;;  %v3438_v34 = vpack.c.bf16 %v2034_v26, %v2033_v22  ;;  %v1711_v35 = vmul.f32 %v4109_v63, %v1227_v27  ;;  %v1775_v36 = vmul.f32 %v4109_v63, %v1483_v28  ;;  %v1231_v37 = vpop.f32.mrb[23].mxu0  ;;  %v1487_v38 = vpop.f32.mrb[23].mxu1 }
 0x129   : > { %v1230_v39 = vadd.f32 %v1229_v31, %v4105_v61  ;;  %v1486_v40 = vadd.f32 %v1485_v32, %v4105_v61 }
 0x12a   : > { %3578 = vst [vmem:[%s4138_s16 + $0x20] sm:$0xff] %v3278_v33   ;;  %3610 = vst [vmem:[%s4138_s16 + $0x120] sm:$0xff] %v3438_v34   ;;  %v1843_v41 = vadd.f32 %v4112_v3, %v1711_v35  ;;  %v1907_v42 = vadd.f32 %v4112_v3, %v1775_v36 }
 0x12b   : > { %v1712_v43 = vmul.f32 %v4109_v63, %v1230_v39  ;;  %v1776_v44 = vmul.f32 %v4109_v63, %v1486_v40 }
 0x12c   : > { %v1971_v53 = vmax.f32 %v1843_v41, 0.0  ;;  %v2035_v54 = vmax.f32 %v1907_v42, 0.0 }
 0x12d   : > { %v1844_v45 = vadd.f32 %v4112_v3, %v1712_v43  ;;  %v1908_v46 = vadd.f32 %v4112_v3, %v1776_v44  ;;  %v1234_v47 = vpop.f32.mrb[24].mxu0  ;;  %v1490_v48 = vpop.f32.mrb[24].mxu1 }
 0x12e   : > { %v1235_v49 = vadd.f32 %v1234_v47, %v4105_v61  ;;  %v1491_v50 = vadd.f32 %v1490_v48, %v4105_v61  ;;  %v1236_v51 = vpop.f32.mrb[25].mxu0  ;;  %v1492_v52 = vpop.f32.mrb[25].mxu1 }
 0x12f   : > { %v1972_v55 = vmax.f32 %v1844_v45, 0.0  ;;  %v2036_v56 = vmax.f32 %v1908_v46, 0.0  ;;  %v1237_v57 = vpop.f32.mrb[26].mxu0  ;;  %v1493_v58 = vpop.f32.mrb[26].mxu1 }
 0x130   : > { %v1713_v59 = vmul.f32 %v4109_v63, %v1235_v49  ;;  %v1777_v60 = vmul.f32 %v4109_v63, %v1491_v50  ;;  %v1238_v62 = vadd.f32 %v1237_v57, %v4105_v61  ;;  %v1494_v0 = vadd.f32 %v1493_v58, %v4105_v61  ;;  %v1239_v1 = vpop.f32.mrb[27].mxu0  ;;  %v1495_v2 = vpop.f32.mrb[27].mxu1 }
 0x131   : > { %v3283_v4 = vpack.c.bf16 %v1972_v55, %v1971_v53  ;;  %v3443_v5 = vpack.c.bf16 %v2036_v56, %v2035_v54 }
 0x132   : > { %v1845_v6 = vadd.f32 %v4112_v3, %v1713_v59  ;;  %v1909_v7 = vadd.f32 %v4112_v3, %v1777_v60  ;;  %v1714_v8 = vmul.f32 %v4109_v63, %v1238_v62  ;;  %v1778_v9 = vmul.f32 %v4109_v63, %v1494_v0 }
 0x133   : > { %3579 = vst [vmem:[%s4138_s16 + $0x28] sm:$0xff] %v3283_v4   ;;  %3611 = vst [vmem:[%s4138_s16 + $0x128] sm:$0xff] %v3443_v5  }
 0x134   : > { %v1846_v10 = vadd.f32 %v4112_v3, %v1714_v8  ;;  %v1910_v11 = vadd.f32 %v4112_v3, %v1778_v9  ;;  %v1973_v12 = vmax.f32 %v1845_v6, 0.0  ;;  %v2037_v13 = vmax.f32 %v1909_v7, 0.0 }
 0x135   : > { %v1242_v14 = vpop.f32.mrb[28].mxu0  ;;  %v1498_v15 = vpop.f32.mrb[28].mxu1 }
 0x136   : > { %v1974_v16 = vmax.f32 %v1846_v10, 0.0  ;;  %v2038_v17 = vmax.f32 %v1910_v11, 0.0  ;;  %v1243_v18 = vadd.f32 %v1242_v14, %v4105_v61  ;;  %v1499_v19 = vadd.f32 %v1498_v15, %v4105_v61  ;;  %v1244_v20 = vpop.f32.mrb[29].mxu0  ;;  %v1500_v21 = vpop.f32.mrb[29].mxu1 }
 0x137   : > { %v1245_v22 = vpop.f32.mrb[30].mxu0  ;;  %v1501_v23 = vpop.f32.mrb[30].mxu1 }
 0x138   : > { %v3288_v24 = vpack.c.bf16 %v1974_v16, %v1973_v12  ;;  %v3448_v25 = vpack.c.bf16 %v2038_v17, %v2037_v13  ;;  %v1715_v26 = vmul.f32 %v4109_v63, %v1243_v18  ;;  %v1779_v27 = vmul.f32 %v4109_v63, %v1499_v19  ;;  %v1247_v28 = vpop.f32.mrb[31].mxu0  ;;  %v1503_v29 = vpop.f32.mrb[31].mxu1 }
 0x139   : > { %v1246_v30 = vadd.f32 %v1245_v22, %v4105_v61  ;;  %v1502_v31 = vadd.f32 %v1501_v23, %v4105_v61 }
 0x13a   : > { %3580 = vst [vmem:[%s4138_s16 + $0x30] sm:$0xff] %v3288_v24   ;;  %3612 = vst [vmem:[%s4138_s16 + $0x130] sm:$0xff] %v3448_v25   ;;  %v1847_v32 = vadd.f32 %v4112_v3, %v1715_v26  ;;  %v1911_v33 = vadd.f32 %v4112_v3, %v1779_v27 }
 0x13b   : > { %v1716_v34 = vmul.f32 %v4109_v63, %v1246_v30  ;;  %v1780_v35 = vmul.f32 %v4109_v63, %v1502_v31 }
 0x13c   : > { %v1975_v44 = vmax.f32 %v1847_v32, 0.0  ;;  %v2039_v45 = vmax.f32 %v1911_v33, 0.0 }
 0x13d   : > { %v1848_v36 = vadd.f32 %v4112_v3, %v1716_v34  ;;  %v1912_v37 = vadd.f32 %v4112_v3, %v1780_v35  ;;  %v1250_v38 = vpop.f32.mrb[32].mxu0  ;;  %v1506_v39 = vpop.f32.mrb[32].mxu1 }
 0x13e   : > { %v1251_v40 = vadd.f32 %v1250_v38, %v4105_v61  ;;  %v1507_v41 = vadd.f32 %v1506_v39, %v4105_v61  ;;  %v1252_v42 = vpop.f32.mrb[33].mxu0  ;;  %v1508_v43 = vpop.f32.mrb[33].mxu1 }
 0x13f   : > { %v1976_v46 = vmax.f32 %v1848_v36, 0.0  ;;  %v2040_v47 = vmax.f32 %v1912_v37, 0.0  ;;  %v1253_v48 = vpop.f32.mrb[34].mxu0  ;;  %v1509_v49 = vpop.f32.mrb[34].mxu1 }
 0x140   : > { %v1717_v50 = vmul.f32 %v4109_v63, %v1251_v40  ;;  %v1781_v51 = vmul.f32 %v4109_v63, %v1507_v41  ;;  %v1254_v52 = vadd.f32 %v1253_v48, %v4105_v61  ;;  %v1510_v53 = vadd.f32 %v1509_v49, %v4105_v61  ;;  %v1255_v54 = vpop.f32.mrb[35].mxu0  ;;  %v1511_v55 = vpop.f32.mrb[35].mxu1 }
 0x141   : > { %v3293_v56 = vpack.c.bf16 %v1976_v46, %v1975_v44  ;;  %v3453_v57 = vpack.c.bf16 %v2040_v47, %v2039_v45 }
 0x142   : > { %v1849_v58 = vadd.f32 %v4112_v3, %v1717_v50  ;;  %v1913_v59 = vadd.f32 %v4112_v3, %v1781_v51  ;;  %v1718_v60 = vmul.f32 %v4109_v63, %v1254_v52  ;;  %v1782_v62 = vmul.f32 %v4109_v63, %v1510_v53 }
 0x143   : > { %3581 = vst [vmem:[%s4138_s16 + $0x38] sm:$0xff] %v3293_v56   ;;  %3613 = vst [vmem:[%s4138_s16 + $0x138] sm:$0xff] %v3453_v57  }
 0x144   : > { %v1850_v0 = vadd.f32 %v4112_v3, %v1718_v60  ;;  %v1914_v1 = vadd.f32 %v4112_v3, %v1782_v62  ;;  %v1977_v2 = vmax.f32 %v1849_v58, 0.0  ;;  %v2041_v4 = vmax.f32 %v1913_v59, 0.0 }
 0x145   : > { %v1258_v5 = vpop.f32.mrb[36].mxu0  ;;  %v1514_v6 = vpop.f32.mrb[36].mxu1 }
 0x146   : > { %v1978_v7 = vmax.f32 %v1850_v0, 0.0  ;;  %v2042_v8 = vmax.f32 %v1914_v1, 0.0  ;;  %v1259_v9 = vadd.f32 %v1258_v5, %v4105_v61  ;;  %v1515_v10 = vadd.f32 %v1514_v6, %v4105_v61  ;;  %v1260_v11 = vpop.f32.mrb[37].mxu0  ;;  %v1516_v12 = vpop.f32.mrb[37].mxu1 }
 0x147   : > { %v1261_v13 = vpop.f32.mrb[38].mxu0  ;;  %v1517_v14 = vpop.f32.mrb[38].mxu1 }
 0x148   : > { %v3298_v15 = vpack.c.bf16 %v1978_v7, %v1977_v2  ;;  %v3458_v16 = vpack.c.bf16 %v2042_v8, %v2041_v4  ;;  %v1719_v17 = vmul.f32 %v4109_v63, %v1259_v9  ;;  %v1783_v18 = vmul.f32 %v4109_v63, %v1515_v10  ;;  %v1263_v19 = vpop.f32.mrb[39].mxu0  ;;  %v1519_v20 = vpop.f32.mrb[39].mxu1 }
 0x149   : > { %v1262_v21 = vadd.f32 %v1261_v13, %v4105_v61  ;;  %v1518_v22 = vadd.f32 %v1517_v14, %v4105_v61 }
 0x14a   : > { %3582 = vst [vmem:[%s4138_s16 + $0x40] sm:$0xff] %v3298_v15   ;;  %3614 = vst [vmem:[%s4138_s16 + $0x140] sm:$0xff] %v3458_v16   ;;  %v1851_v23 = vadd.f32 %v4112_v3, %v1719_v17  ;;  %v1915_v24 = vadd.f32 %v4112_v3, %v1783_v18 }
 0x14b   : > { %v1720_v25 = vmul.f32 %v4109_v63, %v1262_v21  ;;  %v1784_v26 = vmul.f32 %v4109_v63, %v1518_v22 }
 0x14c   : > { %v1979_v35 = vmax.f32 %v1851_v23, 0.0  ;;  %v2043_v36 = vmax.f32 %v1915_v24, 0.0 }
 0x14d   : > { %v1852_v27 = vadd.f32 %v4112_v3, %v1720_v25  ;;  %v1916_v28 = vadd.f32 %v4112_v3, %v1784_v26  ;;  %v1266_v29 = vpop.f32.mrb[40].mxu0  ;;  %v1522_v30 = vpop.f32.mrb[40].mxu1 }
 0x14e   : > { %v1267_v31 = vadd.f32 %v1266_v29, %v4105_v61  ;;  %v1523_v32 = vadd.f32 %v1522_v30, %v4105_v61  ;;  %v1268_v33 = vpop.f32.mrb[41].mxu0  ;;  %v1524_v34 = vpop.f32.mrb[41].mxu1 }
 0x14f   : > { %v1980_v37 = vmax.f32 %v1852_v27, 0.0  ;;  %v2044_v38 = vmax.f32 %v1916_v28, 0.0  ;;  %v1269_v39 = vpop.f32.mrb[42].mxu0  ;;  %v1525_v40 = vpop.f32.mrb[42].mxu1 }
 0x150   : > { %v1721_v41 = vmul.f32 %v4109_v63, %v1267_v31  ;;  %v1785_v42 = vmul.f32 %v4109_v63, %v1523_v32  ;;  %v1270_v43 = vadd.f32 %v1269_v39, %v4105_v61  ;;  %v1526_v44 = vadd.f32 %v1525_v40, %v4105_v61  ;;  %v1271_v45 = vpop.f32.mrb[43].mxu0  ;;  %v1527_v46 = vpop.f32.mrb[43].mxu1 }
 0x151   : > { %v3303_v47 = vpack.c.bf16 %v1980_v37, %v1979_v35  ;;  %v3463_v48 = vpack.c.bf16 %v2044_v38, %v2043_v36 }
 0x152   : > { %v1853_v49 = vadd.f32 %v4112_v3, %v1721_v41  ;;  %v1917_v50 = vadd.f32 %v4112_v3, %v1785_v42  ;;  %v1722_v51 = vmul.f32 %v4109_v63, %v1270_v43  ;;  %v1786_v52 = vmul.f32 %v4109_v63, %v1526_v44 }
 0x153   : > { %3583 = vst [vmem:[%s4138_s16 + $0x48] sm:$0xff] %v3303_v47   ;;  %3615 = vst [vmem:[%s4138_s16 + $0x148] sm:$0xff] %v3463_v48  }
 0x154   : > { %v1854_v53 = vadd.f32 %v4112_v3, %v1722_v51  ;;  %v1918_v54 = vadd.f32 %v4112_v3, %v1786_v52  ;;  %v1981_v55 = vmax.f32 %v1853_v49, 0.0  ;;  %v2045_v56 = vmax.f32 %v1917_v50, 0.0 }
 0x155   : > { %v1274_v57 = vpop.f32.mrb[44].mxu0  ;;  %v1530_v58 = vpop.f32.mrb[44].mxu1 }
 0x156   : > { %v1982_v59 = vmax.f32 %v1854_v53, 0.0  ;;  %v2046_v60 = vmax.f32 %v1918_v54, 0.0  ;;  %v1275_v62 = vadd.f32 %v1274_v57, %v4105_v61  ;;  %v1531_v0 = vadd.f32 %v1530_v58, %v4105_v61  ;;  %v1276_v1 = vpop.f32.mrb[45].mxu0  ;;  %v1532_v2 = vpop.f32.mrb[45].mxu1 }
 0x157   : > { %v1277_v4 = vpop.f32.mrb[46].mxu0  ;;  %v1533_v5 = vpop.f32.mrb[46].mxu1 }
 0x158   : > { %v3308_v6 = vpack.c.bf16 %v1982_v59, %v1981_v55  ;;  %v3468_v7 = vpack.c.bf16 %v2046_v60, %v2045_v56  ;;  %v1723_v8 = vmul.f32 %v4109_v63, %v1275_v62  ;;  %v1787_v9 = vmul.f32 %v4109_v63, %v1531_v0  ;;  %v1279_v10 = vpop.f32.mrb[47].mxu0  ;;  %v1535_v11 = vpop.f32.mrb[47].mxu1 }
 0x159   : > { %v1278_v12 = vadd.f32 %v1277_v4, %v4105_v61  ;;  %v1534_v13 = vadd.f32 %v1533_v5, %v4105_v61 }
 0x15a   : > { %3584 = vst [vmem:[%s4138_s16 + $0x50] sm:$0xff] %v3308_v6   ;;  %3616 = vst [vmem:[%s4138_s16 + $0x150] sm:$0xff] %v3468_v7   ;;  %v1855_v14 = vadd.f32 %v4112_v3, %v1723_v8  ;;  %v1919_v15 = vadd.f32 %v4112_v3, %v1787_v9 }
 0x15b   : > { %v1724_v16 = vmul.f32 %v4109_v63, %v1278_v12  ;;  %v1788_v17 = vmul.f32 %v4109_v63, %v1534_v13 }
 0x15c   : > { %v1983_v26 = vmax.f32 %v1855_v14, 0.0  ;;  %v2047_v27 = vmax.f32 %v1919_v15, 0.0 }
 0x15d   : > { %v1856_v18 = vadd.f32 %v4112_v3, %v1724_v16  ;;  %v1920_v19 = vadd.f32 %v4112_v3, %v1788_v17  ;;  %v1282_v20 = vpop.f32.mrb[48].mxu0  ;;  %v1538_v21 = vpop.f32.mrb[48].mxu1 }
 0x15e   : > { %v1283_v22 = vadd.f32 %v1282_v20, %v4105_v61  ;;  %v1539_v23 = vadd.f32 %v1538_v21, %v4105_v61  ;;  %v1284_v24 = vpop.f32.mrb[49].mxu0  ;;  %v1540_v25 = vpop.f32.mrb[49].mxu1 }
 0x15f   : > { %v1984_v28 = vmax.f32 %v1856_v18, 0.0  ;;  %v2048_v29 = vmax.f32 %v1920_v19, 0.0  ;;  %v1285_v30 = vpop.f32.mrb[50].mxu0  ;;  %v1541_v31 = vpop.f32.mrb[50].mxu1 }
 0x160   : > { %v1725_v32 = vmul.f32 %v4109_v63, %v1283_v22  ;;  %v1789_v33 = vmul.f32 %v4109_v63, %v1539_v23  ;;  %v1286_v34 = vadd.f32 %v1285_v30, %v4105_v61  ;;  %v1542_v35 = vadd.f32 %v1541_v31, %v4105_v61  ;;  %v1287_v36 = vpop.f32.mrb[51].mxu0  ;;  %v1543_v37 = vpop.f32.mrb[51].mxu1 }
 0x161   : > { %v3313_v38 = vpack.c.bf16 %v1984_v28, %v1983_v26  ;;  %v3473_v39 = vpack.c.bf16 %v2048_v29, %v2047_v27 }
 0x162   : > { %v1857_v40 = vadd.f32 %v4112_v3, %v1725_v32  ;;  %v1921_v41 = vadd.f32 %v4112_v3, %v1789_v33  ;;  %v1726_v42 = vmul.f32 %v4109_v63, %v1286_v34  ;;  %v1790_v43 = vmul.f32 %v4109_v63, %v1542_v35 }
 0x163   : > { %3585 = vst [vmem:[%s4138_s16 + $0x58] sm:$0xff] %v3313_v38   ;;  %3617 = vst [vmem:[%s4138_s16 + $0x158] sm:$0xff] %v3473_v39  }
 0x164   : > { %v1858_v44 = vadd.f32 %v4112_v3, %v1726_v42  ;;  %v1922_v45 = vadd.f32 %v4112_v3, %v1790_v43  ;;  %v1985_v46 = vmax.f32 %v1857_v40, 0.0  ;;  %v2049_v47 = vmax.f32 %v1921_v41, 0.0 }
 0x165   : > { %v1290_v48 = vpop.f32.mrb[52].mxu0  ;;  %v1546_v49 = vpop.f32.mrb[52].mxu1 }
 0x166   : > { %v1986_v50 = vmax.f32 %v1858_v44, 0.0  ;;  %v2050_v51 = vmax.f32 %v1922_v45, 0.0  ;;  %v1291_v52 = vadd.f32 %v1290_v48, %v4105_v61  ;;  %v1547_v53 = vadd.f32 %v1546_v49, %v4105_v61  ;;  %v1292_v54 = vpop.f32.mrb[53].mxu0  ;;  %v1548_v55 = vpop.f32.mrb[53].mxu1 }
 0x167   : > { %v1293_v56 = vpop.f32.mrb[54].mxu0  ;;  %v1549_v57 = vpop.f32.mrb[54].mxu1 }
 0x168   : > { %v3318_v58 = vpack.c.bf16 %v1986_v50, %v1985_v46  ;;  %v3478_v59 = vpack.c.bf16 %v2050_v51, %v2049_v47  ;;  %v1727_v60 = vmul.f32 %v4109_v63, %v1291_v52  ;;  %v1791_v62 = vmul.f32 %v4109_v63, %v1547_v53  ;;  %v1295_v0 = vpop.f32.mrb[55].mxu0  ;;  %v1551_v1 = vpop.f32.mrb[55].mxu1 }
 0x169   : > { %v1294_v2 = vadd.f32 %v1293_v56, %v4105_v61  ;;  %v1550_v4 = vadd.f32 %v1549_v57, %v4105_v61 }
 0x16a   : > { %3586 = vst [vmem:[%s4138_s16 + $0x60] sm:$0xff] %v3318_v58   ;;  %3618 = vst [vmem:[%s4138_s16 + $0x160] sm:$0xff] %v3478_v59   ;;  %v1859_v5 = vadd.f32 %v4112_v3, %v1727_v60  ;;  %v1923_v6 = vadd.f32 %v4112_v3, %v1791_v62 }
 0x16b   : > { %v1728_v7 = vmul.f32 %v4109_v63, %v1294_v2  ;;  %v1792_v8 = vmul.f32 %v4109_v63, %v1550_v4 }
 0x16c   : > { %v1987_v17 = vmax.f32 %v1859_v5, 0.0  ;;  %v2051_v18 = vmax.f32 %v1923_v6, 0.0 }
 0x16d   : > { %v1860_v9 = vadd.f32 %v4112_v3, %v1728_v7  ;;  %v1924_v10 = vadd.f32 %v4112_v3, %v1792_v8  ;;  %v1298_v11 = vpop.f32.mrb[56].mxu0  ;;  %v1554_v12 = vpop.f32.mrb[56].mxu1 }
 0x16e   : > { %v1299_v13 = vadd.f32 %v1298_v11, %v4105_v61  ;;  %v1555_v14 = vadd.f32 %v1554_v12, %v4105_v61  ;;  %v1300_v15 = vpop.f32.mrb[57].mxu0  ;;  %v1556_v16 = vpop.f32.mrb[57].mxu1 }
 0x16f   : > { %v1988_v19 = vmax.f32 %v1860_v9, 0.0  ;;  %v2052_v20 = vmax.f32 %v1924_v10, 0.0  ;;  %v1301_v21 = vpop.f32.mrb[58].mxu0  ;;  %v1557_v22 = vpop.f32.mrb[58].mxu1 }
 0x170   : > { %v1729_v23 = vmul.f32 %v4109_v63, %v1299_v13  ;;  %v1793_v24 = vmul.f32 %v4109_v63, %v1555_v14  ;;  %v1302_v25 = vadd.f32 %v1301_v21, %v4105_v61  ;;  %v1558_v26 = vadd.f32 %v1557_v22, %v4105_v61  ;;  %v1303_v27 = vpop.f32.mrb[59].mxu0  ;;  %v1559_v28 = vpop.f32.mrb[59].mxu1 }
 0x171   : > { %v3323_v29 = vpack.c.bf16 %v1988_v19, %v1987_v17  ;;  %v3483_v30 = vpack.c.bf16 %v2052_v20, %v2051_v18 }
 0x172   : > { %v1861_v31 = vadd.f32 %v4112_v3, %v1729_v23  ;;  %v1925_v32 = vadd.f32 %v4112_v3, %v1793_v24  ;;  %v1730_v33 = vmul.f32 %v4109_v63, %v1302_v25  ;;  %v1794_v34 = vmul.f32 %v4109_v63, %v1558_v26 }
 0x173   : > { %3587 = vst [vmem:[%s4138_s16 + $0x68] sm:$0xff] %v3323_v29   ;;  %3619 = vst [vmem:[%s4138_s16 + $0x168] sm:$0xff] %v3483_v30  }
 0x174   : > { %v1862_v35 = vadd.f32 %v4112_v3, %v1730_v33  ;;  %v1926_v36 = vadd.f32 %v4112_v3, %v1794_v34  ;;  %v1989_v37 = vmax.f32 %v1861_v31, 0.0  ;;  %v2053_v38 = vmax.f32 %v1925_v32, 0.0 }
 0x175   : > { %v1306_v39 = vpop.f32.mrb[60].mxu0  ;;  %v1562_v40 = vpop.f32.mrb[60].mxu1 }
 0x176   : > { %v1990_v41 = vmax.f32 %v1862_v35, 0.0  ;;  %v2054_v42 = vmax.f32 %v1926_v36, 0.0  ;;  %v1307_v43 = vadd.f32 %v1306_v39, %v4105_v61  ;;  %v1563_v44 = vadd.f32 %v1562_v40, %v4105_v61  ;;  %v1308_v45 = vpop.f32.mrb[61].mxu0  ;;  %v1564_v46 = vpop.f32.mrb[61].mxu1 }
 0x177   : > { %v1309_v47 = vpop.f32.mrb[62].mxu0  ;;  %v1565_v48 = vpop.f32.mrb[62].mxu1 }
 0x178   : > { %v3328_v49 = vpack.c.bf16 %v1990_v41, %v1989_v37  ;;  %v3488_v50 = vpack.c.bf16 %v2054_v42, %v2053_v38  ;;  %v1731_v51 = vmul.f32 %v4109_v63, %v1307_v43  ;;  %v1795_v52 = vmul.f32 %v4109_v63, %v1563_v44  ;;  %v1311_v53 = vpop.f32.mrb[63].mxu0  ;;  %v1567_v54 = vpop.f32.mrb[63].mxu1 }
 0x179   : > { %v1310_v55 = vadd.f32 %v1309_v47, %v4105_v61  ;;  %v1566_v56 = vadd.f32 %v1565_v48, %v4105_v61 }
 0x17a   : > { %3588 = vst [vmem:[%s4138_s16 + $0x70] sm:$0xff] %v3328_v49   ;;  %3620 = vst [vmem:[%s4138_s16 + $0x170] sm:$0xff] %v3488_v50   ;;  %v1863_v57 = vadd.f32 %v4112_v3, %v1731_v51  ;;  %v1927_v58 = vadd.f32 %v4112_v3, %v1795_v52 }
 0x17b   : > { %v1732_v59 = vmul.f32 %v4109_v63, %v1310_v55  ;;  %v1796_v60 = vmul.f32 %v4109_v63, %v1566_v56 }
 0x17c   : > { %v1991_v8 = vmax.f32 %v1863_v57, 0.0  ;;  %v2055_v9 = vmax.f32 %v1927_v58, 0.0 }
 0x17d   : > { %v1864_v62 = vadd.f32 %v4112_v3, %v1732_v59  ;;  %v1928_v0 = vadd.f32 %v4112_v3, %v1796_v60  ;;  %v1314_v1 = vpop.f32.mrb[64].mxu0  ;;  %v1570_v2 = vpop.f32.mrb[64].mxu1 }
 0x17e   : > { %v1315_v4 = vadd.f32 %v1314_v1, %v4105_v61  ;;  %v1571_v5 = vadd.f32 %v1570_v2, %v4105_v61  ;;  %v1316_v6 = vpop.f32.mrb[65].mxu0  ;;  %v1572_v7 = vpop.f32.mrb[65].mxu1 }
 0x17f   : > { %v1992_v10 = vmax.f32 %v1864_v62, 0.0  ;;  %v2056_v11 = vmax.f32 %v1928_v0, 0.0  ;;  %v1317_v12 = vpop.f32.mrb[66].mxu0  ;;  %v1573_v13 = vpop.f32.mrb[66].mxu1 }
 0x180   : > { %v1733_v14 = vmul.f32 %v4109_v63, %v1315_v4  ;;  %v1797_v15 = vmul.f32 %v4109_v63, %v1571_v5  ;;  %v1318_v16 = vadd.f32 %v1317_v12, %v4105_v61  ;;  %v1574_v17 = vadd.f32 %v1573_v13, %v4105_v61  ;;  %v1319_v18 = vpop.f32.mrb[67].mxu0  ;;  %v1575_v19 = vpop.f32.mrb[67].mxu1 }
 0x181   : > { %v3333_v20 = vpack.c.bf16 %v1992_v10, %v1991_v8  ;;  %v3493_v21 = vpack.c.bf16 %v2056_v11, %v2055_v9 }
 0x182   : > { %v1865_v22 = vadd.f32 %v4112_v3, %v1733_v14  ;;  %v1929_v23 = vadd.f32 %v4112_v3, %v1797_v15  ;;  %v1734_v24 = vmul.f32 %v4109_v63, %v1318_v16  ;;  %v1798_v25 = vmul.f32 %v4109_v63, %v1574_v17 }
 0x183   : > { %3589 = vst [vmem:[%s4138_s16 + $0x78] sm:$0xff] %v3333_v20   ;;  %3621 = vst [vmem:[%s4138_s16 + $0x178] sm:$0xff] %v3493_v21  }
 0x184   : > { %v1866_v26 = vadd.f32 %v4112_v3, %v1734_v24  ;;  %v1930_v27 = vadd.f32 %v4112_v3, %v1798_v25  ;;  %v1993_v28 = vmax.f32 %v1865_v22, 0.0  ;;  %v2057_v29 = vmax.f32 %v1929_v23, 0.0 }
 0x185   : > { %v1322_v30 = vpop.f32.mrb[68].mxu0  ;;  %v1578_v31 = vpop.f32.mrb[68].mxu1 }
 0x186   : > { %v1994_v32 = vmax.f32 %v1866_v26, 0.0  ;;  %v2058_v33 = vmax.f32 %v1930_v27, 0.0  ;;  %v1323_v34 = vadd.f32 %v1322_v30, %v4105_v61  ;;  %v1579_v35 = vadd.f32 %v1578_v31, %v4105_v61  ;;  %v1324_v36 = vpop.f32.mrb[69].mxu0  ;;  %v1580_v37 = vpop.f32.mrb[69].mxu1 }
 0x187   : > { %v1325_v38 = vpop.f32.mrb[70].mxu0  ;;  %v1581_v39 = vpop.f32.mrb[70].mxu1 }
 0x188   : > { %v3338_v40 = vpack.c.bf16 %v1994_v32, %v1993_v28  ;;  %v3498_v41 = vpack.c.bf16 %v2058_v33, %v2057_v29  ;;  %v1735_v42 = vmul.f32 %v4109_v63, %v1323_v34  ;;  %v1799_v43 = vmul.f32 %v4109_v63, %v1579_v35  ;;  %v1327_v44 = vpop.f32.mrb[71].mxu0  ;;  %v1583_v45 = vpop.f32.mrb[71].mxu1 }
 0x189   : > { %v1326_v46 = vadd.f32 %v1325_v38, %v4105_v61  ;;  %v1582_v47 = vadd.f32 %v1581_v39, %v4105_v61 }
 0x18a   : > { %3590 = vst [vmem:[%s4138_s16 + $0x80] sm:$0xff] %v3338_v40   ;;  %3622 = vst [vmem:[%s4138_s16 + $0x180] sm:$0xff] %v3498_v41   ;;  %v1867_v48 = vadd.f32 %v4112_v3, %v1735_v42  ;;  %v1931_v49 = vadd.f32 %v4112_v3, %v1799_v43 }
 0x18b   : > { %v1736_v50 = vmul.f32 %v4109_v63, %v1326_v46  ;;  %v1800_v51 = vmul.f32 %v4109_v63, %v1582_v47 }
 0x18c   : > { %v1995_v60 = vmax.f32 %v1867_v48, 0.0  ;;  %v2059_v62 = vmax.f32 %v1931_v49, 0.0 }
 0x18d   : > { %v1868_v52 = vadd.f32 %v4112_v3, %v1736_v50  ;;  %v1932_v53 = vadd.f32 %v4112_v3, %v1800_v51  ;;  %v1330_v54 = vpop.f32.mrb[72].mxu0  ;;  %v1586_v55 = vpop.f32.mrb[72].mxu1 }
 0x18e   : > { %v1331_v56 = vadd.f32 %v1330_v54, %v4105_v61  ;;  %v1587_v57 = vadd.f32 %v1586_v55, %v4105_v61  ;;  %v1332_v58 = vpop.f32.mrb[73].mxu0  ;;  %v1588_v59 = vpop.f32.mrb[73].mxu1 }
 0x18f   : > { %v1996_v0 = vmax.f32 %v1868_v52, 0.0  ;;  %v2060_v1 = vmax.f32 %v1932_v53, 0.0  ;;  %v1333_v2 = vpop.f32.mrb[74].mxu0  ;;  %v1589_v4 = vpop.f32.mrb[74].mxu1 }
 0x190   : > { %v1737_v5 = vmul.f32 %v4109_v63, %v1331_v56  ;;  %v1801_v6 = vmul.f32 %v4109_v63, %v1587_v57  ;;  %v1334_v7 = vadd.f32 %v1333_v2, %v4105_v61  ;;  %v1590_v8 = vadd.f32 %v1589_v4, %v4105_v61  ;;  %v1335_v9 = vpop.f32.mrb[75].mxu0  ;;  %v1591_v10 = vpop.f32.mrb[75].mxu1 }
 0x191   : > { %v3343_v11 = vpack.c.bf16 %v1996_v0, %v1995_v60  ;;  %v3503_v12 = vpack.c.bf16 %v2060_v1, %v2059_v62 }
 0x192   : > { %v1869_v13 = vadd.f32 %v4112_v3, %v1737_v5  ;;  %v1933_v14 = vadd.f32 %v4112_v3, %v1801_v6  ;;  %v1738_v15 = vmul.f32 %v4109_v63, %v1334_v7  ;;  %v1802_v16 = vmul.f32 %v4109_v63, %v1590_v8 }
 0x193   : > { %3591 = vst [vmem:[%s4138_s16 + $0x88] sm:$0xff] %v3343_v11   ;;  %3623 = vst [vmem:[%s4138_s16 + $0x188] sm:$0xff] %v3503_v12  }
 0x194   : > { %v1870_v17 = vadd.f32 %v4112_v3, %v1738_v15  ;;  %v1934_v18 = vadd.f32 %v4112_v3, %v1802_v16  ;;  %v1997_v19 = vmax.f32 %v1869_v13, 0.0  ;;  %v2061_v20 = vmax.f32 %v1933_v14, 0.0 }
 0x195   : > { %v1338_v21 = vpop.f32.mrb[76].mxu0  ;;  %v1594_v22 = vpop.f32.mrb[76].mxu1 }
 0x196   : > { %v1998_v23 = vmax.f32 %v1870_v17, 0.0  ;;  %v2062_v24 = vmax.f32 %v1934_v18, 0.0  ;;  %v1339_v25 = vadd.f32 %v1338_v21, %v4105_v61  ;;  %v1595_v26 = vadd.f32 %v1594_v22, %v4105_v61  ;;  %v1340_v27 = vpop.f32.mrb[77].mxu0  ;;  %v1596_v28 = vpop.f32.mrb[77].mxu1 }
 0x197   : > { %v1341_v29 = vpop.f32.mrb[78].mxu0  ;;  %v1597_v30 = vpop.f32.mrb[78].mxu1 }
 0x198   : > { %v3348_v31 = vpack.c.bf16 %v1998_v23, %v1997_v19  ;;  %v3508_v32 = vpack.c.bf16 %v2062_v24, %v2061_v20  ;;  %v1739_v33 = vmul.f32 %v4109_v63, %v1339_v25  ;;  %v1803_v34 = vmul.f32 %v4109_v63, %v1595_v26  ;;  %v1343_v35 = vpop.f32.mrb[79].mxu0  ;;  %v1599_v36 = vpop.f32.mrb[79].mxu1 }
 0x199   : > { %v1342_v37 = vadd.f32 %v1341_v29, %v4105_v61  ;;  %v1598_v38 = vadd.f32 %v1597_v30, %v4105_v61 }
 0x19a   : > { %3592 = vst [vmem:[%s4138_s16 + $0x90] sm:$0xff] %v3348_v31   ;;  %3624 = vst [vmem:[%s4138_s16 + $0x190] sm:$0xff] %v3508_v32   ;;  %v1871_v39 = vadd.f32 %v4112_v3, %v1739_v33  ;;  %v1935_v40 = vadd.f32 %v4112_v3, %v1803_v34 }
 0x19b   : > { %v1740_v41 = vmul.f32 %v4109_v63, %v1342_v37  ;;  %v1804_v42 = vmul.f32 %v4109_v63, %v1598_v38 }
 0x19c   : > { %v1999_v51 = vmax.f32 %v1871_v39, 0.0  ;;  %v2063_v52 = vmax.f32 %v1935_v40, 0.0 }
 0x19d   : > { %v1872_v43 = vadd.f32 %v4112_v3, %v1740_v41  ;;  %v1936_v44 = vadd.f32 %v4112_v3, %v1804_v42  ;;  %v1346_v45 = vpop.f32.mrb[80].mxu0  ;;  %v1602_v46 = vpop.f32.mrb[80].mxu1 }
 0x19e   : > { %v1347_v47 = vadd.f32 %v1346_v45, %v4105_v61  ;;  %v1603_v48 = vadd.f32 %v1602_v46, %v4105_v61  ;;  %v1348_v49 = vpop.f32.mrb[81].mxu0  ;;  %v1604_v50 = vpop.f32.mrb[81].mxu1 }
 0x19f   : > { %v2000_v53 = vmax.f32 %v1872_v43, 0.0  ;;  %v2064_v54 = vmax.f32 %v1936_v44, 0.0  ;;  %v1349_v55 = vpop.f32.mrb[82].mxu0  ;;  %v1605_v56 = vpop.f32.mrb[82].mxu1 }
 0x1a0   : > { %v1741_v57 = vmul.f32 %v4109_v63, %v1347_v47  ;;  %v1805_v58 = vmul.f32 %v4109_v63, %v1603_v48  ;;  %v1350_v59 = vadd.f32 %v1349_v55, %v4105_v61  ;;  %v1606_v60 = vadd.f32 %v1605_v56, %v4105_v61  ;;  %v1351_v62 = vpop.f32.mrb[83].mxu0  ;;  %v1607_v0 = vpop.f32.mrb[83].mxu1 }
 0x1a1   : > { %v3353_v1 = vpack.c.bf16 %v2000_v53, %v1999_v51  ;;  %v3513_v2 = vpack.c.bf16 %v2064_v54, %v2063_v52 }
 0x1a2   : > { %v1873_v4 = vadd.f32 %v4112_v3, %v1741_v57  ;;  %v1937_v5 = vadd.f32 %v4112_v3, %v1805_v58  ;;  %v1742_v6 = vmul.f32 %v4109_v63, %v1350_v59  ;;  %v1806_v7 = vmul.f32 %v4109_v63, %v1606_v60 }
 0x1a3   : > { %3593 = vst [vmem:[%s4138_s16 + $0x98] sm:$0xff] %v3353_v1   ;;  %3625 = vst [vmem:[%s4138_s16 + $0x198] sm:$0xff] %v3513_v2  }
 0x1a4   : > { %v1874_v8 = vadd.f32 %v4112_v3, %v1742_v6  ;;  %v1938_v9 = vadd.f32 %v4112_v3, %v1806_v7  ;;  %v2001_v10 = vmax.f32 %v1873_v4, 0.0  ;;  %v2065_v11 = vmax.f32 %v1937_v5, 0.0 }
 0x1a5   : > { %v1354_v12 = vpop.f32.mrb[84].mxu0  ;;  %v1610_v13 = vpop.f32.mrb[84].mxu1 }
 0x1a6   : > { %v2002_v14 = vmax.f32 %v1874_v8, 0.0  ;;  %v2066_v15 = vmax.f32 %v1938_v9, 0.0  ;;  %v1355_v16 = vadd.f32 %v1354_v12, %v4105_v61  ;;  %v1611_v17 = vadd.f32 %v1610_v13, %v4105_v61  ;;  %v1356_v18 = vpop.f32.mrb[85].mxu0  ;;  %v1612_v19 = vpop.f32.mrb[85].mxu1 }
 0x1a7   : > { %v1357_v20 = vpop.f32.mrb[86].mxu0  ;;  %v1613_v21 = vpop.f32.mrb[86].mxu1 }
 0x1a8   : > { %v3358_v22 = vpack.c.bf16 %v2002_v14, %v2001_v10  ;;  %v3518_v23 = vpack.c.bf16 %v2066_v15, %v2065_v11  ;;  %v1743_v24 = vmul.f32 %v4109_v63, %v1355_v16  ;;  %v1807_v25 = vmul.f32 %v4109_v63, %v1611_v17  ;;  %v1359_v26 = vpop.f32.mrb[87].mxu0  ;;  %v1615_v27 = vpop.f32.mrb[87].mxu1 }
 0x1a9   : > { %v1358_v28 = vadd.f32 %v1357_v20, %v4105_v61  ;;  %v1614_v29 = vadd.f32 %v1613_v21, %v4105_v61 }
 0x1aa   : > { %3594 = vst [vmem:[%s4138_s16 + $0xa0] sm:$0xff] %v3358_v22   ;;  %3626 = vst [vmem:[%s4138_s16 + $0x1a0] sm:$0xff] %v3518_v23   ;;  %v1875_v30 = vadd.f32 %v4112_v3, %v1743_v24  ;;  %v1939_v31 = vadd.f32 %v4112_v3, %v1807_v25 }
 0x1ab   : > { %v1744_v32 = vmul.f32 %v4109_v63, %v1358_v28  ;;  %v1808_v33 = vmul.f32 %v4109_v63, %v1614_v29 }
 0x1ac   : > { %v2003_v42 = vmax.f32 %v1875_v30, 0.0  ;;  %v2067_v43 = vmax.f32 %v1939_v31, 0.0 }
 0x1ad   : > { %v1876_v34 = vadd.f32 %v4112_v3, %v1744_v32  ;;  %v1940_v35 = vadd.f32 %v4112_v3, %v1808_v33  ;;  %v1362_v36 = vpop.f32.mrb[88].mxu0  ;;  %v1618_v37 = vpop.f32.mrb[88].mxu1 }
 0x1ae   : > { %v1363_v38 = vadd.f32 %v1362_v36, %v4105_v61  ;;  %v1619_v39 = vadd.f32 %v1618_v37, %v4105_v61  ;;  %v1364_v40 = vpop.f32.mrb[89].mxu0  ;;  %v1620_v41 = vpop.f32.mrb[89].mxu1 }
 0x1af   : > { %v2004_v44 = vmax.f32 %v1876_v34, 0.0  ;;  %v2068_v45 = vmax.f32 %v1940_v35, 0.0  ;;  %v1365_v46 = vpop.f32.mrb[90].mxu0  ;;  %v1621_v47 = vpop.f32.mrb[90].mxu1 }
 0x1b0   : > { %v1745_v48 = vmul.f32 %v4109_v63, %v1363_v38  ;;  %v1809_v49 = vmul.f32 %v4109_v63, %v1619_v39  ;;  %v1366_v50 = vadd.f32 %v1365_v46, %v4105_v61  ;;  %v1622_v51 = vadd.f32 %v1621_v47, %v4105_v61  ;;  %v1367_v52 = vpop.f32.mrb[91].mxu0  ;;  %v1623_v53 = vpop.f32.mrb[91].mxu1 }
 0x1b1   : > { %v3363_v54 = vpack.c.bf16 %v2004_v44, %v2003_v42  ;;  %v3523_v55 = vpack.c.bf16 %v2068_v45, %v2067_v43 }
 0x1b2   : > { %v1877_v56 = vadd.f32 %v4112_v3, %v1745_v48  ;;  %v1941_v57 = vadd.f32 %v4112_v3, %v1809_v49  ;;  %v1746_v58 = vmul.f32 %v4109_v63, %v1366_v50  ;;  %v1810_v59 = vmul.f32 %v4109_v63, %v1622_v51 }
 0x1b3   : > { %3595 = vst [vmem:[%s4138_s16 + $0xa8] sm:$0xff] %v3363_v54   ;;  %3627 = vst [vmem:[%s4138_s16 + $0x1a8] sm:$0xff] %v3523_v55  }
 0x1b4   : > { %v1878_v60 = vadd.f32 %v4112_v3, %v1746_v58  ;;  %v1942_v62 = vadd.f32 %v4112_v3, %v1810_v59  ;;  %v2005_v0 = vmax.f32 %v1877_v56, 0.0  ;;  %v2069_v1 = vmax.f32 %v1941_v57, 0.0 }
 0x1b5   : > { %v1370_v2 = vpop.f32.mrb[92].mxu0  ;;  %v1626_v4 = vpop.f32.mrb[92].mxu1 }
 0x1b6   : > { %v2006_v5 = vmax.f32 %v1878_v60, 0.0  ;;  %v2070_v6 = vmax.f32 %v1942_v62, 0.0  ;;  %v1371_v7 = vadd.f32 %v1370_v2, %v4105_v61  ;;  %v1627_v8 = vadd.f32 %v1626_v4, %v4105_v61  ;;  %v1372_v9 = vpop.f32.mrb[93].mxu0  ;;  %v1628_v10 = vpop.f32.mrb[93].mxu1 }
 0x1b7   : > { %v1373_v11 = vpop.f32.mrb[94].mxu0  ;;  %v1629_v12 = vpop.f32.mrb[94].mxu1 }
 0x1b8   : > { %v3368_v13 = vpack.c.bf16 %v2006_v5, %v2005_v0  ;;  %v3528_v14 = vpack.c.bf16 %v2070_v6, %v2069_v1  ;;  %v1747_v15 = vmul.f32 %v4109_v63, %v1371_v7  ;;  %v1811_v16 = vmul.f32 %v4109_v63, %v1627_v8  ;;  %v1375_v17 = vpop.f32.mrb[95].mxu0  ;;  %v1631_v18 = vpop.f32.mrb[95].mxu1 }
 0x1b9   : > { %v1374_v19 = vadd.f32 %v1373_v11, %v4105_v61  ;;  %v1630_v20 = vadd.f32 %v1629_v12, %v4105_v61 }
 0x1ba   : > { %3596 = vst [vmem:[%s4138_s16 + $0xb0] sm:$0xff] %v3368_v13   ;;  %3628 = vst [vmem:[%s4138_s16 + $0x1b0] sm:$0xff] %v3528_v14   ;;  %v1879_v21 = vadd.f32 %v4112_v3, %v1747_v15  ;;  %v1943_v22 = vadd.f32 %v4112_v3, %v1811_v16 }
 0x1bb   : > { %v1748_v23 = vmul.f32 %v4109_v63, %v1374_v19  ;;  %v1812_v24 = vmul.f32 %v4109_v63, %v1630_v20 }
 0x1bc   : > { %v2007_v33 = vmax.f32 %v1879_v21, 0.0  ;;  %v2071_v34 = vmax.f32 %v1943_v22, 0.0 }
 0x1bd   : > { %v1880_v25 = vadd.f32 %v4112_v3, %v1748_v23  ;;  %v1944_v26 = vadd.f32 %v4112_v3, %v1812_v24  ;;  %v1378_v27 = vpop.f32.mrb[96].mxu0  ;;  %v1634_v28 = vpop.f32.mrb[96].mxu1 }
 0x1be   : > { %v1379_v29 = vadd.f32 %v1378_v27, %v4105_v61  ;;  %v1635_v30 = vadd.f32 %v1634_v28, %v4105_v61  ;;  %v1380_v31 = vpop.f32.mrb[97].mxu0  ;;  %v1636_v32 = vpop.f32.mrb[97].mxu1 }
 0x1bf   : > { %v2008_v35 = vmax.f32 %v1880_v25, 0.0  ;;  %v2072_v36 = vmax.f32 %v1944_v26, 0.0  ;;  %v1381_v37 = vpop.f32.mrb[98].mxu0  ;;  %v1637_v38 = vpop.f32.mrb[98].mxu1 }
 0x1c0   : > { %v1749_v39 = vmul.f32 %v4109_v63, %v1379_v29  ;;  %v1813_v40 = vmul.f32 %v4109_v63, %v1635_v30  ;;  %v1382_v41 = vadd.f32 %v1381_v37, %v4105_v61  ;;  %v1638_v42 = vadd.f32 %v1637_v38, %v4105_v61  ;;  %v1383_v43 = vpop.f32.mrb[99].mxu0  ;;  %v1639_v44 = vpop.f32.mrb[99].mxu1 }
 0x1c1   : > { %v3373_v45 = vpack.c.bf16 %v2008_v35, %v2007_v33  ;;  %v3533_v46 = vpack.c.bf16 %v2072_v36, %v2071_v34 }
 0x1c2   : > { %v1881_v47 = vadd.f32 %v4112_v3, %v1749_v39  ;;  %v1945_v48 = vadd.f32 %v4112_v3, %v1813_v40  ;;  %v1750_v49 = vmul.f32 %v4109_v63, %v1382_v41  ;;  %v1814_v50 = vmul.f32 %v4109_v63, %v1638_v42 }
 0x1c3   : > { %3597 = vst [vmem:[%s4138_s16 + $0xb8] sm:$0xff] %v3373_v45   ;;  %3629 = vst [vmem:[%s4138_s16 + $0x1b8] sm:$0xff] %v3533_v46  }
 0x1c4   : > { %v1882_v51 = vadd.f32 %v4112_v3, %v1750_v49  ;;  %v1946_v52 = vadd.f32 %v4112_v3, %v1814_v50  ;;  %v2009_v53 = vmax.f32 %v1881_v47, 0.0  ;;  %v2073_v54 = vmax.f32 %v1945_v48, 0.0 }
 0x1c5   : > { %v1386_v55 = vpop.f32.mrb[100].mxu0  ;;  %v1642_v56 = vpop.f32.mrb[100].mxu1 }
 0x1c6   : > { %v2010_v57 = vmax.f32 %v1882_v51, 0.0  ;;  %v2074_v58 = vmax.f32 %v1946_v52, 0.0  ;;  %v1387_v59 = vadd.f32 %v1386_v55, %v4105_v61  ;;  %v1643_v60 = vadd.f32 %v1642_v56, %v4105_v61  ;;  %v1388_v62 = vpop.f32.mrb[101].mxu0  ;;  %v1644_v0 = vpop.f32.mrb[101].mxu1 }
 0x1c7   : > { %v1389_v1 = vpop.f32.mrb[102].mxu0  ;;  %v1645_v2 = vpop.f32.mrb[102].mxu1 }
 0x1c8   : > { %v3378_v4 = vpack.c.bf16 %v2010_v57, %v2009_v53  ;;  %v3538_v5 = vpack.c.bf16 %v2074_v58, %v2073_v54  ;;  %v1751_v6 = vmul.f32 %v4109_v63, %v1387_v59  ;;  %v1815_v7 = vmul.f32 %v4109_v63, %v1643_v60  ;;  %v1391_v8 = vpop.f32.mrb[103].mxu0  ;;  %v1647_v9 = vpop.f32.mrb[103].mxu1 }
 0x1c9   : > { %v1390_v10 = vadd.f32 %v1389_v1, %v4105_v61  ;;  %v1646_v11 = vadd.f32 %v1645_v2, %v4105_v61 }
 0x1ca   : > { %3598 = vst [vmem:[%s4138_s16 + $0xc0] sm:$0xff] %v3378_v4   ;;  %3630 = vst [vmem:[%s4138_s16 + $0x1c0] sm:$0xff] %v3538_v5   ;;  %v1883_v12 = vadd.f32 %v4112_v3, %v1751_v6  ;;  %v1947_v13 = vadd.f32 %v4112_v3, %v1815_v7 }
 0x1cb   : > { %v1752_v14 = vmul.f32 %v4109_v63, %v1390_v10  ;;  %v1816_v15 = vmul.f32 %v4109_v63, %v1646_v11 }
 0x1cc   : > { %v2011_v24 = vmax.f32 %v1883_v12, 0.0  ;;  %v2075_v25 = vmax.f32 %v1947_v13, 0.0 }
 0x1cd   : > { %v1884_v16 = vadd.f32 %v4112_v3, %v1752_v14  ;;  %v1948_v17 = vadd.f32 %v4112_v3, %v1816_v15  ;;  %v1394_v18 = vpop.f32.mrb[104].mxu0  ;;  %v1650_v19 = vpop.f32.mrb[104].mxu1 }
 0x1ce   : > { %v1395_v20 = vadd.f32 %v1394_v18, %v4105_v61  ;;  %v1651_v21 = vadd.f32 %v1650_v19, %v4105_v61  ;;  %v1396_v22 = vpop.f32.mrb[105].mxu0  ;;  %v1652_v23 = vpop.f32.mrb[105].mxu1 }
 0x1cf   : > { %v2012_v26 = vmax.f32 %v1884_v16, 0.0  ;;  %v2076_v27 = vmax.f32 %v1948_v17, 0.0  ;;  %v1397_v28 = vpop.f32.mrb[106].mxu0  ;;  %v1653_v29 = vpop.f32.mrb[106].mxu1 }
 0x1d0   : > { %v1753_v30 = vmul.f32 %v4109_v63, %v1395_v20  ;;  %v1817_v31 = vmul.f32 %v4109_v63, %v1651_v21  ;;  %v1398_v32 = vadd.f32 %v1397_v28, %v4105_v61  ;;  %v1654_v33 = vadd.f32 %v1653_v29, %v4105_v61  ;;  %v1399_v34 = vpop.f32.mrb[107].mxu0  ;;  %v1655_v35 = vpop.f32.mrb[107].mxu1 }
 0x1d1   : > { %v3383_v36 = vpack.c.bf16 %v2012_v26, %v2011_v24  ;;  %v3543_v37 = vpack.c.bf16 %v2076_v27, %v2075_v25 }
 0x1d2   : > { %v1885_v38 = vadd.f32 %v4112_v3, %v1753_v30  ;;  %v1949_v39 = vadd.f32 %v4112_v3, %v1817_v31  ;;  %v1754_v40 = vmul.f32 %v4109_v63, %v1398_v32  ;;  %v1818_v41 = vmul.f32 %v4109_v63, %v1654_v33 }
 0x1d3   : > { %3599 = vst [vmem:[%s4138_s16 + $0xc8] sm:$0xff] %v3383_v36   ;;  %3631 = vst [vmem:[%s4138_s16 + $0x1c8] sm:$0xff] %v3543_v37  }
 0x1d4   : > { %v1886_v42 = vadd.f32 %v4112_v3, %v1754_v40  ;;  %v1950_v43 = vadd.f32 %v4112_v3, %v1818_v41  ;;  %v2013_v44 = vmax.f32 %v1885_v38, 0.0  ;;  %v2077_v46 = vmax.f32 %v1949_v39, 0.0 }
 0x1d5   : > { %v1402_v45 = vpop.f32.mrb[108].mxu0 }
 0x1d6   : > { %v2014_v47 = vmax.f32 %v1886_v42, 0.0  ;;  %v2078_v48 = vmax.f32 %v1950_v43, 0.0  ;;  %v1403_v49 = vadd.f32 %v1402_v45, %v4105_v61  ;;  %v1658_v50 = vpop.f32.mrb[108].mxu1  ;;  %v1404_v51 = vpop.f32.mrb[109].mxu0 }
 0x1d7   : > { %v1659_v52 = vadd.f32 %v1658_v50, %v4105_v61  ;;  %v1660_v53 = vpop.f32.mrb[109].mxu1  ;;  %v1405_v54 = vpop.f32.mrb[110].mxu0 }
 0x1d8   : > { %v3388_v55 = vpack.c.bf16 %v2014_v47, %v2013_v44  ;;  %v3548_v56 = vpack.c.bf16 %v2078_v48, %v2077_v46  ;;  %v1755_v57 = vmul.f32 %v4109_v63, %v1403_v49  ;;  %v1406_v58 = vadd.f32 %v1405_v54, %v4105_v61  ;;  %v1661_v59 = vpop.f32.mrb[110].mxu1  ;;  %v1407_v60 = vpop.f32.mrb[111].mxu0 }
 0x1d9   : > { %v1819_v62 = vmul.f32 %v4109_v63, %v1659_v52  ;;  %v1662_v0 = vadd.f32 %v1661_v59, %v4105_v61  ;;  %v1663_v1 = vpop.f32.mrb[111].mxu1 }
 0x1da   : > { %3600 = vst [vmem:[%s4138_s16 + $0xd0] sm:$0xff] %v3388_v55   ;;  %3632 = vst [vmem:[%s4138_s16 + $0x1d0] sm:$0xff] %v3548_v56   ;;  %v1887_v2 = vadd.f32 %v4112_v3, %v1755_v57  ;;  %v1756_v4 = vmul.f32 %v4109_v63, %v1406_v58 }
 0x1db   : > { %v1951_v5 = vadd.f32 %v4112_v3, %v1819_v62  ;;  %v1820_v6 = vmul.f32 %v4109_v63, %v1662_v0 }
 0x1dc   : > { %v1888_v7 = vadd.f32 %v4112_v3, %v1756_v4  ;;  %v2015_v10 = vmax.f32 %v1887_v2, 0.0 }
 0x1dd   : > { %v1952_v8 = vadd.f32 %v4112_v3, %v1820_v6  ;;  %v1410_v9 = vpop.f32.mrb[112].mxu0  ;;  %v2079_v15 = vmax.f32 %v1951_v5, 0.0 }
 0x1de   : > { %v2016_v11 = vmax.f32 %v1888_v7, 0.0  ;;  %v1411_v12 = vadd.f32 %v1410_v9, %v4105_v61  ;;  %v1666_v13 = vpop.f32.mrb[112].mxu1  ;;  %v1412_v14 = vpop.f32.mrb[113].mxu0 }
 0x1df   : > { %v2080_v16 = vmax.f32 %v1952_v8, 0.0  ;;  %v1667_v17 = vadd.f32 %v1666_v13, %v4105_v61  ;;  %v1668_v18 = vpop.f32.mrb[113].mxu1  ;;  %v1413_v19 = vpop.f32.mrb[114].mxu0 }
 0x1e0   : > { %v3393_v20 = vpack.c.bf16 %v2016_v11, %v2015_v10  ;;  %v1757_v21 = vmul.f32 %v4109_v63, %v1411_v12  ;;  %v1414_v22 = vadd.f32 %v1413_v19, %v4105_v61  ;;  %v1669_v23 = vpop.f32.mrb[114].mxu1  ;;  %v1415_v24 = vpop.f32.mrb[115].mxu0 }
 0x1e1   : > { %v3553_v25 = vpack.c.bf16 %v2080_v16, %v2079_v15  ;;  %v1821_v26 = vmul.f32 %v4109_v63, %v1667_v17  ;;  %v1670_v27 = vadd.f32 %v1669_v23, %v4105_v61  ;;  %v1671_v28 = vpop.f32.mrb[115].mxu1 }
 0x1e2   : > { %3601 = vst [vmem:[%s4138_s16 + $0xd8] sm:$0xff] %v3393_v20   ;;  %v1889_v29 = vadd.f32 %v4112_v3, %v1757_v21  ;;  %v1758_v30 = vmul.f32 %v4109_v63, %v1414_v22 }
 0x1e3   : > { %3633 = vst [vmem:[%s4138_s16 + $0x1d8] sm:$0xff] %v3553_v25   ;;  %v1953_v31 = vadd.f32 %v4112_v3, %v1821_v26  ;;  %v1822_v32 = vmul.f32 %v4109_v63, %v1670_v27 }
 0x1e4   : > { %v1890_v33 = vadd.f32 %v4112_v3, %v1758_v30  ;;  %v2017_v36 = vmax.f32 %v1889_v29, 0.0 }
 0x1e5   : > { %v1954_v34 = vadd.f32 %v4112_v3, %v1822_v32  ;;  %v1418_v35 = vpop.f32.mrb[116].mxu0  ;;  %v2081_v41 = vmax.f32 %v1953_v31, 0.0 }
 0x1e6   : > { %v2018_v37 = vmax.f32 %v1890_v33, 0.0  ;;  %v1419_v38 = vadd.f32 %v1418_v35, %v4105_v61  ;;  %v1674_v39 = vpop.f32.mrb[116].mxu1  ;;  %v1420_v40 = vpop.f32.mrb[117].mxu0 }
 0x1e7   : > { %v2082_v42 = vmax.f32 %v1954_v34, 0.0  ;;  %v1675_v43 = vadd.f32 %v1674_v39, %v4105_v61  ;;  %v1676_v44 = vpop.f32.mrb[117].mxu1  ;;  %v1421_v45 = vpop.f32.mrb[118].mxu0 }
 0x1e8   : > { %v3398_v46 = vpack.c.bf16 %v2018_v37, %v2017_v36  ;;  %v1759_v47 = vmul.f32 %v4109_v63, %v1419_v38  ;;  %v1422_v48 = vadd.f32 %v1421_v45, %v4105_v61  ;;  %v1677_v49 = vpop.f32.mrb[118].mxu1  ;;  %v1423_v50 = vpop.f32.mrb[119].mxu0 }
 0x1e9   : > { %v3558_v51 = vpack.c.bf16 %v2082_v42, %v2081_v41  ;;  %v1823_v52 = vmul.f32 %v4109_v63, %v1675_v43  ;;  %v1678_v53 = vadd.f32 %v1677_v49, %v4105_v61  ;;  %v1679_v54 = vpop.f32.mrb[119].mxu1 }
 0x1ea   : > { %3602 = vst [vmem:[%s4138_s16 + $0xe0] sm:$0xff] %v3398_v46   ;;  %v1891_v55 = vadd.f32 %v4112_v3, %v1759_v47  ;;  %v1760_v56 = vmul.f32 %v4109_v63, %v1422_v48 }
 0x1eb   : > { %3634 = vst [vmem:[%s4138_s16 + $0x1e0] sm:$0xff] %v3558_v51   ;;  %v1955_v57 = vadd.f32 %v4112_v3, %v1823_v52  ;;  %v1824_v58 = vmul.f32 %v4109_v63, %v1678_v53 }
 0x1ec   : > { %v1892_v59 = vadd.f32 %v4112_v3, %v1760_v56  ;;  %v2019_v0 = vmax.f32 %v1891_v55, 0.0 }
 0x1ed   : > { %v1956_v60 = vadd.f32 %v4112_v3, %v1824_v58  ;;  %v1426_v62 = vpop.f32.mrb[120].mxu0  ;;  %v2083_v6 = vmax.f32 %v1955_v57, 0.0 }
 0x1ee   : > { %v2020_v1 = vmax.f32 %v1892_v59, 0.0  ;;  %v1427_v2 = vadd.f32 %v1426_v62, %v4105_v61  ;;  %v1682_v4 = vpop.f32.mrb[120].mxu1  ;;  %v1428_v5 = vpop.f32.mrb[121].mxu0 }
 0x1ef   : > { %v2084_v7 = vmax.f32 %v1956_v60, 0.0  ;;  %v1683_v8 = vadd.f32 %v1682_v4, %v4105_v61  ;;  %v1684_v9 = vpop.f32.mrb[121].mxu1  ;;  %v1429_v10 = vpop.f32.mrb[122].mxu0 }
 0x1f0   : > { %v3403_v11 = vpack.c.bf16 %v2020_v1, %v2019_v0  ;;  %v1761_v12 = vmul.f32 %v4109_v63, %v1427_v2  ;;  %v1430_v13 = vadd.f32 %v1429_v10, %v4105_v61  ;;  %v1685_v14 = vpop.f32.mrb[122].mxu1  ;;  %v1431_v15 = vpop.f32.mrb[123].mxu0 }
 0x1f1   : > { %v3563_v16 = vpack.c.bf16 %v2084_v7, %v2083_v6  ;;  %v1825_v17 = vmul.f32 %v4109_v63, %v1683_v8  ;;  %v1686_v18 = vadd.f32 %v1685_v14, %v4105_v61  ;;  %v1687_v19 = vpop.f32.mrb[123].mxu1 }
 0x1f2   : > { %3603 = vst [vmem:[%s4138_s16 + $0xe8] sm:$0xff] %v3403_v11   ;;  %v1893_v20 = vadd.f32 %v4112_v3, %v1761_v12  ;;  %v1762_v21 = vmul.f32 %v4109_v63, %v1430_v13 }
 0x1f3   : > { %3635 = vst [vmem:[%s4138_s16 + $0x1e8] sm:$0xff] %v3563_v16   ;;  %v1957_v22 = vadd.f32 %v4112_v3, %v1825_v17  ;;  %v1826_v23 = vmul.f32 %v4109_v63, %v1686_v18 }
 0x1f4   : > { %v1894_v24 = vadd.f32 %v4112_v3, %v1762_v21  ;;  %v2021_v27 = vmax.f32 %v1893_v20, 0.0 }
 0x1f5   : > { %v1958_v25 = vadd.f32 %v4112_v3, %v1826_v23  ;;  %v1434_v26 = vpop.f32.mrb[124].mxu0  ;;  %v2085_v32 = vmax.f32 %v1957_v22, 0.0 }
 0x1f6   : > { %v2022_v28 = vmax.f32 %v1894_v24, 0.0  ;;  %v1435_v29 = vadd.f32 %v1434_v26, %v4105_v61  ;;  %v1690_v30 = vpop.f32.mrb[124].mxu1  ;;  %v1436_v31 = vpop.f32.mrb[125].mxu0 }
 0x1f7   : > { %v2086_v33 = vmax.f32 %v1958_v25, 0.0  ;;  %v1691_v34 = vadd.f32 %v1690_v30, %v4105_v61  ;;  %v1692_v35 = vpop.f32.mrb[125].mxu1  ;;  %v1437_v36 = vpop.f32.mrb[126].mxu0 }
 0x1f8   : > { %v3408_v37 = vpack.c.bf16 %v2022_v28, %v2021_v27  ;;  %v1763_v38 = vmul.f32 %v4109_v63, %v1435_v29  ;;  %v1438_v39 = vadd.f32 %v1437_v36, %v4105_v61  ;;  %v1693_v40 = vpop.f32.mrb[126].mxu1  ;;  %v1439_v41 = vpop.f32.mrb[127].mxu0 }
 0x1f9   : > { %v3568_v42 = vpack.c.bf16 %v2086_v33, %v2085_v32  ;;  %v1827_v43 = vmul.f32 %v4109_v63, %v1691_v34  ;;  %v1694_v44 = vadd.f32 %v1693_v40, %v4105_v61  ;;  %v1695_v45 = vpop.f32.mrb[127].mxu1 }
 0x1fa   : > { %3604 = vst [vmem:[%s4138_s16 + $0xf0] sm:$0xff] %v3408_v37   ;;  %v1895_v46 = vadd.f32 %v4112_v3, %v1763_v38  ;;  %v1764_v47 = vmul.f32 %v4109_v63, %v1438_v39 }
 0x1fb   : > { %3636 = vst [vmem:[%s4138_s16 + $0x1f0] sm:$0xff] %v3568_v42   ;;  %v1959_v48 = vadd.f32 %v4112_v3, %v1827_v43  ;;  %v1828_v49 = vmul.f32 %v4109_v63, %v1694_v44 }
 0x1fc   : > { %v1896_v50 = vadd.f32 %v4112_v3, %v1764_v47  ;;  %v2023_v52 = vmax.f32 %v1895_v46, 0.0 }
 0x1fd   : > { %v1960_v51 = vadd.f32 %v4112_v3, %v1828_v49  ;;  %v2087_v61 = vmax.f32 %v1959_v48, 0.0 }
 0x1fe   : > { %v2024_v53 = vmax.f32 %v1896_v50, 0.0 }
 0x1ff   : > { %v2088_v54 = vmax.f32 %v1960_v51, 0.0 }
 0x200   : > { %v3413_v55 = vpack.c.bf16 %v2024_v53, %v2023_v52 }
 0x201   : > { %v3573_v56 = vpack.c.bf16 %v2088_v54, %v2087_v61 }
 0x202   : > { %3605 = vst [vmem:[%s4138_s16 + $0xf8] sm:$0xff] %v3413_v55  }
 0x203   : > { %3637 = vst [vmem:[%s4138_s16 + $0x1f8] sm:$0xff] %v3573_v56  }
 0x204 PF: > { %s13_s12 = sadd.s32 1, %s3872_s12  }
 0x205   : > { %p10_p4 = scmp.ge.s32.totalorder %s13_s12, 4  }
 0x207   :  { %12 = sbr.rel (!%p10_p4) target bundleno = 1 (0x1), region = 62 }

// kernel: _lambda_.9
= control target key start
LH: loop header
LB: loop body
LE: loop exit
PB: predicated region body
PF: predicated region fallthrough
CT: control target
= control target key end

     0   :  { %s6027_s18 = smov 0   ;;  %s6883_s0 = inlined_call_operand.vmem [shape: bf16[2048,144], index: 0, kind: input, shape index: {}]   ;;  %s6884_s1 = inlined_call_operand.vmem [shape: bf16[144,128], index: 1, kind: input, shape index: {}]   ;;  %s6885_s2 = inlined_call_operand.vmem [shape: f32[8,128], index: 2, kind: input, shape index: {}]   ;;  %s6886_s3 = inlined_call_operand.vmem [shape: bf16[2048,128], index: 3, kind: input, shape index: {}]   ;;  %s6887_s4 = inlined_call_operand.vmem [shape: bf16[2048,128], index: 4, kind: output, shape index: {0}]   ;;  %s6888_s5 = inlined_call_operand.vmem [shape: bf16[2048,128], index: 5, kind: output, shape index: {1}]  }
   0x1 LB: > { %s3945_s19 = sadd.s32 4294967295, %s5994_s18   ;;  %p3949_p0 = scmp.ge.s32.totalorder %s5994_s18, 1  ;;  %s5994_s18 = sphi %s6027_s18, %s16_s18  }
   0x2   : > { %p203_p1 = scmp.lt.s32.totalorder %s5994_s18, 3 }
   0x4   : > { %p204_p2 = pnand %p3949_p0, %p203_p1 }
   0x5   : > { %v5787_v0 = vld [vmem:[%s6884_s1] sm:$0xff] (!%p204_p2)   ;;  %v5996_v1 = vmov (!%p204_p2), 0   ;;  %s3950_s22 = sshll.u32 (!%p204_p2), %s3945_s19, 7  ;;  %v5788_v2 = vld [vmem:[%s6884_s1 + $0x8] sm:$0xff] (!%p204_p2)   ;;  %v5789_v3 = vld [vmem:[%s6884_s1 + $0x10] sm:$0xff] (!%p204_p2)   ;;  %vm1049_vm0 = vcmask (!%p204_p2), 130048  }
   0x6   : > { %207 = sbr.rel (%p204_p2) target bundleno = 518 (0x206), region = 36  ;;  %1242 = vmatprep.subr.bf16.mxu0 (!%p204_p2), %v5996_v1  ;;  %5760 = vmatprep.subr.bf16.mxu1 (!%p204_p2), %v5996_v1  ;;  %p243_p3 = scmp.lt.s32.totalorder (!%p204_p2), %s3950_s22, 255  ;;  %v5790_v4 = vld [vmem:[%s6884_s1 + $0x18] sm:$0xff] (!%p204_p2)   ;;  %v5791_v7 = vld [vmem:[%s6884_s1 + $0x20] sm:$0xff] (!%p204_p2)   ;;  %v5792_v8 = vld [vmem:[%s6884_s1 + $0x28] sm:$0xff] (!%p204_p2)  }
   0x7   : > { %1243 = vmatpush1.bf16.msra.mxu0 (!%p204_p2), %v5787_v0  ;;  %5769 = vmatpush1.bf16.msra.mxu1 (!%p204_p2), %v5787_v0  ;;  %v5793_v9 = vld [vmem:[%s6884_s1 + $0x30] sm:$0xff] (!%p204_p2)   ;;  %v5794_v10 = vld [vmem:[%s6884_s1 + $0x38] sm:$0xff] (!%p204_p2)   ;;  %v5795_v11 = vld [vmem:[%s6884_s1 + $0x40] sm:$0xff] (!%p204_p2)  }
   0x8   : > { %1244 = vmatprep.subr.bf16.mxu0 (!%p204_p2), %v5996_v1  ;;  %5761 = vmatprep.subr.bf16.mxu1 (!%p204_p2), %v5996_v1 }
   0xb   : > { %1245 = vmatpush1.bf16.msra.mxu0 (!%p204_p2), %v5788_v2  ;;  %5770 = vmatpush1.bf16.msra.mxu1 (!%p204_p2), %v5788_v2 }
   0xc   : > { %1246 = vmatprep.subr.bf16.mxu0 (!%p204_p2), %v5996_v1  ;;  %5762 = vmatprep.subr.bf16.mxu1 (!%p204_p2), %v5996_v1 }
   0xd   : > { %s6890_s22 = smov (!%p243_p3, %s3950_s22), 255 }
   0xe   : > { %s4418_s27 = sshll.u32 %s6890_s22, 3  ;;  %s6231_s19 = sshll.u32 %s6890_s22, 2 }
   0xf   : > { %s6050_s30 = scalar_lea.vmem %s6883_s0, %s4418_s27  ;;  %1247 = vmatpush1.bf16.msra.mxu0 %v5789_v3  ;;  %5771 = vmatpush1.bf16.msra.mxu1 %v5789_v3  ;;  %s6239_s23 = scalar_lea.vmem %s6886_s3, %s6231_s19 }
  0x10   : > { %v5798_v5 = vld [vmem:[%s6050_s30 + $0x4] ss:$8 sps:$4 sm:$0xff]   ;;  %1248 = vmatprep.subr.bf16.mxu0 %v5996_v1  ;;  %5763 = vmatprep.subr.bf16.mxu1 %v5996_v1  ;;  %v5796_v12 = vld [vmem:[%s6050_s30] ss:$8 sps:$4 sm:$0xff]   ;;  %v5802_v14 = vld [vmem:[%s6050_s30 + $0x14] ss:$8 sps:$4 sm:$0xff]   ;;  %s6272_s27 = scalar_lea.vmem %s6887_s4, %s6231_s19  ;;  %s6302_s6 = scalar_lea.vmem %s6888_s5, %s6231_s19 }
  0x11   : > { %v5801_v6 = vld [vmem:[%s6050_s30 + $0x204] ss:$8 sps:$4 sm:$0xff]   ;;  %4096 = vmatprep.mubr.msk.bf16.mxu0 %vm1049_vm0, %v5798_v5  ;;  %v5799_v13 = vld [vmem:[%s6050_s30 + $0x200] ss:$8 sps:$4 sm:$0xff]   ;;  %v5804_v15 = vld [vmem:[%s6050_s30 + $0x214] ss:$8 sps:$4 sm:$0xff]  }
  0x12   : > { %4128 = vmatprep.mubr.msk.bf16.mxu1 %vm1049_vm0, %v5801_v6  ;;  %v5806_v16 = vld [vmem:[%s6050_s30 + $0x10] ss:$8 sps:$4 sm:$0xff]   ;;  %v5808_v18 = vld [vmem:[%s6050_s30 + $0x24] ss:$8 sps:$4 sm:$0xff]   ;;  %v5812_v20 = vld [vmem:[%s6050_s30 + $0x20] ss:$8 sps:$4 sm:$0xff]  }
  0x13   : > { %1249 = vmatpush1.bf16.msra.mxu0 %v5790_v4  ;;  %5772 = vmatpush1.bf16.msra.mxu1 %v5790_v4  ;;  %v5807_v17 = vld [vmem:[%s6050_s30 + $0x210] ss:$8 sps:$4 sm:$0xff]   ;;  %v5810_v19 = vld [vmem:[%s6050_s30 + $0x224] ss:$8 sps:$4 sm:$0xff]   ;;  %v5813_v21 = vld [vmem:[%s6050_s30 + $0x220] ss:$8 sps:$4 sm:$0xff]  }
  0x14   : > { %1250 = vmatprep.subr.bf16.mxu0 %v5996_v1  ;;  %5764 = vmatprep.subr.bf16.mxu1 %v5996_v1  ;;  %v5814_v22 = vld [vmem:[%s6050_s30 + $0x34] ss:$8 sps:$4 sm:$0xff]   ;;  %v5818_v24 = vld [vmem:[%s6050_s30 + $0x30] ss:$8 sps:$4 sm:$0xff]   ;;  %v5820_v26 = vld [vmem:[%s6050_s30 + $0x44] ss:$8 sps:$4 sm:$0xff]  }
  0x15   : > { %v5816_v23 = vld [vmem:[%s6050_s30 + $0x234] ss:$8 sps:$4 sm:$0xff]   ;;  %v5819_v25 = vld [vmem:[%s6050_s30 + $0x230] ss:$8 sps:$4 sm:$0xff]   ;;  %v5822_v27 = vld [vmem:[%s6050_s30 + $0x244] ss:$8 sps:$4 sm:$0xff]  }
  0x16   : > { %v5824_v28 = vld [vmem:[%s6050_s30 + $0x40] ss:$8 sps:$4 sm:$0xff]   ;;  %v5826_v30 = vld [vmem:[%s6050_s30 + $0x54] ss:$8 sps:$4 sm:$0xff]   ;;  %v5830_v32 = vld [vmem:[%s6050_s30 + $0x50] ss:$8 sps:$4 sm:$0xff]  }
  0x17   : > { %1251 = vmatpush1.bf16.msra.mxu0 %v5791_v7  ;;  %5773 = vmatpush1.bf16.msra.mxu1 %v5791_v7  ;;  %v5825_v29 = vld [vmem:[%s6050_s30 + $0x240] ss:$8 sps:$4 sm:$0xff]   ;;  %v5828_v31 = vld [vmem:[%s6050_s30 + $0x254] ss:$8 sps:$4 sm:$0xff]   ;;  %v5831_v33 = vld [vmem:[%s6050_s30 + $0x250] ss:$8 sps:$4 sm:$0xff]  }
  0x18   : > { %1252 = vmatprep.subr.bf16.mxu0 %v5996_v1  ;;  %5765 = vmatprep.subr.bf16.mxu1 %v5996_v1  ;;  %v5832_v34 = vld [vmem:[%s6050_s30 + $0x64] ss:$8 sps:$4 sm:$0xff]   ;;  %v5836_v36 = vld [vmem:[%s6050_s30 + $0x60] ss:$8 sps:$4 sm:$0xff]   ;;  %v5838_v38 = vld [vmem:[%s6050_s30 + $0x74] ss:$8 sps:$4 sm:$0xff]  }
  0x19   : > { %v5834_v35 = vld [vmem:[%s6050_s30 + $0x264] ss:$8 sps:$4 sm:$0xff]   ;;  %v5837_v37 = vld [vmem:[%s6050_s30 + $0x260] ss:$8 sps:$4 sm:$0xff]   ;;  %v5840_v39 = vld [vmem:[%s6050_s30 + $0x274] ss:$8 sps:$4 sm:$0xff]  }
  0x1a   : > { %v5842_v40 = vld [vmem:[%s6050_s30 + $0x70] ss:$8 sps:$4 sm:$0xff]   ;;  %v5844_v42 = vld [vmem:[%s6050_s30 + $0x84] ss:$8 sps:$4 sm:$0xff]   ;;  %v5848_v44 = vld [vmem:[%s6050_s30 + $0x80] ss:$8 sps:$4 sm:$0xff]  }
  0x1b   : > { %1253 = vmatpush1.bf16.msra.mxu0 %v5792_v8  ;;  %5774 = vmatpush1.bf16.msra.mxu1 %v5792_v8  ;;  %v5843_v41 = vld [vmem:[%s6050_s30 + $0x270] ss:$8 sps:$4 sm:$0xff]   ;;  %v5846_v43 = vld [vmem:[%s6050_s30 + $0x284] ss:$8 sps:$4 sm:$0xff]   ;;  %v5849_v45 = vld [vmem:[%s6050_s30 + $0x280] ss:$8 sps:$4 sm:$0xff]  }
  0x1c   : > { %1254 = vmatprep.subr.bf16.mxu0 %v5996_v1  ;;  %5766 = vmatprep.subr.bf16.mxu1 %v5996_v1  ;;  %v5850_v46 = vld [vmem:[%s6050_s30 + $0x94] ss:$8 sps:$4 sm:$0xff]   ;;  %v5854_v48 = vld [vmem:[%s6050_s30 + $0x90] ss:$8 sps:$4 sm:$0xff]   ;;  %v5856_v50 = vld [vmem:[%s6050_s30 + $0xa4] ss:$8 sps:$4 sm:$0xff]  }
  0x1d   : > { %v5852_v47 = vld [vmem:[%s6050_s30 + $0x294] ss:$8 sps:$4 sm:$0xff]   ;;  %v5855_v49 = vld [vmem:[%s6050_s30 + $0x290] ss:$8 sps:$4 sm:$0xff]   ;;  %v5858_v51 = vld [vmem:[%s6050_s30 + $0x2a4] ss:$8 sps:$4 sm:$0xff]  }
  0x1e   : > { %v5860_v52 = vld [vmem:[%s6050_s30 + $0xa0] ss:$8 sps:$4 sm:$0xff]   ;;  %v5862_v54 = vld [vmem:[%s6050_s30 + $0xb4] ss:$8 sps:$4 sm:$0xff]   ;;  %v5866_v56 = vld [vmem:[%s6050_s30 + $0xb0] ss:$8 sps:$4 sm:$0xff]  }
  0x1f   : > { %1255 = vmatpush1.bf16.msra.mxu0 %v5793_v9  ;;  %5775 = vmatpush1.bf16.msra.mxu1 %v5793_v9  ;;  %v5861_v53 = vld [vmem:[%s6050_s30 + $0x2a0] ss:$8 sps:$4 sm:$0xff]   ;;  %v5864_v55 = vld [vmem:[%s6050_s30 + $0x2b4] ss:$8 sps:$4 sm:$0xff]   ;;  %v5867_v57 = vld [vmem:[%s6050_s30 + $0x2b0] ss:$8 sps:$4 sm:$0xff]  }
  0x20   : > { %1256 = vmatprep.subr.bf16.mxu0 %v5996_v1  ;;  %5767 = vmatprep.subr.bf16.mxu1 %v5996_v1  ;;  %v5868_v58 = vld [vmem:[%s6050_s30 + $0xc4] ss:$8 sps:$4 sm:$0xff]   ;;  %v5872_v60 = vld [vmem:[%s6050_s30 + $0xc0] ss:$8 sps:$4 sm:$0xff]   ;;  %v5874_v62 = vld [vmem:[%s6050_s30 + $0xd4] ss:$8 sps:$4 sm:$0xff]  }
  0x21   : > { %v5870_v59 = vld [vmem:[%s6050_s30 + $0x2c4] ss:$8 sps:$4 sm:$0xff]   ;;  %v5873_v61 = vld [vmem:[%s6050_s30 + $0x2c0] ss:$8 sps:$4 sm:$0xff]   ;;  %v5876_v63 = vld [vmem:[%s6050_s30 + $0x2d4] ss:$8 sps:$4 sm:$0xff]  }
  0x22   : > { %v5878_v0 = vld [vmem:[%s6050_s30 + $0xd0] ss:$8 sps:$4 sm:$0xff]   ;;  %v5880_v2 = vld [vmem:[%s6050_s30 + $0xe4] ss:$8 sps:$4 sm:$0xff]   ;;  %v5884_v4 = vld [vmem:[%s6050_s30 + $0xe0] ss:$8 sps:$4 sm:$0xff]  }
  0x23   : > { %1257 = vmatpush1.bf16.msra.mxu0 %v5794_v10  ;;  %5776 = vmatpush1.bf16.msra.mxu1 %v5794_v10  ;;  %v5882_v3 = vld [vmem:[%s6050_s30 + $0x2e4] ss:$8 sps:$4 sm:$0xff]   ;;  %v5885_v5 = vld [vmem:[%s6050_s30 + $0x2e0] ss:$8 sps:$4 sm:$0xff]   ;;  %v5886_v6 = vld [vmem:[%s6050_s30 + $0xf4] ss:$8 sps:$4 sm:$0xff]  }
  0x24   : > { %1258 = vmatprep.subr.bf16.mxu0 %v5996_v1  ;;  %5768 = vmatprep.subr.bf16.mxu1 %v5996_v1  ;;  %v5879_v1 = vld [vmem:[%s6050_s30 + $0x2d0] ss:$8 sps:$4 sm:$0xff]   ;;  %v5888_v7 = vld [vmem:[%s6050_s30 + $0x2f4] ss:$8 sps:$4 sm:$0xff]   ;;  %v5892_v10 = vld [vmem:[%s6050_s30 + $0x104] ss:$8 sps:$4 sm:$0xff]  }
  0x25   : > { %v5890_v8 = vld [vmem:[%s6050_s30 + $0xf0] ss:$8 sps:$4 sm:$0xff]  }
  0x26   : > { %v5891_v9 = vld [vmem:[%s6050_s30 + $0x2f0] ss:$8 sps:$4 sm:$0xff]  }
  0x27   : > { %1259 = vmatpush1.bf16.msra.mxu0 %v5795_v11  ;;  %5777 = vmatpush1.bf16.msra.mxu1 %v5795_v11  ;;  %v5894_v11 = vld [vmem:[%s6050_s30 + $0x304] ss:$8 sps:$4 sm:$0xff]  }
  0x2a   : > { %1275 = vmatmul.mubr.bf16.vlgmr.msra.gmra.mrb[0].mxu0 %v5796_v12  ;;  %1531 = vmatmul.mubr.bf16.vlgmr.msra.gmra.mrb[0].mxu1 %v5799_v13  ;;  %v5896_v12 = vld [vmem:[%s6050_s30 + $0x100] ss:$8 sps:$4 sm:$0xff]  }
  0x2b   : > { %4097 = vmatprep.mubr.msk.bf16.mxu0 %vm1049_vm0, %v5802_v14  ;;  %4129 = vmatprep.mubr.msk.bf16.mxu1 %vm1049_vm0, %v5804_v15  ;;  %v5897_v13 = vld [vmem:[%s6050_s30 + $0x300] ss:$8 sps:$4 sm:$0xff]   ;;  %v5898_v14 = vld [vmem:[%s6050_s30 + $0x114] ss:$8 sps:$4 sm:$0xff]  }
  0x2c   : > { %v5900_v15 = vld [vmem:[%s6050_s30 + $0x314] ss:$8 sps:$4 sm:$0xff]  }
  0x32   : > { %1283 = vmatmul.mubr.bf16.gmra.mrb[4].mxu0 %v5806_v16  ;;  %1539 = vmatmul.mubr.bf16.gmra.mrb[4].mxu1 %v5807_v17  ;;  %v5902_v16 = vld [vmem:[%s6050_s30 + $0x110] ss:$8 sps:$4 sm:$0xff]  }
  0x33   : > { %4098 = vmatprep.mubr.msk.bf16.mxu0 %vm1049_vm0, %v5808_v18  ;;  %4130 = vmatprep.mubr.msk.bf16.mxu1 %vm1049_vm0, %v5810_v19  ;;  %v5903_v17 = vld [vmem:[%s6050_s30 + $0x310] ss:$8 sps:$4 sm:$0xff]   ;;  %v5904_v18 = vld [vmem:[%s6050_s30 + $0x124] ss:$8 sps:$4 sm:$0xff]  }
  0x34   : > { %v5906_v19 = vld [vmem:[%s6050_s30 + $0x324] ss:$8 sps:$4 sm:$0xff]  }
  0x3a   : > { %1291 = vmatmul.mubr.bf16.gmra.mrb[8].mxu0 %v5812_v20  ;;  %1547 = vmatmul.mubr.bf16.gmra.mrb[8].mxu1 %v5813_v21  ;;  %v5908_v20 = vld [vmem:[%s6050_s30 + $0x120] ss:$8 sps:$4 sm:$0xff]  }
  0x3b   : > { %4099 = vmatprep.mubr.msk.bf16.mxu0 %vm1049_vm0, %v5814_v22  ;;  %4131 = vmatprep.mubr.msk.bf16.mxu1 %vm1049_vm0, %v5816_v23  ;;  %v5909_v21 = vld [vmem:[%s6050_s30 + $0x320] ss:$8 sps:$4 sm:$0xff]   ;;  %v5910_v22 = vld [vmem:[%s6050_s30 + $0x134] ss:$8 sps:$4 sm:$0xff]  }
  0x3c   : > { %v5912_v23 = vld [vmem:[%s6050_s30 + $0x334] ss:$8 sps:$4 sm:$0xff]  }
  0x42   : > { %1299 = vmatmul.mubr.bf16.gmra.mrb[12].mxu0 %v5818_v24  ;;  %1555 = vmatmul.mubr.bf16.gmra.mrb[12].mxu1 %v5819_v25  ;;  %v5914_v24 = vld [vmem:[%s6050_s30 + $0x130] ss:$8 sps:$4 sm:$0xff]  }
  0x43   : > { %4100 = vmatprep.mubr.msk.bf16.mxu0 %vm1049_vm0, %v5820_v26  ;;  %4132 = vmatprep.mubr.msk.bf16.mxu1 %vm1049_vm0, %v5822_v27  ;;  %v5915_v25 = vld [vmem:[%s6050_s30 + $0x330] ss:$8 sps:$4 sm:$0xff]   ;;  %v5916_v26 = vld [vmem:[%s6050_s30 + $0x144] ss:$8 sps:$4 sm:$0xff]  }
  0x44   : > { %v5918_v27 = vld [vmem:[%s6050_s30 + $0x344] ss:$8 sps:$4 sm:$0xff]  }
  0x4a   : > { %1307 = vmatmul.mubr.bf16.gmra.mrb[16].mxu0 %v5824_v28  ;;  %1563 = vmatmul.mubr.bf16.gmra.mrb[16].mxu1 %v5825_v29  ;;  %v5920_v28 = vld [vmem:[%s6050_s30 + $0x140] ss:$8 sps:$4 sm:$0xff]  }
  0x4b   : > { %4101 = vmatprep.mubr.msk.bf16.mxu0 %vm1049_vm0, %v5826_v30  ;;  %4133 = vmatprep.mubr.msk.bf16.mxu1 %vm1049_vm0, %v5828_v31  ;;  %v5921_v29 = vld [vmem:[%s6050_s30 + $0x340] ss:$8 sps:$4 sm:$0xff]   ;;  %v5922_v30 = vld [vmem:[%s6050_s30 + $0x154] ss:$8 sps:$4 sm:$0xff]  }
  0x4c   : > { %v5924_v31 = vld [vmem:[%s6050_s30 + $0x354] ss:$8 sps:$4 sm:$0xff]  }
  0x52   : > { %1315 = vmatmul.mubr.bf16.gmra.mrb[20].mxu0 %v5830_v32  ;;  %1571 = vmatmul.mubr.bf16.gmra.mrb[20].mxu1 %v5831_v33  ;;  %v5926_v32 = vld [vmem:[%s6050_s30 + $0x150] ss:$8 sps:$4 sm:$0xff]  }
  0x53   : > { %4102 = vmatprep.mubr.msk.bf16.mxu0 %vm1049_vm0, %v5832_v34  ;;  %4134 = vmatprep.mubr.msk.bf16.mxu1 %vm1049_vm0, %v5834_v35  ;;  %v5927_v33 = vld [vmem:[%s6050_s30 + $0x350] ss:$8 sps:$4 sm:$0xff]   ;;  %v5928_v34 = vld [vmem:[%s6050_s30 + $0x164] ss:$8 sps:$4 sm:$0xff]  }
  0x54   : > { %v5930_v35 = vld [vmem:[%s6050_s30 + $0x364] ss:$8 sps:$4 sm:$0xff]  }
  0x5a   : > { %1323 = vmatmul.mubr.bf16.gmra.mrb[24].mxu0 %v5836_v36  ;;  %1579 = vmatmul.mubr.bf16.gmra.mrb[24].mxu1 %v5837_v37  ;;  %v5932_v36 = vld [vmem:[%s6050_s30 + $0x160] ss:$8 sps:$4 sm:$0xff]  }
  0x5b   : > { %4103 = vmatprep.mubr.msk.bf16.mxu0 %vm1049_vm0, %v5838_v38  ;;  %4135 = vmatprep.mubr.msk.bf16.mxu1 %vm1049_vm0, %v5840_v39  ;;  %v5933_v37 = vld [vmem:[%s6050_s30 + $0x360] ss:$8 sps:$4 sm:$0xff]   ;;  %v5934_v38 = vld [vmem:[%s6050_s30 + $0x174] ss:$8 sps:$4 sm:$0xff]  }
  0x5c   : > { %v5936_v39 = vld [vmem:[%s6050_s30 + $0x374] ss:$8 sps:$4 sm:$0xff]  }
  0x62   : > { %1331 = vmatmul.mubr.bf16.gmra.mrb[28].mxu0 %v5842_v40  ;;  %1587 = vmatmul.mubr.bf16.gmra.mrb[28].mxu1 %v5843_v41  ;;  %v5938_v40 = vld [vmem:[%s6050_s30 + $0x170] ss:$8 sps:$4 sm:$0xff]  }
  0x63   : > { %4104 = vmatprep.mubr.msk.bf16.mxu0 %vm1049_vm0, %v5844_v42  ;;  %4136 = vmatprep.mubr.msk.bf16.mxu1 %vm1049_vm0, %v5846_v43  ;;  %v5939_v41 = vld [vmem:[%s6050_s30 + $0x370] ss:$8 sps:$4 sm:$0xff]   ;;  %v5940_v42 = vld [vmem:[%s6050_s30 + $0x184] ss:$8 sps:$4 sm:$0xff]  }
  0x64   : > { %v5942_v43 = vld [vmem:[%s6050_s30 + $0x384] ss:$8 sps:$4 sm:$0xff]  }
  0x6a   : > { %1339 = vmatmul.mubr.bf16.gmra.mrb[32].mxu0 %v5848_v44  ;;  %1595 = vmatmul.mubr.bf16.gmra.mrb[32].mxu1 %v5849_v45  ;;  %v5944_v44 = vld [vmem:[%s6050_s30 + $0x180] ss:$8 sps:$4 sm:$0xff]  }
  0x6b   : > { %4105 = vmatprep.mubr.msk.bf16.mxu0 %vm1049_vm0, %v5850_v46  ;;  %4137 = vmatprep.mubr.msk.bf16.mxu1 %vm1049_vm0, %v5852_v47  ;;  %v5945_v45 = vld [vmem:[%s6050_s30 + $0x380] ss:$8 sps:$4 sm:$0xff]   ;;  %v5946_v46 = vld [vmem:[%s6050_s30 + $0x194] ss:$8 sps:$4 sm:$0xff]  }
  0x6c   : > { %v5948_v47 = vld [vmem:[%s6050_s30 + $0x394] ss:$8 sps:$4 sm:$0xff]  }
  0x72   : > { %1347 = vmatmul.mubr.bf16.gmra.mrb[36].mxu0 %v5854_v48  ;;  %1603 = vmatmul.mubr.bf16.gmra.mrb[36].mxu1 %v5855_v49  ;;  %v5950_v48 = vld [vmem:[%s6050_s30 + $0x190] ss:$8 sps:$4 sm:$0xff]  }
  0x73   : > { %4106 = vmatprep.mubr.msk.bf16.mxu0 %vm1049_vm0, %v5856_v50  ;;  %4138 = vmatprep.mubr.msk.bf16.mxu1 %vm1049_vm0, %v5858_v51  ;;  %v5951_v49 = vld [vmem:[%s6050_s30 + $0x390] ss:$8 sps:$4 sm:$0xff]   ;;  %v415_v50 = vlaneseq  ;;  %v5952_v51 = vld [vmem:[%s6050_s30 + $0x1a4] ss:$8 sps:$4 sm:$0xff]  }
  0x7a   : > { %1355 = vmatmul.mubr.bf16.gmra.mrb[40].mxu0 %v5860_v52  ;;  %1611 = vmatmul.mubr.bf16.gmra.mrb[40].mxu1 %v5861_v53  ;;  %v5954_v52 = vld [vmem:[%s6050_s30 + $0x3a4] ss:$8 sps:$4 sm:$0xff]   ;;  %v416_v53 = vshrl.u32 %v415_v50, 7 }
  0x7b   : > { %4107 = vmatprep.mubr.msk.bf16.mxu0 %vm1049_vm0, %v5862_v54  ;;  %4139 = vmatprep.mubr.msk.bf16.mxu1 %vm1049_vm0, %v5864_v55  ;;  %v5956_v54 = vld [vmem:[%s6050_s30 + $0x1a0] ss:$8 sps:$4 sm:$0xff]  }
  0x7c   : > { %v5957_v55 = vld [vmem:[%s6050_s30 + $0x3a0] ss:$8 sps:$4 sm:$0xff]  }
  0x82   : > { %1363 = vmatmul.mubr.bf16.gmra.mrb[44].mxu0 %v5866_v56  ;;  %1619 = vmatmul.mubr.bf16.gmra.mrb[44].mxu1 %v5867_v57  ;;  %v417_v56 = vsub.s32 0, %v416_v53  ;;  %v268_v57 = vld [vmem:[%s6885_s2] sm:$0xff] }
  0x83   : > { %4108 = vmatprep.mubr.msk.bf16.mxu0 %vm1049_vm0, %v5868_v58  ;;  %4140 = vmatprep.mubr.msk.bf16.mxu1 %vm1049_vm0, %v5870_v59  ;;  %v5958_v58 = vld [vmem:[%s6050_s30 + $0x1b4] ss:$8 sps:$4 sm:$0xff]  }
  0x84   : > { %v5960_v59 = vld [vmem:[%s6050_s30 + $0x3b4] ss:$8 sps:$4 sm:$0xff]  }
  0x8a   : > { %1371 = vmatmul.mubr.bf16.gmra.mrb[48].mxu0 %v5872_v60  ;;  %1627 = vmatmul.mubr.bf16.gmra.mrb[48].mxu1 %v5873_v61  ;;  %v4676_v60 = vld [vmem:[%s6239_s23] sm:$0xff]   ;;  %v2813_v61 = vsub.s32 1, %v416_v53 }
  0x8b   : > { %4109 = vmatprep.mubr.msk.bf16.mxu0 %vm1049_vm0, %v5874_v62  ;;  %4141 = vmatprep.mubr.msk.bf16.mxu1 %vm1049_vm0, %v5876_v63  ;;  %v5602_v62 = vld [vmem:[%s6239_s23 + $0x100] sm:$0xff]   ;;  %v6248_v63 = vrot.slane %v268_v57, %v417_v56 }
  0x92   : > { %1379 = vmatmul.mubr.bf16.gmra.mrb[52].mxu0 %v5878_v0  ;;  %1635 = vmatmul.mubr.bf16.gmra.mrb[52].mxu1 %v5879_v1  ;;  %v2945_v0 = vsub.s32 2, %v416_v53  ;;  %v4677_v1 = vunpack.c.l.bf16 %v4676_v60 }
  0x93   : > { %4110 = vmatprep.mubr.msk.bf16.mxu0 %vm1049_vm0, %v5880_v2  ;;  %4142 = vmatprep.mubr.msk.bf16.mxu1 %vm1049_vm0, %v5882_v3  ;;  %v4805_v2 = vunpack.c.l.bf16 %v5602_v62 }
  0x9a   : > { %1387 = vmatmul.mubr.bf16.gmra.mrb[56].mxu0 %v5884_v4  ;;  %1643 = vmatmul.mubr.bf16.gmra.mrb[56].mxu1 %v5885_v5  ;;  %v6252_v4 = vrot.slane %v268_v57, %v2813_v61 }
  0x9b   : > { %4111 = vmatprep.mubr.msk.bf16.mxu0 %vm1049_vm0, %v5886_v6  ;;  %4143 = vmatprep.mubr.msk.bf16.mxu1 %vm1049_vm0, %v5888_v7 }
  0xa2   : > { %1395 = vmatmul.mubr.bf16.gmra.mrb[60].mxu0 %v5890_v8  ;;  %1651 = vmatmul.mubr.bf16.gmra.mrb[60].mxu1 %v5891_v9 }
  0xa3   : > { %4112 = vmatprep.mubr.msk.bf16.mxu0 %vm1049_vm0, %v5892_v10  ;;  %4144 = vmatprep.mubr.msk.bf16.mxu1 %vm1049_vm0, %v5894_v11  ;;  %v4678_v10 = vunpack.c.h.bf16 %v4676_v60  ;;  %v4806_v11 = vunpack.c.h.bf16 %v5602_v62  ;;  %v6295_v62 = vld [vmem:[%s6239_s23 + $0x110] sm:$0xff]  }
  0xaa   : > { %1403 = vmatmul.mubr.bf16.gmra.mrb[64].mxu0 %v5896_v12  ;;  %1659 = vmatmul.mubr.bf16.gmra.mrb[64].mxu1 %v5897_v13  ;;  %v5962_v12 = vld [vmem:[%s6050_s30 + $0x1b0] ss:$8 sps:$4 sm:$0xff]   ;;  %v6257_v13 = vrot.slane %v268_v57, %v2945_v0  ;;  %v5972_v0 = vld [vmem:[%s6050_s30 + $0x3d4] ss:$8 sps:$4 sm:$0xff]  }
  0xab   : > { %4113 = vmatprep.mubr.msk.bf16.mxu0 %vm1049_vm0, %v5898_v14  ;;  %4145 = vmatprep.mubr.msk.bf16.mxu1 %vm1049_vm0, %v5900_v15 }
  0xb2   : > { %1411 = vmatmul.mubr.bf16.gmra.mrb[68].mxu0 %v5902_v16  ;;  %1667 = vmatmul.mubr.bf16.gmra.mrb[68].mxu1 %v5903_v17  ;;  %v5963_v16 = vld [vmem:[%s6050_s30 + $0x3b0] ss:$8 sps:$4 sm:$0xff]   ;;  %v5964_v17 = vld [vmem:[%s6050_s30 + $0x1c4] ss:$8 sps:$4 sm:$0xff]  }
  0xb3   : > { %4114 = vmatprep.mubr.msk.bf16.mxu0 %vm1049_vm0, %v5904_v18  ;;  %4146 = vmatprep.mubr.msk.bf16.mxu1 %vm1049_vm0, %v5906_v19 }
  0xba   : > { %1419 = vmatmul.mubr.bf16.gmra.mrb[72].mxu0 %v5908_v20  ;;  %1675 = vmatmul.mubr.bf16.gmra.mrb[72].mxu1 %v5909_v21 }
  0xbb   : > { %4115 = vmatprep.mubr.msk.bf16.mxu0 %vm1049_vm0, %v5910_v22  ;;  %4147 = vmatprep.mubr.msk.bf16.mxu1 %vm1049_vm0, %v5912_v23 }
  0xc2   : > { %1427 = vmatmul.mubr.bf16.gmra.mrb[76].mxu0 %v5914_v24  ;;  %1683 = vmatmul.mubr.bf16.gmra.mrb[76].mxu1 %v5915_v25  ;;  %v5966_v24 = vld [vmem:[%s6050_s30 + $0x3c4] ss:$8 sps:$4 sm:$0xff]  }
  0xc3   : > { %4116 = vmatprep.mubr.msk.bf16.mxu0 %vm1049_vm0, %v5916_v26  ;;  %4148 = vmatprep.mubr.msk.bf16.mxu1 %vm1049_vm0, %v5918_v27  ;;  %v5571_v25 = vld [vmem:[%s6239_s23 + $0x8] sm:$0xff]  }
  0xca   : > { %1435 = vmatmul.mubr.bf16.gmra.mrb[80].mxu0 %v5920_v28  ;;  %1691 = vmatmul.mubr.bf16.gmra.mrb[80].mxu1 %v5921_v29 }
  0xcb   : > { %4117 = vmatprep.mubr.msk.bf16.mxu0 %vm1049_vm0, %v5922_v30  ;;  %4149 = vmatprep.mubr.msk.bf16.mxu1 %vm1049_vm0, %v5924_v31  ;;  %v5603_v30 = vld [vmem:[%s6239_s23 + $0x108] sm:$0xff]  }
  0xd2   : > { %1443 = vmatmul.mubr.bf16.gmra.mrb[84].mxu0 %v5926_v32  ;;  %1699 = vmatmul.mubr.bf16.gmra.mrb[84].mxu1 %v5927_v33 }
  0xd3   : > { %4118 = vmatprep.mubr.msk.bf16.mxu0 %vm1049_vm0, %v5928_v34  ;;  %4150 = vmatprep.mubr.msk.bf16.mxu1 %vm1049_vm0, %v5930_v35  ;;  %v4681_v34 = vunpack.c.l.bf16 %v5571_v25 }
  0xda   : > { %1451 = vmatmul.mubr.bf16.gmra.mrb[88].mxu0 %v5932_v36  ;;  %1707 = vmatmul.mubr.bf16.gmra.mrb[88].mxu1 %v5933_v37 }
  0xdb   : > { %4119 = vmatprep.mubr.msk.bf16.mxu0 %vm1049_vm0, %v5934_v38  ;;  %4151 = vmatprep.mubr.msk.bf16.mxu1 %vm1049_vm0, %v5936_v39 }
  0xe2   : > { %1459 = vmatmul.mubr.bf16.gmra.mrb[92].mxu0 %v5938_v40  ;;  %1715 = vmatmul.mubr.bf16.gmra.mrb[92].mxu1 %v5939_v41  ;;  %v4809_v40 = vunpack.c.l.bf16 %v5603_v30 }
  0xe3   : > { %4120 = vmatprep.mubr.msk.bf16.mxu0 %vm1049_vm0, %v5940_v42  ;;  %4152 = vmatprep.mubr.msk.bf16.mxu1 %vm1049_vm0, %v5942_v43 }
  0xea   : > { %1467 = vmatmul.mubr.bf16.gmra.mrb[96].mxu0 %v5944_v44  ;;  %1723 = vmatmul.mubr.bf16.gmra.mrb[96].mxu1 %v5945_v45  ;;  %v4682_v45 = vunpack.c.h.bf16 %v5571_v25 }
  0xeb   : > { %4121 = vmatprep.mubr.msk.bf16.mxu0 %vm1049_vm0, %v5946_v46  ;;  %4153 = vmatprep.mubr.msk.bf16.mxu1 %vm1049_vm0, %v5948_v47  ;;  %v4810_v46 = vunpack.c.h.bf16 %v5603_v30  ;;  %v5968_v47 = vld [vmem:[%s6050_s30 + $0x1c0] ss:$8 sps:$4 sm:$0xff]  }
  0xf2   : > { %1475 = vmatmul.mubr.bf16.gmra.mrb[100].mxu0 %v5950_v48  ;;  %1731 = vmatmul.mubr.bf16.gmra.mrb[100].mxu1 %v5951_v49  ;;  %v5969_v48 = vld [vmem:[%s6050_s30 + $0x3c0] ss:$8 sps:$4 sm:$0xff]  }
  0xf3   : > { %4122 = vmatprep.mubr.msk.bf16.mxu0 %vm1049_vm0, %v5952_v51  ;;  %4154 = vmatprep.mubr.msk.bf16.mxu1 %vm1049_vm0, %v5954_v52 }
  0xfa   : > { %1483 = vmatmul.mubr.bf16.gmra.mrb[104].mxu0 %v5956_v54  ;;  %1739 = vmatmul.mubr.bf16.gmra.mrb[104].mxu1 %v5957_v55  ;;  %v6289_v54 = vld [vmem:[%s6239_s23 + $0x10] sm:$0xff]  }
  0xfb   : > { %4123 = vmatprep.mubr.msk.bf16.mxu0 %vm1049_vm0, %v5958_v58  ;;  %4155 = vmatprep.mubr.msk.bf16.mxu1 %vm1049_vm0, %v5960_v59  ;;  %v5970_v55 = vld [vmem:[%s6050_s30 + $0x1d4] ss:$8 sps:$4 sm:$0xff]  }
  0xfd   : > { %v1276_v3 = vpop.f32.mrb[0].mxu0  ;;  %v1532_v5 = vpop.f32.mrb[0].mxu1 }
  0xfe   : > { %v1277_v6 = vadd.f32 %v1276_v3, %v6248_v63  ;;  %v1533_v7 = vadd.f32 %v1532_v5, %v6248_v63  ;;  %v1278_v8 = vpop.f32.mrb[1].mxu0  ;;  %v1534_v9 = vpop.f32.mrb[1].mxu1 }
  0xff   : > { %v1279_v14 = vpop.f32.mrb[2].mxu0  ;;  %v1535_v15 = vpop.f32.mrb[2].mxu1 }
 0x100   : > { %v2043_v18 = vadd.f32 %v4677_v1, %v1277_v6  ;;  %v2107_v19 = vadd.f32 %v4805_v2, %v1533_v7  ;;  %v1280_v20 = vadd.f32 %v1279_v14, %v6248_v63  ;;  %v1536_v21 = vadd.f32 %v1535_v15, %v6248_v63  ;;  %v1281_v22 = vpop.f32.mrb[3].mxu0  ;;  %v1537_v23 = vpop.f32.mrb[3].mxu1 }
 0x102   : > { %v2815_v26 = vmul.f32 %v6252_v4, %v2043_v18  ;;  %v2879_v27 = vmul.f32 %v6252_v4, %v2107_v19  ;;  %v2044_v28 = vadd.f32 %v4678_v10, %v1280_v20  ;;  %v2108_v29 = vadd.f32 %v4806_v11, %v1536_v21  ;;  %1491 = vmatmul.mubr.bf16.gmra.mrb[108].mxu0 %v5962_v12 }
 0x103   : > { %1747 = vmatmul.mubr.bf16.gmra.mrb[108].mxu1 %v5963_v16  ;;  %4124 = vmatprep.mubr.msk.bf16.mxu0 %vm1049_vm0, %v5964_v17  ;;  %v4685_v11 = vunpack.c.l.bf16 %v6289_v54  ;;  %v4813_v12 = vunpack.c.l.bf16 %v6295_v62 }
 0x104   : > { %v2947_v31 = vadd.f32 %v6257_v13, %v2815_v26  ;;  %v4934_v32 = vpack.c.bf16 %v2044_v28, %v2043_v18  ;;  %v2816_v33 = vmul.f32 %v6252_v4, %v2044_v28  ;;  %4156 = vmatprep.mubr.msk.bf16.mxu1 %vm1049_vm0, %v5966_v24  ;;  %v3011_v35 = vadd.f32 %v6257_v13, %v2879_v27  ;;  %v5974_v28 = vld [vmem:[%s6050_s30 + $0x1d0] ss:$8 sps:$4 sm:$0xff]  }
 0x105   : > { %v5094_v36 = vpack.c.bf16 %v2108_v29, %v2107_v19  ;;  %v2880_v37 = vmul.f32 %v6252_v4, %v2108_v29  ;;  %v1284_v38 = vpop.f32.mrb[4].mxu0  ;;  %v1540_v39 = vpop.f32.mrb[4].mxu1  ;;  %v4686_v27 = vunpack.c.h.bf16 %v6289_v54  ;;  %v5975_v29 = vld [vmem:[%s6050_s30 + $0x3d0] ss:$8 sps:$4 sm:$0xff]  }
 0x106   : > { %4935 = vst [vmem:[%s6272_s27] sm:$0xff] %v4934_v32   ;;  %v2948_v41 = vadd.f32 %v6257_v13, %v2816_v33  ;;  %v1285_v42 = vadd.f32 %v1284_v38, %v6248_v63  ;;  %v1286_v43 = vpop.f32.mrb[5].mxu0  ;;  %v1542_v44 = vpop.f32.mrb[5].mxu1  ;;  %v3075_v49 = vmax.f32 %v2947_v31, 0.0  ;;  %v1541_v51 = vadd.f32 %v1540_v39, %v6248_v63 }
 0x107   : > { %5665 = vst [vmem:[%s6272_s27 + $0x100] sm:$0xff] %v5094_v36   ;;  %v3012_v50 = vadd.f32 %v6257_v13, %v2880_v37  ;;  %v1287_v52 = vpop.f32.mrb[6].mxu0  ;;  %v1543_v53 = vpop.f32.mrb[6].mxu1  ;;  %v3139_v1 = vmax.f32 %v3011_v35, 0.0  ;;  %v5976_v35 = vld [vmem:[%s6050_s30 + $0x1e4] ss:$8 sps:$4 sm:$0xff]  }
 0x108   : > { %v3076_v56 = vmax.f32 %v2948_v41, 0.0  ;;  %v2045_v57 = vadd.f32 %v4681_v34, %v1285_v42  ;;  %v1288_v58 = vadd.f32 %v1287_v52, %v6248_v63  ;;  %v1544_v59 = vadd.f32 %v1543_v53, %v6248_v63  ;;  %v1289_v60 = vpop.f32.mrb[7].mxu0  ;;  %v1545_v61 = vpop.f32.mrb[7].mxu1  ;;  %v5978_v42 = vld [vmem:[%s6050_s30 + $0x3e4] ss:$8 sps:$4 sm:$0xff]  }
 0x109   : > { %v3140_v2 = vmax.f32 %v3012_v50, 0.0  ;;  %v2109_v3 = vadd.f32 %v4809_v40, %v1541_v51  ;;  %v4814_v34 = vunpack.c.h.bf16 %v6295_v62  ;;  %v5605_v51 = vld [vmem:[%s6239_s23 + $0x118] sm:$0xff]  }
 0x10a   : > { %v5254_v5 = vpack.c.bf16 %v3076_v56, %v3075_v49  ;;  %v2817_v6 = vmul.f32 %v6252_v4, %v2045_v57  ;;  %v2046_v7 = vadd.f32 %v4682_v45, %v1288_v58  ;;  %v2110_v8 = vadd.f32 %v4810_v46, %v1544_v59  ;;  %1499 = vmatmul.mubr.bf16.gmra.mrb[112].mxu0 %v5968_v47  ;;  %v5573_v46 = vld [vmem:[%s6239_s23 + $0x18] sm:$0xff]  }
 0x10b   : > { %v5414_v9 = vpack.c.bf16 %v3140_v2, %v3139_v1  ;;  %v2881_v10 = vmul.f32 %v6252_v4, %v2109_v3  ;;  %1755 = vmatmul.mubr.bf16.gmra.mrb[112].mxu1 %v5969_v48  ;;  %4125 = vmatprep.mubr.msk.bf16.mxu0 %vm1049_vm0, %v5970_v55 }
 0x10c   : > { %5255 = vst [vmem:[%s6302_s6] sm:$0xff] %v5254_v5   ;;  %v2949_v14 = vadd.f32 %v6257_v13, %v2817_v6  ;;  %v4939_v15 = vpack.c.bf16 %v2046_v7, %v2045_v57  ;;  %v2818_v16 = vmul.f32 %v6252_v4, %v2046_v7  ;;  %v5099_v17 = vpack.c.bf16 %v2110_v8, %v2109_v3 }
 0x10d   : > { %4157 = vmatprep.mubr.msk.bf16.mxu1 %vm1049_vm0, %v5972_v0  ;;  %5728 = vst [vmem:[%s6302_s6 + $0x100] sm:$0xff] %v5414_v9   ;;  %v3013_v18 = vadd.f32 %v6257_v13, %v2881_v10  ;;  %v2882_v19 = vmul.f32 %v6252_v4, %v2110_v8  ;;  %v1292_v20 = vpop.f32.mrb[8].mxu0  ;;  %v1548_v21 = vpop.f32.mrb[8].mxu1  ;;  %v4689_v57 = vunpack.c.l.bf16 %v5573_v46  ;;  %v4817_v0 = vunpack.c.l.bf16 %v5605_v51  ;;  %v5980_v8 = vld [vmem:[%s6050_s30 + $0x1e0] ss:$8 sps:$4 sm:$0xff]  }
 0x10e   : > { %5634 = vst [vmem:[%s6272_s27 + $0x8] sm:$0xff] %v4939_v15   ;;  %v2950_v22 = vadd.f32 %v6257_v13, %v2818_v16  ;;  %5666 = vst [vmem:[%s6272_s27 + $0x108] sm:$0xff] %v5099_v17   ;;  %v1293_v23 = vadd.f32 %v1292_v20, %v6248_v63  ;;  %v1549_v24 = vadd.f32 %v1548_v21, %v6248_v63  ;;  %v1294_v25 = vpop.f32.mrb[9].mxu0  ;;  %v1550_v26 = vpop.f32.mrb[9].mxu1  ;;  %v3077_v30 = vmax.f32 %v2949_v14, 0.0  ;;  %v6351_v16 = vld [vmem:[%s6239_s23 + $0x20] sm:$0xff]  }
 0x10f   : > { %v3014_v31 = vadd.f32 %v6257_v13, %v2882_v19  ;;  %v1295_v32 = vpop.f32.mrb[10].mxu0  ;;  %v1551_v33 = vpop.f32.mrb[10].mxu1  ;;  %v3141_v43 = vmax.f32 %v3013_v18, 0.0  ;;  %v4690_v6 = vunpack.c.h.bf16 %v5573_v46  ;;  %v4818_v7 = vunpack.c.h.bf16 %v5605_v51  ;;  %v5981_v9 = vld [vmem:[%s6050_s30 + $0x3e0] ss:$8 sps:$4 sm:$0xff]  }
 0x110   : > { %v3078_v36 = vmax.f32 %v2950_v22, 0.0  ;;  %v2047_v37 = vadd.f32 %v4685_v11, %v1293_v23  ;;  %v2111_v38 = vadd.f32 %v4813_v12, %v1549_v24  ;;  %v1296_v39 = vadd.f32 %v1295_v32, %v6248_v63  ;;  %v1297_v40 = vpop.f32.mrb[11].mxu0  ;;  %v1553_v41 = vpop.f32.mrb[11].mxu1  ;;  %v5982_v17 = vld [vmem:[%s6050_s30 + $0x1f4] ss:$8 sps:$4 sm:$0xff]   ;;  %v5606_v24 = vld [vmem:[%s6239_s23 + $0x120] sm:$0xff]  }
 0x111   : > { %v3142_v44 = vmax.f32 %v3014_v31, 0.0  ;;  %v1552_v45 = vadd.f32 %v1551_v33, %v6248_v63  ;;  %v5984_v25 = vld [vmem:[%s6050_s30 + $0x3f4] ss:$8 sps:$4 sm:$0xff]   ;;  %v5986_v51 = vld [vmem:[%s6050_s30 + $0x1f0] ss:$8 sps:$4 sm:$0xff]  }
 0x112   : > { %v5259_v47 = vpack.c.bf16 %v3078_v36, %v3077_v30  ;;  %v2819_v48 = vmul.f32 %v6252_v4, %v2047_v37  ;;  %v2883_v49 = vmul.f32 %v6252_v4, %v2111_v38  ;;  %v2048_v50 = vadd.f32 %v4686_v27, %v1296_v39  ;;  %1507 = vmatmul.mubr.bf16.gmra.mrb[116].mxu0 %v5974_v28 }
 0x113   : > { %v5419_v52 = vpack.c.bf16 %v3142_v44, %v3141_v43  ;;  %v2112_v53 = vadd.f32 %v4814_v34, %v1552_v45  ;;  %1763 = vmatmul.mubr.bf16.gmra.mrb[116].mxu1 %v5975_v29  ;;  %4126 = vmatprep.mubr.msk.bf16.mxu0 %vm1049_vm0, %v5976_v35  ;;  %v4693_v35 = vunpack.c.l.bf16 %v6351_v16  ;;  %v4821_v36 = vunpack.c.l.bf16 %v5606_v24 }
 0x114   : > { %5697 = vst [vmem:[%s6302_s6 + $0x8] sm:$0xff] %v5259_v47   ;;  %v2951_v54 = vadd.f32 %v6257_v13, %v2819_v48  ;;  %v4944_v55 = vpack.c.bf16 %v2048_v50, %v2047_v37  ;;  %v2820_v56 = vmul.f32 %v6252_v4, %v2048_v50  ;;  %4158 = vmatprep.mubr.msk.bf16.mxu1 %vm1049_vm0, %v5978_v42  ;;  %v4694_v50 = vunpack.c.h.bf16 %v6351_v16 }
 0x115   : > { %5729 = vst [vmem:[%s6302_s6 + $0x108] sm:$0xff] %v5419_v52   ;;  %v3015_v58 = vadd.f32 %v6257_v13, %v2883_v49  ;;  %v5104_v59 = vpack.c.bf16 %v2112_v53, %v2111_v38  ;;  %v2884_v60 = vmul.f32 %v6252_v4, %v2112_v53  ;;  %v1300_v61 = vpop.f32.mrb[12].mxu0  ;;  %v1556_v62 = vpop.f32.mrb[12].mxu1 }
 0x116   : > { %5635 = vst [vmem:[%s6272_s27 + $0x10] sm:$0xff] %v4944_v55   ;;  %v2952_v1 = vadd.f32 %v6257_v13, %v2820_v56  ;;  %v1301_v2 = vadd.f32 %v1300_v61, %v6248_v63  ;;  %v1302_v3 = vpop.f32.mrb[13].mxu0  ;;  %v1558_v5 = vpop.f32.mrb[13].mxu1  ;;  %v3079_v10 = vmax.f32 %v2951_v54, 0.0  ;;  %v1557_v12 = vadd.f32 %v1556_v62, %v6248_v63 }
 0x117   : > { %5667 = vst [vmem:[%s6272_s27 + $0x110] sm:$0xff] %v5104_v59   ;;  %v3016_v11 = vadd.f32 %v6257_v13, %v2884_v60  ;;  %v1303_v14 = vpop.f32.mrb[14].mxu0  ;;  %v1559_v15 = vpop.f32.mrb[14].mxu1  ;;  %v3143_v26 = vmax.f32 %v3015_v58, 0.0  ;;  %v4822_v56 = vunpack.c.h.bf16 %v5606_v24  ;;  %v5575_v5 = vld [vmem:[%s6239_s23 + $0x28] sm:$0xff]  }
 0x118   : > { %v3080_v18 = vmax.f32 %v2952_v1, 0.0  ;;  %v2049_v19 = vadd.f32 %v4689_v57, %v1301_v2  ;;  %v1304_v20 = vadd.f32 %v1303_v14, %v6248_v63  ;;  %v1560_v21 = vadd.f32 %v1559_v15, %v6248_v63  ;;  %v1305_v22 = vpop.f32.mrb[15].mxu0  ;;  %v1561_v23 = vpop.f32.mrb[15].mxu1  ;;  %v5987_v57 = vld [vmem:[%s6050_s30 + $0x3f0] ss:$8 sps:$4 sm:$0xff]  }
 0x119   : > { %v3144_v27 = vmax.f32 %v3016_v11, 0.0  ;;  %v2113_v28 = vadd.f32 %v4817_v0, %v1557_v12 }
 0x11a   : > { %v5264_v29 = vpack.c.bf16 %v3080_v18, %v3079_v10  ;;  %v2821_v30 = vmul.f32 %v6252_v4, %v2049_v19  ;;  %v2050_v31 = vadd.f32 %v4690_v6, %v1304_v20  ;;  %v2114_v32 = vadd.f32 %v4818_v7, %v1560_v21  ;;  %1515 = vmatmul.mubr.bf16.gmra.mrb[120].mxu0 %v5980_v8  ;;  %v5607_v10 = vld [vmem:[%s6239_s23 + $0x128] sm:$0xff]  }
 0x11b   : > { %v5424_v33 = vpack.c.bf16 %v3144_v27, %v3143_v26  ;;  %v2885_v34 = vmul.f32 %v6252_v4, %v2113_v28  ;;  %1771 = vmatmul.mubr.bf16.gmra.mrb[120].mxu1 %v5981_v9  ;;  %4127 = vmatprep.mubr.msk.bf16.mxu0 %vm1049_vm0, %v5982_v17  ;;  %v4697_v17 = vunpack.c.l.bf16 %v5575_v5  ;;  %v4825_v23 = vunpack.c.l.bf16 %v5607_v10 }
 0x11c   : > { %5698 = vst [vmem:[%s6302_s6 + $0x10] sm:$0xff] %v5264_v29   ;;  %v2953_v37 = vadd.f32 %v6257_v13, %v2821_v30  ;;  %v4949_v38 = vpack.c.bf16 %v2050_v31, %v2049_v19  ;;  %v2822_v39 = vmul.f32 %v6252_v4, %v2050_v31  ;;  %v5109_v40 = vpack.c.bf16 %v2114_v32, %v2113_v28 }
 0x11d   : > { %4159 = vmatprep.mubr.msk.bf16.mxu1 %vm1049_vm0, %v5984_v25  ;;  %5730 = vst [vmem:[%s6302_s6 + $0x110] sm:$0xff] %v5424_v33   ;;  %v3017_v41 = vadd.f32 %v6257_v13, %v2885_v34  ;;  %v2886_v42 = vmul.f32 %v6252_v4, %v2114_v32  ;;  %v1308_v43 = vpop.f32.mrb[16].mxu0  ;;  %v1564_v44 = vpop.f32.mrb[16].mxu1  ;;  %v4698_v28 = vunpack.c.h.bf16 %v5575_v5  ;;  %v4826_v29 = vunpack.c.h.bf16 %v5607_v10 }
 0x11e   : > { %5636 = vst [vmem:[%s6272_s27 + $0x18] sm:$0xff] %v4949_v38   ;;  %v2954_v45 = vadd.f32 %v6257_v13, %v2822_v39  ;;  %5668 = vst [vmem:[%s6272_s27 + $0x118] sm:$0xff] %v5109_v40   ;;  %v1309_v46 = vadd.f32 %v1308_v43, %v6248_v63  ;;  %v1565_v47 = vadd.f32 %v1564_v44, %v6248_v63  ;;  %v1310_v48 = vpop.f32.mrb[17].mxu0  ;;  %v1566_v49 = vpop.f32.mrb[17].mxu1  ;;  %v3081_v52 = vmax.f32 %v2953_v37, 0.0 }
 0x11f   : > { %v3018_v53 = vadd.f32 %v6257_v13, %v2886_v42  ;;  %v1311_v54 = vpop.f32.mrb[18].mxu0  ;;  %v1567_v55 = vpop.f32.mrb[18].mxu1  ;;  %v3145_v1 = vmax.f32 %v3017_v41, 0.0  ;;  %v5576_v41 = vld [vmem:[%s6239_s23 + $0x30] sm:$0xff]  }
 0x120   : > { %v3082_v58 = vmax.f32 %v2954_v45, 0.0  ;;  %v2051_v59 = vadd.f32 %v4693_v35, %v1309_v46  ;;  %v2115_v60 = vadd.f32 %v4821_v36, %v1565_v47  ;;  %v1312_v61 = vadd.f32 %v1311_v54, %v6248_v63  ;;  %v1313_v62 = vpop.f32.mrb[19].mxu0  ;;  %v1569_v0 = vpop.f32.mrb[19].mxu1  ;;  %v5608_v42 = vld [vmem:[%s6239_s23 + $0x130] sm:$0xff]  }
 0x121   : > { %v3146_v2 = vmax.f32 %v3018_v53, 0.0  ;;  %v1568_v3 = vadd.f32 %v1567_v55, %v6248_v63  ;;  %v4829_v53 = vunpack.c.l.bf16 %v5608_v42  ;;  %v4702_v5 = vunpack.c.h.bf16 %v5576_v41 }
 0x122   : > { %v5269_v6 = vpack.c.bf16 %v3082_v58, %v3081_v52  ;;  %v2823_v7 = vmul.f32 %v6252_v4, %v2051_v59  ;;  %v2887_v8 = vmul.f32 %v6252_v4, %v2115_v60  ;;  %v2052_v9 = vadd.f32 %v4694_v50, %v1312_v61  ;;  %1523 = vmatmul.mubr.bf16.gmra.mrb[124].mxu0 %v5986_v51 }
 0x123   : > { %v5429_v11 = vpack.c.bf16 %v3146_v2, %v3145_v1  ;;  %v2116_v12 = vadd.f32 %v4822_v56, %v1568_v3  ;;  %1779 = vmatmul.mubr.bf16.gmra.mrb[124].mxu1 %v5987_v57  ;;  %v4701_v52 = vunpack.c.l.bf16 %v5576_v41  ;;  %v4830_v10 = vunpack.c.h.bf16 %v5608_v42 }
 0x124   : > { %5699 = vst [vmem:[%s6302_s6 + $0x18] sm:$0xff] %v5269_v6   ;;  %v2955_v14 = vadd.f32 %v6257_v13, %v2823_v7  ;;  %v4954_v15 = vpack.c.bf16 %v2052_v9, %v2051_v59  ;;  %v2824_v16 = vmul.f32 %v6252_v4, %v2052_v9  ;;  %v3019_v18 = vadd.f32 %v6257_v13, %v2887_v8 }
 0x125   : > { %5731 = vst [vmem:[%s6302_s6 + $0x118] sm:$0xff] %v5429_v11   ;;  %v5114_v19 = vpack.c.bf16 %v2116_v12, %v2115_v60  ;;  %v2888_v20 = vmul.f32 %v6252_v4, %v2116_v12  ;;  %v1316_v21 = vpop.f32.mrb[20].mxu0  ;;  %v1572_v22 = vpop.f32.mrb[20].mxu1 }
 0x126   : > { %5637 = vst [vmem:[%s6272_s27 + $0x20] sm:$0xff] %v4954_v15   ;;  %v2956_v24 = vadd.f32 %v6257_v13, %v2824_v16  ;;  %v1317_v25 = vadd.f32 %v1316_v21, %v6248_v63  ;;  %v1318_v26 = vpop.f32.mrb[21].mxu0  ;;  %v1574_v27 = vpop.f32.mrb[21].mxu1  ;;  %v3083_v30 = vmax.f32 %v2955_v14, 0.0  ;;  %v1573_v32 = vadd.f32 %v1572_v22, %v6248_v63  ;;  %v5577_v21 = vld [vmem:[%s6239_s23 + $0x38] sm:$0xff]  }
 0x127   : > { %5669 = vst [vmem:[%s6272_s27 + $0x120] sm:$0xff] %v5114_v19   ;;  %v3020_v31 = vadd.f32 %v6257_v13, %v2888_v20  ;;  %v1319_v33 = vpop.f32.mrb[22].mxu0  ;;  %v1575_v34 = vpop.f32.mrb[22].mxu1  ;;  %v3147_v43 = vmax.f32 %v3019_v18, 0.0  ;;  %v5609_v26 = vld [vmem:[%s6239_s23 + $0x138] sm:$0xff]  }
 0x128   : > { %v3084_v35 = vmax.f32 %v2956_v24, 0.0  ;;  %v2053_v36 = vadd.f32 %v4697_v17, %v1317_v25  ;;  %v1320_v37 = vadd.f32 %v1319_v33, %v6248_v63  ;;  %v1576_v38 = vadd.f32 %v1575_v34, %v6248_v63  ;;  %v1321_v39 = vpop.f32.mrb[23].mxu0  ;;  %v1577_v40 = vpop.f32.mrb[23].mxu1 }
 0x129   : > { %v3148_v44 = vmax.f32 %v3020_v31, 0.0  ;;  %v2117_v45 = vadd.f32 %v4825_v23, %v1573_v32  ;;  %v4705_v32 = vunpack.c.l.bf16 %v5577_v21 }
 0x12a   : > { %v5274_v46 = vpack.c.bf16 %v3084_v35, %v3083_v30  ;;  %v2825_v47 = vmul.f32 %v6252_v4, %v2053_v36  ;;  %v2054_v48 = vadd.f32 %v4698_v28, %v1320_v37  ;;  %v2118_v49 = vadd.f32 %v4826_v29, %v1576_v38 }
 0x12b   : > { %v5434_v50 = vpack.c.bf16 %v3148_v44, %v3147_v43  ;;  %v2889_v51 = vmul.f32 %v6252_v4, %v2117_v45  ;;  %v4833_v38 = vunpack.c.l.bf16 %v5609_v26  ;;  %v4706_v43 = vunpack.c.h.bf16 %v5577_v21 }
 0x12c   : > { %5700 = vst [vmem:[%s6302_s6 + $0x20] sm:$0xff] %v5274_v46   ;;  %v2957_v54 = vadd.f32 %v6257_v13, %v2825_v47  ;;  %v4959_v55 = vpack.c.bf16 %v2054_v48, %v2053_v36  ;;  %v2826_v56 = vmul.f32 %v6252_v4, %v2054_v48  ;;  %v5119_v57 = vpack.c.bf16 %v2118_v49, %v2117_v45 }
 0x12d   : > { %5732 = vst [vmem:[%s6302_s6 + $0x120] sm:$0xff] %v5434_v50   ;;  %v3021_v58 = vadd.f32 %v6257_v13, %v2889_v51  ;;  %v2890_v59 = vmul.f32 %v6252_v4, %v2118_v49  ;;  %v1324_v60 = vpop.f32.mrb[24].mxu0  ;;  %v1580_v61 = vpop.f32.mrb[24].mxu1  ;;  %v4834_v44 = vunpack.c.h.bf16 %v5609_v26 }
 0x12e   : > { %5638 = vst [vmem:[%s6272_s27 + $0x28] sm:$0xff] %v4959_v55   ;;  %v2958_v62 = vadd.f32 %v6257_v13, %v2826_v56  ;;  %5670 = vst [vmem:[%s6272_s27 + $0x128] sm:$0xff] %v5119_v57   ;;  %v1325_v0 = vadd.f32 %v1324_v60, %v6248_v63  ;;  %v1581_v1 = vadd.f32 %v1580_v61, %v6248_v63  ;;  %v1326_v2 = vpop.f32.mrb[25].mxu0  ;;  %v1582_v3 = vpop.f32.mrb[25].mxu1  ;;  %v3085_v6 = vmax.f32 %v2957_v54, 0.0  ;;  %v5578_v56 = vld [vmem:[%s6239_s23 + $0x40] sm:$0xff]  }
 0x12f   : > { %v3022_v7 = vadd.f32 %v6257_v13, %v2890_v59  ;;  %v1327_v8 = vpop.f32.mrb[26].mxu0  ;;  %v1583_v9 = vpop.f32.mrb[26].mxu1  ;;  %v3149_v18 = vmax.f32 %v3021_v58, 0.0  ;;  %v5610_v57 = vld [vmem:[%s6239_s23 + $0x140] sm:$0xff]   ;;  %v4710_v21 = vunpack.c.h.bf16 %v5578_v56 }
 0x130   : > { %v3086_v11 = vmax.f32 %v2958_v62, 0.0  ;;  %v2055_v12 = vadd.f32 %v4701_v52, %v1325_v0  ;;  %v2119_v14 = vadd.f32 %v4829_v53, %v1581_v1  ;;  %v1328_v15 = vadd.f32 %v1327_v8, %v6248_v63  ;;  %v1329_v16 = vpop.f32.mrb[27].mxu0  ;;  %v1585_v17 = vpop.f32.mrb[27].mxu1 }
 0x131   : > { %v3150_v19 = vmax.f32 %v3022_v7, 0.0  ;;  %v1584_v20 = vadd.f32 %v1583_v9, %v6248_v63  ;;  %v4838_v26 = vunpack.c.h.bf16 %v5610_v57 }
 0x132   : > { %v5279_v22 = vpack.c.bf16 %v3086_v11, %v3085_v6  ;;  %v2827_v23 = vmul.f32 %v6252_v4, %v2055_v12  ;;  %v2891_v24 = vmul.f32 %v6252_v4, %v2119_v14  ;;  %v2056_v25 = vadd.f32 %v4702_v5, %v1328_v15 }
 0x133   : > { %v5439_v27 = vpack.c.bf16 %v3150_v19, %v3149_v18  ;;  %v2120_v28 = vadd.f32 %v4830_v10, %v1584_v20  ;;  %v4709_v5 = vunpack.c.l.bf16 %v5578_v56  ;;  %v4837_v6 = vunpack.c.l.bf16 %v5610_v57 }
 0x134   : > { %5701 = vst [vmem:[%s6302_s6 + $0x28] sm:$0xff] %v5279_v22   ;;  %v2959_v29 = vadd.f32 %v6257_v13, %v2827_v23  ;;  %v4964_v30 = vpack.c.bf16 %v2056_v25, %v2055_v12  ;;  %v2828_v31 = vmul.f32 %v6252_v4, %v2056_v25  ;;  %v3023_v33 = vadd.f32 %v6257_v13, %v2891_v24 }
 0x135   : > { %5733 = vst [vmem:[%s6302_s6 + $0x128] sm:$0xff] %v5439_v27   ;;  %v5124_v34 = vpack.c.bf16 %v2120_v28, %v2119_v14  ;;  %v2892_v35 = vmul.f32 %v6252_v4, %v2120_v28  ;;  %v1332_v36 = vpop.f32.mrb[28].mxu0  ;;  %v1588_v37 = vpop.f32.mrb[28].mxu1 }
 0x136   : > { %5639 = vst [vmem:[%s6272_s27 + $0x30] sm:$0xff] %v4964_v30   ;;  %v2960_v39 = vadd.f32 %v6257_v13, %v2828_v31  ;;  %v1333_v40 = vadd.f32 %v1332_v36, %v6248_v63  ;;  %v1334_v41 = vpop.f32.mrb[29].mxu0  ;;  %v1590_v42 = vpop.f32.mrb[29].mxu1  ;;  %v3087_v45 = vmax.f32 %v2959_v29, 0.0  ;;  %v1589_v47 = vadd.f32 %v1588_v37, %v6248_v63  ;;  %v5579_v36 = vld [vmem:[%s6239_s23 + $0x48] sm:$0xff]  }
 0x137   : > { %5671 = vst [vmem:[%s6272_s27 + $0x130] sm:$0xff] %v5124_v34   ;;  %v3024_v46 = vadd.f32 %v6257_v13, %v2892_v35  ;;  %v1335_v48 = vpop.f32.mrb[30].mxu0  ;;  %v1591_v49 = vpop.f32.mrb[30].mxu1  ;;  %v3151_v58 = vmax.f32 %v3023_v33, 0.0  ;;  %v5611_v41 = vld [vmem:[%s6239_s23 + $0x148] sm:$0xff]  }
 0x138   : > { %v3088_v50 = vmax.f32 %v2960_v39, 0.0  ;;  %v2057_v51 = vadd.f32 %v4705_v32, %v1333_v40  ;;  %v1336_v52 = vadd.f32 %v1335_v48, %v6248_v63  ;;  %v1592_v53 = vadd.f32 %v1591_v49, %v6248_v63  ;;  %v1337_v54 = vpop.f32.mrb[31].mxu0  ;;  %v1593_v55 = vpop.f32.mrb[31].mxu1 }
 0x139   : > { %v3152_v59 = vmax.f32 %v3024_v46, 0.0  ;;  %v2121_v60 = vadd.f32 %v4833_v38, %v1589_v47  ;;  %v4713_v47 = vunpack.c.l.bf16 %v5579_v36 }
 0x13a   : > { %v5284_v61 = vpack.c.bf16 %v3088_v50, %v3087_v45  ;;  %v2829_v62 = vmul.f32 %v6252_v4, %v2057_v51  ;;  %v2058_v0 = vadd.f32 %v4706_v43, %v1336_v52  ;;  %v2122_v1 = vadd.f32 %v4834_v44, %v1592_v53 }
 0x13b   : > { %v5444_v2 = vpack.c.bf16 %v3152_v59, %v3151_v58  ;;  %v2893_v3 = vmul.f32 %v6252_v4, %v2121_v60  ;;  %v4841_v53 = vunpack.c.l.bf16 %v5611_v41  ;;  %v4714_v58 = vunpack.c.h.bf16 %v5579_v36 }
 0x13c   : > { %5702 = vst [vmem:[%s6302_s6 + $0x30] sm:$0xff] %v5284_v61   ;;  %v2961_v7 = vadd.f32 %v6257_v13, %v2829_v62  ;;  %v4969_v8 = vpack.c.bf16 %v2058_v0, %v2057_v51  ;;  %v2830_v9 = vmul.f32 %v6252_v4, %v2058_v0  ;;  %v5129_v10 = vpack.c.bf16 %v2122_v1, %v2121_v60 }
 0x13d   : > { %5734 = vst [vmem:[%s6302_s6 + $0x130] sm:$0xff] %v5444_v2   ;;  %v3025_v11 = vadd.f32 %v6257_v13, %v2893_v3  ;;  %v2894_v12 = vmul.f32 %v6252_v4, %v2122_v1  ;;  %v1340_v14 = vpop.f32.mrb[32].mxu0  ;;  %v1596_v15 = vpop.f32.mrb[32].mxu1  ;;  %v4842_v59 = vunpack.c.h.bf16 %v5611_v41 }
 0x13e   : > { %5640 = vst [vmem:[%s6272_s27 + $0x38] sm:$0xff] %v4969_v8   ;;  %v2962_v16 = vadd.f32 %v6257_v13, %v2830_v9  ;;  %5672 = vst [vmem:[%s6272_s27 + $0x138] sm:$0xff] %v5129_v10   ;;  %v1341_v17 = vadd.f32 %v1340_v14, %v6248_v63  ;;  %v1597_v18 = vadd.f32 %v1596_v15, %v6248_v63  ;;  %v1342_v19 = vpop.f32.mrb[33].mxu0  ;;  %v1598_v20 = vpop.f32.mrb[33].mxu1  ;;  %v3089_v22 = vmax.f32 %v2961_v7, 0.0  ;;  %v5580_v9 = vld [vmem:[%s6239_s23 + $0x50] sm:$0xff]  }
 0x13f   : > { %v3026_v23 = vadd.f32 %v6257_v13, %v2894_v12  ;;  %v1343_v24 = vpop.f32.mrb[34].mxu0  ;;  %v1599_v25 = vpop.f32.mrb[34].mxu1  ;;  %v3153_v33 = vmax.f32 %v3025_v11, 0.0  ;;  %v5612_v10 = vld [vmem:[%s6239_s23 + $0x150] sm:$0xff]   ;;  %v4718_v36 = vunpack.c.h.bf16 %v5580_v9 }
 0x140   : > { %v3090_v27 = vmax.f32 %v2962_v16, 0.0  ;;  %v2059_v28 = vadd.f32 %v4709_v5, %v1341_v17  ;;  %v2123_v29 = vadd.f32 %v4837_v6, %v1597_v18  ;;  %v1344_v30 = vadd.f32 %v1343_v24, %v6248_v63  ;;  %v1345_v31 = vpop.f32.mrb[35].mxu0  ;;  %v1601_v32 = vpop.f32.mrb[35].mxu1 }
 0x141   : > { %v3154_v34 = vmax.f32 %v3026_v23, 0.0  ;;  %v1600_v35 = vadd.f32 %v1599_v25, %v6248_v63  ;;  %v4846_v41 = vunpack.c.h.bf16 %v5612_v10 }
 0x142   : > { %v5289_v37 = vpack.c.bf16 %v3090_v27, %v3089_v22  ;;  %v2831_v38 = vmul.f32 %v6252_v4, %v2059_v28  ;;  %v2895_v39 = vmul.f32 %v6252_v4, %v2123_v29  ;;  %v2060_v40 = vadd.f32 %v4710_v21, %v1344_v30 }
 0x143   : > { %v5449_v42 = vpack.c.bf16 %v3154_v34, %v3153_v33  ;;  %v2124_v43 = vadd.f32 %v4838_v26, %v1600_v35  ;;  %v4717_v21 = vunpack.c.l.bf16 %v5580_v9  ;;  %v4845_v22 = vunpack.c.l.bf16 %v5612_v10 }
 0x144   : > { %5703 = vst [vmem:[%s6302_s6 + $0x38] sm:$0xff] %v5289_v37   ;;  %v2963_v44 = vadd.f32 %v6257_v13, %v2831_v38  ;;  %v4974_v45 = vpack.c.bf16 %v2060_v40, %v2059_v28  ;;  %v2832_v46 = vmul.f32 %v6252_v4, %v2060_v40  ;;  %v3027_v48 = vadd.f32 %v6257_v13, %v2895_v39 }
 0x145   : > { %5735 = vst [vmem:[%s6302_s6 + $0x138] sm:$0xff] %v5449_v42   ;;  %v5134_v49 = vpack.c.bf16 %v2124_v43, %v2123_v29  ;;  %v2896_v50 = vmul.f32 %v6252_v4, %v2124_v43  ;;  %v1348_v51 = vpop.f32.mrb[36].mxu0  ;;  %v1604_v52 = vpop.f32.mrb[36].mxu1 }
 0x146   : > { %5641 = vst [vmem:[%s6272_s27 + $0x40] sm:$0xff] %v4974_v45   ;;  %v2964_v54 = vadd.f32 %v6257_v13, %v2832_v46  ;;  %v1349_v55 = vadd.f32 %v1348_v51, %v6248_v63  ;;  %v1350_v56 = vpop.f32.mrb[37].mxu0  ;;  %v1606_v57 = vpop.f32.mrb[37].mxu1  ;;  %v3091_v60 = vmax.f32 %v2963_v44, 0.0  ;;  %v1605_v62 = vadd.f32 %v1604_v52, %v6248_v63  ;;  %v5581_v51 = vld [vmem:[%s6239_s23 + $0x58] sm:$0xff]  }
 0x147   : > { %5673 = vst [vmem:[%s6272_s27 + $0x140] sm:$0xff] %v5134_v49   ;;  %v3028_v61 = vadd.f32 %v6257_v13, %v2896_v50  ;;  %v1351_v0 = vpop.f32.mrb[38].mxu0  ;;  %v1607_v1 = vpop.f32.mrb[38].mxu1  ;;  %v3155_v11 = vmax.f32 %v3027_v48, 0.0  ;;  %v5613_v56 = vld [vmem:[%s6239_s23 + $0x158] sm:$0xff]  }
 0x148   : > { %v3092_v2 = vmax.f32 %v2964_v54, 0.0  ;;  %v2061_v3 = vadd.f32 %v4713_v47, %v1349_v55  ;;  %v1352_v5 = vadd.f32 %v1351_v0, %v6248_v63  ;;  %v1608_v6 = vadd.f32 %v1607_v1, %v6248_v63  ;;  %v1353_v7 = vpop.f32.mrb[39].mxu0  ;;  %v1609_v8 = vpop.f32.mrb[39].mxu1 }
 0x149   : > { %v3156_v12 = vmax.f32 %v3028_v61, 0.0  ;;  %v2125_v14 = vadd.f32 %v4841_v53, %v1605_v62  ;;  %v4721_v62 = vunpack.c.l.bf16 %v5581_v51 }
 0x14a   : > { %v5294_v15 = vpack.c.bf16 %v3092_v2, %v3091_v60  ;;  %v2833_v16 = vmul.f32 %v6252_v4, %v2061_v3  ;;  %v2062_v17 = vadd.f32 %v4714_v58, %v1352_v5  ;;  %v2126_v18 = vadd.f32 %v4842_v59, %v1608_v6 }
 0x14b   : > { %v5454_v19 = vpack.c.bf16 %v3156_v12, %v3155_v11  ;;  %v2897_v20 = vmul.f32 %v6252_v4, %v2125_v14  ;;  %v4849_v6 = vunpack.c.l.bf16 %v5613_v56  ;;  %v4722_v11 = vunpack.c.h.bf16 %v5581_v51 }
 0x14c   : > { %5704 = vst [vmem:[%s6302_s6 + $0x40] sm:$0xff] %v5294_v15   ;;  %v2965_v23 = vadd.f32 %v6257_v13, %v2833_v16  ;;  %v4979_v24 = vpack.c.bf16 %v2062_v17, %v2061_v3  ;;  %v2834_v25 = vmul.f32 %v6252_v4, %v2062_v17  ;;  %v5139_v26 = vpack.c.bf16 %v2126_v18, %v2125_v14 }
 0x14d   : > { %5736 = vst [vmem:[%s6302_s6 + $0x140] sm:$0xff] %v5454_v19   ;;  %v3029_v27 = vadd.f32 %v6257_v13, %v2897_v20  ;;  %v2898_v28 = vmul.f32 %v6252_v4, %v2126_v18  ;;  %v1356_v29 = vpop.f32.mrb[40].mxu0  ;;  %v1612_v30 = vpop.f32.mrb[40].mxu1  ;;  %v4850_v12 = vunpack.c.h.bf16 %v5613_v56 }
 0x14e   : > { %5642 = vst [vmem:[%s6272_s27 + $0x48] sm:$0xff] %v4979_v24   ;;  %v2966_v31 = vadd.f32 %v6257_v13, %v2834_v25  ;;  %5674 = vst [vmem:[%s6272_s27 + $0x148] sm:$0xff] %v5139_v26   ;;  %v1357_v32 = vadd.f32 %v1356_v29, %v6248_v63  ;;  %v1613_v33 = vadd.f32 %v1612_v30, %v6248_v63  ;;  %v1358_v34 = vpop.f32.mrb[41].mxu0  ;;  %v1614_v35 = vpop.f32.mrb[41].mxu1  ;;  %v3093_v37 = vmax.f32 %v2965_v23, 0.0  ;;  %v5582_v25 = vld [vmem:[%s6239_s23 + $0x60] sm:$0xff]  }
 0x14f   : > { %v3030_v38 = vadd.f32 %v6257_v13, %v2898_v28  ;;  %v1359_v39 = vpop.f32.mrb[42].mxu0  ;;  %v1615_v40 = vpop.f32.mrb[42].mxu1  ;;  %v3157_v48 = vmax.f32 %v3029_v27, 0.0  ;;  %v5614_v26 = vld [vmem:[%s6239_s23 + $0x160] sm:$0xff]   ;;  %v4726_v51 = vunpack.c.h.bf16 %v5582_v25 }
 0x150   : > { %v3094_v42 = vmax.f32 %v2966_v31, 0.0  ;;  %v2063_v43 = vadd.f32 %v4717_v21, %v1357_v32  ;;  %v2127_v44 = vadd.f32 %v4845_v22, %v1613_v33  ;;  %v1360_v45 = vadd.f32 %v1359_v39, %v6248_v63  ;;  %v1361_v46 = vpop.f32.mrb[43].mxu0  ;;  %v1617_v47 = vpop.f32.mrb[43].mxu1 }
 0x151   : > { %v3158_v49 = vmax.f32 %v3030_v38, 0.0  ;;  %v1616_v50 = vadd.f32 %v1615_v40, %v6248_v63  ;;  %v4854_v56 = vunpack.c.h.bf16 %v5614_v26 }
 0x152   : > { %v5299_v52 = vpack.c.bf16 %v3094_v42, %v3093_v37  ;;  %v2835_v53 = vmul.f32 %v6252_v4, %v2063_v43  ;;  %v2899_v54 = vmul.f32 %v6252_v4, %v2127_v44  ;;  %v2064_v55 = vadd.f32 %v4718_v36, %v1360_v45 }
 0x153   : > { %v5459_v57 = vpack.c.bf16 %v3158_v49, %v3157_v48  ;;  %v2128_v58 = vadd.f32 %v4846_v41, %v1616_v50  ;;  %v4725_v36 = vunpack.c.l.bf16 %v5582_v25  ;;  %v4853_v37 = vunpack.c.l.bf16 %v5614_v26 }
 0x154   : > { %5705 = vst [vmem:[%s6302_s6 + $0x48] sm:$0xff] %v5299_v52   ;;  %v2967_v59 = vadd.f32 %v6257_v13, %v2835_v53  ;;  %v4984_v60 = vpack.c.bf16 %v2064_v55, %v2063_v43  ;;  %v2836_v61 = vmul.f32 %v6252_v4, %v2064_v55  ;;  %v3031_v0 = vadd.f32 %v6257_v13, %v2899_v54 }
 0x155   : > { %5737 = vst [vmem:[%s6302_s6 + $0x148] sm:$0xff] %v5459_v57   ;;  %v5144_v1 = vpack.c.bf16 %v2128_v58, %v2127_v44  ;;  %v2900_v2 = vmul.f32 %v6252_v4, %v2128_v58  ;;  %v1364_v3 = vpop.f32.mrb[44].mxu0  ;;  %v1620_v5 = vpop.f32.mrb[44].mxu1 }
 0x156   : > { %5643 = vst [vmem:[%s6272_s27 + $0x50] sm:$0xff] %v4984_v60   ;;  %v2968_v7 = vadd.f32 %v6257_v13, %v2836_v61  ;;  %v1365_v8 = vadd.f32 %v1364_v3, %v6248_v63  ;;  %v1366_v9 = vpop.f32.mrb[45].mxu0  ;;  %v1622_v10 = vpop.f32.mrb[45].mxu1  ;;  %v3095_v14 = vmax.f32 %v2967_v59, 0.0  ;;  %v1621_v16 = vadd.f32 %v1620_v5, %v6248_v63  ;;  %v5583_v3 = vld [vmem:[%s6239_s23 + $0x68] sm:$0xff]  }
 0x157   : > { %5675 = vst [vmem:[%s6272_s27 + $0x150] sm:$0xff] %v5144_v1   ;;  %v3032_v15 = vadd.f32 %v6257_v13, %v2900_v2  ;;  %v1367_v17 = vpop.f32.mrb[46].mxu0  ;;  %v1623_v18 = vpop.f32.mrb[46].mxu1  ;;  %v3159_v27 = vmax.f32 %v3031_v0, 0.0  ;;  %v5615_v9 = vld [vmem:[%s6239_s23 + $0x168] sm:$0xff]  }
 0x158   : > { %v3096_v19 = vmax.f32 %v2968_v7, 0.0  ;;  %v2065_v20 = vadd.f32 %v4721_v62, %v1365_v8  ;;  %v1368_v21 = vadd.f32 %v1367_v17, %v6248_v63  ;;  %v1624_v22 = vadd.f32 %v1623_v18, %v6248_v63  ;;  %v1369_v23 = vpop.f32.mrb[47].mxu0  ;;  %v1625_v24 = vpop.f32.mrb[47].mxu1 }
 0x159   : > { %v3160_v28 = vmax.f32 %v3032_v15, 0.0  ;;  %v2129_v29 = vadd.f32 %v4849_v6, %v1621_v16  ;;  %v4729_v16 = vunpack.c.l.bf16 %v5583_v3 }
 0x15a   : > { %v5304_v30 = vpack.c.bf16 %v3096_v19, %v3095_v14  ;;  %v2837_v31 = vmul.f32 %v6252_v4, %v2065_v20  ;;  %v2066_v32 = vadd.f32 %v4722_v11, %v1368_v21  ;;  %v2130_v33 = vadd.f32 %v4850_v12, %v1624_v22 }
 0x15b   : > { %v5464_v34 = vpack.c.bf16 %v3160_v28, %v3159_v27  ;;  %v2901_v35 = vmul.f32 %v6252_v4, %v2129_v29  ;;  %v4857_v22 = vunpack.c.l.bf16 %v5615_v9  ;;  %v4730_v27 = vunpack.c.h.bf16 %v5583_v3 }
 0x15c   : > { %5706 = vst [vmem:[%s6302_s6 + $0x50] sm:$0xff] %v5304_v30   ;;  %v2969_v38 = vadd.f32 %v6257_v13, %v2837_v31  ;;  %v4989_v39 = vpack.c.bf16 %v2066_v32, %v2065_v20  ;;  %v2838_v40 = vmul.f32 %v6252_v4, %v2066_v32  ;;  %v5149_v41 = vpack.c.bf16 %v2130_v33, %v2129_v29 }
 0x15d   : > { %5738 = vst [vmem:[%s6302_s6 + $0x150] sm:$0xff] %v5464_v34   ;;  %v3033_v42 = vadd.f32 %v6257_v13, %v2901_v35  ;;  %v2902_v43 = vmul.f32 %v6252_v4, %v2130_v33  ;;  %v1372_v44 = vpop.f32.mrb[48].mxu0  ;;  %v1628_v45 = vpop.f32.mrb[48].mxu1  ;;  %v4858_v28 = vunpack.c.h.bf16 %v5615_v9 }
 0x15e   : > { %5644 = vst [vmem:[%s6272_s27 + $0x58] sm:$0xff] %v4989_v39   ;;  %v2970_v46 = vadd.f32 %v6257_v13, %v2838_v40  ;;  %5676 = vst [vmem:[%s6272_s27 + $0x158] sm:$0xff] %v5149_v41   ;;  %v1373_v47 = vadd.f32 %v1372_v44, %v6248_v63  ;;  %v1629_v48 = vadd.f32 %v1628_v45, %v6248_v63  ;;  %v1374_v49 = vpop.f32.mrb[49].mxu0  ;;  %v1630_v50 = vpop.f32.mrb[49].mxu1  ;;  %v3097_v52 = vmax.f32 %v2969_v38, 0.0  ;;  %v5584_v40 = vld [vmem:[%s6239_s23 + $0x70] sm:$0xff]  }
 0x15f   : > { %v3034_v53 = vadd.f32 %v6257_v13, %v2902_v43  ;;  %v1375_v54 = vpop.f32.mrb[50].mxu0  ;;  %v1631_v55 = vpop.f32.mrb[50].mxu1  ;;  %v3161_v0 = vmax.f32 %v3033_v42, 0.0  ;;  %v5616_v41 = vld [vmem:[%s6239_s23 + $0x170] sm:$0xff]   ;;  %v4734_v3 = vunpack.c.h.bf16 %v5584_v40 }
 0x160   : > { %v3098_v57 = vmax.f32 %v2970_v46, 0.0  ;;  %v2067_v58 = vadd.f32 %v4725_v36, %v1373_v47  ;;  %v2131_v59 = vadd.f32 %v4853_v37, %v1629_v48  ;;  %v1376_v60 = vadd.f32 %v1375_v54, %v6248_v63  ;;  %v1377_v61 = vpop.f32.mrb[51].mxu0  ;;  %v1633_v62 = vpop.f32.mrb[51].mxu1 }
 0x161   : > { %v3162_v1 = vmax.f32 %v3034_v53, 0.0  ;;  %v1632_v2 = vadd.f32 %v1631_v55, %v6248_v63  ;;  %v4862_v9 = vunpack.c.h.bf16 %v5616_v41 }
 0x162   : > { %v5309_v5 = vpack.c.bf16 %v3098_v57, %v3097_v52  ;;  %v2839_v6 = vmul.f32 %v6252_v4, %v2067_v58  ;;  %v2903_v7 = vmul.f32 %v6252_v4, %v2131_v59  ;;  %v2068_v8 = vadd.f32 %v4726_v51, %v1376_v60 }
 0x163   : > { %v5469_v10 = vpack.c.bf16 %v3162_v1, %v3161_v0  ;;  %v2132_v11 = vadd.f32 %v4854_v56, %v1632_v2  ;;  %v4733_v51 = vunpack.c.l.bf16 %v5584_v40  ;;  %v4861_v52 = vunpack.c.l.bf16 %v5616_v41 }
 0x164   : > { %5707 = vst [vmem:[%s6302_s6 + $0x58] sm:$0xff] %v5309_v5   ;;  %v2971_v12 = vadd.f32 %v6257_v13, %v2839_v6  ;;  %v4994_v14 = vpack.c.bf16 %v2068_v8, %v2067_v58  ;;  %v2840_v15 = vmul.f32 %v6252_v4, %v2068_v8  ;;  %v3035_v17 = vadd.f32 %v6257_v13, %v2903_v7 }
 0x165   : > { %5739 = vst [vmem:[%s6302_s6 + $0x158] sm:$0xff] %v5469_v10   ;;  %v5154_v18 = vpack.c.bf16 %v2132_v11, %v2131_v59  ;;  %v2904_v19 = vmul.f32 %v6252_v4, %v2132_v11  ;;  %v1380_v20 = vpop.f32.mrb[52].mxu0  ;;  %v1636_v21 = vpop.f32.mrb[52].mxu1 }
 0x166   : > { %5645 = vst [vmem:[%s6272_s27 + $0x60] sm:$0xff] %v4994_v14   ;;  %v2972_v23 = vadd.f32 %v6257_v13, %v2840_v15  ;;  %v1381_v24 = vadd.f32 %v1380_v20, %v6248_v63  ;;  %v1382_v25 = vpop.f32.mrb[53].mxu0  ;;  %v1638_v26 = vpop.f32.mrb[53].mxu1  ;;  %v3099_v29 = vmax.f32 %v2971_v12, 0.0  ;;  %v1637_v31 = vadd.f32 %v1636_v21, %v6248_v63  ;;  %v5585_v20 = vld [vmem:[%s6239_s23 + $0x78] sm:$0xff]  }
 0x167   : > { %5677 = vst [vmem:[%s6272_s27 + $0x160] sm:$0xff] %v5154_v18   ;;  %v3036_v30 = vadd.f32 %v6257_v13, %v2904_v19  ;;  %v1383_v32 = vpop.f32.mrb[54].mxu0  ;;  %v1639_v33 = vpop.f32.mrb[54].mxu1  ;;  %v3163_v42 = vmax.f32 %v3035_v17, 0.0  ;;  %v5617_v25 = vld [vmem:[%s6239_s23 + $0x178] sm:$0xff]  }
 0x168   : > { %v3100_v34 = vmax.f32 %v2972_v23, 0.0  ;;  %v2069_v35 = vadd.f32 %v4729_v16, %v1381_v24  ;;  %v1384_v36 = vadd.f32 %v1383_v32, %v6248_v63  ;;  %v1640_v37 = vadd.f32 %v1639_v33, %v6248_v63  ;;  %v1385_v38 = vpop.f32.mrb[55].mxu0  ;;  %v1641_v39 = vpop.f32.mrb[55].mxu1 }
 0x169   : > { %v3164_v43 = vmax.f32 %v3036_v30, 0.0  ;;  %v2133_v44 = vadd.f32 %v4857_v22, %v1637_v31  ;;  %v4737_v31 = vunpack.c.l.bf16 %v5585_v20 }
 0x16a   : > { %v5314_v45 = vpack.c.bf16 %v3100_v34, %v3099_v29  ;;  %v2841_v46 = vmul.f32 %v6252_v4, %v2069_v35  ;;  %v2070_v47 = vadd.f32 %v4730_v27, %v1384_v36  ;;  %v2134_v48 = vadd.f32 %v4858_v28, %v1640_v37 }
 0x16b   : > { %v5474_v49 = vpack.c.bf16 %v3164_v43, %v3163_v42  ;;  %v2905_v50 = vmul.f32 %v6252_v4, %v2133_v44  ;;  %v4865_v37 = vunpack.c.l.bf16 %v5617_v25  ;;  %v4738_v42 = vunpack.c.h.bf16 %v5585_v20 }
 0x16c   : > { %5708 = vst [vmem:[%s6302_s6 + $0x60] sm:$0xff] %v5314_v45   ;;  %v2973_v53 = vadd.f32 %v6257_v13, %v2841_v46  ;;  %v4999_v54 = vpack.c.bf16 %v2070_v47, %v2069_v35  ;;  %v2842_v55 = vmul.f32 %v6252_v4, %v2070_v47  ;;  %v5159_v56 = vpack.c.bf16 %v2134_v48, %v2133_v44 }
 0x16d   : > { %5740 = vst [vmem:[%s6302_s6 + $0x160] sm:$0xff] %v5474_v49   ;;  %v3037_v57 = vadd.f32 %v6257_v13, %v2905_v50  ;;  %v2906_v58 = vmul.f32 %v6252_v4, %v2134_v48  ;;  %v1388_v59 = vpop.f32.mrb[56].mxu0  ;;  %v1644_v60 = vpop.f32.mrb[56].mxu1  ;;  %v4866_v43 = vunpack.c.h.bf16 %v5617_v25 }
 0x16e   : > { %5646 = vst [vmem:[%s6272_s27 + $0x68] sm:$0xff] %v4999_v54   ;;  %v2974_v61 = vadd.f32 %v6257_v13, %v2842_v55  ;;  %5678 = vst [vmem:[%s6272_s27 + $0x168] sm:$0xff] %v5159_v56   ;;  %v1389_v62 = vadd.f32 %v1388_v59, %v6248_v63  ;;  %v1645_v0 = vadd.f32 %v1644_v60, %v6248_v63  ;;  %v1390_v1 = vpop.f32.mrb[57].mxu0  ;;  %v1646_v2 = vpop.f32.mrb[57].mxu1  ;;  %v3101_v5 = vmax.f32 %v2973_v53, 0.0  ;;  %v5586_v55 = vld [vmem:[%s6239_s23 + $0x80] sm:$0xff]  }
 0x16f   : > { %v3038_v6 = vadd.f32 %v6257_v13, %v2906_v58  ;;  %v1391_v7 = vpop.f32.mrb[58].mxu0  ;;  %v1647_v8 = vpop.f32.mrb[58].mxu1  ;;  %v3165_v17 = vmax.f32 %v3037_v57, 0.0  ;;  %v5618_v56 = vld [vmem:[%s6239_s23 + $0x180] sm:$0xff]   ;;  %v4742_v20 = vunpack.c.h.bf16 %v5586_v55 }
 0x170   : > { %v3102_v10 = vmax.f32 %v2974_v61, 0.0  ;;  %v2071_v11 = vadd.f32 %v4733_v51, %v1389_v62  ;;  %v2135_v12 = vadd.f32 %v4861_v52, %v1645_v0  ;;  %v1392_v14 = vadd.f32 %v1391_v7, %v6248_v63  ;;  %v1393_v15 = vpop.f32.mrb[59].mxu0  ;;  %v1649_v16 = vpop.f32.mrb[59].mxu1 }
 0x171   : > { %v3166_v18 = vmax.f32 %v3038_v6, 0.0  ;;  %v1648_v19 = vadd.f32 %v1647_v8, %v6248_v63  ;;  %v4870_v25 = vunpack.c.h.bf16 %v5618_v56 }
 0x172   : > { %v5319_v21 = vpack.c.bf16 %v3102_v10, %v3101_v5  ;;  %v2843_v22 = vmul.f32 %v6252_v4, %v2071_v11  ;;  %v2907_v23 = vmul.f32 %v6252_v4, %v2135_v12  ;;  %v2072_v24 = vadd.f32 %v4734_v3, %v1392_v14 }
 0x173   : > { %v5479_v26 = vpack.c.bf16 %v3166_v18, %v3165_v17  ;;  %v2136_v27 = vadd.f32 %v4862_v9, %v1648_v19  ;;  %v4741_v3 = vunpack.c.l.bf16 %v5586_v55  ;;  %v4869_v5 = vunpack.c.l.bf16 %v5618_v56 }
 0x174   : > { %5709 = vst [vmem:[%s6302_s6 + $0x68] sm:$0xff] %v5319_v21   ;;  %v2975_v28 = vadd.f32 %v6257_v13, %v2843_v22  ;;  %v5004_v29 = vpack.c.bf16 %v2072_v24, %v2071_v11  ;;  %v2844_v30 = vmul.f32 %v6252_v4, %v2072_v24  ;;  %v3039_v32 = vadd.f32 %v6257_v13, %v2907_v23 }
 0x175   : > { %5741 = vst [vmem:[%s6302_s6 + $0x168] sm:$0xff] %v5479_v26   ;;  %v5164_v33 = vpack.c.bf16 %v2136_v27, %v2135_v12  ;;  %v2908_v34 = vmul.f32 %v6252_v4, %v2136_v27  ;;  %v1396_v35 = vpop.f32.mrb[60].mxu0  ;;  %v1652_v36 = vpop.f32.mrb[60].mxu1 }
 0x176   : > { %5647 = vst [vmem:[%s6272_s27 + $0x70] sm:$0xff] %v5004_v29   ;;  %v2976_v38 = vadd.f32 %v6257_v13, %v2844_v30  ;;  %v1397_v39 = vadd.f32 %v1396_v35, %v6248_v63  ;;  %v1398_v40 = vpop.f32.mrb[61].mxu0  ;;  %v1654_v41 = vpop.f32.mrb[61].mxu1  ;;  %v3103_v44 = vmax.f32 %v2975_v28, 0.0  ;;  %v1653_v46 = vadd.f32 %v1652_v36, %v6248_v63  ;;  %v5587_v35 = vld [vmem:[%s6239_s23 + $0x88] sm:$0xff]  }
 0x177   : > { %5679 = vst [vmem:[%s6272_s27 + $0x170] sm:$0xff] %v5164_v33   ;;  %v3040_v45 = vadd.f32 %v6257_v13, %v2908_v34  ;;  %v1399_v47 = vpop.f32.mrb[62].mxu0  ;;  %v1655_v48 = vpop.f32.mrb[62].mxu1  ;;  %v3167_v57 = vmax.f32 %v3039_v32, 0.0  ;;  %v5619_v40 = vld [vmem:[%s6239_s23 + $0x188] sm:$0xff]  }
 0x178   : > { %v3104_v49 = vmax.f32 %v2976_v38, 0.0  ;;  %v2073_v50 = vadd.f32 %v4737_v31, %v1397_v39  ;;  %v1400_v51 = vadd.f32 %v1399_v47, %v6248_v63  ;;  %v1656_v52 = vadd.f32 %v1655_v48, %v6248_v63  ;;  %v1401_v53 = vpop.f32.mrb[63].mxu0  ;;  %v1657_v54 = vpop.f32.mrb[63].mxu1 }
 0x179   : > { %v3168_v58 = vmax.f32 %v3040_v45, 0.0  ;;  %v2137_v59 = vadd.f32 %v4865_v37, %v1653_v46  ;;  %v4745_v46 = vunpack.c.l.bf16 %v5587_v35 }
 0x17a   : > { %v5324_v60 = vpack.c.bf16 %v3104_v49, %v3103_v44  ;;  %v2845_v61 = vmul.f32 %v6252_v4, %v2073_v50  ;;  %v2074_v62 = vadd.f32 %v4738_v42, %v1400_v51  ;;  %v2138_v0 = vadd.f32 %v4866_v43, %v1656_v52 }
 0x17b   : > { %v5484_v1 = vpack.c.bf16 %v3168_v58, %v3167_v57  ;;  %v2909_v2 = vmul.f32 %v6252_v4, %v2137_v59  ;;  %v4873_v52 = vunpack.c.l.bf16 %v5619_v40  ;;  %v4746_v57 = vunpack.c.h.bf16 %v5587_v35 }
 0x17c   : > { %5710 = vst [vmem:[%s6302_s6 + $0x70] sm:$0xff] %v5324_v60   ;;  %v2977_v6 = vadd.f32 %v6257_v13, %v2845_v61  ;;  %v5009_v7 = vpack.c.bf16 %v2074_v62, %v2073_v50  ;;  %v2846_v8 = vmul.f32 %v6252_v4, %v2074_v62  ;;  %v5169_v9 = vpack.c.bf16 %v2138_v0, %v2137_v59 }
 0x17d   : > { %5742 = vst [vmem:[%s6302_s6 + $0x170] sm:$0xff] %v5484_v1   ;;  %v3041_v10 = vadd.f32 %v6257_v13, %v2909_v2  ;;  %v2910_v11 = vmul.f32 %v6252_v4, %v2138_v0  ;;  %v1404_v12 = vpop.f32.mrb[64].mxu0  ;;  %v1660_v14 = vpop.f32.mrb[64].mxu1  ;;  %v4874_v58 = vunpack.c.h.bf16 %v5619_v40 }
 0x17e   : > { %5648 = vst [vmem:[%s6272_s27 + $0x78] sm:$0xff] %v5009_v7   ;;  %v2978_v15 = vadd.f32 %v6257_v13, %v2846_v8  ;;  %5680 = vst [vmem:[%s6272_s27 + $0x178] sm:$0xff] %v5169_v9   ;;  %v1405_v16 = vadd.f32 %v1404_v12, %v6248_v63  ;;  %v1661_v17 = vadd.f32 %v1660_v14, %v6248_v63  ;;  %v1406_v18 = vpop.f32.mrb[65].mxu0  ;;  %v1662_v19 = vpop.f32.mrb[65].mxu1  ;;  %v3105_v21 = vmax.f32 %v2977_v6, 0.0  ;;  %v5588_v8 = vld [vmem:[%s6239_s23 + $0x90] sm:$0xff]  }
 0x17f   : > { %v3042_v22 = vadd.f32 %v6257_v13, %v2910_v11  ;;  %v1407_v23 = vpop.f32.mrb[66].mxu0  ;;  %v1663_v24 = vpop.f32.mrb[66].mxu1  ;;  %v3169_v32 = vmax.f32 %v3041_v10, 0.0  ;;  %v5620_v9 = vld [vmem:[%s6239_s23 + $0x190] sm:$0xff]   ;;  %v4750_v35 = vunpack.c.h.bf16 %v5588_v8 }
 0x180   : > { %v3106_v26 = vmax.f32 %v2978_v15, 0.0  ;;  %v2075_v27 = vadd.f32 %v4741_v3, %v1405_v16  ;;  %v2139_v28 = vadd.f32 %v4869_v5, %v1661_v17  ;;  %v1408_v29 = vadd.f32 %v1407_v23, %v6248_v63  ;;  %v1409_v30 = vpop.f32.mrb[67].mxu0  ;;  %v1665_v31 = vpop.f32.mrb[67].mxu1 }
 0x181   : > { %v3170_v33 = vmax.f32 %v3042_v22, 0.0  ;;  %v1664_v34 = vadd.f32 %v1663_v24, %v6248_v63  ;;  %v4878_v40 = vunpack.c.h.bf16 %v5620_v9 }
 0x182   : > { %v5329_v36 = vpack.c.bf16 %v3106_v26, %v3105_v21  ;;  %v2847_v37 = vmul.f32 %v6252_v4, %v2075_v27  ;;  %v2911_v38 = vmul.f32 %v6252_v4, %v2139_v28  ;;  %v2076_v39 = vadd.f32 %v4742_v20, %v1408_v29 }
 0x183   : > { %v5489_v41 = vpack.c.bf16 %v3170_v33, %v3169_v32  ;;  %v2140_v42 = vadd.f32 %v4870_v25, %v1664_v34  ;;  %v4749_v20 = vunpack.c.l.bf16 %v5588_v8  ;;  %v4877_v21 = vunpack.c.l.bf16 %v5620_v9 }
 0x184   : > { %5711 = vst [vmem:[%s6302_s6 + $0x78] sm:$0xff] %v5329_v36   ;;  %v2979_v43 = vadd.f32 %v6257_v13, %v2847_v37  ;;  %v5014_v44 = vpack.c.bf16 %v2076_v39, %v2075_v27  ;;  %v2848_v45 = vmul.f32 %v6252_v4, %v2076_v39  ;;  %v3043_v47 = vadd.f32 %v6257_v13, %v2911_v38 }
 0x185   : > { %5743 = vst [vmem:[%s6302_s6 + $0x178] sm:$0xff] %v5489_v41   ;;  %v5174_v48 = vpack.c.bf16 %v2140_v42, %v2139_v28  ;;  %v2912_v49 = vmul.f32 %v6252_v4, %v2140_v42  ;;  %v1412_v50 = vpop.f32.mrb[68].mxu0  ;;  %v1668_v51 = vpop.f32.mrb[68].mxu1 }
 0x186   : > { %5649 = vst [vmem:[%s6272_s27 + $0x80] sm:$0xff] %v5014_v44   ;;  %v2980_v53 = vadd.f32 %v6257_v13, %v2848_v45  ;;  %v1413_v54 = vadd.f32 %v1412_v50, %v6248_v63  ;;  %v1414_v55 = vpop.f32.mrb[69].mxu0  ;;  %v1670_v56 = vpop.f32.mrb[69].mxu1  ;;  %v3107_v59 = vmax.f32 %v2979_v43, 0.0  ;;  %v1669_v61 = vadd.f32 %v1668_v51, %v6248_v63  ;;  %v5589_v50 = vld [vmem:[%s6239_s23 + $0x98] sm:$0xff]  }
 0x187   : > { %5681 = vst [vmem:[%s6272_s27 + $0x180] sm:$0xff] %v5174_v48   ;;  %v3044_v60 = vadd.f32 %v6257_v13, %v2912_v49  ;;  %v1415_v62 = vpop.f32.mrb[70].mxu0  ;;  %v1671_v0 = vpop.f32.mrb[70].mxu1  ;;  %v3171_v10 = vmax.f32 %v3043_v47, 0.0  ;;  %v5621_v55 = vld [vmem:[%s6239_s23 + $0x198] sm:$0xff]  }
 0x188   : > { %v3108_v1 = vmax.f32 %v2980_v53, 0.0  ;;  %v2077_v2 = vadd.f32 %v4745_v46, %v1413_v54  ;;  %v1416_v3 = vadd.f32 %v1415_v62, %v6248_v63  ;;  %v1672_v5 = vadd.f32 %v1671_v0, %v6248_v63  ;;  %v1417_v6 = vpop.f32.mrb[71].mxu0  ;;  %v1673_v7 = vpop.f32.mrb[71].mxu1 }
 0x189   : > { %v3172_v11 = vmax.f32 %v3044_v60, 0.0  ;;  %v2141_v12 = vadd.f32 %v4873_v52, %v1669_v61  ;;  %v4753_v61 = vunpack.c.l.bf16 %v5589_v50 }
 0x18a   : > { %v5334_v14 = vpack.c.bf16 %v3108_v1, %v3107_v59  ;;  %v2849_v15 = vmul.f32 %v6252_v4, %v2077_v2  ;;  %v2078_v16 = vadd.f32 %v4746_v57, %v1416_v3  ;;  %v2142_v17 = vadd.f32 %v4874_v58, %v1672_v5 }
 0x18b   : > { %v5494_v18 = vpack.c.bf16 %v3172_v11, %v3171_v10  ;;  %v2913_v19 = vmul.f32 %v6252_v4, %v2141_v12  ;;  %v4881_v5 = vunpack.c.l.bf16 %v5621_v55  ;;  %v4754_v10 = vunpack.c.h.bf16 %v5589_v50 }
 0x18c   : > { %5712 = vst [vmem:[%s6302_s6 + $0x80] sm:$0xff] %v5334_v14   ;;  %v2981_v22 = vadd.f32 %v6257_v13, %v2849_v15  ;;  %v5019_v23 = vpack.c.bf16 %v2078_v16, %v2077_v2  ;;  %v2850_v24 = vmul.f32 %v6252_v4, %v2078_v16  ;;  %v5179_v25 = vpack.c.bf16 %v2142_v17, %v2141_v12 }
 0x18d   : > { %5744 = vst [vmem:[%s6302_s6 + $0x180] sm:$0xff] %v5494_v18   ;;  %v3045_v26 = vadd.f32 %v6257_v13, %v2913_v19  ;;  %v2914_v27 = vmul.f32 %v6252_v4, %v2142_v17  ;;  %v1420_v28 = vpop.f32.mrb[72].mxu0  ;;  %v1676_v29 = vpop.f32.mrb[72].mxu1  ;;  %v4882_v11 = vunpack.c.h.bf16 %v5621_v55 }
 0x18e   : > { %5650 = vst [vmem:[%s6272_s27 + $0x88] sm:$0xff] %v5019_v23   ;;  %v2982_v30 = vadd.f32 %v6257_v13, %v2850_v24  ;;  %5682 = vst [vmem:[%s6272_s27 + $0x188] sm:$0xff] %v5179_v25   ;;  %v1421_v31 = vadd.f32 %v1420_v28, %v6248_v63  ;;  %v1677_v32 = vadd.f32 %v1676_v29, %v6248_v63  ;;  %v1422_v33 = vpop.f32.mrb[73].mxu0  ;;  %v1678_v34 = vpop.f32.mrb[73].mxu1  ;;  %v3109_v36 = vmax.f32 %v2981_v22, 0.0  ;;  %v5590_v24 = vld [vmem:[%s6239_s23 + $0xa0] sm:$0xff]  }
 0x18f   : > { %v3046_v37 = vadd.f32 %v6257_v13, %v2914_v27  ;;  %v1423_v38 = vpop.f32.mrb[74].mxu0  ;;  %v1679_v39 = vpop.f32.mrb[74].mxu1  ;;  %v3173_v47 = vmax.f32 %v3045_v26, 0.0  ;;  %v5622_v25 = vld [vmem:[%s6239_s23 + $0x1a0] sm:$0xff]   ;;  %v4758_v50 = vunpack.c.h.bf16 %v5590_v24 }
 0x190   : > { %v3110_v41 = vmax.f32 %v2982_v30, 0.0  ;;  %v2079_v42 = vadd.f32 %v4749_v20, %v1421_v31  ;;  %v2143_v43 = vadd.f32 %v4877_v21, %v1677_v32  ;;  %v1424_v44 = vadd.f32 %v1423_v38, %v6248_v63  ;;  %v1425_v45 = vpop.f32.mrb[75].mxu0  ;;  %v1681_v46 = vpop.f32.mrb[75].mxu1 }
 0x191   : > { %v3174_v48 = vmax.f32 %v3046_v37, 0.0  ;;  %v1680_v49 = vadd.f32 %v1679_v39, %v6248_v63  ;;  %v4886_v55 = vunpack.c.h.bf16 %v5622_v25 }
 0x192   : > { %v5339_v51 = vpack.c.bf16 %v3110_v41, %v3109_v36  ;;  %v2851_v52 = vmul.f32 %v6252_v4, %v2079_v42  ;;  %v2915_v53 = vmul.f32 %v6252_v4, %v2143_v43  ;;  %v2080_v54 = vadd.f32 %v4750_v35, %v1424_v44 }
 0x193   : > { %v5499_v56 = vpack.c.bf16 %v3174_v48, %v3173_v47  ;;  %v2144_v57 = vadd.f32 %v4878_v40, %v1680_v49  ;;  %v4757_v35 = vunpack.c.l.bf16 %v5590_v24  ;;  %v4885_v36 = vunpack.c.l.bf16 %v5622_v25 }
 0x194   : > { %5713 = vst [vmem:[%s6302_s6 + $0x88] sm:$0xff] %v5339_v51   ;;  %v2983_v58 = vadd.f32 %v6257_v13, %v2851_v52  ;;  %v5024_v59 = vpack.c.bf16 %v2080_v54, %v2079_v42  ;;  %v2852_v60 = vmul.f32 %v6252_v4, %v2080_v54  ;;  %v3047_v62 = vadd.f32 %v6257_v13, %v2915_v53 }
 0x195   : > { %5745 = vst [vmem:[%s6302_s6 + $0x188] sm:$0xff] %v5499_v56   ;;  %v5184_v0 = vpack.c.bf16 %v2144_v57, %v2143_v43  ;;  %v2916_v1 = vmul.f32 %v6252_v4, %v2144_v57  ;;  %v1428_v2 = vpop.f32.mrb[76].mxu0  ;;  %v1684_v3 = vpop.f32.mrb[76].mxu1 }
 0x196   : > { %5651 = vst [vmem:[%s6272_s27 + $0x90] sm:$0xff] %v5024_v59   ;;  %v2984_v6 = vadd.f32 %v6257_v13, %v2852_v60  ;;  %v1429_v7 = vadd.f32 %v1428_v2, %v6248_v63  ;;  %v1430_v8 = vpop.f32.mrb[77].mxu0  ;;  %v1686_v9 = vpop.f32.mrb[77].mxu1  ;;  %v3111_v12 = vmax.f32 %v2983_v58, 0.0  ;;  %v1685_v15 = vadd.f32 %v1684_v3, %v6248_v63  ;;  %v5591_v2 = vld [vmem:[%s6239_s23 + $0xa8] sm:$0xff]  }
 0x197   : > { %5683 = vst [vmem:[%s6272_s27 + $0x190] sm:$0xff] %v5184_v0   ;;  %v3048_v14 = vadd.f32 %v6257_v13, %v2916_v1  ;;  %v1431_v16 = vpop.f32.mrb[78].mxu0  ;;  %v1687_v17 = vpop.f32.mrb[78].mxu1  ;;  %v3175_v26 = vmax.f32 %v3047_v62, 0.0  ;;  %v5623_v8 = vld [vmem:[%s6239_s23 + $0x1a8] sm:$0xff]  }
 0x198   : > { %v3112_v18 = vmax.f32 %v2984_v6, 0.0  ;;  %v2081_v19 = vadd.f32 %v4753_v61, %v1429_v7  ;;  %v1432_v20 = vadd.f32 %v1431_v16, %v6248_v63  ;;  %v1688_v21 = vadd.f32 %v1687_v17, %v6248_v63  ;;  %v1433_v22 = vpop.f32.mrb[79].mxu0  ;;  %v1689_v23 = vpop.f32.mrb[79].mxu1 }
 0x199   : > { %v3176_v27 = vmax.f32 %v3048_v14, 0.0  ;;  %v2145_v28 = vadd.f32 %v4881_v5, %v1685_v15  ;;  %v4761_v15 = vunpack.c.l.bf16 %v5591_v2 }
 0x19a   : > { %v5344_v29 = vpack.c.bf16 %v3112_v18, %v3111_v12  ;;  %v2853_v30 = vmul.f32 %v6252_v4, %v2081_v19  ;;  %v2082_v31 = vadd.f32 %v4754_v10, %v1432_v20  ;;  %v2146_v32 = vadd.f32 %v4882_v11, %v1688_v21 }
 0x19b   : > { %v5504_v33 = vpack.c.bf16 %v3176_v27, %v3175_v26  ;;  %v2917_v34 = vmul.f32 %v6252_v4, %v2145_v28  ;;  %v4889_v21 = vunpack.c.l.bf16 %v5623_v8  ;;  %v4762_v26 = vunpack.c.h.bf16 %v5591_v2 }
 0x19c   : > { %5714 = vst [vmem:[%s6302_s6 + $0x90] sm:$0xff] %v5344_v29   ;;  %v2985_v37 = vadd.f32 %v6257_v13, %v2853_v30  ;;  %v5029_v38 = vpack.c.bf16 %v2082_v31, %v2081_v19  ;;  %v2854_v39 = vmul.f32 %v6252_v4, %v2082_v31  ;;  %v5189_v40 = vpack.c.bf16 %v2146_v32, %v2145_v28 }
 0x19d   : > { %5746 = vst [vmem:[%s6302_s6 + $0x190] sm:$0xff] %v5504_v33   ;;  %v3049_v41 = vadd.f32 %v6257_v13, %v2917_v34  ;;  %v2918_v42 = vmul.f32 %v6252_v4, %v2146_v32  ;;  %v1436_v43 = vpop.f32.mrb[80].mxu0  ;;  %v1692_v44 = vpop.f32.mrb[80].mxu1  ;;  %v4890_v27 = vunpack.c.h.bf16 %v5623_v8 }
 0x19e   : > { %5652 = vst [vmem:[%s6272_s27 + $0x98] sm:$0xff] %v5029_v38   ;;  %v2986_v45 = vadd.f32 %v6257_v13, %v2854_v39  ;;  %5684 = vst [vmem:[%s6272_s27 + $0x198] sm:$0xff] %v5189_v40   ;;  %v1437_v46 = vadd.f32 %v1436_v43, %v6248_v63  ;;  %v1693_v47 = vadd.f32 %v1692_v44, %v6248_v63  ;;  %v1438_v48 = vpop.f32.mrb[81].mxu0  ;;  %v1694_v49 = vpop.f32.mrb[81].mxu1  ;;  %v3113_v51 = vmax.f32 %v2985_v37, 0.0  ;;  %v5592_v39 = vld [vmem:[%s6239_s23 + $0xb0] sm:$0xff]  }
 0x19f   : > { %v3050_v52 = vadd.f32 %v6257_v13, %v2918_v42  ;;  %v1439_v53 = vpop.f32.mrb[82].mxu0  ;;  %v1695_v54 = vpop.f32.mrb[82].mxu1  ;;  %v3177_v62 = vmax.f32 %v3049_v41, 0.0  ;;  %v5624_v40 = vld [vmem:[%s6239_s23 + $0x1b0] sm:$0xff]   ;;  %v4766_v2 = vunpack.c.h.bf16 %v5592_v39 }
 0x1a0   : > { %v3114_v56 = vmax.f32 %v2986_v45, 0.0  ;;  %v2083_v57 = vadd.f32 %v4757_v35, %v1437_v46  ;;  %v2147_v58 = vadd.f32 %v4885_v36, %v1693_v47  ;;  %v1440_v59 = vadd.f32 %v1439_v53, %v6248_v63  ;;  %v1441_v60 = vpop.f32.mrb[83].mxu0  ;;  %v1697_v61 = vpop.f32.mrb[83].mxu1 }
 0x1a1   : > { %v3178_v0 = vmax.f32 %v3050_v52, 0.0  ;;  %v1696_v1 = vadd.f32 %v1695_v54, %v6248_v63  ;;  %v4894_v8 = vunpack.c.h.bf16 %v5624_v40 }
 0x1a2   : > { %v5349_v3 = vpack.c.bf16 %v3114_v56, %v3113_v51  ;;  %v2855_v5 = vmul.f32 %v6252_v4, %v2083_v57  ;;  %v2919_v6 = vmul.f32 %v6252_v4, %v2147_v58  ;;  %v2084_v7 = vadd.f32 %v4758_v50, %v1440_v59 }
 0x1a3   : > { %v5509_v9 = vpack.c.bf16 %v3178_v0, %v3177_v62  ;;  %v2148_v10 = vadd.f32 %v4886_v55, %v1696_v1  ;;  %v4765_v50 = vunpack.c.l.bf16 %v5592_v39  ;;  %v4893_v51 = vunpack.c.l.bf16 %v5624_v40 }
 0x1a4   : > { %5715 = vst [vmem:[%s6302_s6 + $0x98] sm:$0xff] %v5349_v3   ;;  %v2987_v11 = vadd.f32 %v6257_v13, %v2855_v5  ;;  %v5034_v12 = vpack.c.bf16 %v2084_v7, %v2083_v57  ;;  %v2856_v14 = vmul.f32 %v6252_v4, %v2084_v7  ;;  %v3051_v16 = vadd.f32 %v6257_v13, %v2919_v6 }
 0x1a5   : > { %5747 = vst [vmem:[%s6302_s6 + $0x198] sm:$0xff] %v5509_v9   ;;  %v5194_v17 = vpack.c.bf16 %v2148_v10, %v2147_v58  ;;  %v2920_v18 = vmul.f32 %v6252_v4, %v2148_v10  ;;  %v1444_v19 = vpop.f32.mrb[84].mxu0  ;;  %v1700_v20 = vpop.f32.mrb[84].mxu1 }
 0x1a6   : > { %5653 = vst [vmem:[%s6272_s27 + $0xa0] sm:$0xff] %v5034_v12   ;;  %v2988_v22 = vadd.f32 %v6257_v13, %v2856_v14  ;;  %v1445_v23 = vadd.f32 %v1444_v19, %v6248_v63  ;;  %v1446_v24 = vpop.f32.mrb[85].mxu0  ;;  %v1702_v25 = vpop.f32.mrb[85].mxu1  ;;  %v3115_v28 = vmax.f32 %v2987_v11, 0.0  ;;  %v1701_v30 = vadd.f32 %v1700_v20, %v6248_v63  ;;  %v5593_v19 = vld [vmem:[%s6239_s23 + $0xb8] sm:$0xff]  }
 0x1a7   : > { %5685 = vst [vmem:[%s6272_s27 + $0x1a0] sm:$0xff] %v5194_v17   ;;  %v3052_v29 = vadd.f32 %v6257_v13, %v2920_v18  ;;  %v1447_v31 = vpop.f32.mrb[86].mxu0  ;;  %v1703_v32 = vpop.f32.mrb[86].mxu1  ;;  %v3179_v41 = vmax.f32 %v3051_v16, 0.0  ;;  %v5625_v24 = vld [vmem:[%s6239_s23 + $0x1b8] sm:$0xff]  }
 0x1a8   : > { %v3116_v33 = vmax.f32 %v2988_v22, 0.0  ;;  %v2085_v34 = vadd.f32 %v4761_v15, %v1445_v23  ;;  %v1448_v35 = vadd.f32 %v1447_v31, %v6248_v63  ;;  %v1704_v36 = vadd.f32 %v1703_v32, %v6248_v63  ;;  %v1449_v37 = vpop.f32.mrb[87].mxu0  ;;  %v1705_v38 = vpop.f32.mrb[87].mxu1 }
 0x1a9   : > { %v3180_v42 = vmax.f32 %v3052_v29, 0.0  ;;  %v2149_v43 = vadd.f32 %v4889_v21, %v1701_v30  ;;  %v4769_v30 = vunpack.c.l.bf16 %v5593_v19 }
 0x1aa   : > { %v5354_v44 = vpack.c.bf16 %v3116_v33, %v3115_v28  ;;  %v2857_v45 = vmul.f32 %v6252_v4, %v2085_v34  ;;  %v2086_v46 = vadd.f32 %v4762_v26, %v1448_v35  ;;  %v2150_v47 = vadd.f32 %v4890_v27, %v1704_v36 }
 0x1ab   : > { %v5514_v48 = vpack.c.bf16 %v3180_v42, %v3179_v41  ;;  %v2921_v49 = vmul.f32 %v6252_v4, %v2149_v43  ;;  %v4897_v36 = vunpack.c.l.bf16 %v5625_v24  ;;  %v4770_v41 = vunpack.c.h.bf16 %v5593_v19 }
 0x1ac   : > { %5716 = vst [vmem:[%s6302_s6 + $0xa0] sm:$0xff] %v5354_v44   ;;  %v2989_v52 = vadd.f32 %v6257_v13, %v2857_v45  ;;  %v5039_v53 = vpack.c.bf16 %v2086_v46, %v2085_v34  ;;  %v2858_v54 = vmul.f32 %v6252_v4, %v2086_v46  ;;  %v5199_v55 = vpack.c.bf16 %v2150_v47, %v2149_v43 }
 0x1ad   : > { %5748 = vst [vmem:[%s6302_s6 + $0x1a0] sm:$0xff] %v5514_v48   ;;  %v3053_v56 = vadd.f32 %v6257_v13, %v2921_v49  ;;  %v2922_v57 = vmul.f32 %v6252_v4, %v2150_v47  ;;  %v1452_v58 = vpop.f32.mrb[88].mxu0  ;;  %v1708_v59 = vpop.f32.mrb[88].mxu1  ;;  %v4898_v42 = vunpack.c.h.bf16 %v5625_v24 }
 0x1ae   : > { %5654 = vst [vmem:[%s6272_s27 + $0xa8] sm:$0xff] %v5039_v53   ;;  %v2990_v60 = vadd.f32 %v6257_v13, %v2858_v54  ;;  %5686 = vst [vmem:[%s6272_s27 + $0x1a8] sm:$0xff] %v5199_v55   ;;  %v1453_v61 = vadd.f32 %v1452_v58, %v6248_v63  ;;  %v1709_v62 = vadd.f32 %v1708_v59, %v6248_v63  ;;  %v1454_v0 = vpop.f32.mrb[89].mxu0  ;;  %v1710_v1 = vpop.f32.mrb[89].mxu1  ;;  %v3117_v3 = vmax.f32 %v2989_v52, 0.0  ;;  %v5594_v54 = vld [vmem:[%s6239_s23 + $0xc0] sm:$0xff]  }
 0x1af   : > { %v3054_v5 = vadd.f32 %v6257_v13, %v2922_v57  ;;  %v1455_v6 = vpop.f32.mrb[90].mxu0  ;;  %v1711_v7 = vpop.f32.mrb[90].mxu1  ;;  %v3181_v16 = vmax.f32 %v3053_v56, 0.0  ;;  %v5626_v55 = vld [vmem:[%s6239_s23 + $0x1c0] sm:$0xff]   ;;  %v4774_v19 = vunpack.c.h.bf16 %v5594_v54 }
 0x1b0   : > { %v3118_v9 = vmax.f32 %v2990_v60, 0.0  ;;  %v2087_v10 = vadd.f32 %v4765_v50, %v1453_v61  ;;  %v2151_v11 = vadd.f32 %v4893_v51, %v1709_v62  ;;  %v1456_v12 = vadd.f32 %v1455_v6, %v6248_v63  ;;  %v1457_v14 = vpop.f32.mrb[91].mxu0  ;;  %v1713_v15 = vpop.f32.mrb[91].mxu1 }
 0x1b1   : > { %v3182_v17 = vmax.f32 %v3054_v5, 0.0  ;;  %v1712_v18 = vadd.f32 %v1711_v7, %v6248_v63  ;;  %v4902_v24 = vunpack.c.h.bf16 %v5626_v55 }
 0x1b2   : > { %v5359_v20 = vpack.c.bf16 %v3118_v9, %v3117_v3  ;;  %v2859_v21 = vmul.f32 %v6252_v4, %v2087_v10  ;;  %v2923_v22 = vmul.f32 %v6252_v4, %v2151_v11  ;;  %v2088_v23 = vadd.f32 %v4766_v2, %v1456_v12 }
 0x1b3   : > { %v5519_v25 = vpack.c.bf16 %v3182_v17, %v3181_v16  ;;  %v2152_v26 = vadd.f32 %v4894_v8, %v1712_v18  ;;  %v4773_v2 = vunpack.c.l.bf16 %v5594_v54  ;;  %v4901_v3 = vunpack.c.l.bf16 %v5626_v55 }
 0x1b4   : > { %5717 = vst [vmem:[%s6302_s6 + $0xa8] sm:$0xff] %v5359_v20   ;;  %v2991_v27 = vadd.f32 %v6257_v13, %v2859_v21  ;;  %v5044_v28 = vpack.c.bf16 %v2088_v23, %v2087_v10  ;;  %v2860_v29 = vmul.f32 %v6252_v4, %v2088_v23  ;;  %v3055_v31 = vadd.f32 %v6257_v13, %v2923_v22 }
 0x1b5   : > { %5749 = vst [vmem:[%s6302_s6 + $0x1a8] sm:$0xff] %v5519_v25   ;;  %v5204_v32 = vpack.c.bf16 %v2152_v26, %v2151_v11  ;;  %v2924_v33 = vmul.f32 %v6252_v4, %v2152_v26  ;;  %v1460_v34 = vpop.f32.mrb[92].mxu0  ;;  %v1716_v35 = vpop.f32.mrb[92].mxu1 }
 0x1b6   : > { %5655 = vst [vmem:[%s6272_s27 + $0xb0] sm:$0xff] %v5044_v28   ;;  %v2992_v37 = vadd.f32 %v6257_v13, %v2860_v29  ;;  %v1461_v38 = vadd.f32 %v1460_v34, %v6248_v63  ;;  %v1462_v39 = vpop.f32.mrb[93].mxu0  ;;  %v1718_v40 = vpop.f32.mrb[93].mxu1  ;;  %v3119_v43 = vmax.f32 %v2991_v27, 0.0  ;;  %v1717_v45 = vadd.f32 %v1716_v35, %v6248_v63  ;;  %v5595_v34 = vld [vmem:[%s6239_s23 + $0xc8] sm:$0xff]  }
 0x1b7   : > { %5687 = vst [vmem:[%s6272_s27 + $0x1b0] sm:$0xff] %v5204_v32   ;;  %v3056_v44 = vadd.f32 %v6257_v13, %v2924_v33  ;;  %v1463_v46 = vpop.f32.mrb[94].mxu0  ;;  %v1719_v47 = vpop.f32.mrb[94].mxu1  ;;  %v3183_v56 = vmax.f32 %v3055_v31, 0.0  ;;  %v5627_v39 = vld [vmem:[%s6239_s23 + $0x1c8] sm:$0xff]  }
 0x1b8   : > { %v3120_v48 = vmax.f32 %v2992_v37, 0.0  ;;  %v2089_v49 = vadd.f32 %v4769_v30, %v1461_v38  ;;  %v1464_v50 = vadd.f32 %v1463_v46, %v6248_v63  ;;  %v1720_v51 = vadd.f32 %v1719_v47, %v6248_v63  ;;  %v1465_v52 = vpop.f32.mrb[95].mxu0  ;;  %v1721_v53 = vpop.f32.mrb[95].mxu1 }
 0x1b9   : > { %v3184_v57 = vmax.f32 %v3056_v44, 0.0  ;;  %v2153_v58 = vadd.f32 %v4897_v36, %v1717_v45  ;;  %v4777_v45 = vunpack.c.l.bf16 %v5595_v34 }
 0x1ba   : > { %v5364_v59 = vpack.c.bf16 %v3120_v48, %v3119_v43  ;;  %v2861_v60 = vmul.f32 %v6252_v4, %v2089_v49  ;;  %v2090_v61 = vadd.f32 %v4770_v41, %v1464_v50  ;;  %v2154_v62 = vadd.f32 %v4898_v42, %v1720_v51 }
 0x1bb   : > { %v5524_v0 = vpack.c.bf16 %v3184_v57, %v3183_v56  ;;  %v2925_v1 = vmul.f32 %v6252_v4, %v2153_v58  ;;  %v4905_v51 = vunpack.c.l.bf16 %v5627_v39  ;;  %v4778_v56 = vunpack.c.h.bf16 %v5595_v34 }
 0x1bc   : > { %5718 = vst [vmem:[%s6302_s6 + $0xb0] sm:$0xff] %v5364_v59   ;;  %v2993_v5 = vadd.f32 %v6257_v13, %v2861_v60  ;;  %v5049_v6 = vpack.c.bf16 %v2090_v61, %v2089_v49  ;;  %v2862_v7 = vmul.f32 %v6252_v4, %v2090_v61  ;;  %v5209_v8 = vpack.c.bf16 %v2154_v62, %v2153_v58 }
 0x1bd   : > { %5750 = vst [vmem:[%s6302_s6 + $0x1b0] sm:$0xff] %v5524_v0   ;;  %v3057_v9 = vadd.f32 %v6257_v13, %v2925_v1  ;;  %v2926_v10 = vmul.f32 %v6252_v4, %v2154_v62  ;;  %v1468_v11 = vpop.f32.mrb[96].mxu0  ;;  %v1724_v12 = vpop.f32.mrb[96].mxu1  ;;  %v4906_v57 = vunpack.c.h.bf16 %v5627_v39 }
 0x1be   : > { %5656 = vst [vmem:[%s6272_s27 + $0xb8] sm:$0xff] %v5049_v6   ;;  %v2994_v14 = vadd.f32 %v6257_v13, %v2862_v7  ;;  %5688 = vst [vmem:[%s6272_s27 + $0x1b8] sm:$0xff] %v5209_v8   ;;  %v1469_v15 = vadd.f32 %v1468_v11, %v6248_v63  ;;  %v1725_v16 = vadd.f32 %v1724_v12, %v6248_v63  ;;  %v1470_v17 = vpop.f32.mrb[97].mxu0  ;;  %v1726_v18 = vpop.f32.mrb[97].mxu1  ;;  %v3121_v20 = vmax.f32 %v2993_v5, 0.0  ;;  %v5596_v7 = vld [vmem:[%s6239_s23 + $0xd0] sm:$0xff]  }
 0x1bf   : > { %v3058_v21 = vadd.f32 %v6257_v13, %v2926_v10  ;;  %v1471_v22 = vpop.f32.mrb[98].mxu0  ;;  %v1727_v23 = vpop.f32.mrb[98].mxu1  ;;  %v3185_v31 = vmax.f32 %v3057_v9, 0.0  ;;  %v5628_v8 = vld [vmem:[%s6239_s23 + $0x1d0] sm:$0xff]   ;;  %v4782_v34 = vunpack.c.h.bf16 %v5596_v7 }
 0x1c0   : > { %v3122_v25 = vmax.f32 %v2994_v14, 0.0  ;;  %v2091_v26 = vadd.f32 %v4773_v2, %v1469_v15  ;;  %v2155_v27 = vadd.f32 %v4901_v3, %v1725_v16  ;;  %v1472_v28 = vadd.f32 %v1471_v22, %v6248_v63  ;;  %v1473_v29 = vpop.f32.mrb[99].mxu0  ;;  %v1729_v30 = vpop.f32.mrb[99].mxu1 }
 0x1c1   : > { %v3186_v32 = vmax.f32 %v3058_v21, 0.0  ;;  %v1728_v33 = vadd.f32 %v1727_v23, %v6248_v63  ;;  %v4910_v39 = vunpack.c.h.bf16 %v5628_v8 }
 0x1c2   : > { %v5369_v35 = vpack.c.bf16 %v3122_v25, %v3121_v20  ;;  %v2863_v36 = vmul.f32 %v6252_v4, %v2091_v26  ;;  %v2927_v37 = vmul.f32 %v6252_v4, %v2155_v27  ;;  %v2092_v38 = vadd.f32 %v4774_v19, %v1472_v28 }
 0x1c3   : > { %v5529_v40 = vpack.c.bf16 %v3186_v32, %v3185_v31  ;;  %v2156_v41 = vadd.f32 %v4902_v24, %v1728_v33  ;;  %v4781_v19 = vunpack.c.l.bf16 %v5596_v7  ;;  %v4909_v20 = vunpack.c.l.bf16 %v5628_v8 }
 0x1c4   : > { %5719 = vst [vmem:[%s6302_s6 + $0xb8] sm:$0xff] %v5369_v35   ;;  %v2995_v42 = vadd.f32 %v6257_v13, %v2863_v36  ;;  %v5054_v43 = vpack.c.bf16 %v2092_v38, %v2091_v26  ;;  %v2864_v44 = vmul.f32 %v6252_v4, %v2092_v38  ;;  %v3059_v46 = vadd.f32 %v6257_v13, %v2927_v37 }
 0x1c5   : > { %5751 = vst [vmem:[%s6302_s6 + $0x1b8] sm:$0xff] %v5529_v40   ;;  %v5214_v47 = vpack.c.bf16 %v2156_v41, %v2155_v27  ;;  %v2928_v48 = vmul.f32 %v6252_v4, %v2156_v41  ;;  %v1476_v49 = vpop.f32.mrb[100].mxu0  ;;  %v1732_v50 = vpop.f32.mrb[100].mxu1 }
 0x1c6   : > { %5657 = vst [vmem:[%s6272_s27 + $0xc0] sm:$0xff] %v5054_v43   ;;  %v2996_v52 = vadd.f32 %v6257_v13, %v2864_v44  ;;  %v1477_v53 = vadd.f32 %v1476_v49, %v6248_v63  ;;  %v1478_v54 = vpop.f32.mrb[101].mxu0  ;;  %v1734_v55 = vpop.f32.mrb[101].mxu1  ;;  %v3123_v58 = vmax.f32 %v2995_v42, 0.0  ;;  %v1733_v60 = vadd.f32 %v1732_v50, %v6248_v63  ;;  %v5597_v49 = vld [vmem:[%s6239_s23 + $0xd8] sm:$0xff]  }
 0x1c7   : > { %5689 = vst [vmem:[%s6272_s27 + $0x1c0] sm:$0xff] %v5214_v47   ;;  %v3060_v59 = vadd.f32 %v6257_v13, %v2928_v48  ;;  %v1479_v61 = vpop.f32.mrb[102].mxu0  ;;  %v1735_v62 = vpop.f32.mrb[102].mxu1  ;;  %v3187_v9 = vmax.f32 %v3059_v46, 0.0  ;;  %v5629_v54 = vld [vmem:[%s6239_s23 + $0x1d8] sm:$0xff]   ;;  %v4786_v8 = vunpack.c.h.bf16 %v5597_v49 }
 0x1c8   : > { %v3124_v0 = vmax.f32 %v2996_v52, 0.0  ;;  %v2093_v1 = vadd.f32 %v4777_v45, %v1477_v53  ;;  %v1480_v2 = vadd.f32 %v1479_v61, %v6248_v63  ;;  %v1736_v3 = vadd.f32 %v1735_v62, %v6248_v63  ;;  %v1481_v5 = vpop.f32.mrb[103].mxu0  ;;  %v1737_v6 = vpop.f32.mrb[103].mxu1 }
 0x1c9   : > { %v3188_v10 = vmax.f32 %v3060_v59, 0.0  ;;  %v2157_v11 = vadd.f32 %v4905_v51, %v1733_v60  ;;  %v4785_v60 = vunpack.c.l.bf16 %v5597_v49 }
 0x1ca   : > { %v5374_v12 = vpack.c.bf16 %v3124_v0, %v3123_v58  ;;  %v2865_v14 = vmul.f32 %v6252_v4, %v2093_v1  ;;  %v2094_v15 = vadd.f32 %v4778_v56, %v1480_v2  ;;  %v2158_v16 = vadd.f32 %v4906_v57, %v1736_v3 }
 0x1cb   : > { %v5534_v17 = vpack.c.bf16 %v3188_v10, %v3187_v9  ;;  %v2929_v18 = vmul.f32 %v6252_v4, %v2157_v11  ;;  %v4913_v2 = vunpack.c.l.bf16 %v5629_v54 }
 0x1cc   : > { %5720 = vst [vmem:[%s6302_s6 + $0xc0] sm:$0xff] %v5374_v12   ;;  %v2997_v21 = vadd.f32 %v6257_v13, %v2865_v14  ;;  %v5059_v22 = vpack.c.bf16 %v2094_v15, %v2093_v1  ;;  %v2866_v23 = vmul.f32 %v6252_v4, %v2094_v15  ;;  %v5219_v24 = vpack.c.bf16 %v2158_v16, %v2157_v11 }
 0x1cd   : > { %5752 = vst [vmem:[%s6302_s6 + $0x1c0] sm:$0xff] %v5534_v17   ;;  %v3061_v25 = vadd.f32 %v6257_v13, %v2929_v18  ;;  %v2930_v26 = vmul.f32 %v6252_v4, %v2158_v16  ;;  %v1484_v27 = vpop.f32.mrb[104].mxu0  ;;  %v1740_v28 = vpop.f32.mrb[104].mxu1  ;;  %v4914_v14 = vunpack.c.h.bf16 %v5629_v54 }
 0x1ce   : > { %5658 = vst [vmem:[%s6272_s27 + $0xc8] sm:$0xff] %v5059_v22   ;;  %v2998_v29 = vadd.f32 %v6257_v13, %v2866_v23  ;;  %5690 = vst [vmem:[%s6272_s27 + $0x1c8] sm:$0xff] %v5219_v24   ;;  %v1485_v30 = vadd.f32 %v1484_v27, %v6248_v63  ;;  %v1741_v31 = vadd.f32 %v1740_v28, %v6248_v63  ;;  %v1486_v32 = vpop.f32.mrb[105].mxu0  ;;  %v1742_v33 = vpop.f32.mrb[105].mxu1  ;;  %v3125_v35 = vmax.f32 %v2997_v21, 0.0 }
 0x1cf   : > { %v3062_v36 = vadd.f32 %v6257_v13, %v2930_v26  ;;  %v1487_v37 = vpop.f32.mrb[106].mxu0  ;;  %v1743_v38 = vpop.f32.mrb[106].mxu1  ;;  %v3189_v46 = vmax.f32 %v3061_v25, 0.0  ;;  %v5598_v26 = vld [vmem:[%s6239_s23 + $0xe0] sm:$0xff]  }
 0x1d0   : > { %v3126_v40 = vmax.f32 %v2998_v29, 0.0  ;;  %v2095_v41 = vadd.f32 %v4781_v19, %v1485_v30  ;;  %v2159_v42 = vadd.f32 %v4909_v20, %v1741_v31  ;;  %v1488_v43 = vadd.f32 %v1487_v37, %v6248_v63  ;;  %v1489_v44 = vpop.f32.mrb[107].mxu0  ;;  %v1745_v45 = vpop.f32.mrb[107].mxu1  ;;  %v5630_v30 = vld [vmem:[%s6239_s23 + $0x1e0] sm:$0xff]  }
 0x1d1   : > { %v3190_v47 = vmax.f32 %v3062_v36, 0.0  ;;  %v1744_v48 = vadd.f32 %v1743_v38, %v6248_v63  ;;  %v4789_v37 = vunpack.c.l.bf16 %v5598_v26 }
 0x1d2   : > { %v5379_v50 = vpack.c.bf16 %v3126_v40, %v3125_v35  ;;  %v2867_v51 = vmul.f32 %v6252_v4, %v2095_v41  ;;  %v2931_v52 = vmul.f32 %v6252_v4, %v2159_v42  ;;  %v2096_v53 = vadd.f32 %v4782_v34, %v1488_v43 }
 0x1d3   : > { %v5539_v55 = vpack.c.bf16 %v3190_v47, %v3189_v46  ;;  %v2160_v56 = vadd.f32 %v4910_v39, %v1744_v48  ;;  %v4790_v47 = vunpack.c.h.bf16 %v5598_v26 }
 0x1d4   : > { %5721 = vst [vmem:[%s6302_s6 + $0xc8] sm:$0xff] %v5379_v50   ;;  %v2999_v57 = vadd.f32 %v6257_v13, %v2867_v51  ;;  %v5064_v58 = vpack.c.bf16 %v2096_v53, %v2095_v41  ;;  %v2868_v59 = vmul.f32 %v6252_v4, %v2096_v53  ;;  %v3063_v61 = vadd.f32 %v6257_v13, %v2931_v52 }
 0x1d5   : > { %5753 = vst [vmem:[%s6302_s6 + $0x1c8] sm:$0xff] %v5539_v55   ;;  %v5224_v62 = vpack.c.bf16 %v2160_v56, %v2159_v42  ;;  %v2932_v0 = vmul.f32 %v6252_v4, %v2160_v56  ;;  %v1492_v1 = vpop.f32.mrb[108].mxu0  ;;  %v4917_v42 = vunpack.c.l.bf16 %v5630_v30  ;;  %v4918_v52 = vunpack.c.h.bf16 %v5630_v30 }
 0x1d6   : > { %5659 = vst [vmem:[%s6272_s27 + $0xd0] sm:$0xff] %v5064_v58   ;;  %v3000_v3 = vadd.f32 %v6257_v13, %v2868_v59  ;;  %v1493_v5 = vadd.f32 %v1492_v1, %v6248_v63  ;;  %v1748_v6 = vpop.f32.mrb[108].mxu1  ;;  %v1494_v7 = vpop.f32.mrb[109].mxu0  ;;  %v3127_v15 = vmax.f32 %v2999_v57, 0.0  ;;  %v3191_v21 = vmax.f32 %v3063_v61, 0.0  ;;  %v5599_v1 = vld [vmem:[%s6239_s23 + $0xe8] sm:$0xff]  }
 0x1d7   : > { %5691 = vst [vmem:[%s6272_s27 + $0x1d0] sm:$0xff] %v5224_v62   ;;  %v3064_v9 = vadd.f32 %v6257_v13, %v2932_v0  ;;  %v1749_v10 = vadd.f32 %v1748_v6, %v6248_v63  ;;  %v1750_v11 = vpop.f32.mrb[109].mxu1  ;;  %v1495_v12 = vpop.f32.mrb[110].mxu0  ;;  %v5631_v6 = vld [vmem:[%s6239_s23 + $0x1e8] sm:$0xff]  }
 0x1d8   : > { %v3128_v16 = vmax.f32 %v3000_v3, 0.0  ;;  %v2097_v17 = vadd.f32 %v4785_v60, %v1493_v5  ;;  %v1496_v18 = vadd.f32 %v1495_v12, %v6248_v63  ;;  %v1751_v19 = vpop.f32.mrb[110].mxu1  ;;  %v1497_v20 = vpop.f32.mrb[111].mxu0 }
 0x1d9   : > { %v3192_v22 = vmax.f32 %v3064_v9, 0.0  ;;  %v2161_v23 = vadd.f32 %v4913_v2, %v1749_v10  ;;  %v1752_v24 = vadd.f32 %v1751_v19, %v6248_v63  ;;  %v1753_v25 = vpop.f32.mrb[111].mxu1  ;;  %v4921_v19 = vunpack.c.l.bf16 %v5631_v6 }
 0x1da   : > { %v5384_v27 = vpack.c.bf16 %v3128_v16, %v3127_v15  ;;  %v2869_v28 = vmul.f32 %v6252_v4, %v2097_v17  ;;  %v2098_v29 = vadd.f32 %v4786_v8, %v1496_v18 }
 0x1db   : > { %v5544_v31 = vpack.c.bf16 %v3192_v22, %v3191_v21  ;;  %v2933_v32 = vmul.f32 %v6252_v4, %v2161_v23  ;;  %v2162_v33 = vadd.f32 %v4914_v14, %v1752_v24  ;;  %v4793_v14 = vunpack.c.l.bf16 %v5599_v1 }
 0x1dc   : > { %5722 = vst [vmem:[%s6302_s6 + $0xd0] sm:$0xff] %v5384_v27   ;;  %v3001_v34 = vadd.f32 %v6257_v13, %v2869_v28  ;;  %v5069_v35 = vpack.c.bf16 %v2098_v29, %v2097_v17  ;;  %v2870_v36 = vmul.f32 %v6252_v4, %v2098_v29  ;;  %v4794_v24 = vunpack.c.h.bf16 %v5599_v1 }
 0x1dd   : > { %5754 = vst [vmem:[%s6302_s6 + $0x1d0] sm:$0xff] %v5544_v31   ;;  %v3065_v38 = vadd.f32 %v6257_v13, %v2933_v32  ;;  %v5229_v39 = vpack.c.bf16 %v2162_v33, %v2161_v23  ;;  %v2934_v40 = vmul.f32 %v6252_v4, %v2162_v33  ;;  %v1500_v41 = vpop.f32.mrb[112].mxu0  ;;  %v4922_v29 = vunpack.c.h.bf16 %v5631_v6 }
 0x1de   : > { %5660 = vst [vmem:[%s6272_s27 + $0xd8] sm:$0xff] %v5069_v35   ;;  %v3002_v43 = vadd.f32 %v6257_v13, %v2870_v36  ;;  %v1501_v44 = vadd.f32 %v1500_v41, %v6248_v63  ;;  %v1756_v45 = vpop.f32.mrb[112].mxu1  ;;  %v1502_v46 = vpop.f32.mrb[113].mxu0  ;;  %v3129_v53 = vmax.f32 %v3001_v34, 0.0  ;;  %v5600_v41 = vld [vmem:[%s6239_s23 + $0xf0] sm:$0xff]  }
 0x1df   : > { %5692 = vst [vmem:[%s6272_s27 + $0x1d8] sm:$0xff] %v5229_v39   ;;  %v3066_v48 = vadd.f32 %v6257_v13, %v2934_v40  ;;  %v1757_v49 = vadd.f32 %v1756_v45, %v6248_v63  ;;  %v1758_v50 = vpop.f32.mrb[113].mxu1  ;;  %v1503_v51 = vpop.f32.mrb[114].mxu0  ;;  %v3193_v59 = vmax.f32 %v3065_v38, 0.0  ;;  %v5632_v45 = vld [vmem:[%s6239_s23 + $0x1f0] sm:$0xff]  }
 0x1e0   : > { %v3130_v54 = vmax.f32 %v3002_v43, 0.0  ;;  %v2099_v55 = vadd.f32 %v4789_v37, %v1501_v44  ;;  %v1504_v56 = vadd.f32 %v1503_v51, %v6248_v63  ;;  %v1759_v57 = vpop.f32.mrb[114].mxu1  ;;  %v1505_v58 = vpop.f32.mrb[115].mxu0 }
 0x1e1   : > { %v3194_v60 = vmax.f32 %v3066_v48, 0.0  ;;  %v2163_v61 = vadd.f32 %v4917_v42, %v1757_v49  ;;  %v1760_v62 = vadd.f32 %v1759_v57, %v6248_v63  ;;  %v1761_v0 = vpop.f32.mrb[115].mxu1  ;;  %v4925_v57 = vunpack.c.l.bf16 %v5632_v45 }
 0x1e2   : > { %v5389_v2 = vpack.c.bf16 %v3130_v54, %v3129_v53  ;;  %v2871_v3 = vmul.f32 %v6252_v4, %v2099_v55  ;;  %v2100_v5 = vadd.f32 %v4790_v47, %v1504_v56 }
 0x1e3   : > { %v5549_v7 = vpack.c.bf16 %v3194_v60, %v3193_v59  ;;  %v2935_v8 = vmul.f32 %v6252_v4, %v2163_v61  ;;  %v2164_v9 = vadd.f32 %v4918_v52, %v1760_v62  ;;  %v4797_v52 = vunpack.c.l.bf16 %v5600_v41 }
 0x1e4   : > { %5723 = vst [vmem:[%s6302_s6 + $0xd8] sm:$0xff] %v5389_v2   ;;  %v3003_v10 = vadd.f32 %v6257_v13, %v2871_v3  ;;  %v5074_v11 = vpack.c.bf16 %v2100_v5, %v2099_v55  ;;  %v2872_v12 = vmul.f32 %v6252_v4, %v2100_v5  ;;  %v4798_v62 = vunpack.c.h.bf16 %v5600_v41 }
 0x1e5   : > { %5755 = vst [vmem:[%s6302_s6 + $0x1d8] sm:$0xff] %v5549_v7   ;;  %v3067_v15 = vadd.f32 %v6257_v13, %v2935_v8  ;;  %v5234_v16 = vpack.c.bf16 %v2164_v9, %v2163_v61  ;;  %v2936_v17 = vmul.f32 %v6252_v4, %v2164_v9  ;;  %v1508_v18 = vpop.f32.mrb[116].mxu0  ;;  %v4926_v5 = vunpack.c.h.bf16 %v5632_v45 }
 0x1e6   : > { %5661 = vst [vmem:[%s6272_s27 + $0xe0] sm:$0xff] %v5074_v11   ;;  %v3004_v20 = vadd.f32 %v6257_v13, %v2872_v12  ;;  %v1509_v21 = vadd.f32 %v1508_v18, %v6248_v63  ;;  %v1764_v22 = vpop.f32.mrb[116].mxu1  ;;  %v1510_v23 = vpop.f32.mrb[117].mxu0  ;;  %v3131_v30 = vmax.f32 %v3003_v10, 0.0  ;;  %v5601_v18 = vld [vmem:[%s6239_s23 + $0xf8] sm:$0xff]  }
 0x1e7   : > { %5693 = vst [vmem:[%s6272_s27 + $0x1e0] sm:$0xff] %v5234_v16   ;;  %v3068_v25 = vadd.f32 %v6257_v13, %v2936_v17  ;;  %v1765_v26 = vadd.f32 %v1764_v22, %v6248_v63  ;;  %v1766_v27 = vpop.f32.mrb[117].mxu1  ;;  %v1511_v28 = vpop.f32.mrb[118].mxu0  ;;  %v3195_v36 = vmax.f32 %v3067_v15, 0.0  ;;  %v5633_v22 = vld [vmem:[%s6239_s23 + $0x1f8] sm:$0xff]  }
 0x1e8   : > { %v3132_v31 = vmax.f32 %v3004_v20, 0.0  ;;  %v2101_v32 = vadd.f32 %v4793_v14, %v1509_v21  ;;  %v1512_v33 = vadd.f32 %v1511_v28, %v6248_v63  ;;  %v1767_v34 = vpop.f32.mrb[118].mxu1  ;;  %v1513_v35 = vpop.f32.mrb[119].mxu0 }
 0x1e9   : > { %v3196_v37 = vmax.f32 %v3068_v25, 0.0  ;;  %v2165_v38 = vadd.f32 %v4921_v19, %v1765_v26  ;;  %v1768_v39 = vadd.f32 %v1767_v34, %v6248_v63  ;;  %v1769_v40 = vpop.f32.mrb[119].mxu1  ;;  %v4929_v34 = vunpack.c.l.bf16 %v5633_v22 }
 0x1ea   : > { %v5394_v42 = vpack.c.bf16 %v3132_v31, %v3131_v30  ;;  %v2873_v43 = vmul.f32 %v6252_v4, %v2101_v32  ;;  %v2102_v44 = vadd.f32 %v4794_v24, %v1512_v33 }
 0x1eb   : > { %v5554_v46 = vpack.c.bf16 %v3196_v37, %v3195_v36  ;;  %v2937_v47 = vmul.f32 %v6252_v4, %v2165_v38  ;;  %v2166_v48 = vadd.f32 %v4922_v29, %v1768_v39  ;;  %v4801_v29 = vunpack.c.l.bf16 %v5601_v18 }
 0x1ec   : > { %5724 = vst [vmem:[%s6302_s6 + $0xe0] sm:$0xff] %v5394_v42   ;;  %v3005_v49 = vadd.f32 %v6257_v13, %v2873_v43  ;;  %v5079_v50 = vpack.c.bf16 %v2102_v44, %v2101_v32  ;;  %v2874_v51 = vmul.f32 %v6252_v4, %v2102_v44  ;;  %v4802_v39 = vunpack.c.h.bf16 %v5601_v18 }
 0x1ed   : > { %5756 = vst [vmem:[%s6302_s6 + $0x1e0] sm:$0xff] %v5554_v46   ;;  %v3069_v53 = vadd.f32 %v6257_v13, %v2937_v47  ;;  %v5239_v54 = vpack.c.bf16 %v2166_v48, %v2165_v38  ;;  %v2938_v55 = vmul.f32 %v6252_v4, %v2166_v48  ;;  %v1516_v56 = vpop.f32.mrb[120].mxu0  ;;  %v4930_v44 = vunpack.c.h.bf16 %v5633_v22 }
 0x1ee   : > { %5662 = vst [vmem:[%s6272_s27 + $0xe8] sm:$0xff] %v5079_v50   ;;  %v3006_v58 = vadd.f32 %v6257_v13, %v2874_v51  ;;  %v1517_v59 = vadd.f32 %v1516_v56, %v6248_v63  ;;  %v1772_v60 = vpop.f32.mrb[120].mxu1  ;;  %v1518_v61 = vpop.f32.mrb[121].mxu0  ;;  %v3133_v6 = vmax.f32 %v3005_v49, 0.0 }
 0x1ef   : > { %5694 = vst [vmem:[%s6272_s27 + $0x1e8] sm:$0xff] %v5239_v54   ;;  %v3070_v0 = vadd.f32 %v6257_v13, %v2938_v55  ;;  %v1773_v1 = vadd.f32 %v1772_v60, %v6248_v63  ;;  %v1774_v2 = vpop.f32.mrb[121].mxu1  ;;  %v1519_v3 = vpop.f32.mrb[122].mxu0  ;;  %v3197_v12 = vmax.f32 %v3069_v53, 0.0 }
 0x1f0   : > { %v3134_v7 = vmax.f32 %v3006_v58, 0.0  ;;  %v2103_v8 = vadd.f32 %v4797_v52, %v1517_v59  ;;  %v1520_v9 = vadd.f32 %v1519_v3, %v6248_v63  ;;  %v1775_v10 = vpop.f32.mrb[122].mxu1  ;;  %v1521_v11 = vpop.f32.mrb[123].mxu0 }
 0x1f1   : > { %v3198_v14 = vmax.f32 %v3070_v0, 0.0  ;;  %v2167_v15 = vadd.f32 %v4925_v57, %v1773_v1  ;;  %v1776_v16 = vadd.f32 %v1775_v10, %v6248_v63  ;;  %v1777_v17 = vpop.f32.mrb[123].mxu1 }
 0x1f2   : > { %v5399_v19 = vpack.c.bf16 %v3134_v7, %v3133_v6  ;;  %v2875_v20 = vmul.f32 %v6252_v4, %v2103_v8  ;;  %v2104_v21 = vadd.f32 %v4798_v62, %v1520_v9 }
 0x1f3   : > { %v5559_v23 = vpack.c.bf16 %v3198_v14, %v3197_v12  ;;  %v2939_v24 = vmul.f32 %v6252_v4, %v2167_v15  ;;  %v2168_v25 = vadd.f32 %v4926_v5, %v1776_v16 }
 0x1f4   : > { %5725 = vst [vmem:[%s6302_s6 + $0xe8] sm:$0xff] %v5399_v19   ;;  %v3007_v26 = vadd.f32 %v6257_v13, %v2875_v20  ;;  %v5084_v27 = vpack.c.bf16 %v2104_v21, %v2103_v8  ;;  %v2876_v28 = vmul.f32 %v6252_v4, %v2104_v21 }
 0x1f5   : > { %5757 = vst [vmem:[%s6302_s6 + $0x1e8] sm:$0xff] %v5559_v23   ;;  %v3071_v30 = vadd.f32 %v6257_v13, %v2939_v24  ;;  %v5244_v31 = vpack.c.bf16 %v2168_v25, %v2167_v15  ;;  %v2940_v32 = vmul.f32 %v6252_v4, %v2168_v25  ;;  %v1524_v33 = vpop.f32.mrb[124].mxu0 }
 0x1f6   : > { %5663 = vst [vmem:[%s6272_s27 + $0xf0] sm:$0xff] %v5084_v27   ;;  %v3008_v35 = vadd.f32 %v6257_v13, %v2876_v28  ;;  %v1525_v36 = vadd.f32 %v1524_v33, %v6248_v63  ;;  %v1780_v37 = vpop.f32.mrb[124].mxu1  ;;  %v1526_v38 = vpop.f32.mrb[125].mxu0  ;;  %v3135_v45 = vmax.f32 %v3007_v26, 0.0 }
 0x1f7   : > { %5695 = vst [vmem:[%s6272_s27 + $0x1f0] sm:$0xff] %v5244_v31   ;;  %v3072_v40 = vadd.f32 %v6257_v13, %v2940_v32  ;;  %v1781_v41 = vadd.f32 %v1780_v37, %v6248_v63  ;;  %v1782_v42 = vpop.f32.mrb[125].mxu1  ;;  %v1527_v43 = vpop.f32.mrb[126].mxu0  ;;  %v3199_v51 = vmax.f32 %v3071_v30, 0.0 }
 0x1f8   : > { %v3136_v46 = vmax.f32 %v3008_v35, 0.0  ;;  %v2105_v47 = vadd.f32 %v4801_v29, %v1525_v36  ;;  %v1528_v48 = vadd.f32 %v1527_v43, %v6248_v63  ;;  %v1783_v49 = vpop.f32.mrb[126].mxu1  ;;  %v1529_v50 = vpop.f32.mrb[127].mxu0 }
 0x1f9   : > { %v3200_v52 = vmax.f32 %v3072_v40, 0.0  ;;  %v2169_v53 = vadd.f32 %v4929_v34, %v1781_v41  ;;  %v1784_v54 = vadd.f32 %v1783_v49, %v6248_v63  ;;  %v1785_v55 = vpop.f32.mrb[127].mxu1 }
 0x1fa   : > { %v5404_v56 = vpack.c.bf16 %v3136_v46, %v3135_v45  ;;  %v2877_v57 = vmul.f32 %v6252_v4, %v2105_v47  ;;  %v2106_v58 = vadd.f32 %v4802_v39, %v1528_v48 }
 0x1fb   : > { %v5564_v59 = vpack.c.bf16 %v3200_v52, %v3199_v51  ;;  %v2941_v60 = vmul.f32 %v6252_v4, %v2169_v53  ;;  %v2170_v61 = vadd.f32 %v4930_v44, %v1784_v54 }
 0x1fc   : > { %5726 = vst [vmem:[%s6302_s6 + $0xf0] sm:$0xff] %v5404_v56   ;;  %v3009_v62 = vadd.f32 %v6257_v13, %v2877_v57  ;;  %v5089_v0 = vpack.c.bf16 %v2106_v58, %v2105_v47  ;;  %v2878_v1 = vmul.f32 %v6252_v4, %v2106_v58 }
 0x1fd   : > { %5758 = vst [vmem:[%s6302_s6 + $0x1f0] sm:$0xff] %v5564_v59   ;;  %v3073_v63 = vadd.f32 %v6257_v13, %v2941_v60  ;;  %v5249_v2 = vpack.c.bf16 %v2170_v61, %v2169_v53  ;;  %v2942_v3 = vmul.f32 %v6252_v4, %v2170_v61 }
 0x1fe   : > { %5664 = vst [vmem:[%s6272_s27 + $0xf8] sm:$0xff] %v5089_v0   ;;  %v3010_v5 = vadd.f32 %v6257_v13, %v2878_v1  ;;  %v3137_v7 = vmax.f32 %v3009_v62, 0.0 }
 0x1ff   : > { %5696 = vst [vmem:[%s6272_s27 + $0x1f8] sm:$0xff] %v5249_v2   ;;  %v3074_v6 = vadd.f32 %v6257_v13, %v2942_v3  ;;  %v3201_v9 = vmax.f32 %v3073_v63, 0.0 }
 0x200   : > { %v3138_v8 = vmax.f32 %v3010_v5, 0.0 }
 0x201   : > { %v3202_v10 = vmax.f32 %v3074_v6, 0.0 }
 0x202   : > { %v5409_v11 = vpack.c.bf16 %v3138_v8, %v3137_v7 }
 0x203   : > { %v5569_v12 = vpack.c.bf16 %v3202_v10, %v3201_v9 }
 0x204   : > { %5727 = vst [vmem:[%s6302_s6 + $0xf8] sm:$0xff] %v5409_v11  }
 0x205   : > { %5759 = vst [vmem:[%s6302_s6 + $0x1f8] sm:$0xff] %v5569_v12  }
 0x206 PF: > { %s16_s18 = sadd.s32 1, %s5994_s18  }
 0x207   : > { %p13_p4 = scmp.ge.s32.totalorder %s16_s18, 4  }
 0x209   :  { %15 = sbr.rel (!%p13_p4) target bundleno = 1 (0x1), region = 81 }

// kernel: _lambda_.11
= control target key start
LH: loop header
LB: loop body
LE: loop exit
PB: predicated region body
PF: predicated region fallthrough
CT: control target
= control target key end

     0   :  { %s2965_s21 = smov 0   ;;  %s3361_s0 = inlined_call_operand.vmem [shape: bf16[512,288], index: 0, kind: input, shape index: {}]   ;;  %s3362_s1 = inlined_call_operand.vmem [shape: bf16[288,128], index: 1, kind: input, shape index: {}]   ;;  %s3363_s2 = inlined_call_operand.vmem [shape: f32[8,128], index: 2, kind: input, shape index: {}]   ;;  %s3364_s3 = inlined_call_operand.vmem [shape: bf16[512,128], index: 3, kind: input, shape index: {}]   ;;  %s3365_s4 = inlined_call_operand.vmem [shape: bf16[128,128], index: 4, kind: input, shape index: {}]   ;;  %s3366_s5 = inlined_call_operand.vmem [shape: bf16[512,128], index: 5, kind: output, shape index: {0}]   ;;  %s3367_s6 = inlined_call_operand.vmem [shape: bf16[512,128], index: 6, kind: output, shape index: {1}]  }
   0x1 LB: > { %s2066_s22 = sadd.s32 4294967295, %s2928_s21   ;;  %p2070_p0 = scmp.ge.s32.totalorder %s2928_s21, 1  ;;  %s2928_s21 = sphi %s2965_s21, %s17_s21  }
   0x2   : > { %p228_p1 = scmp.lt.s32.totalorder %s2928_s21, 3 }
   0x4   : > { %p229_p2 = pnand %p2070_p0, %p228_p1 }
   0x5   : > { %v2816_v0 = vld [vmem:[%s3362_s1 + $0x40] sm:$0xff] (!%p229_p2)   ;;  %s2071_s25 = sshll.u32 (!%p229_p2), %s2066_s22, 5  ;;  %v2819_v3 = vld [vmem:[%s3362_s1 + $0x48] sm:$0xff] (!%p229_p2)   ;;  %v2822_v6 = vld [vmem:[%s3362_s1 + $0x50] sm:$0xff] (!%p229_p2)   ;;  %vm748_vm0 = vcmask (!%p229_p2), 261120  }
   0x6   : > { %232 = sbr.rel (%p229_p2) target bundleno = 390 (0x186), region = 40  ;;  %v2817_v1 = vld [vmem:[%s3362_s1] sm:$0xff] (!%p229_p2)   ;;  %p270_p3 = scmp.lt.s32.totalorder (!%p229_p2), %s2071_s25, 63  ;;  %2505 = vmatprep.subr.bf16.mxu0 (!%p229_p2), %v2816_v0  ;;  %v2820_v4 = vld [vmem:[%s3362_s1 + $0x8] sm:$0xff] (!%p229_p2)   ;;  %v2824_v7 = vld [vmem:[%s3362_s1 + $0x10] sm:$0xff] (!%p229_p2)  }
   0x7   : > { %v2818_v2 = vld [vmem:[%s3362_s1 + $0x80] sm:$0xff] (!%p229_p2)   ;;  %2506 = vmatpush3.bf16.msra.mxu0 (!%p229_p2), %v2817_v1  ;;  %v2821_v5 = vld [vmem:[%s3362_s1 + $0x88] sm:$0xff] (!%p229_p2)   ;;  %v2826_v10 = vld [vmem:[%s3362_s1 + $0x58] sm:$0xff] (!%p229_p2)  }
   0x8   : > { %2659 = vmatprep.subr.bf16.mxu1 (!%p229_p2), %v2818_v2  ;;  %2507 = vmatprep.subr.bf16.mxu0 (!%p229_p2), %v2819_v3  ;;  %v2827_v11 = vld [vmem:[%s3362_s1 + $0x18] sm:$0xff] (!%p229_p2)   ;;  %v2828_v12 = vld [vmem:[%s3362_s1 + $0x60] sm:$0xff] (!%p229_p2)   ;;  %v2832_v16 = vld [vmem:[%s3362_s1 + $0x68] sm:$0xff] (!%p229_p2)  }
   0x9   : > { %2660 = vmatpush3.bf16.msra.mxu1 (!%p229_p2), %v2818_v2  ;;  %v2830_v14 = vld [vmem:[%s3362_s1 + $0x20] sm:$0xff] (!%p229_p2)   ;;  %v2833_v17 = vld [vmem:[%s3362_s1 + $0x28] sm:$0xff] (!%p229_p2)   ;;  %v2834_v19 = vld [vmem:[%s3362_s1 + $0x70] sm:$0xff] (!%p229_p2)  }
   0xa   : > { %2661 = vmatprep.subr.bf16.mxu1 (!%p229_p2), %v2821_v5  ;;  %v2836_v20 = vld [vmem:[%s3362_s1 + $0x30] sm:$0xff] (!%p229_p2)   ;;  %v2838_v22 = vld [vmem:[%s3362_s1 + $0x78] sm:$0xff] (!%p229_p2)   ;;  %v2845_v26 = vld [vmem:[%s3365_s4] sm:$0xff] (!%p229_p2)  }
   0xb   : > { %2508 = vmatpush3.bf16.msra.mxu0 (!%p229_p2), %v2820_v4  ;;  %v2839_v25 = vld [vmem:[%s3362_s1 + $0x38] sm:$0xff] (!%p229_p2)   ;;  %v2851_v30 = vld [vmem:[%s3365_s4 + $0x8] sm:$0xff] (!%p229_p2)   ;;  %v2857_v32 = vld [vmem:[%s3365_s4 + $0x10] sm:$0xff] (!%p229_p2)  }
   0xc   : > { %2509 = vmatprep.subr.bf16.mxu0 (!%p229_p2), %v2822_v6  ;;  %v2858_v33 = vld [vmem:[%s3365_s4 + $0x18] sm:$0xff] (!%p229_p2)   ;;  %v2864_v38 = vld [vmem:[%s3365_s4 + $0x20] sm:$0xff] (!%p229_p2)   ;;  %v2865_v39 = vld [vmem:[%s3365_s4 + $0x28] sm:$0xff] (!%p229_p2)  }
   0xd   : > { %s3369_s25 = smov (!%p270_p3, %s2071_s25), 63  ;;  %2662 = vmatpush3.bf16.msra.mxu1 %v2821_v5  ;;  %v2871_v43 = vld [vmem:[%s3365_s4 + $0x30] sm:$0xff]   ;;  %v2872_v45 = vld [vmem:[%s3365_s4 + $0x38] sm:$0xff]  }
   0xe   : > { %s2807_s12 = smul.u32 12, %s3369_s25  ;;  %2695 = vmatprep.subr.bf16.mxu1 %v2845_v26  ;;  %s3080_s9 = sshll.u32 %s3369_s25, 2 }
   0xf   : > { %2510 = vmatpush3.bf16.msra.mxu0 %v2824_v7  ;;  %s3094_s13 = scalar_lea.vmem %s3364_s3, %s3080_s9  ;;  %s3182_s20 = scalar_lea.vmem %s3366_s5, %s3080_s9 }
  0x10   : > { %s3000_s17 = scalar_lea.vmem %s3361_s0, %s2807_s12  ;;  %2511 = vmatprep.subr.bf16.mxu0 %v2826_v10  ;;  %v2876_v53 = vld [vmem:[%s3094_s13] sm:$0xff]   ;;  %v2877_v56 = vld [vmem:[%s3094_s13 + $0x8] sm:$0xff]   ;;  %v2881_v57 = vld [vmem:[%s3094_s13 + $0x10] sm:$0xff]   ;;  %s3207_s24 = scalar_lea.vmem %s3367_s6, %s3080_s9 }
  0x11   : > { %v2823_v8 = vld [vmem:[%s3000_s17 + $0x8] ss:$12 sps:$4 sm:$0xff]   ;;  %v2825_v9 = vld [vmem:[%s3000_s17 + $0x20] ss:$12 sps:$4 sm:$0xff]   ;;  %v2829_v13 = vld [vmem:[%s3000_s17 + $0x38] ss:$12 sps:$4 sm:$0xff]  }
  0x12   : > { %2663 = vmatprep.mubr.msk.bf16.mxu1 %vm748_vm0, %v2823_v8  ;;  %v2831_v15 = vld [vmem:[%s3000_s17 + $0x50] ss:$12 sps:$4 sm:$0xff]   ;;  %v2835_v18 = vld [vmem:[%s3000_s17 + $0x68] ss:$12 sps:$4 sm:$0xff]   ;;  %v2837_v21 = vld [vmem:[%s3000_s17 + $0x80] ss:$12 sps:$4 sm:$0xff]  }
  0x13   : > { %2664 = vmatmul.mubr.msk.bf16.vlgmr.msra.gmra.mrb[0].mxu1 %vm748_vm0, %v2825_v9  ;;  %2512 = vmatpush3.bf16.msra.mxu0 %v2827_v11  ;;  %v2842_v23 = vld [vmem:[%s3000_s17 + $0x4] ss:$12 sps:$4 sm:$0xff]   ;;  %v2840_v27 = vld [vmem:[%s3000_s17] ss:$12 sps:$4 sm:$0xff]   ;;  %v2846_v29 = vld [vmem:[%s3000_s17 + $0x1c] ss:$12 sps:$4 sm:$0xff]  }
  0x14   : > { %2667 = vmatprep.mubr.msk.bf16.mxu1 %vm748_vm0, %v2829_v13  ;;  %2513 = vmatprep.subr.bf16.mxu0 %v2828_v12  ;;  %v2843_v24 = vld [vmem:[%s3000_s17 + $0x98] ss:$12 sps:$4 sm:$0xff]   ;;  %v2844_v28 = vld [vmem:[%s3000_s17 + $0xb0] ss:$12 sps:$4 sm:$0xff]   ;;  %v2849_v31 = vld [vmem:[%s3000_s17 + $0xc8] ss:$12 sps:$4 sm:$0xff]  }
  0x15   : > { %829 = vmatprep.mubr.bf16.mxu0 %v2842_v23  ;;  %2696 = vmatpush3.bf16.msra.mxu1 %v2845_v26  ;;  %v2848_v34 = vld [vmem:[%s3000_s17 + $0x18] ss:$12 sps:$4 sm:$0xff]   ;;  %v2852_v35 = vld [vmem:[%s3000_s17 + $0x34] ss:$12 sps:$4 sm:$0xff]   ;;  %v2854_v40 = vld [vmem:[%s3000_s17 + $0x30] ss:$12 sps:$4 sm:$0xff]  }
  0x16   : > { %2697 = vmatprep.subr.bf16.mxu1 %v2851_v30  ;;  %v2850_v36 = vld [vmem:[%s3000_s17 + $0xe0] ss:$12 sps:$4 sm:$0xff]   ;;  %v2855_v37 = vld [vmem:[%s3000_s17 + $0xf8] ss:$12 sps:$4 sm:$0xff]   ;;  %v2856_v41 = vld [vmem:[%s3000_s17 + $0x110] ss:$12 sps:$4 sm:$0xff]  }
  0x17   : > { %2514 = vmatpush3.bf16.msra.mxu0 %v2830_v14  ;;  %v2859_v42 = vld [vmem:[%s3000_s17 + $0x4c] ss:$12 sps:$4 sm:$0xff]   ;;  %v2862_v44 = vld [vmem:[%s3000_s17 + $0x128] ss:$12 sps:$4 sm:$0xff]   ;;  %v2866_v47 = vld [vmem:[%s3000_s17 + $0x64] ss:$12 sps:$4 sm:$0xff]  }
  0x18   : > { %2515 = vmatprep.subr.bf16.mxu0 %v2832_v16  ;;  %v2861_v46 = vld [vmem:[%s3000_s17 + $0x48] ss:$12 sps:$4 sm:$0xff]   ;;  %v2863_v48 = vld [vmem:[%s3000_s17 + $0x140] ss:$12 sps:$4 sm:$0xff]   ;;  %v2869_v49 = vld [vmem:[%s3000_s17 + $0x158] ss:$12 sps:$4 sm:$0xff]  }
  0x19   : > { %2698 = vmatpush3.bf16.msra.mxu1 %v2851_v30  ;;  %v2868_v50 = vld [vmem:[%s3000_s17 + $0x60] ss:$12 sps:$4 sm:$0xff]   ;;  %v2873_v51 = vld [vmem:[%s3000_s17 + $0x7c] ss:$12 sps:$4 sm:$0xff]   ;;  %v2875_v54 = vld [vmem:[%s3000_s17 + $0x78] ss:$12 sps:$4 sm:$0xff]  }
  0x1a   : > { %2699 = vmatprep.subr.bf16.mxu1 %v2857_v32  ;;  %v2870_v52 = vld [vmem:[%s3000_s17 + $0x170] ss:$12 sps:$4 sm:$0xff]   ;;  %v2878_v55 = vld [vmem:[%s3000_s17 + $0x94] ss:$12 sps:$4 sm:$0xff]   ;;  %v2883_v59 = vld [vmem:[%s3000_s17 + $0xac] ss:$12 sps:$4 sm:$0xff]  }
  0x1b   : > { %2668 = vmatmul.mubr.msk.bf16.gmra.mrb[4].mxu1 %vm748_vm0, %v2831_v15  ;;  %2516 = vmatpush3.bf16.msra.mxu0 %v2833_v17  ;;  %v2880_v58 = vld [vmem:[%s3000_s17 + $0x90] ss:$12 sps:$4 sm:$0xff]   ;;  %v2886_v61 = vld [vmem:[%s3094_s13 + $0x20] sm:$0xff]   ;;  %v2885_v62 = vld [vmem:[%s3000_s17 + $0xa8] ss:$12 sps:$4 sm:$0xff]  }
  0x1c   : > { %2671 = vmatprep.mubr.msk.bf16.mxu1 %vm748_vm0, %v2835_v18  ;;  %2517 = vmatprep.subr.bf16.mxu0 %v2834_v19  ;;  %v2882_v60 = vld [vmem:[%s3094_s13 + $0x18] sm:$0xff]   ;;  %v2888_v63 = vld [vmem:[%s3000_s17 + $0xc4] ss:$12 sps:$4 sm:$0xff]   ;;  %v2887_v0 = vld [vmem:[%s3094_s13 + $0x28] sm:$0xff]  }
  0x1d   : > { %2700 = vmatpush3.bf16.msra.mxu1 %v2857_v32  ;;  %v2891_v1 = vld [vmem:[%s3094_s13 + $0x30] sm:$0xff]   ;;  %v2890_v2 = vld [vmem:[%s3000_s17 + $0xc0] ss:$12 sps:$4 sm:$0xff]   ;;  %v2893_v3 = vld [vmem:[%s3000_s17 + $0xdc] ss:$12 sps:$4 sm:$0xff]  }
  0x1e   : > { %2701 = vmatprep.subr.bf16.mxu1 %v2858_v33  ;;  %v2892_v4 = vld [vmem:[%s3094_s13 + $0x38] sm:$0xff]   ;;  %v2896_v5 = vld [vmem:[%s3094_s13 + $0x40] sm:$0xff]   ;;  %v2897_v8 = vld [vmem:[%s3094_s13 + $0x48] sm:$0xff]  }
  0x1f   : > { %2518 = vmatpush3.bf16.msra.mxu0 %v2836_v20  ;;  %v2895_v6 = vld [vmem:[%s3000_s17 + $0xd8] ss:$12 sps:$4 sm:$0xff]   ;;  %v2898_v7 = vld [vmem:[%s3000_s17 + $0xf4] ss:$12 sps:$4 sm:$0xff]   ;;  %v2900_v10 = vld [vmem:[%s3000_s17 + $0xf0] ss:$12 sps:$4 sm:$0xff]  }
  0x20   : > { %2519 = vmatprep.subr.bf16.mxu0 %v2838_v22  ;;  %v2901_v9 = vld [vmem:[%s3094_s13 + $0x50] sm:$0xff]   ;;  %v2903_v11 = vld [vmem:[%s3000_s17 + $0x10c] ss:$12 sps:$4 sm:$0xff]   ;;  %v2906_v13 = vld [vmem:[%s3094_s13 + $0x60] sm:$0xff]  }
  0x21   : > { %2702 = vmatpush3.bf16.msra.mxu1 %v2858_v33  ;;  %v2902_v12 = vld [vmem:[%s3094_s13 + $0x58] sm:$0xff]   ;;  %v2905_v14 = vld [vmem:[%s3000_s17 + $0x108] ss:$12 sps:$4 sm:$0xff]   ;;  %v2908_v15 = vld [vmem:[%s3000_s17 + $0x124] ss:$12 sps:$4 sm:$0xff]  }
  0x22   : > { %2703 = vmatprep.subr.bf16.mxu1 %v2864_v38  ;;  %v2907_v16 = vld [vmem:[%s3094_s13 + $0x68] sm:$0xff]   ;;  %v2911_v17 = vld [vmem:[%s3094_s13 + $0x70] sm:$0xff]   ;;  %v2912_v20 = vld [vmem:[%s3094_s13 + $0x78] sm:$0xff]  }
  0x23   : > { %2672 = vmatmul.mubr.msk.bf16.gmra.mrb[8].mxu1 %vm748_vm0, %v2837_v21  ;;  %2520 = vmatpush3.bf16.msra.mxu0 %v2839_v25  ;;  %v2910_v18 = vld [vmem:[%s3000_s17 + $0x120] ss:$12 sps:$4 sm:$0xff]   ;;  %v2913_v19 = vld [vmem:[%s3000_s17 + $0x13c] ss:$12 sps:$4 sm:$0xff]   ;;  %v2915_v21 = vld [vmem:[%s3000_s17 + $0x138] ss:$12 sps:$4 sm:$0xff]  }
  0x24   : > { %2675 = vmatprep.mubr.msk.bf16.mxu1 %vm748_vm0, %v2843_v24  ;;  %v2916_v22 = vld [vmem:[%s3000_s17 + $0x154] ss:$12 sps:$4 sm:$0xff]   ;;  %v2918_v23 = vld [vmem:[%s3000_s17 + $0x150] ss:$12 sps:$4 sm:$0xff]   ;;  %v2919_v24 = vld [vmem:[%s3000_s17 + $0x16c] ss:$12 sps:$4 sm:$0xff]  }
  0x25   : > { %2704 = vmatpush3.bf16.msra.mxu1 %v2864_v38  ;;  %v2921_v25 = vld [vmem:[%s3000_s17 + $0x168] ss:$12 sps:$4 sm:$0xff]  }
  0x26   : > { %830 = vmatmul.mubr.bf16.vlgmr.msra.gmra.mrb[0].mxu0 %v2840_v27  ;;  %2705 = vmatprep.subr.bf16.mxu1 %v2865_v39 }
  0x27   : > { %837 = vmatprep.mubr.bf16.mxu0 %v2846_v29 }
  0x29   : > { %2706 = vmatpush3.bf16.msra.mxu1 %v2865_v39 }
  0x2a   : > { %2707 = vmatprep.subr.bf16.mxu1 %v2871_v43 }
  0x2b   : > { %2676 = vmatmul.mubr.msk.bf16.gmra.mrb[12].mxu1 %vm748_vm0, %v2844_v28 }
  0x2c   : > { %2679 = vmatprep.mubr.msk.bf16.mxu1 %vm748_vm0, %v2849_v31 }
  0x2d   : > { %2708 = vmatpush3.bf16.msra.mxu1 %v2871_v43 }
  0x2e   : > { %838 = vmatmul.mubr.bf16.gmra.mrb[4].mxu0 %v2848_v34  ;;  %2709 = vmatprep.subr.bf16.mxu1 %v2872_v45 }
  0x2f   : > { %845 = vmatprep.mubr.bf16.mxu0 %v2852_v35 }
  0x31   : > { %2710 = vmatpush3.bf16.msra.mxu1 %v2872_v45 }
  0x33   : > { %2680 = vmatmul.mubr.msk.bf16.gmra.mrb[16].mxu1 %vm748_vm0, %v2850_v36 }
  0x34   : > { %2683 = vmatprep.mubr.msk.bf16.mxu1 %vm748_vm0, %v2855_v37 }
  0x36   : > { %846 = vmatmul.mubr.bf16.gmra.mrb[8].mxu0 %v2854_v40 }
  0x37   : > { %853 = vmatprep.mubr.bf16.mxu0 %v2859_v42 }
  0x3b   : > { %2684 = vmatmul.mubr.msk.bf16.gmra.mrb[20].mxu1 %vm748_vm0, %v2856_v41 }
  0x3c   : > { %2687 = vmatprep.mubr.msk.bf16.mxu1 %vm748_vm0, %v2862_v44 }
  0x3e   : > { %854 = vmatmul.mubr.bf16.gmra.mrb[12].mxu0 %v2861_v46 }
  0x3f   : > { %861 = vmatprep.mubr.bf16.mxu0 %v2866_v47 }
  0x43   : > { %2688 = vmatmul.mubr.msk.bf16.gmra.mrb[24].mxu1 %vm748_vm0, %v2863_v48  ;;  %v396_v48 = vlaneseq }
  0x44   : > { %2691 = vmatprep.mubr.msk.bf16.mxu1 %vm748_vm0, %v2869_v49 }
  0x46   : > { %862 = vmatmul.mubr.bf16.gmra.mrb[16].mxu0 %v2868_v50 }
  0x47   : > { %869 = vmatprep.mubr.bf16.mxu0 %v2873_v51  ;;  %v397_v51 = vshrl.u32 %v396_v48, 7 }
  0x4b   : > { %2692 = vmatmul.mubr.msk.bf16.gmra.mrb[28].mxu1 %vm748_vm0, %v2870_v52 }
  0x4c   : > { %2711 = vmatprep.mubr.bf16.mxu1 %v2876_v53 }
  0x4e   : > { %870 = vmatmul.mubr.bf16.gmra.mrb[20].mxu0 %v2875_v54 }
  0x4f   : > { %877 = vmatprep.mubr.bf16.mxu0 %v2878_v55 }
  0x53   : > { %2712 = vmatmul.mubr.bf16.vlgmr.msra.gmra.mrb[0].mxu1 %v2877_v56  ;;  %v398_v56 = vsub.s32 0, %v397_v51 }
  0x54   : > { %2715 = vmatprep.mubr.bf16.mxu1 %v2881_v57 }
  0x56   : > { %878 = vmatmul.mubr.bf16.gmra.mrb[24].mxu0 %v2880_v58  ;;  %v295_v58 = vld [vmem:[%s3363_s2] sm:$0xff] }
  0x57   : > { %885 = vmatprep.mubr.bf16.mxu0 %v2883_v59 }
  0x5b   : > { %2716 = vmatmul.mubr.bf16.gmra.mrb[4].mxu1 %v2882_v60  ;;  %v1506_v60 = vsub.s32 3, %v397_v51 }
  0x5c   : > { %2719 = vmatprep.mubr.bf16.mxu1 %v2886_v61  ;;  %v3157_v61 = vrot.slane %v295_v58, %v398_v56 }
  0x5e   : > { %886 = vmatmul.mubr.bf16.gmra.mrb[28].mxu0 %v2885_v62  ;;  %v1702_v62 = vsub.s32 1, %v397_v51 }
  0x5f   : > { %893 = vmatprep.mubr.bf16.mxu0 %v2888_v63 }
  0x63   : > { %2720 = vmatmul.mubr.bf16.gmra.mrb[8].mxu1 %v2887_v0 }
  0x64   : > { %2723 = vmatprep.mubr.bf16.mxu1 %v2891_v1 }
  0x66   : > { %894 = vmatmul.mubr.bf16.gmra.mrb[32].mxu0 %v2890_v2  ;;  %v3160_v2 = vrot.slane %v295_v58, %v1506_v60 }
  0x67   : > { %901 = vmatprep.mubr.bf16.mxu0 %v2893_v3  ;;  %v1738_v3 = vsub.s32 2, %v397_v51 }
  0x6b   : > { %2724 = vmatmul.mubr.bf16.gmra.mrb[12].mxu1 %v2892_v4 }
  0x6c   : > { %2727 = vmatprep.mubr.bf16.mxu1 %v2896_v5 }
  0x6e   : > { %902 = vmatmul.mubr.bf16.gmra.mrb[36].mxu0 %v2895_v6 }
  0x6f   : > { %909 = vmatprep.mubr.bf16.mxu0 %v2898_v7 }
  0x73   : > { %2728 = vmatmul.mubr.bf16.gmra.mrb[16].mxu1 %v2897_v8 }
  0x74   : > { %2731 = vmatprep.mubr.bf16.mxu1 %v2901_v9  ;;  %v3165_v9 = vrot.slane %v295_v58, %v1702_v62 }
  0x76   : > { %910 = vmatmul.mubr.bf16.gmra.mrb[40].mxu0 %v2900_v10 }
  0x77   : > { %917 = vmatprep.mubr.bf16.mxu0 %v2903_v11 }
  0x7b   : > { %2732 = vmatmul.mubr.bf16.gmra.mrb[20].mxu1 %v2902_v12 }
  0x7c   : > { %2735 = vmatprep.mubr.bf16.mxu1 %v2906_v13 }
  0x7e   : > { %918 = vmatmul.mubr.bf16.gmra.mrb[44].mxu0 %v2905_v14 }
  0x7f   : > { %925 = vmatprep.mubr.bf16.mxu0 %v2908_v15 }
  0x83   : > { %2736 = vmatmul.mubr.bf16.gmra.mrb[24].mxu1 %v2907_v16 }
  0x84   : > { %2739 = vmatprep.mubr.bf16.mxu1 %v2911_v17 }
  0x86   : > { %926 = vmatmul.mubr.bf16.gmra.mrb[48].mxu0 %v2910_v18  ;;  %v3172_v18 = vrot.slane %v295_v58, %v1738_v3 }
  0x87   : > { %933 = vmatprep.mubr.bf16.mxu0 %v2913_v19 }
  0x8b   : > { %2740 = vmatmul.mubr.bf16.gmra.mrb[28].mxu1 %v2912_v20 }
  0x8e   : > { %934 = vmatmul.mubr.bf16.gmra.mrb[52].mxu0 %v2915_v21 }
  0x8f   : > { %941 = vmatprep.mubr.bf16.mxu0 %v2916_v22 }
  0x96   : > { %942 = vmatmul.mubr.bf16.gmra.mrb[56].mxu0 %v2918_v23 }
  0x97   : > { %949 = vmatprep.mubr.bf16.mxu0 %v2919_v24 }
  0x9e   : > { %950 = vmatmul.mubr.bf16.gmra.mrb[60].mxu0 %v2921_v25 }
  0xf9   : > { %v2521_v26 = vpop.f32.mrb[0].mxu0 }
  0xfa   : > { %v2522_v27 = vpop.f32.mrb[1].mxu0 }
  0xfb   : > { %v2523_v28 = vadd.f32 %v2522_v27, %v2521_v26  ;;  %v2524_v29 = vpop.f32.mrb[2].mxu0 }
  0xfc   : > { %v2525_v30 = vpop.f32.mrb[3].mxu0 }
  0xfd   : > { %v2526_v31 = vadd.f32 %v2525_v30, %v2524_v29  ;;  %v832_v7 = vadd.f32 %v2523_v28, %v3157_v61 }
  0xff   : > { %v835_v16 = vadd.f32 %v2526_v31, %v3157_v61 }
 0x101   : > { %v2527_v32 = vpop.f32.mrb[4].mxu0 }
 0x102   : > { %v2528_v33 = vpop.f32.mrb[5].mxu0 }
 0x103   : > { %v2529_v34 = vadd.f32 %v2528_v33, %v2527_v32  ;;  %v2530_v35 = vpop.f32.mrb[6].mxu0 }
 0x104   : > { %v2531_v36 = vpop.f32.mrb[7].mxu0 }
 0x105   : > { %v2532_v37 = vadd.f32 %v2531_v36, %v2530_v35  ;;  %v840_v1 = vadd.f32 %v2529_v34, %v3157_v61 }
 0x107   : > { %v843_v12 = vadd.f32 %v2532_v37, %v3157_v61 }
 0x109   : > { %v2533_v38 = vpop.f32.mrb[8].mxu0 }
 0x10a   : > { %v2534_v39 = vpop.f32.mrb[9].mxu0 }
 0x10b   : > { %v2535_v40 = vadd.f32 %v2534_v39, %v2533_v38  ;;  %v2536_v41 = vpop.f32.mrb[10].mxu0 }
 0x10c   : > { %v2537_v42 = vpop.f32.mrb[11].mxu0 }
 0x10d   : > { %v3148_v43 = vadd.f32 %v2537_v42, %v2536_v41  ;;  %v848_v28 = vadd.f32 %v2535_v40, %v3157_v61 }
 0x10f   : > { %v851_v51 = vadd.f32 %v3148_v43, %v3157_v61 }
 0x111   : > { %v2539_v44 = vpop.f32.mrb[12].mxu0 }
 0x112   : > { %v2540_v45 = vpop.f32.mrb[13].mxu0 }
 0x113   : > { %v2541_v46 = vadd.f32 %v2540_v45, %v2539_v44  ;;  %v2542_v47 = vpop.f32.mrb[14].mxu0 }
 0x114   : > { %v2543_v49 = vpop.f32.mrb[15].mxu0 }
 0x115   : > { %v2544_v50 = vadd.f32 %v2543_v49, %v2542_v47  ;;  %v856_v33 = vadd.f32 %v2541_v46, %v3157_v61 }
 0x117   : > { %v859_v45 = vadd.f32 %v2544_v50, %v3157_v61 }
 0x119   : > { %v2545_v52 = vpop.f32.mrb[16].mxu0 }
 0x11a   : > { %v2546_v53 = vpop.f32.mrb[17].mxu0 }
 0x11b   : > { %v3150_v54 = vadd.f32 %v2546_v53, %v2545_v52  ;;  %v2548_v55 = vpop.f32.mrb[18].mxu0 }
 0x11c   : > { %v2549_v57 = vpop.f32.mrb[19].mxu0 }
 0x11d   : > { %v3155_v59 = vadd.f32 %v2549_v57, %v2548_v55 }
 0x121   : > { %v2551_v63 = vpop.f32.mrb[20].mxu0 }
 0x122   : > { %v2552_v0 = vpop.f32.mrb[21].mxu0 }
 0x123   : > { %v3162_v4 = vadd.f32 %v2552_v0, %v2551_v63  ;;  %v2554_v6 = vpop.f32.mrb[22].mxu0 }
 0x124   : > { %v2555_v11 = vpop.f32.mrb[23].mxu0 }
 0x125   : > { %v3168_v14 = vadd.f32 %v2555_v11, %v2554_v6 }
 0x126   : > { %v2713_v5 = vpop.f32.mrb[0].mxu1 }
 0x127   : > { %v2743_v8 = vadd.f32 %v2713_v5, %v840_v1  ;;  %v1345_v10 = vpop.f32.mrb[1].mxu1 }
 0x128   : > { %v2744_v13 = vadd.f32 %v1345_v10, %v832_v7  ;;  %v2714_v15 = vpop.f32.mrb[2].mxu1  ;;  %v864_v7 = vadd.f32 %v3150_v54, %v3157_v61 }
 0x129   : > { %v1510_v17 = vadd.f32 %v2743_v8, %v3160_v2  ;;  %v2745_v19 = vadd.f32 %v2714_v15, %v843_v12  ;;  %v1348_v20 = vpop.f32.mrb[3].mxu1  ;;  %v2557_v27 = vpop.f32.mrb[24].mxu0 }
 0x12a   : > { %v1508_v21 = vadd.f32 %v2744_v13, %v3160_v2  ;;  %v2746_v22 = vadd.f32 %v1348_v20, %v835_v16  ;;  %v2558_v32 = vpop.f32.mrb[25].mxu0  ;;  %v872_v13 = vadd.f32 %v3162_v4, %v3157_v61 }
 0x12b   : > { %v1706_v23 = vmul.f32 %v3165_v9, %v1510_v17  ;;  %v1511_v24 = vadd.f32 %v2745_v19, %v3160_v2  ;;  %v3191_v37 = vadd.f32 %v2558_v32, %v2557_v27  ;;  %v2560_v39 = vpop.f32.mrb[26].mxu0 }
 0x12c   : > { %v1704_v25 = vmul.f32 %v3165_v9, %v1508_v21  ;;  %v1509_v26 = vadd.f32 %v2746_v22, %v3160_v2  ;;  %v2561_v44 = vpop.f32.mrb[27].mxu0 }
 0x12d   : > { %v1742_v29 = vadd.f32 %v3172_v18, %v1706_v23  ;;  %v2323_v30 = vpack.c.bf16 %v1511_v24, %v1510_v17  ;;  %v1707_v31 = vmul.f32 %v3165_v9, %v1511_v24  ;;  %v3198_v48 = vadd.f32 %v2561_v44, %v2560_v39 }
 0x12e   : > { %v1740_v34 = vadd.f32 %v3172_v18, %v1704_v25  ;;  %v2318_v35 = vpack.c.bf16 %v1509_v26, %v1508_v21  ;;  %v1705_v36 = vmul.f32 %v3165_v9, %v1509_v26  ;;  %v2717_v38 = vpop.f32.mrb[4].mxu1  ;;  %v875_v25 = vadd.f32 %v3168_v14, %v3157_v61 }
 0x12f   : > { %2475 = vst [vmem:[%s3182_s20 + $0x8] sm:$0xff] %v2323_v30   ;;  %v1743_v40 = vadd.f32 %v3172_v18, %v1707_v31  ;;  %v2747_v41 = vadd.f32 %v2717_v38, %v856_v33  ;;  %v1361_v42 = vpop.f32.mrb[5].mxu1  ;;  %v1774_v52 = vmax.f32 %v1742_v29, 0.0  ;;  %v867_v29 = vadd.f32 %v3155_v59, %v3157_v61 }
 0x130   : > { %2319 = vst [vmem:[%s3182_s20] sm:$0xff] %v2318_v35   ;;  %v1741_v46 = vadd.f32 %v3172_v18, %v1705_v36  ;;  %v2748_v47 = vadd.f32 %v1361_v42, %v848_v28  ;;  %v2718_v49 = vpop.f32.mrb[6].mxu1  ;;  %v1772_v58 = vmax.f32 %v1740_v34, 0.0 }
 0x131   : > { %v1775_v53 = vmax.f32 %v1743_v40, 0.0  ;;  %v1514_v55 = vadd.f32 %v2747_v41, %v3160_v2  ;;  %v2749_v56 = vadd.f32 %v2718_v49, %v859_v45  ;;  %v1364_v57 = vpop.f32.mrb[7].mxu1  ;;  %v2563_v6 = vpop.f32.mrb[28].mxu0 }
 0x132   : > { %v1773_v50 = vmax.f32 %v1741_v46, 0.0  ;;  %v1512_v60 = vadd.f32 %v2748_v47, %v3160_v2  ;;  %v2750_v62 = vadd.f32 %v1364_v57, %v851_v51  ;;  %v2564_v12 = vpop.f32.mrb[29].mxu0  ;;  %v880_v46 = vadd.f32 %v3191_v37, %v3157_v61 }
 0x133   : > { %v2403_v63 = vpack.c.bf16 %v1775_v53, %v1774_v52  ;;  %v1710_v43 = vmul.f32 %v3165_v9, %v1514_v55  ;;  %v1515_v0 = vadd.f32 %v2749_v56, %v3160_v2  ;;  %v2565_v19 = vadd.f32 %v2564_v12, %v2563_v6  ;;  %v2566_v54 = vpop.f32.mrb[30].mxu0 }
 0x134   : > { %v2398_v1 = vpack.c.bf16 %v1773_v50, %v1772_v58  ;;  %v1708_v3 = vmul.f32 %v3165_v9, %v1512_v60  ;;  %v1513_v5 = vadd.f32 %v2750_v62, %v3160_v2  ;;  %v2567_v24 = vpop.f32.mrb[31].mxu0 }
 0x135   : > { %2490 = vst [vmem:[%s3207_s24 + $0x8] sm:$0xff] %v2403_v63   ;;  %v1746_v8 = vadd.f32 %v3172_v18, %v1710_v43  ;;  %v2333_v10 = vpack.c.bf16 %v1515_v0, %v1514_v55  ;;  %v1711_v11 = vmul.f32 %v3165_v9, %v1515_v0  ;;  %v2568_v27 = vadd.f32 %v2567_v24, %v2566_v54 }
 0x136   : > { %2399 = vst [vmem:[%s3207_s24] sm:$0xff] %v2398_v1   ;;  %v1744_v15 = vadd.f32 %v3172_v18, %v1708_v3  ;;  %v2328_v16 = vpack.c.bf16 %v1513_v5, %v1512_v60  ;;  %v1709_v17 = vmul.f32 %v3165_v9, %v1513_v5  ;;  %v2721_v20 = vpop.f32.mrb[8].mxu1  ;;  %v888_v53 = vadd.f32 %v2565_v19, %v3157_v61 }
 0x137   : > { %2477 = vst [vmem:[%s3182_s20 + $0x18] sm:$0xff] %v2333_v10   ;;  %v1747_v21 = vadd.f32 %v3172_v18, %v1711_v11  ;;  %v2751_v22 = vadd.f32 %v2721_v20, %v872_v13  ;;  %v1377_v23 = vpop.f32.mrb[9].mxu1  ;;  %v1778_v30 = vmax.f32 %v1746_v8, 0.0  ;;  %v891_v0 = vadd.f32 %v2568_v27, %v3157_v61 }
 0x138   : > { %2476 = vst [vmem:[%s3182_s20 + $0x10] sm:$0xff] %v2328_v16   ;;  %v1745_v4 = vadd.f32 %v3172_v18, %v1709_v17  ;;  %v2752_v26 = vadd.f32 %v1377_v23, %v864_v7  ;;  %v2722_v28 = vpop.f32.mrb[10].mxu1  ;;  %v1776_v35 = vmax.f32 %v1744_v15, 0.0  ;;  %v883_v7 = vadd.f32 %v3198_v48, %v3157_v61 }
 0x139   : > { %v1779_v31 = vmax.f32 %v1747_v21, 0.0  ;;  %v1518_v32 = vadd.f32 %v2751_v22, %v3160_v2  ;;  %v2753_v33 = vadd.f32 %v2722_v28, %v875_v25  ;;  %v1380_v34 = vpop.f32.mrb[11].mxu1  ;;  %v2569_v45 = vpop.f32.mrb[32].mxu0 }
 0x13a   : > { %v1777_v36 = vmax.f32 %v1745_v4, 0.0  ;;  %v1516_v14 = vadd.f32 %v2752_v26, %v3160_v2  ;;  %v2754_v38 = vadd.f32 %v1380_v34, %v867_v29  ;;  %v2570_v52 = vpop.f32.mrb[33].mxu0 }
 0x13b   : > { %v2413_v39 = vpack.c.bf16 %v1779_v31, %v1778_v30  ;;  %v1714_v40 = vmul.f32 %v3165_v9, %v1518_v32  ;;  %v1519_v41 = vadd.f32 %v2753_v33, %v3160_v2  ;;  %v2571_v58 = vadd.f32 %v2570_v52, %v2569_v45  ;;  %v2572_v60 = vpop.f32.mrb[34].mxu0 }
 0x13c   : > { %v2408_v42 = vpack.c.bf16 %v1777_v36, %v1776_v35  ;;  %v1712_v59 = vmul.f32 %v3165_v9, %v1516_v14  ;;  %v1517_v44 = vadd.f32 %v2754_v38, %v3160_v2  ;;  %v2573_v43 = vpop.f32.mrb[35].mxu0 }
 0x13d   : > { %2492 = vst [vmem:[%s3207_s24 + $0x18] sm:$0xff] %v2413_v39   ;;  %v1750_v47 = vadd.f32 %v3172_v18, %v1714_v40  ;;  %v2343_v49 = vpack.c.bf16 %v1519_v41, %v1518_v32  ;;  %v1715_v51 = vmul.f32 %v3165_v9, %v1519_v41  ;;  %v2574_v5 = vadd.f32 %v2573_v43, %v2572_v60 }
 0x13e   : > { %2491 = vst [vmem:[%s3207_s24 + $0x10] sm:$0xff] %v2408_v42   ;;  %v1748_v55 = vadd.f32 %v3172_v18, %v1712_v59  ;;  %v2338_v56 = vpack.c.bf16 %v1517_v44, %v1516_v14  ;;  %v1713_v57 = vmul.f32 %v3165_v9, %v1517_v44  ;;  %v2725_v50 = vpop.f32.mrb[12].mxu1  ;;  %v896_v28 = vadd.f32 %v2571_v58, %v3157_v61 }
 0x13f   : > { %2479 = vst [vmem:[%s3182_s20 + $0x28] sm:$0xff] %v2343_v49   ;;  %v1751_v37 = vadd.f32 %v3172_v18, %v1715_v51  ;;  %v2755_v62 = vadd.f32 %v2725_v50, %v888_v53  ;;  %v1393_v63 = vpop.f32.mrb[13].mxu1  ;;  %v1782_v8 = vmax.f32 %v1750_v47, 0.0  ;;  %v899_v42 = vadd.f32 %v2574_v5, %v3157_v61 }
 0x140   : > { %2478 = vst [vmem:[%s3182_s20 + $0x20] sm:$0xff] %v2338_v56   ;;  %v1749_v1 = vadd.f32 %v3172_v18, %v1713_v57  ;;  %v2756_v3 = vadd.f32 %v1393_v63, %v880_v46  ;;  %v2726_v6 = vpop.f32.mrb[14].mxu1  ;;  %v1780_v15 = vmax.f32 %v1748_v55, 0.0 }
 0x141   : > { %v1783_v10 = vmax.f32 %v1751_v37, 0.0  ;;  %v1522_v11 = vadd.f32 %v2755_v62, %v3160_v2  ;;  %v2757_v12 = vadd.f32 %v2726_v6, %v891_v0  ;;  %v1396_v13 = vpop.f32.mrb[15].mxu1  ;;  %v2575_v24 = vpop.f32.mrb[36].mxu0 }
 0x142   : > { %v1781_v16 = vmax.f32 %v1749_v1, 0.0  ;;  %v1520_v17 = vadd.f32 %v2756_v3, %v3160_v2  ;;  %v2758_v19 = vadd.f32 %v1396_v13, %v883_v7  ;;  %v2576_v27 = vpop.f32.mrb[37].mxu0 }
 0x143   : > { %v2423_v20 = vpack.c.bf16 %v1783_v10, %v1782_v8  ;;  %v1718_v54 = vmul.f32 %v3165_v9, %v1522_v11  ;;  %v1523_v21 = vadd.f32 %v2757_v12, %v3160_v2  ;;  %v2577_v32 = vadd.f32 %v2576_v27, %v2575_v24  ;;  %v2578_v34 = vpop.f32.mrb[38].mxu0 }
 0x144   : > { %v2418_v22 = vpack.c.bf16 %v1781_v16, %v1780_v15  ;;  %v1716_v48 = vmul.f32 %v3165_v9, %v1520_v17  ;;  %v1521_v23 = vadd.f32 %v2758_v19, %v3160_v2  ;;  %v2579_v14 = vpop.f32.mrb[39].mxu0 }
 0x145   : > { %2494 = vst [vmem:[%s3207_s24 + $0x28] sm:$0xff] %v2423_v20   ;;  %v1754_v25 = vadd.f32 %v3172_v18, %v1718_v54  ;;  %v2353_v4 = vpack.c.bf16 %v1523_v21, %v1522_v11  ;;  %v1719_v26 = vmul.f32 %v3165_v9, %v1523_v21  ;;  %v904_v39 = vadd.f32 %v2577_v32, %v3157_v61 }
 0x146   : > { %2493 = vst [vmem:[%s3207_s24 + $0x20] sm:$0xff] %v2418_v22   ;;  %v1752_v29 = vadd.f32 %v3172_v18, %v1716_v48  ;;  %v2348_v30 = vpack.c.bf16 %v1521_v23, %v1520_v17  ;;  %v1717_v31 = vmul.f32 %v3165_v9, %v1521_v23  ;;  %v2729_v33 = vpop.f32.mrb[16].mxu1  ;;  %v2580_v46 = vadd.f32 %v2579_v14, %v2578_v34 }
 0x147   : > { %2481 = vst [vmem:[%s3182_s20 + $0x38] sm:$0xff] %v2353_v4   ;;  %v1755_v35 = vadd.f32 %v3172_v18, %v1719_v26  ;;  %v1409_v36 = vpop.f32.mrb[17].mxu1  ;;  %v1786_v59 = vmax.f32 %v1754_v25, 0.0  ;;  %v2759_v51 = vadd.f32 %v2729_v33, %v904_v39 }
 0x148   : > { %2480 = vst [vmem:[%s3182_s20 + $0x30] sm:$0xff] %v2348_v30   ;;  %v1753_v38 = vadd.f32 %v3172_v18, %v1717_v31  ;;  %v2760_v40 = vadd.f32 %v1409_v36, %v896_v28  ;;  %v2730_v41 = vpop.f32.mrb[18].mxu1  ;;  %v1784_v44 = vmax.f32 %v1752_v29, 0.0  ;;  %v907_v56 = vadd.f32 %v2580_v46, %v3157_v61 }
 0x149   : > { %v1787_v45 = vmax.f32 %v1755_v35, 0.0  ;;  %v1412_v47 = vpop.f32.mrb[19].mxu1  ;;  %v1526_v58 = vadd.f32 %v2759_v51, %v3160_v2  ;;  %v2581_v37 = vpop.f32.mrb[40].mxu0 }
 0x14a   : > { %v1785_v49 = vmax.f32 %v1753_v38, 0.0  ;;  %v1524_v52 = vadd.f32 %v2760_v40, %v3160_v2  ;;  %v2762_v53 = vadd.f32 %v1412_v47, %v899_v42  ;;  %v2761_v62 = vadd.f32 %v2730_v41, %v907_v56  ;;  %v2582_v63 = vpop.f32.mrb[41].mxu0 }
 0x14b   : > { %v2433_v55 = vpack.c.bf16 %v1787_v45, %v1786_v59  ;;  %v1722_v43 = vmul.f32 %v3165_v9, %v1526_v58  ;;  %v2584_v6 = vpop.f32.mrb[42].mxu0  ;;  %v2583_v8 = vadd.f32 %v2582_v63, %v2581_v37 }
 0x14c   : > { %v2428_v57 = vpack.c.bf16 %v1785_v49, %v1784_v44  ;;  %v1720_v50 = vmul.f32 %v3165_v9, %v1524_v52  ;;  %v1525_v60 = vadd.f32 %v2762_v53, %v3160_v2  ;;  %v1527_v7 = vadd.f32 %v2761_v62, %v3160_v2  ;;  %v2585_v11 = vpop.f32.mrb[43].mxu0 }
 0x14d   : > { %2496 = vst [vmem:[%s3207_s24 + $0x38] sm:$0xff] %v2433_v55   ;;  %v2586_v13 = vadd.f32 %v2585_v11, %v2584_v6  ;;  %v1758_v16 = vadd.f32 %v3172_v18, %v1722_v43  ;;  %v912_v20 = vadd.f32 %v2583_v8, %v3157_v61 }
 0x14e   : > { %2495 = vst [vmem:[%s3207_s24 + $0x30] sm:$0xff] %v2428_v57   ;;  %v1756_v0 = vadd.f32 %v3172_v18, %v1720_v50  ;;  %v2358_v1 = vpack.c.bf16 %v1525_v60, %v1524_v52  ;;  %v1721_v3 = vmul.f32 %v3165_v9, %v1525_v60  ;;  %v2733_v5 = vpop.f32.mrb[20].mxu1  ;;  %v2363_v17 = vpack.c.bf16 %v1527_v7, %v1526_v58 }
 0x14f   : > { %v1425_v10 = vpop.f32.mrb[21].mxu1  ;;  %v1723_v19 = vmul.f32 %v3165_v9, %v1527_v7  ;;  %v915_v48 = vadd.f32 %v2586_v13, %v3157_v61  ;;  %v1790_v27 = vmax.f32 %v1758_v16, 0.0 }
 0x150   : > { %2482 = vst [vmem:[%s3182_s20 + $0x40] sm:$0xff] %v2358_v1   ;;  %v1757_v12 = vadd.f32 %v3172_v18, %v1721_v3  ;;  %v2734_v15 = vpop.f32.mrb[22].mxu1  ;;  %v1788_v21 = vmax.f32 %v1756_v0, 0.0  ;;  %2483 = vst [vmem:[%s3182_s20 + $0x48] sm:$0xff] %v2363_v17   ;;  %v2764_v24 = vadd.f32 %v1425_v10, %v912_v20 }
 0x151   : > { %v1428_v54 = vpop.f32.mrb[23].mxu1  ;;  %v1759_v23 = vadd.f32 %v3172_v18, %v1723_v19  ;;  %v2587_v26 = vpop.f32.mrb[44].mxu0 }
 0x152   : > { %v1789_v22 = vmax.f32 %v1757_v12, 0.0  ;;  %v2766_v4 = vadd.f32 %v1428_v54, %v915_v48  ;;  %v1528_v29 = vadd.f32 %v2764_v24, %v3160_v2  ;;  %v2588_v30 = vpop.f32.mrb[45].mxu0 }
 0x153   : > { %v1791_v28 = vmax.f32 %v1759_v23, 0.0  ;;  %v2589_v32 = vadd.f32 %v2588_v30, %v2587_v26  ;;  %v2590_v34 = vpop.f32.mrb[46].mxu0 }
 0x154   : > { %v2438_v25 = vpack.c.bf16 %v1789_v22, %v1788_v21  ;;  %v1529_v31 = vadd.f32 %v2766_v4, %v3160_v2  ;;  %v1724_v36 = vmul.f32 %v3165_v9, %v1528_v29  ;;  %v2591_v38 = vpop.f32.mrb[47].mxu0 }
 0x155   : > { %v2443_v35 = vpack.c.bf16 %v1791_v28, %v1790_v27  ;;  %v920_v41 = vadd.f32 %v2589_v32, %v3157_v61  ;;  %v2592_v42 = vadd.f32 %v2591_v38, %v2590_v34 }
 0x156   : > { %2497 = vst [vmem:[%s3207_s24 + $0x40] sm:$0xff] %v2438_v25   ;;  %v2737_v33 = vpop.f32.mrb[24].mxu1  ;;  %v2368_v39 = vpack.c.bf16 %v1529_v31, %v1528_v29  ;;  %v1725_v40 = vmul.f32 %v3165_v9, %v1529_v31  ;;  %v1760_v44 = vadd.f32 %v3172_v18, %v1724_v36 }
 0x157   : > { %v1441_v14 = vpop.f32.mrb[25].mxu1  ;;  %2498 = vst [vmem:[%s3207_s24 + $0x48] sm:$0xff] %v2443_v35   ;;  %v2763_v47 = vadd.f32 %v2733_v5, %v920_v41  ;;  %v923_v49 = vadd.f32 %v2592_v42, %v3157_v61 }
 0x158   : > { %v2738_v59 = vpop.f32.mrb[26].mxu1  ;;  %2484 = vst [vmem:[%s3182_s20 + $0x50] sm:$0xff] %v2368_v39   ;;  %v1761_v46 = vadd.f32 %v3172_v18, %v1725_v40  ;;  %v1792_v51 = vmax.f32 %v1760_v44, 0.0 }
 0x159   : > { %v1444_v45 = vpop.f32.mrb[27].mxu1  ;;  %v1530_v53 = vadd.f32 %v2763_v47, %v3160_v2  ;;  %v2765_v55 = vadd.f32 %v2734_v15, %v923_v49  ;;  %v2593_v56 = vpop.f32.mrb[48].mxu0 }
 0x15a   : > { %v1793_v52 = vmax.f32 %v1761_v46, 0.0  ;;  %v2594_v57 = vpop.f32.mrb[49].mxu0 }
 0x15b   : > { %v1726_v50 = vmul.f32 %v3165_v9, %v1530_v53  ;;  %v1531_v60 = vadd.f32 %v2765_v55, %v3160_v2  ;;  %v2595_v37 = vadd.f32 %v2594_v57, %v2593_v56  ;;  %v2596_v63 = vpop.f32.mrb[50].mxu0 }
 0x15c   : > { %v2448_v58 = vpack.c.bf16 %v1793_v52, %v1792_v51  ;;  %v2597_v0 = vpop.f32.mrb[51].mxu0 }
 0x15d   : > { %v1762_v1 = vadd.f32 %v3172_v18, %v1726_v50  ;;  %v2373_v3 = vpack.c.bf16 %v1531_v60, %v1530_v53  ;;  %v1727_v5 = vmul.f32 %v3165_v9, %v1531_v60  ;;  %v928_v6 = vadd.f32 %v2595_v37, %v3157_v61 }
 0x15e   : > { %v3306_v62 = vpop.f32.mrb[28].mxu1  ;;  %2499 = vst [vmem:[%s3207_s24 + $0x50] sm:$0xff] %v2448_v58   ;;  %v2598_v8 = vadd.f32 %v2597_v0, %v2596_v63 }
 0x15f   : > { %v1457_v43 = vpop.f32.mrb[29].mxu1  ;;  %2485 = vst [vmem:[%s3182_s20 + $0x58] sm:$0xff] %v2373_v3   ;;  %v1763_v11 = vadd.f32 %v3172_v18, %v1727_v5  ;;  %v2768_v12 = vadd.f32 %v1441_v14, %v928_v6  ;;  %v1794_v15 = vmax.f32 %v1762_v1, 0.0 }
 0x160   : > { %v3312_v7 = vpop.f32.mrb[30].mxu1  ;;  %v931_v13 = vadd.f32 %v2598_v8, %v3157_v61 }
 0x161   : > { %v1460_v10 = vpop.f32.mrb[31].mxu1  ;;  %v1795_v16 = vmax.f32 %v1763_v11, 0.0  ;;  %v1532_v17 = vadd.f32 %v2768_v12, %v3160_v2  ;;  %v2599_v19 = vpop.f32.mrb[52].mxu0 }
 0x162   : > { %v2770_v20 = vadd.f32 %v1444_v45, %v931_v13  ;;  %v2600_v54 = vpop.f32.mrb[53].mxu0 }
 0x163   : > { %v2453_v21 = vpack.c.bf16 %v1795_v16, %v1794_v15  ;;  %v1728_v22 = vmul.f32 %v3165_v9, %v1532_v17  ;;  %v2601_v48 = vadd.f32 %v2600_v54, %v2599_v19  ;;  %v2602_v23 = vpop.f32.mrb[54].mxu0 }
 0x164   : > { %v1533_v24 = vadd.f32 %v2770_v20, %v3160_v2  ;;  %v2603_v25 = vpop.f32.mrb[55].mxu0 }
 0x165   : > { %2500 = vst [vmem:[%s3207_s24 + $0x58] sm:$0xff] %v2453_v21   ;;  %v936_v4 = vadd.f32 %v2601_v48, %v3157_v61  ;;  %v2604_v26 = vadd.f32 %v2603_v25, %v2602_v23  ;;  %v1764_v27 = vadd.f32 %v3172_v18, %v1728_v22 }
 0x166   : > { %v2378_v28 = vpack.c.bf16 %v1533_v24, %v1532_v17  ;;  %v1729_v29 = vmul.f32 %v3165_v9, %v1533_v24 }
 0x167   : > { %v2767_v30 = vadd.f32 %v2737_v33, %v936_v4  ;;  %v939_v31 = vadd.f32 %v2604_v26, %v3157_v61  ;;  %v1796_v14 = vmax.f32 %v1764_v27, 0.0 }
 0x168   : > { %2486 = vst [vmem:[%s3182_s20 + $0x60] sm:$0xff] %v2378_v28   ;;  %v1765_v32 = vadd.f32 %v3172_v18, %v1729_v29 }
 0x169   : > { %v1534_v34 = vadd.f32 %v2767_v30, %v3160_v2  ;;  %v2769_v35 = vadd.f32 %v2738_v59, %v939_v31  ;;  %v2605_v36 = vpop.f32.mrb[56].mxu0 }
 0x16a   : > { %v1797_v38 = vmax.f32 %v1765_v32, 0.0  ;;  %v2606_v39 = vpop.f32.mrb[57].mxu0 }
 0x16b   : > { %v1730_v40 = vmul.f32 %v3165_v9, %v1534_v34  ;;  %v1535_v41 = vadd.f32 %v2769_v35, %v3160_v2  ;;  %v2607_v42 = vadd.f32 %v2606_v39, %v2605_v36  ;;  %v2608_v33 = vpop.f32.mrb[58].mxu0 }
 0x16c   : > { %v2458_v44 = vpack.c.bf16 %v1797_v38, %v1796_v14  ;;  %v2609_v45 = vpop.f32.mrb[59].mxu0 }
 0x16d   : > { %v1766_v46 = vadd.f32 %v3172_v18, %v1730_v40  ;;  %v2383_v47 = vpack.c.bf16 %v1535_v41, %v1534_v34  ;;  %v1731_v49 = vmul.f32 %v3165_v9, %v1535_v41  ;;  %v944_v59 = vadd.f32 %v2607_v42, %v3157_v61 }
 0x16e   : > { %2501 = vst [vmem:[%s3207_s24 + $0x60] sm:$0xff] %v2458_v44   ;;  %v2610_v51 = vadd.f32 %v2609_v45, %v2608_v33 }
 0x16f   : > { %2487 = vst [vmem:[%s3182_s20 + $0x68] sm:$0xff] %v2383_v47   ;;  %v1767_v52 = vadd.f32 %v3172_v18, %v1731_v49  ;;  %v2772_v53 = vadd.f32 %v1457_v43, %v944_v59  ;;  %v1798_v56 = vmax.f32 %v1766_v46, 0.0 }
 0x170   : > { %v947_v55 = vadd.f32 %v2610_v51, %v3157_v61 }
 0x171   : > { %v1799_v57 = vmax.f32 %v1767_v52, 0.0  ;;  %v1536_v58 = vadd.f32 %v2772_v53, %v3160_v2  ;;  %v2611_v50 = vpop.f32.mrb[60].mxu0 }
 0x172   : > { %v2774_v60 = vadd.f32 %v1460_v10, %v947_v55  ;;  %v2612_v37 = vpop.f32.mrb[61].mxu0 }
 0x173   : > { %v2463_v63 = vpack.c.bf16 %v1799_v57, %v1798_v56  ;;  %v1732_v0 = vmul.f32 %v3165_v9, %v1536_v58  ;;  %v2613_v1 = vadd.f32 %v2612_v37, %v2611_v50  ;;  %v2614_v3 = vpop.f32.mrb[62].mxu0 }
 0x174   : > { %v1537_v5 = vadd.f32 %v2774_v60, %v3160_v2  ;;  %v2615_v6 = vpop.f32.mrb[63].mxu0 }
 0x175   : > { %2502 = vst [vmem:[%s3207_s24 + $0x68] sm:$0xff] %v2463_v63   ;;  %v952_v43 = vadd.f32 %v2613_v1, %v3157_v61  ;;  %v2616_v8 = vadd.f32 %v2615_v6, %v2614_v3  ;;  %v1768_v11 = vadd.f32 %v3172_v18, %v1732_v0 }
 0x176   : > { %v2388_v12 = vpack.c.bf16 %v1537_v5, %v1536_v58  ;;  %v1733_v10 = vmul.f32 %v3165_v9, %v1537_v5 }
 0x177   : > { %v2771_v13 = vadd.f32 %v3306_v62, %v952_v43  ;;  %v955_v15 = vadd.f32 %v2616_v8, %v3157_v61  ;;  %v1800_v20 = vmax.f32 %v1768_v11, 0.0 }
 0x178   : > { %2488 = vst [vmem:[%s3182_s20 + $0x70] sm:$0xff] %v2388_v12   ;;  %v1769_v16 = vadd.f32 %v3172_v18, %v1733_v10 }
 0x179   : > { %v1538_v17 = vadd.f32 %v2771_v13, %v3160_v2  ;;  %v2773_v19 = vadd.f32 %v3312_v7, %v955_v15 }
 0x17a   : > { %v1801_v54 = vmax.f32 %v1769_v16, 0.0 }
 0x17b   : > { %v1734_v21 = vmul.f32 %v3165_v9, %v1538_v17  ;;  %v1539_v22 = vadd.f32 %v2773_v19, %v3160_v2 }
 0x17c   : > { %v2468_v48 = vpack.c.bf16 %v1801_v54, %v1800_v20 }
 0x17d   : > { %v1770_v23 = vadd.f32 %v3172_v18, %v1734_v21  ;;  %v2393_v62 = vpack.c.bf16 %v1539_v22, %v1538_v17  ;;  %v1735_v61 = vmul.f32 %v3165_v9, %v1539_v22 }
 0x17e   : > { %2503 = vst [vmem:[%s3207_s24 + $0x70] sm:$0xff] %v2468_v48  }
 0x17f   : > { %2489 = vst [vmem:[%s3182_s20 + $0x78] sm:$0xff] %v2393_v62   ;;  %v1771_v24 = vadd.f32 %v3172_v18, %v1735_v61  ;;  %v1802_v25 = vmax.f32 %v1770_v23, 0.0 }
 0x181   : > { %v1803_v4 = vmax.f32 %v1771_v24, 0.0 }
 0x183   : > { %v2473_v26 = vpack.c.bf16 %v1803_v4, %v1802_v25 }
 0x185   : > { %2504 = vst [vmem:[%s3207_s24 + $0x78] sm:$0xff] %v2473_v26  }
 0x186 PF: > { %s17_s21 = sadd.s32 1, %s2928_s21  }
 0x187   : > { %p14_p4 = scmp.ge.s32.totalorder %s17_s21, 4  }
 0x189   :  { %16 = sbr.rel (!%p14_p4) target bundleno = 1 (0x1), region = 85 }

// kernel: _lambda_.12
= control target key start
LH: loop header
LB: loop body
LE: loop exit
PB: predicated region body
PF: predicated region fallthrough
CT: control target
= control target key end

     0   :  { %s1875_s12 = smov 0   ;;  %s2169_s0 = inlined_call_operand.vmem [shape: bf16[512,288], index: 0, kind: input, shape index: {}]   ;;  %s2170_s1 = inlined_call_operand.vmem [shape: bf16[288,128], index: 1, kind: input, shape index: {}]   ;;  %s2171_s2 = inlined_call_operand.vmem [shape: f32[8,128], index: 2, kind: input, shape index: {}]   ;;  %s2172_s3 = inlined_call_operand.vmem [shape: bf16[512,128], index: 3, kind: output, shape index: {}]  }
   0x1 LB: > { %s1322_s13 = sadd.s32 4294967295, %s1853_s12   ;;  %p1326_p0 = scmp.ge.s32.totalorder %s1853_s12, 1  ;;  %s1853_s12 = sphi %s1875_s12, %s13_s12  }
   0x2   : > { %p139_p1 = scmp.lt.s32.totalorder %s1853_s12, 3 }
   0x4   : > { %p140_p2 = pnand %p1326_p0, %p139_p1 }
   0x5   : > { %v1765_v0 = vld [vmem:[%s2170_s1 + $0x40] sm:$0xff] (!%p140_p2)   ;;  %s1327_s16 = sshll.u32 (!%p140_p2), %s1322_s13, 5  ;;  %v1767_v2 = vld [vmem:[%s2170_s1 + $0x48] sm:$0xff] (!%p140_p2)   ;;  %v1769_v4 = vld [vmem:[%s2170_s1 + $0x50] sm:$0xff] (!%p140_p2)   ;;  %vm631_vm0 = vcmask (!%p140_p2), 261120  }
   0x6   : > { %143 = sbr.rel (%p140_p2) target bundleno = 356 (0x164), region = 32  ;;  %v1766_v1 = vld [vmem:[%s2170_s1] sm:$0xff] (!%p140_p2)   ;;  %1574 = vmatprep.subr.bf16.mxu0 (!%p140_p2), %v1765_v0  ;;  %1740 = vmatprep.subr.bf16.mxu1 (!%p140_p2), %v1765_v0  ;;  %p165_p3 = scmp.lt.s32.totalorder (!%p140_p2), %s1327_s16, 63  ;;  %v1768_v3 = vld [vmem:[%s2170_s1 + $0x8] sm:$0xff] (!%p140_p2)   ;;  %v1770_v5 = vld [vmem:[%s2170_s1 + $0x10] sm:$0xff] (!%p140_p2)  }
   0x7   : > { %1575 = vmatpush3.bf16.msra.mxu0 (!%p140_p2), %v1766_v1  ;;  %1748 = vmatpush3.bf16.msra.mxu1 (!%p140_p2), %v1766_v1  ;;  %v1771_v6 = vld [vmem:[%s2170_s1 + $0x58] sm:$0xff] (!%p140_p2)   ;;  %v1773_v8 = vld [vmem:[%s2170_s1 + $0x60] sm:$0xff] (!%p140_p2)   ;;  %v1775_v10 = vld [vmem:[%s2170_s1 + $0x68] sm:$0xff] (!%p140_p2)  }
   0x8   : > { %1576 = vmatprep.subr.bf16.mxu0 (!%p140_p2), %v1767_v2  ;;  %1741 = vmatprep.subr.bf16.mxu1 (!%p140_p2), %v1767_v2  ;;  %v1772_v7 = vld [vmem:[%s2170_s1 + $0x18] sm:$0xff] (!%p140_p2)   ;;  %v1774_v9 = vld [vmem:[%s2170_s1 + $0x20] sm:$0xff] (!%p140_p2)   ;;  %v1776_v13 = vld [vmem:[%s2170_s1 + $0x28] sm:$0xff] (!%p140_p2)  }
   0x9   : > { %v1777_v14 = vld [vmem:[%s2170_s1 + $0x70] sm:$0xff] (!%p140_p2)   ;;  %v1779_v16 = vld [vmem:[%s2170_s1 + $0x78] sm:$0xff] (!%p140_p2)   ;;  %v1787_v18 = vld [vmem:[%s2170_s1 + $0x80] sm:$0xff] (!%p140_p2)  }
   0xa   : > { %v1778_v15 = vld [vmem:[%s2170_s1 + $0x30] sm:$0xff] (!%p140_p2)   ;;  %v1780_v17 = vld [vmem:[%s2170_s1 + $0x38] sm:$0xff] (!%p140_p2)   ;;  %v1800_v23 = vld [vmem:[%s2170_s1 + $0x88] sm:$0xff] (!%p140_p2)  }
   0xb   : > { %1577 = vmatpush3.bf16.msra.mxu0 (!%p140_p2), %v1768_v3  ;;  %1749 = vmatpush3.bf16.msra.mxu1 (!%p140_p2), %v1768_v3 }
   0xc   : > { %1578 = vmatprep.subr.bf16.mxu0 (!%p140_p2), %v1769_v4  ;;  %1742 = vmatprep.subr.bf16.mxu1 (!%p140_p2), %v1769_v4 }
   0xd   : > { %s2174_s16 = smov (!%p165_p3, %s1327_s16), 63 }
   0xe   : > { %s1756_s29 = smul.u32 12, %s2174_s16  ;;  %s1330_s5 = sshll.u32 %s2174_s16, 2 }
   0xf   : > { %1579 = vmatpush3.bf16.msra.mxu0 %v1770_v5  ;;  %1750 = vmatpush3.bf16.msra.mxu1 %v1770_v5  ;;  %s2054_s7 = scalar_lea.vmem %s2172_s3, %s1330_s5 }
  0x10   : > { %1580 = vmatprep.subr.bf16.mxu0 %v1771_v6  ;;  %1743 = vmatprep.subr.bf16.mxu1 %v1771_v6  ;;  %s1916_s9 = scalar_lea.vmem %s2169_s0, %s1756_s29 }
  0x11   : > { %v1783_v11 = vld [vmem:[%s1916_s9 + $0x4] ss:$12 sps:$4 sm:$0xff]   ;;  %v1781_v19 = vld [vmem:[%s1916_s9] ss:$12 sps:$4 sm:$0xff]   ;;  %v1788_v21 = vld [vmem:[%s1916_s9 + $0x1c] ss:$12 sps:$4 sm:$0xff]  }
  0x12   : > { %v1786_v12 = vld [vmem:[%s1916_s9 + $0x124] ss:$12 sps:$4 sm:$0xff]   ;;  %712 = vmatprep.mubr.bf16.mxu0 %v1783_v11  ;;  %v1784_v20 = vld [vmem:[%s1916_s9 + $0x120] ss:$12 sps:$4 sm:$0xff]   ;;  %v1790_v22 = vld [vmem:[%s1916_s9 + $0x13c] ss:$12 sps:$4 sm:$0xff]  }
  0x13   : > { %1581 = vmatpush3.bf16.msra.mxu0 %v1772_v7  ;;  %1751 = vmatpush3.bf16.msra.mxu1 %v1772_v7  ;;  %v1792_v24 = vld [vmem:[%s1916_s9 + $0x18] ss:$12 sps:$4 sm:$0xff]   ;;  %v1794_v26 = vld [vmem:[%s1916_s9 + $0x34] ss:$12 sps:$4 sm:$0xff]   ;;  %v1798_v28 = vld [vmem:[%s1916_s9 + $0x30] ss:$12 sps:$4 sm:$0xff]  }
  0x14   : > { %1582 = vmatprep.subr.bf16.mxu0 %v1773_v8  ;;  %1744 = vmatprep.subr.bf16.mxu1 %v1773_v8  ;;  %v1793_v25 = vld [vmem:[%s1916_s9 + $0x138] ss:$12 sps:$4 sm:$0xff]   ;;  %v1796_v27 = vld [vmem:[%s1916_s9 + $0x154] ss:$12 sps:$4 sm:$0xff]   ;;  %v1799_v29 = vld [vmem:[%s1916_s9 + $0x150] ss:$12 sps:$4 sm:$0xff]  }
  0x15   : > { %808 = vmatprep.mubr.bf16.mxu1 %v1786_v12  ;;  %v1801_v30 = vld [vmem:[%s1916_s9 + $0x4c] ss:$12 sps:$4 sm:$0xff]   ;;  %v1805_v32 = vld [vmem:[%s1916_s9 + $0x48] ss:$12 sps:$4 sm:$0xff]   ;;  %v1807_v34 = vld [vmem:[%s1916_s9 + $0x64] ss:$12 sps:$4 sm:$0xff]  }
  0x16   : > { %v1803_v31 = vld [vmem:[%s1916_s9 + $0x16c] ss:$12 sps:$4 sm:$0xff]   ;;  %v1806_v33 = vld [vmem:[%s1916_s9 + $0x168] ss:$12 sps:$4 sm:$0xff]   ;;  %v1816_v41 = vld [vmem:[%s1916_s9 + $0x50] ss:$12 sps:$4 sm:$0xff]  }
  0x17   : > { %1583 = vmatpush3.bf16.msra.mxu0 %v1774_v9  ;;  %1752 = vmatpush3.bf16.msra.mxu1 %v1774_v9  ;;  %v1809_v35 = vld [vmem:[%s1916_s9 + $0x8] ss:$12 sps:$4 sm:$0xff]   ;;  %v1810_v36 = vld [vmem:[%s1916_s9 + $0x60] ss:$12 sps:$4 sm:$0xff]   ;;  %v1814_v39 = vld [vmem:[%s1916_s9 + $0x38] ss:$12 sps:$4 sm:$0xff]  }
  0x18   : > { %1584 = vmatprep.subr.bf16.mxu0 %v1775_v10  ;;  %1745 = vmatprep.subr.bf16.mxu1 %v1775_v10  ;;  %v1811_v37 = vld [vmem:[%s1916_s9 + $0x20] ss:$12 sps:$4 sm:$0xff]   ;;  %v1812_v38 = vld [vmem:[%s1916_s9 + $0x7c] ss:$12 sps:$4 sm:$0xff]   ;;  %v1815_v40 = vld [vmem:[%s1916_s9 + $0x78] ss:$12 sps:$4 sm:$0xff]  }
  0x19   : > { %v1817_v42 = vld [vmem:[%s1916_s9 + $0x94] ss:$12 sps:$4 sm:$0xff]   ;;  %v1820_v44 = vld [vmem:[%s1916_s9 + $0x90] ss:$12 sps:$4 sm:$0xff]   ;;  %v1822_v46 = vld [vmem:[%s1916_s9 + $0xac] ss:$12 sps:$4 sm:$0xff]  }
  0x1a   : > { %v1819_v43 = vld [vmem:[%s1916_s9 + $0x68] ss:$12 sps:$4 sm:$0xff]   ;;  %v1821_v45 = vld [vmem:[%s1916_s9 + $0x80] ss:$12 sps:$4 sm:$0xff]   ;;  %v1824_v47 = vld [vmem:[%s1916_s9 + $0x98] ss:$12 sps:$4 sm:$0xff]  }
  0x1b   : > { %1585 = vmatpush3.bf16.msra.mxu0 %v1776_v13  ;;  %1753 = vmatpush3.bf16.msra.mxu1 %v1776_v13  ;;  %v1825_v48 = vld [vmem:[%s1916_s9 + $0xa8] ss:$12 sps:$4 sm:$0xff]   ;;  %v1826_v49 = vld [vmem:[%s1916_s9 + $0xb0] ss:$12 sps:$4 sm:$0xff]   ;;  %v1830_v52 = vld [vmem:[%s1916_s9 + $0xc0] ss:$12 sps:$4 sm:$0xff]  }
  0x1c   : > { %1586 = vmatprep.subr.bf16.mxu0 %v1777_v14  ;;  %1746 = vmatprep.subr.bf16.mxu1 %v1777_v14  ;;  %v1827_v50 = vld [vmem:[%s1916_s9 + $0xc4] ss:$12 sps:$4 sm:$0xff]   ;;  %v1829_v51 = vld [vmem:[%s1916_s9 + $0xc8] ss:$12 sps:$4 sm:$0xff]   ;;  %v1831_v53 = vld [vmem:[%s1916_s9 + $0xe0] ss:$12 sps:$4 sm:$0xff]  }
  0x1d   : > { %v1832_v54 = vld [vmem:[%s1916_s9 + $0xdc] ss:$12 sps:$4 sm:$0xff]   ;;  %v1834_v55 = vld [vmem:[%s1916_s9 + $0xf8] ss:$12 sps:$4 sm:$0xff]   ;;  %v1837_v58 = vld [vmem:[%s1916_s9 + $0xf4] ss:$12 sps:$4 sm:$0xff]  }
  0x1e   : > { %v1835_v56 = vld [vmem:[%s1916_s9 + $0xd8] ss:$12 sps:$4 sm:$0xff]   ;;  %v1836_v57 = vld [vmem:[%s1916_s9 + $0x110] ss:$12 sps:$4 sm:$0xff]   ;;  %v1839_v59 = vld [vmem:[%s1916_s9 + $0x128] ss:$12 sps:$4 sm:$0xff]  }
  0x1f   : > { %1587 = vmatpush3.bf16.msra.mxu0 %v1778_v15  ;;  %1754 = vmatpush3.bf16.msra.mxu1 %v1778_v15  ;;  %v1840_v60 = vld [vmem:[%s1916_s9 + $0xf0] ss:$12 sps:$4 sm:$0xff]   ;;  %v1841_v61 = vld [vmem:[%s1916_s9 + $0x140] ss:$12 sps:$4 sm:$0xff]   ;;  %v1844_v63 = vld [vmem:[%s1916_s9 + $0x158] ss:$12 sps:$4 sm:$0xff]  }
  0x20   : > { %1588 = vmatprep.subr.bf16.mxu0 %v1779_v16  ;;  %1747 = vmatprep.subr.bf16.mxu1 %v1779_v16  ;;  %v1842_v62 = vld [vmem:[%s1916_s9 + $0x10c] ss:$12 sps:$4 sm:$0xff]   ;;  %v1845_v0 = vld [vmem:[%s1916_s9 + $0x108] ss:$12 sps:$4 sm:$0xff]   ;;  %v1846_v1 = vld [vmem:[%s1916_s9 + $0x170] ss:$12 sps:$4 sm:$0xff]  }
  0x23   : > { %1589 = vmatpush3.bf16.msra.mxu0 %v1780_v17  ;;  %1755 = vmatpush3.bf16.msra.mxu1 %v1780_v17 }
  0x24   : > { %1704 = vmatprep.subr.bf16.mxu1 %v1787_v18 }
  0x26   : > { %713 = vmatmul.mubr.bf16.vlgmr.msra.gmra.mrb[0].mxu0 %v1781_v19  ;;  %809 = vmatmul.mubr.bf16.vlgmr.msra.gmra.mrb[0].mxu1 %v1784_v20 }
  0x27   : > { %1705 = vmatpush3.bf16.msra.mxu1 %v1787_v18  ;;  %720 = vmatprep.mubr.bf16.mxu0 %v1788_v21 }
  0x28   : > { %816 = vmatprep.mubr.bf16.mxu1 %v1790_v22  ;;  %1706 = vmatprep.subr.bf16.mxu1 %v1800_v23 }
  0x2b   : > { %1707 = vmatpush3.bf16.msra.mxu1 %v1800_v23 }
  0x2e   : > { %721 = vmatmul.mubr.bf16.gmra.mrb[4].mxu0 %v1792_v24  ;;  %817 = vmatmul.mubr.bf16.gmra.mrb[4].mxu1 %v1793_v25 }
  0x2f   : > { %728 = vmatprep.mubr.bf16.mxu0 %v1794_v26  ;;  %824 = vmatprep.mubr.bf16.mxu1 %v1796_v27 }
  0x36   : > { %729 = vmatmul.mubr.bf16.gmra.mrb[8].mxu0 %v1798_v28  ;;  %825 = vmatmul.mubr.bf16.gmra.mrb[8].mxu1 %v1799_v29  ;;  %v279_v28 = vlaneseq }
  0x37   : > { %736 = vmatprep.mubr.bf16.mxu0 %v1801_v30  ;;  %832 = vmatprep.mubr.bf16.mxu1 %v1803_v31 }
  0x3e   : > { %737 = vmatmul.mubr.bf16.gmra.mrb[12].mxu0 %v1805_v32  ;;  %833 = vmatmul.mubr.bf16.gmra.mrb[12].mxu1 %v1806_v33 }
  0x3f   : > { %744 = vmatprep.mubr.bf16.mxu0 %v1807_v34  ;;  %1708 = vmatprep.mubr.msk.bf16.mxu1 %vm631_vm0, %v1809_v35 }
  0x46   : > { %745 = vmatmul.mubr.bf16.gmra.mrb[16].mxu0 %v1810_v36  ;;  %1709 = vmatmul.mubr.msk.bf16.vlgmr.msra.gmra.mrb[16].mxu1 %vm631_vm0, %v1811_v37 }
  0x47   : > { %752 = vmatprep.mubr.bf16.mxu0 %v1812_v38  ;;  %1712 = vmatprep.mubr.msk.bf16.mxu1 %vm631_vm0, %v1814_v39  ;;  %v280_v39 = vshrl.u32 %v279_v28, 7 }
  0x4e   : > { %753 = vmatmul.mubr.bf16.gmra.mrb[20].mxu0 %v1815_v40  ;;  %1713 = vmatmul.mubr.msk.bf16.gmra.mrb[20].mxu1 %vm631_vm0, %v1816_v41 }
  0x4f   : > { %760 = vmatprep.mubr.bf16.mxu0 %v1817_v42  ;;  %1716 = vmatprep.mubr.msk.bf16.mxu1 %vm631_vm0, %v1819_v43  ;;  %v281_v42 = vsub.s32 0, %v280_v39 }
  0x56   : > { %761 = vmatmul.mubr.bf16.gmra.mrb[24].mxu0 %v1820_v44  ;;  %1717 = vmatmul.mubr.msk.bf16.gmra.mrb[24].mxu1 %vm631_vm0, %v1821_v45  ;;  %v178_v45 = vld [vmem:[%s2171_s2] sm:$0xff] }
  0x57   : > { %768 = vmatprep.mubr.bf16.mxu0 %v1822_v46  ;;  %1720 = vmatprep.mubr.msk.bf16.mxu1 %vm631_vm0, %v1824_v47 }
  0x5e   : > { %769 = vmatmul.mubr.bf16.gmra.mrb[28].mxu0 %v1825_v48  ;;  %1721 = vmatmul.mubr.msk.bf16.gmra.mrb[28].mxu1 %vm631_vm0, %v1826_v49 }
  0x5f   : > { %776 = vmatprep.mubr.bf16.mxu0 %v1827_v50  ;;  %1724 = vmatprep.mubr.msk.bf16.mxu1 %vm631_vm0, %v1829_v51 }
  0x66   : > { %777 = vmatmul.mubr.bf16.gmra.mrb[32].mxu0 %v1830_v52  ;;  %1725 = vmatmul.mubr.msk.bf16.gmra.mrb[32].mxu1 %vm631_vm0, %v1831_v53  ;;  %v1004_v52 = vsub.s32 1, %v280_v39 }
  0x67   : > { %784 = vmatprep.mubr.bf16.mxu0 %v1832_v54  ;;  %1728 = vmatprep.mubr.msk.bf16.mxu1 %vm631_vm0, %v1834_v55  ;;  %v2028_v55 = vrot.slane %v178_v45, %v281_v42 }
  0x6e   : > { %785 = vmatmul.mubr.bf16.gmra.mrb[36].mxu0 %v1835_v56  ;;  %1729 = vmatmul.mubr.msk.bf16.gmra.mrb[36].mxu1 %vm631_vm0, %v1836_v57  ;;  %v1040_v56 = vsub.s32 2, %v280_v39 }
  0x6f   : > { %792 = vmatprep.mubr.bf16.mxu0 %v1837_v58  ;;  %1732 = vmatprep.mubr.msk.bf16.mxu1 %vm631_vm0, %v1839_v59  ;;  %v2031_v58 = vrot.slane %v178_v45, %v1004_v52 }
  0x76   : > { %793 = vmatmul.mubr.bf16.gmra.mrb[40].mxu0 %v1840_v60  ;;  %1733 = vmatmul.mubr.msk.bf16.gmra.mrb[40].mxu1 %vm631_vm0, %v1841_v61 }
  0x77   : > { %800 = vmatprep.mubr.bf16.mxu0 %v1842_v62  ;;  %1736 = vmatprep.mubr.msk.bf16.mxu1 %vm631_vm0, %v1844_v63  ;;  %v2034_v63 = vrot.slane %v178_v45, %v1040_v56 }
  0x7e   : > { %801 = vmatmul.mubr.bf16.gmra.mrb[44].mxu0 %v1845_v0  ;;  %1737 = vmatmul.mubr.msk.bf16.gmra.mrb[44].mxu1 %vm631_vm0, %v1846_v1 }
  0xf9   : > { %v1590_v2 = vpop.f32.mrb[0].mxu0  ;;  %v1662_v3 = vpop.f32.mrb[0].mxu1 }
  0xfa   : > { %v1591_v4 = vpop.f32.mrb[1].mxu0  ;;  %v1663_v5 = vpop.f32.mrb[1].mxu1 }
  0xfb   : > { %v1592_v6 = vadd.f32 %v1591_v4, %v1590_v2  ;;  %v1593_v7 = vpop.f32.mrb[2].mxu0  ;;  %v2009_v8 = vadd.f32 %v1663_v5, %v1662_v3  ;;  %v1665_v9 = vpop.f32.mrb[2].mxu1 }
  0xfc   : > { %v1594_v10 = vpop.f32.mrb[3].mxu0  ;;  %v1666_v11 = vpop.f32.mrb[3].mxu1 }
  0xfd   : > { %v1595_v12 = vadd.f32 %v1594_v10, %v1593_v7  ;;  %v2011_v13 = vadd.f32 %v1666_v11, %v1665_v9  ;;  %v715_v61 = vadd.f32 %v1592_v6, %v2028_v55 }
  0xff   : > { %v718_v9 = vadd.f32 %v1595_v12, %v2028_v55 }
 0x101   : > { %v1596_v14 = vpop.f32.mrb[4].mxu0  ;;  %v1668_v15 = vpop.f32.mrb[4].mxu1 }
 0x102   : > { %v1597_v16 = vpop.f32.mrb[5].mxu0  ;;  %v1669_v17 = vpop.f32.mrb[5].mxu1 }
 0x103   : > { %v1598_v18 = vadd.f32 %v1597_v16, %v1596_v14  ;;  %v1599_v19 = vpop.f32.mrb[6].mxu0  ;;  %v2013_v20 = vadd.f32 %v1669_v17, %v1668_v15  ;;  %v1671_v21 = vpop.f32.mrb[6].mxu1 }
 0x104   : > { %v1600_v22 = vpop.f32.mrb[7].mxu0  ;;  %v1672_v23 = vpop.f32.mrb[7].mxu1 }
 0x105   : > { %v1601_v24 = vadd.f32 %v1600_v22, %v1599_v19  ;;  %v2015_v25 = vadd.f32 %v1672_v23, %v1671_v21  ;;  %v723_v57 = vadd.f32 %v1598_v18, %v2028_v55 }
 0x107   : > { %v726_v2 = vadd.f32 %v1601_v24, %v2028_v55 }
 0x109   : > { %v1602_v26 = vpop.f32.mrb[8].mxu0  ;;  %v1674_v27 = vpop.f32.mrb[8].mxu1 }
 0x10a   : > { %v1603_v29 = vpop.f32.mrb[9].mxu0  ;;  %v1675_v30 = vpop.f32.mrb[9].mxu1 }
 0x10b   : > { %v1604_v31 = vadd.f32 %v1603_v29, %v1602_v26  ;;  %v1605_v32 = vpop.f32.mrb[10].mxu0  ;;  %v2017_v33 = vadd.f32 %v1675_v30, %v1674_v27  ;;  %v1677_v34 = vpop.f32.mrb[10].mxu1 }
 0x10c   : > { %v1606_v35 = vpop.f32.mrb[11].mxu0  ;;  %v1678_v36 = vpop.f32.mrb[11].mxu1 }
 0x10d   : > { %v1607_v37 = vadd.f32 %v1606_v35, %v1605_v32  ;;  %v2019_v38 = vadd.f32 %v1678_v36, %v1677_v34  ;;  %v731_v28 = vadd.f32 %v1604_v31, %v2028_v55 }
 0x10f   : > { %v734_v29 = vadd.f32 %v1607_v37, %v2028_v55 }
 0x111   : > { %v1608_v40 = vpop.f32.mrb[12].mxu0  ;;  %v1680_v41 = vpop.f32.mrb[12].mxu1 }
 0x112   : > { %v1609_v43 = vpop.f32.mrb[13].mxu0  ;;  %v1681_v44 = vpop.f32.mrb[13].mxu1 }
 0x113   : > { %v1610_v46 = vadd.f32 %v1609_v43, %v1608_v40  ;;  %v1611_v47 = vpop.f32.mrb[14].mxu0  ;;  %v2024_v48 = vadd.f32 %v1681_v44, %v1680_v41  ;;  %v1683_v49 = vpop.f32.mrb[14].mxu1 }
 0x114   : > { %v1612_v50 = vpop.f32.mrb[15].mxu0  ;;  %v1684_v51 = vpop.f32.mrb[15].mxu1 }
 0x115   : > { %v1613_v53 = vadd.f32 %v1612_v50, %v1611_v47  ;;  %v2026_v54 = vadd.f32 %v1684_v51, %v1683_v49  ;;  %v739_v23 = vadd.f32 %v1610_v46, %v2028_v55 }
 0x117   : > { %v742_v39 = vadd.f32 %v1613_v53, %v2028_v55 }
 0x119   : > { %v1614_v59 = vpop.f32.mrb[16].mxu0  ;;  %v1710_v60 = vpop.f32.mrb[16].mxu1 }
 0x11a   : > { %v884_v62 = vadd.f32 %v1710_v60, %v723_v57  ;;  %v1615_v0 = vpop.f32.mrb[17].mxu0  ;;  %v875_v1 = vpop.f32.mrb[17].mxu1 }
 0x11b   : > { %v1616_v3 = vadd.f32 %v1615_v0, %v1614_v59  ;;  %v876_v4 = vadd.f32 %v875_v1, %v715_v61  ;;  %v1617_v5 = vpop.f32.mrb[18].mxu0  ;;  %v1711_v7 = vpop.f32.mrb[18].mxu1 }
 0x11c   : > { %v1008_v10 = vmul.f32 %v2031_v58, %v884_v62  ;;  %v887_v11 = vadd.f32 %v1711_v7, %v726_v2  ;;  %v1618_v14 = vpop.f32.mrb[19].mxu0  ;;  %v878_v15 = vpop.f32.mrb[19].mxu1 }
 0x11d   : > { %v1006_v6 = vmul.f32 %v2031_v58, %v876_v4  ;;  %v1619_v16 = vadd.f32 %v1618_v14, %v1617_v5  ;;  %v879_v17 = vadd.f32 %v878_v15, %v718_v9  ;;  %v747_v4 = vadd.f32 %v1616_v3, %v2028_v55 }
 0x11e   : > { %v1044_v18 = vadd.f32 %v2034_v63, %v1008_v10  ;;  %v1009_v19 = vmul.f32 %v2031_v58, %v887_v11 }
 0x11f   : > { %v1042_v21 = vadd.f32 %v2034_v63, %v1006_v6  ;;  %v1007_v22 = vmul.f32 %v2031_v58, %v879_v17  ;;  %v750_v5 = vadd.f32 %v1619_v16, %v2028_v55 }
 0x120   : > { %v1045_v12 = vadd.f32 %v2034_v63, %v1009_v19  ;;  %v1076_v30 = vmax.f32 %v1044_v18, 0.0 }
 0x121   : > { %v1043_v24 = vadd.f32 %v2034_v63, %v1007_v22  ;;  %v1620_v26 = vpop.f32.mrb[20].mxu0  ;;  %v1714_v27 = vpop.f32.mrb[20].mxu1  ;;  %v1074_v40 = vmax.f32 %v1042_v21, 0.0 }
 0x122   : > { %v1077_v32 = vmax.f32 %v1045_v12, 0.0  ;;  %v900_v34 = vadd.f32 %v1714_v27, %v739_v23  ;;  %v1621_v35 = vpop.f32.mrb[21].mxu0  ;;  %v891_v36 = vpop.f32.mrb[21].mxu1 }
 0x123   : > { %v1075_v41 = vmax.f32 %v1043_v24, 0.0  ;;  %v1622_v42 = vadd.f32 %v1621_v35, %v1620_v26  ;;  %v892_v31 = vadd.f32 %v891_v36, %v731_v28  ;;  %v1623_v43 = vpop.f32.mrb[22].mxu0  ;;  %v1715_v37 = vpop.f32.mrb[22].mxu1 }
 0x124   : > { %v1487_v44 = vpack.c.bf16 %v1077_v32, %v1076_v30  ;;  %v1012_v45 = vmul.f32 %v2031_v58, %v900_v34  ;;  %v903_v46 = vadd.f32 %v1715_v37, %v742_v39  ;;  %v1624_v47 = vpop.f32.mrb[23].mxu0  ;;  %v894_v49 = vpop.f32.mrb[23].mxu1 }
 0x125   : > { %v1482_v50 = vpack.c.bf16 %v1075_v41, %v1074_v40  ;;  %v1010_v51 = vmul.f32 %v2031_v58, %v892_v31  ;;  %v1625_v52 = vadd.f32 %v1624_v47, %v1623_v43  ;;  %v895_v53 = vadd.f32 %v894_v49, %v734_v29 }
 0x126   : > { %1559 = vst [vmem:[%s2054_s7 + $0x8] sm:$0xff] %v1487_v44   ;;  %v1048_v56 = vadd.f32 %v2034_v63, %v1012_v45  ;;  %v1013_v57 = vmul.f32 %v2031_v58, %v903_v46  ;;  %v755_v62 = vadd.f32 %v1622_v42, %v2028_v55 }
 0x127   : > { %1483 = vst [vmem:[%s2054_s7] sm:$0xff] %v1482_v50   ;;  %v1046_v59 = vadd.f32 %v2034_v63, %v1010_v51  ;;  %v1011_v60 = vmul.f32 %v2031_v58, %v895_v53  ;;  %v758_v15 = vadd.f32 %v1625_v52, %v2028_v55 }
 0x128   : > { %v1049_v61 = vadd.f32 %v2034_v63, %v1013_v57  ;;  %v1080_v7 = vmax.f32 %v1048_v56, 0.0 }
 0x129   : > { %v1047_v0 = vadd.f32 %v2034_v63, %v1011_v60  ;;  %v1626_v1 = vpop.f32.mrb[24].mxu0  ;;  %v1718_v2 = vpop.f32.mrb[24].mxu1  ;;  %v1078_v6 = vmax.f32 %v1046_v59, 0.0 }
 0x12a   : > { %v1081_v9 = vmax.f32 %v1049_v61, 0.0  ;;  %v916_v10 = vadd.f32 %v1718_v2, %v755_v62  ;;  %v1627_v11 = vpop.f32.mrb[25].mxu0  ;;  %v907_v14 = vpop.f32.mrb[25].mxu1 }
 0x12b   : > { %v1079_v17 = vmax.f32 %v1047_v0, 0.0  ;;  %v1628_v18 = vadd.f32 %v1627_v11, %v1626_v1  ;;  %v908_v19 = vadd.f32 %v907_v14, %v747_v4  ;;  %v1629_v21 = vpop.f32.mrb[26].mxu0  ;;  %v1719_v22 = vpop.f32.mrb[26].mxu1 }
 0x12c   : > { %v1497_v12 = vpack.c.bf16 %v1081_v9, %v1080_v7  ;;  %v1016_v3 = vmul.f32 %v2031_v58, %v916_v10  ;;  %v919_v23 = vadd.f32 %v1719_v22, %v758_v15  ;;  %v1630_v16 = vpop.f32.mrb[27].mxu0  ;;  %v910_v24 = vpop.f32.mrb[27].mxu1 }
 0x12d   : > { %v1492_v26 = vpack.c.bf16 %v1079_v17, %v1078_v6  ;;  %v1014_v27 = vmul.f32 %v2031_v58, %v908_v19  ;;  %v1631_v28 = vadd.f32 %v1630_v16, %v1629_v21  ;;  %v911_v29 = vadd.f32 %v910_v24, %v750_v5 }
 0x12e   : > { %1561 = vst [vmem:[%s2054_s7 + $0x18] sm:$0xff] %v1497_v12   ;;  %v1052_v30 = vadd.f32 %v2034_v63, %v1016_v3  ;;  %v1017_v32 = vmul.f32 %v2031_v58, %v919_v23  ;;  %v763_v42 = vadd.f32 %v1628_v18, %v2028_v55 }
 0x12f   : > { %1560 = vst [vmem:[%s2054_s7 + $0x10] sm:$0xff] %v1492_v26   ;;  %v1050_v34 = vadd.f32 %v2034_v63, %v1014_v27  ;;  %v1015_v35 = vmul.f32 %v2031_v58, %v911_v29  ;;  %v766_v56 = vadd.f32 %v1631_v28, %v2028_v55 }
 0x130   : > { %v1053_v36 = vadd.f32 %v2034_v63, %v1017_v32  ;;  %v1084_v31 = vmax.f32 %v1052_v30, 0.0 }
 0x131   : > { %v1051_v39 = vadd.f32 %v2034_v63, %v1015_v35  ;;  %v1632_v40 = vpop.f32.mrb[28].mxu0  ;;  %v1722_v41 = vpop.f32.mrb[28].mxu1  ;;  %v1082_v45 = vmax.f32 %v1050_v34, 0.0 }
 0x132   : > { %v1085_v43 = vmax.f32 %v1053_v36, 0.0  ;;  %v1633_v37 = vpop.f32.mrb[29].mxu0  ;;  %v923_v44 = vpop.f32.mrb[29].mxu1 }
 0x133   : > { %v1083_v46 = vmax.f32 %v1051_v39, 0.0  ;;  %v1634_v47 = vadd.f32 %v1633_v37, %v1632_v40  ;;  %v924_v49 = vadd.f32 %v923_v44, %v763_v42  ;;  %v1635_v50 = vpop.f32.mrb[30].mxu0  ;;  %v1723_v51 = vpop.f32.mrb[30].mxu1 }
 0x134   : > { %v1507_v52 = vpack.c.bf16 %v1085_v43, %v1084_v31  ;;  %v1636_v53 = vpop.f32.mrb[31].mxu0  ;;  %v926_v57 = vpop.f32.mrb[31].mxu1 }
 0x135   : > { %v1502_v59 = vpack.c.bf16 %v1083_v46, %v1082_v45  ;;  %v771_v60 = vadd.f32 %v1634_v47, %v2028_v55  ;;  %v1018_v61 = vmul.f32 %v2031_v58, %v924_v49  ;;  %v1637_v62 = vadd.f32 %v1636_v53, %v1635_v50 }
 0x136   : > { %1563 = vst [vmem:[%s2054_s7 + $0x28] sm:$0xff] %v1507_v52   ;;  %v927_v0 = vadd.f32 %v926_v57, %v766_v56 }
 0x137   : > { %1562 = vst [vmem:[%s2054_s7 + $0x20] sm:$0xff] %v1502_v59   ;;  %v932_v1 = vadd.f32 %v1722_v41, %v771_v60  ;;  %v774_v2 = vadd.f32 %v1637_v62, %v2028_v55  ;;  %v1054_v4 = vadd.f32 %v2034_v63, %v1018_v61  ;;  %v819_v60 = vadd.f32 %v2013_v20, %v2028_v55 }
 0x138   : > { %v1019_v5 = vmul.f32 %v2031_v58, %v927_v0 }
 0x139   : > { %v1020_v7 = vmul.f32 %v2031_v58, %v932_v1  ;;  %v935_v9 = vadd.f32 %v1723_v51, %v774_v2  ;;  %v1638_v10 = vpop.f32.mrb[32].mxu0  ;;  %v1726_v11 = vpop.f32.mrb[32].mxu1  ;;  %v1086_v12 = vmax.f32 %v1054_v4, 0.0  ;;  %v811_v4 = vadd.f32 %v2009_v8, %v2028_v55 }
 0x13a   : > { %v1055_v14 = vadd.f32 %v2034_v63, %v1019_v5  ;;  %v1639_v15 = vpop.f32.mrb[33].mxu0  ;;  %v939_v6 = vpop.f32.mrb[33].mxu1  ;;  %v814_v8 = vadd.f32 %v2011_v13, %v2028_v55 }
 0x13b   : > { %v1056_v17 = vadd.f32 %v2034_v63, %v1020_v7  ;;  %v1021_v18 = vmul.f32 %v2031_v58, %v935_v9  ;;  %v1640_v19 = vadd.f32 %v1639_v15, %v1638_v10  ;;  %v1641_v21 = vpop.f32.mrb[34].mxu0  ;;  %v1727_v22 = vpop.f32.mrb[34].mxu1  ;;  %v822_v10 = vadd.f32 %v2015_v25, %v2028_v55 }
 0x13c   : > { %v1087_v3 = vmax.f32 %v1055_v14, 0.0  ;;  %v1642_v23 = vpop.f32.mrb[35].mxu0  ;;  %v942_v16 = vpop.f32.mrb[35].mxu1 }
 0x13d   : > { %v1057_v24 = vadd.f32 %v2034_v63, %v1021_v18  ;;  %v779_v26 = vadd.f32 %v1640_v19, %v2028_v55  ;;  %v1643_v27 = vadd.f32 %v1642_v23, %v1641_v21  ;;  %v1088_v29 = vmax.f32 %v1056_v17, 0.0 }
 0x13e   : > { %v1512_v28 = vpack.c.bf16 %v1087_v3, %v1086_v12  ;;  %v827_v23 = vadd.f32 %v2017_v33, %v2028_v55  ;;  %v835_v33 = vadd.f32 %v2024_v48, %v2028_v55 }
 0x13f   : > { %v1089_v30 = vmax.f32 %v1057_v24, 0.0  ;;  %v940_v32 = vadd.f32 %v939_v6, %v779_v26  ;;  %v782_v34 = vadd.f32 %v1643_v27, %v2028_v55 }
 0x140   : > { %1564 = vst [vmem:[%s2054_s7 + $0x30] sm:$0xff] %v1512_v28  }
 0x141   : > { %v1517_v35 = vpack.c.bf16 %v1089_v30, %v1088_v29  ;;  %v1022_v36 = vmul.f32 %v2031_v58, %v940_v32  ;;  %v943_v39 = vadd.f32 %v942_v16, %v782_v34  ;;  %v1644_v40 = vpop.f32.mrb[36].mxu0  ;;  %v2098_v41 = vpop.f32.mrb[36].mxu1 }
 0x142   : > { %v1645_v42 = vpop.f32.mrb[37].mxu0  ;;  %v955_v31 = vpop.f32.mrb[37].mxu1 }
 0x143   : > { %1565 = vst [vmem:[%s2054_s7 + $0x38] sm:$0xff] %v1517_v35   ;;  %v1058_v43 = vadd.f32 %v2034_v63, %v1022_v36  ;;  %v1023_v37 = vmul.f32 %v2031_v58, %v943_v39  ;;  %v1646_v44 = vadd.f32 %v1645_v42, %v1644_v40  ;;  %v1647_v45 = vpop.f32.mrb[38].mxu0  ;;  %v2103_v46 = vpop.f32.mrb[38].mxu1 }
 0x144   : > { %v1648_v47 = vpop.f32.mrb[39].mxu0  ;;  %v958_v49 = vpop.f32.mrb[39].mxu1 }
 0x145   : > { %v1059_v50 = vadd.f32 %v2034_v63, %v1023_v37  ;;  %v787_v51 = vadd.f32 %v1646_v44, %v2028_v55  ;;  %v1649_v52 = vadd.f32 %v1648_v47, %v1647_v45  ;;  %v1090_v53 = vmax.f32 %v1058_v43, 0.0 }
 0x147   : > { %v1091_v56 = vmax.f32 %v1059_v50, 0.0  ;;  %v948_v57 = vadd.f32 %v1726_v11, %v787_v51  ;;  %v790_v59 = vadd.f32 %v1649_v52, %v2028_v55 }
 0x149   : > { %v1522_v61 = vpack.c.bf16 %v1091_v56, %v1090_v53  ;;  %v1024_v62 = vmul.f32 %v2031_v58, %v948_v57  ;;  %v951_v0 = vadd.f32 %v1727_v22, %v790_v59  ;;  %v1650_v1 = vpop.f32.mrb[40].mxu0  ;;  %v1734_v2 = vpop.f32.mrb[40].mxu1 }
 0x14a   : > { %v980_v5 = vadd.f32 %v1734_v2, %v819_v60  ;;  %v1651_v7 = vpop.f32.mrb[41].mxu0  ;;  %v971_v9 = vpop.f32.mrb[41].mxu1 }
 0x14b   : > { %1566 = vst [vmem:[%s2054_s7 + $0x40] sm:$0xff] %v1522_v61   ;;  %v1060_v11 = vadd.f32 %v2034_v63, %v1024_v62  ;;  %v1025_v20 = vmul.f32 %v2031_v58, %v951_v0  ;;  %v1652_v14 = vadd.f32 %v1651_v7, %v1650_v1  ;;  %v972_v15 = vadd.f32 %v971_v9, %v811_v4  ;;  %v1653_v6 = vpop.f32.mrb[42].mxu0  ;;  %v1735_v17 = vpop.f32.mrb[42].mxu1 }
 0x14c   : > { %v1032_v18 = vmul.f32 %v2031_v58, %v980_v5  ;;  %v983_v19 = vadd.f32 %v1735_v17, %v822_v10  ;;  %v1654_v21 = vpop.f32.mrb[43].mxu0  ;;  %v974_v22 = vpop.f32.mrb[43].mxu1  ;;  %v830_v5 = vadd.f32 %v2019_v38, %v2028_v55 }
 0x14d   : > { %v1061_v12 = vadd.f32 %v2034_v63, %v1025_v20  ;;  %v795_v25 = vadd.f32 %v1652_v14, %v2028_v55  ;;  %v1030_v3 = vmul.f32 %v2031_v58, %v972_v15  ;;  %v1655_v26 = vadd.f32 %v1654_v21, %v1653_v6 }
 0x14e   : > { %v1068_v16 = vadd.f32 %v2034_v63, %v1032_v18  ;;  %v1033_v24 = vmul.f32 %v2031_v58, %v983_v19  ;;  %v975_v27 = vadd.f32 %v974_v22, %v814_v8  ;;  %v1092_v28 = vmax.f32 %v1060_v11, 0.0 }
 0x14f   : > { %v1093_v29 = vmax.f32 %v1061_v12, 0.0  ;;  %v956_v30 = vadd.f32 %v955_v31, %v795_v25  ;;  %v1066_v13 = vadd.f32 %v2034_v63, %v1030_v3  ;;  %v798_v34 = vadd.f32 %v1655_v26, %v2028_v55 }
 0x150   : > { %v1069_v32 = vadd.f32 %v2034_v63, %v1033_v24  ;;  %v1031_v35 = vmul.f32 %v2031_v58, %v975_v27  ;;  %v1100_v39 = vmax.f32 %v1068_v16, 0.0  ;;  %v838_v31 = vadd.f32 %v2026_v54, %v2028_v55 }
 0x151   : > { %v1527_v36 = vpack.c.bf16 %v1093_v29, %v1092_v28  ;;  %v1026_v40 = vmul.f32 %v2031_v58, %v956_v30  ;;  %v1656_v42 = vpop.f32.mrb[44].mxu0  ;;  %v1738_v43 = vpop.f32.mrb[44].mxu1  ;;  %v959_v44 = vadd.f32 %v958_v49, %v798_v34  ;;  %v1098_v48 = vmax.f32 %v1066_v13, 0.0 }
 0x152   : > { %v1101_v37 = vmax.f32 %v1069_v32, 0.0  ;;  %v1067_v45 = vadd.f32 %v2034_v63, %v1031_v35  ;;  %v996_v47 = vadd.f32 %v1738_v43, %v835_v33  ;;  %v1657_v50 = vpop.f32.mrb[45].mxu0  ;;  %v987_v51 = vpop.f32.mrb[45].mxu1 }
 0x153   : > { %1567 = vst [vmem:[%s2054_s7 + $0x48] sm:$0xff] %v1527_v36   ;;  %v1062_v52 = vadd.f32 %v2034_v63, %v1026_v40  ;;  %v1658_v53 = vadd.f32 %v1657_v50, %v1656_v42  ;;  %v988_v56 = vadd.f32 %v987_v51, %v827_v23  ;;  %v1659_v57 = vpop.f32.mrb[46].mxu0  ;;  %v1739_v59 = vpop.f32.mrb[46].mxu1  ;;  %v1027_v61 = vmul.f32 %v2031_v58, %v959_v44 }
 0x154   : > { %v1547_v60 = vpack.c.bf16 %v1101_v37, %v1100_v39  ;;  %v1099_v54 = vmax.f32 %v1067_v45, 0.0  ;;  %v1036_v49 = vmul.f32 %v2031_v58, %v996_v47  ;;  %v1660_v62 = vpop.f32.mrb[47].mxu0  ;;  %v990_v0 = vpop.f32.mrb[47].mxu1  ;;  %v999_v4 = vadd.f32 %v1739_v59, %v838_v31 }
 0x155   : > { %v803_v1 = vadd.f32 %v1658_v53, %v2028_v55  ;;  %v1034_v2 = vmul.f32 %v2031_v58, %v988_v56  ;;  %v1063_v7 = vadd.f32 %v2034_v63, %v1027_v61  ;;  %v1661_v10 = vadd.f32 %v1660_v62, %v1659_v57 }
 0x156   : > { %1571 = vst [vmem:[%s2054_s7 + $0x68] sm:$0xff] %v1547_v60   ;;  %v1542_v9 = vpack.c.bf16 %v1099_v54, %v1098_v48  ;;  %v1072_v11 = vadd.f32 %v2034_v63, %v1036_v49  ;;  %v1037_v14 = vmul.f32 %v2031_v58, %v999_v4  ;;  %v991_v15 = vadd.f32 %v990_v0, %v830_v5 }
 0x157   : > { %v964_v20 = vadd.f32 %v2098_v41, %v803_v1  ;;  %v1094_v6 = vmax.f32 %v1062_v52, 0.0  ;;  %v1095_v17 = vmax.f32 %v1063_v7, 0.0  ;;  %v806_v18 = vadd.f32 %v1661_v10, %v2028_v55 }
 0x158   : > { %1570 = vst [vmem:[%s2054_s7 + $0x60] sm:$0xff] %v1542_v9   ;;  %v1070_v19 = vadd.f32 %v2034_v63, %v1034_v2  ;;  %v1073_v21 = vadd.f32 %v2034_v63, %v1037_v14  ;;  %v1035_v8 = vmul.f32 %v2031_v58, %v991_v15  ;;  %v1104_v12 = vmax.f32 %v1072_v11, 0.0 }
 0x159   : > { %v1028_v38 = vmul.f32 %v2031_v58, %v964_v20  ;;  %v1532_v22 = vpack.c.bf16 %v1095_v17, %v1094_v6  ;;  %v967_v41 = vadd.f32 %v2103_v46, %v806_v18 }
 0x15a   : > { %v1105_v25 = vmax.f32 %v1073_v21, 0.0  ;;  %v1071_v3 = vadd.f32 %v2034_v63, %v1035_v8  ;;  %v1102_v16 = vmax.f32 %v1070_v19, 0.0 }
 0x15b   : > { %1568 = vst [vmem:[%s2054_s7 + $0x50] sm:$0xff] %v1532_v22   ;;  %v1064_v55 = vadd.f32 %v2034_v63, %v1028_v38  ;;  %v1029_v23 = vmul.f32 %v2031_v58, %v967_v41 }
 0x15c   : > { %v1557_v24 = vpack.c.bf16 %v1105_v25, %v1104_v12  ;;  %v1103_v26 = vmax.f32 %v1071_v3, 0.0 }
 0x15d   : > { %v1065_v27 = vadd.f32 %v2034_v63, %v1029_v23  ;;  %v1096_v29 = vmax.f32 %v1064_v55, 0.0 }
 0x15e   : > { %1573 = vst [vmem:[%s2054_s7 + $0x78] sm:$0xff] %v1557_v24   ;;  %v1552_v28 = vpack.c.bf16 %v1103_v26, %v1102_v16 }
 0x15f   : > { %v1097_v30 = vmax.f32 %v1065_v27, 0.0 }
 0x160   : > { %1572 = vst [vmem:[%s2054_s7 + $0x70] sm:$0xff] %v1552_v28  }
 0x161   : > { %v1537_v46 = vpack.c.bf16 %v1097_v30, %v1096_v29 }
 0x163   : > { %1569 = vst [vmem:[%s2054_s7 + $0x58] sm:$0xff] %v1537_v46  }
 0x164 PF: > { %s13_s12 = sadd.s32 1, %s1853_s12  }
 0x165   : > { %p10_p4 = scmp.ge.s32.totalorder %s13_s12, 4  }
 0x167   :  { %12 = sbr.rel (!%p10_p4) target bundleno = 1 (0x1), region = 62 }

// kernel: _lambda_.13
= control target key start
LH: loop header
LB: loop body
LE: loop exit
PB: predicated region body
PF: predicated region fallthrough
CT: control target
= control target key end

     0   :  { %s2558_s0 = inlined_call_operand.vmem [shape: bf16[128,576], index: 0, kind: input, shape index: {}]   ;;  %s2559_s1 = inlined_call_operand.vmem [shape: bf16[576,128], index: 1, kind: input, shape index: {}]   ;;  %s2560_s2 = inlined_call_operand.vmem [shape: f32[8,128], index: 2, kind: input, shape index: {}]   ;;  %s2561_s3 = inlined_call_operand.vmem [shape: bf16[128,128], index: 3, kind: input, shape index: {}]   ;;  %s2562_s4 = inlined_call_operand.vmem [shape: bf16[128,128], index: 4, kind: input, shape index: {}]   ;;  %s2563_s5 = inlined_call_operand.vmem [shape: f32[2,128], index: 5, kind: input, shape index: {}]   ;;  %s2564_s6 = inlined_call_operand.vmem [shape: f32[128,128], index: 6, kind: input, shape index: {}]   ;;  %s2565_s7 = inlined_call_operand.hbm [shape: f32[2,128], index: 7, kind: output, shape index: {}]  }
   0x1   :  { %v1878_v0 = vld [vmem:[%s2559_s1 + $0x40] sm:$0xff]   ;;  %v1882_v4 = vld [vmem:[%s2559_s1 + $0x48] sm:$0xff]   ;;  %v1886_v8 = vld [vmem:[%s2559_s1 + $0x50] sm:$0xff]  }
   0x2   :  { %v1879_v1 = vld [vmem:[%s2559_s1] sm:$0xff]   ;;  %1478 = vmatprep.subr.bf16.mxu0 %v1878_v0  ;;  %v1883_v5 = vld [vmem:[%s2559_s1 + $0x8] sm:$0xff]   ;;  %v1887_v9 = vld [vmem:[%s2559_s1 + $0x10] sm:$0xff]  }
   0x3   :  { %v1880_v2 = vld [vmem:[%s2559_s1 + $0xc0] sm:$0xff]   ;;  %1479 = vmatpush3.bf16.msra.mxu0 %v1879_v1  ;;  %v1884_v6 = vld [vmem:[%s2559_s1 + $0xc8] sm:$0xff]   ;;  %v1888_v10 = vld [vmem:[%s2559_s1 + $0xd0] sm:$0xff]  }
   0x4   :  { %v1881_v3 = vld [vmem:[%s2559_s1 + $0x80] sm:$0xff]   ;;  %1542 = vmatprep.subr.bf16.mxu1 %v1880_v2  ;;  %1480 = vmatprep.subr.bf16.mxu0 %v1882_v4  ;;  %v1885_v7 = vld [vmem:[%s2559_s1 + $0x88] sm:$0xff]   ;;  %v1889_v11 = vld [vmem:[%s2559_s1 + $0x90] sm:$0xff]  }
   0x5   :  { %1543 = vmatpush3.bf16.msra.mxu1 %v1881_v3  ;;  %v1890_v12 = vld [vmem:[%s2559_s1 + $0x58] sm:$0xff]   ;;  %v1894_v16 = vld [vmem:[%s2559_s1 + $0x60] sm:$0xff]   ;;  %v1898_v20 = vld [vmem:[%s2559_s1 + $0x68] sm:$0xff]  }
   0x6   :  { %1544 = vmatprep.subr.bf16.mxu1 %v1884_v6  ;;  %v1891_v13 = vld [vmem:[%s2559_s1 + $0x18] sm:$0xff]   ;;  %v1895_v17 = vld [vmem:[%s2559_s1 + $0x20] sm:$0xff]   ;;  %v1899_v21 = vld [vmem:[%s2559_s1 + $0x28] sm:$0xff]  }
   0x7   :  { %1481 = vmatpush3.bf16.msra.mxu0 %v1883_v5  ;;  %v1892_v14 = vld [vmem:[%s2559_s1 + $0xd8] sm:$0xff]   ;;  %v1896_v18 = vld [vmem:[%s2559_s1 + $0xe0] sm:$0xff]   ;;  %v1900_v22 = vld [vmem:[%s2559_s1 + $0xe8] sm:$0xff]  }
   0x8   :  { %1482 = vmatprep.subr.bf16.mxu0 %v1886_v8  ;;  %v1893_v15 = vld [vmem:[%s2559_s1 + $0x98] sm:$0xff]   ;;  %v1897_v19 = vld [vmem:[%s2559_s1 + $0xa0] sm:$0xff]   ;;  %v1901_v23 = vld [vmem:[%s2559_s1 + $0xa8] sm:$0xff]  }
   0x9   :  { %1545 = vmatpush3.bf16.msra.mxu1 %v1885_v7  ;;  %v1902_v24 = vld [vmem:[%s2559_s1 + $0x70] sm:$0xff]   ;;  %v1906_v28 = vld [vmem:[%s2559_s1 + $0x78] sm:$0xff]   ;;  %v1915_v35 = vld [vmem:[%s2558_s0 + $0xc] ss:$20 sps:$4 sm:$0xff]  }
   0xa   :  { %1546 = vmatprep.subr.bf16.mxu1 %v1888_v10  ;;  %v1903_v25 = vld [vmem:[%s2559_s1 + $0x30] sm:$0xff]   ;;  %v1907_v29 = vld [vmem:[%s2559_s1 + $0x38] sm:$0xff]   ;;  %v1916_v36 = vld [vmem:[%s2558_s0 + $0x2c] ss:$20 sps:$4 sm:$0xff]   ;;  %723 = vmatprep.mubr.bf16.mxu1 %v1915_v35 }
   0xb   :  { %1483 = vmatpush3.bf16.msra.mxu0 %v1887_v9  ;;  %v1904_v26 = vld [vmem:[%s2559_s1 + $0xf0] sm:$0xff]   ;;  %v1908_v30 = vld [vmem:[%s2559_s1 + $0xf8] sm:$0xff]   ;;  %v1937_v42 = vld [vmem:[%s2559_s1 + $0x100] sm:$0xff]  }
   0xc   :  { %1484 = vmatprep.subr.bf16.mxu0 %v1890_v12  ;;  %v1905_v27 = vld [vmem:[%s2559_s1 + $0xb0] sm:$0xff]   ;;  %v1911_v32 = vld [vmem:[%s2558_s0 + $0x4] ss:$20 sps:$4 sm:$0xff]   ;;  %v1913_v34 = vld [vmem:[%s2558_s0 + $0x8] ss:$20 sps:$4 sm:$0xff]  }
   0xd   :  { %1547 = vmatpush3.bf16.msra.mxu1 %v1889_v11  ;;  %v1909_v31 = vld [vmem:[%s2558_s0] ss:$20 sps:$4 sm:$0xff]   ;;  %v1912_v33 = vld [vmem:[%s2559_s1 + $0xb8] sm:$0xff]   ;;  %626 = vmatprep.mubr.bf16.mxu0 %v1911_v32  ;;  %v1921_v40 = vld [vmem:[%s2558_s0 + $0x30] ss:$20 sps:$4 sm:$0xff]  }
   0xe   :  { %1548 = vmatprep.subr.bf16.mxu1 %v1892_v14  ;;  %v1919_v37 = vld [vmem:[%s2558_s0 + $0x34] ss:$20 sps:$4 sm:$0xff]   ;;  %v1925_v41 = vld [vmem:[%s2558_s0 + $0x5c] ss:$20 sps:$4 sm:$0xff]   ;;  %v1927_v45 = vld [vmem:[%s2558_s0 + $0x58] ss:$20 sps:$4 sm:$0xff]  }
   0xf   :  { %1485 = vmatpush3.bf16.msra.mxu0 %v1891_v13  ;;  %v1918_v38 = vld [vmem:[%s2558_s0 + $0x28] ss:$20 sps:$4 sm:$0xff]   ;;  %v1924_v43 = vld [vmem:[%s2558_s0 + $0x50] ss:$20 sps:$4 sm:$0xff]   ;;  %v1930_v49 = vld [vmem:[%s2558_s0 + $0x78] ss:$20 sps:$4 sm:$0xff]  }
  0x10   :  { %1486 = vmatprep.subr.bf16.mxu0 %v1894_v16  ;;  %v1922_v39 = vld [vmem:[%s2558_s0 + $0x54] ss:$20 sps:$4 sm:$0xff]   ;;  %v1928_v44 = vld [vmem:[%s2558_s0 + $0x7c] ss:$20 sps:$4 sm:$0xff]   ;;  %v1931_v46 = vld [vmem:[%s2558_s0 + $0x84] ss:$20 sps:$4 sm:$0xff]  }
  0x11   :  { %1549 = vmatpush3.bf16.msra.mxu1 %v1893_v15  ;;  %v1950_v47 = vld [vmem:[%s2559_s1 + $0x108] sm:$0xff]   ;;  %v1957_v48 = vld [vmem:[%s2559_s1 + $0x110] sm:$0xff]   ;;  %v1934_v50 = vld [vmem:[%s2558_s0 + $0xa4] ss:$20 sps:$4 sm:$0xff]  }
  0x12   :  { %1550 = vmatprep.subr.bf16.mxu1 %v1896_v18  ;;  %v1961_v51 = vld [vmem:[%s2559_s1 + $0x118] sm:$0xff]   ;;  %v1933_v52 = vld [vmem:[%s2558_s0 + $0x80] ss:$20 sps:$4 sm:$0xff]   ;;  %v1946_v61 = vld [vmem:[%s2558_s0 + $0xd0] ss:$20 sps:$4 sm:$0xff]  }
  0x13   :  { %1487 = vmatpush3.bf16.msra.mxu0 %v1895_v17  ;;  %v1938_v53 = vld [vmem:[%s2558_s0 + $0xac] ss:$20 sps:$4 sm:$0xff]   ;;  %v1940_v57 = vld [vmem:[%s2558_s0 + $0xa8] ss:$20 sps:$4 sm:$0xff]   ;;  %v1949_v63 = vld [vmem:[%s2558_s0 + $0xf0] ss:$20 sps:$4 sm:$0xff]  }
  0x14   :  { %1488 = vmatprep.subr.bf16.mxu0 %v1898_v20  ;;  %v1964_v54 = vld [vmem:[%s2562_s4] sm:$0xff]   ;;  %v1944_v58 = vld [vmem:[%s2558_s0 + $0xd4] ss:$20 sps:$4 sm:$0xff]   ;;  %v1951_v62 = vld [vmem:[%s2558_s0 + $0xfc] ss:$20 sps:$4 sm:$0xff]  }
  0x15   :  { %1551 = vmatpush3.bf16.msra.mxu1 %v1897_v19  ;;  %v1936_v55 = vld [vmem:[%s2558_s0 + $0xa0] ss:$20 sps:$4 sm:$0xff]   ;;  %v1943_v59 = vld [vmem:[%s2558_s0 + $0xc8] ss:$20 sps:$4 sm:$0xff]  }
  0x16   :  { %1552 = vmatprep.subr.bf16.mxu1 %v1900_v22  ;;  %v1941_v56 = vld [vmem:[%s2558_s0 + $0xcc] ss:$20 sps:$4 sm:$0xff]   ;;  %v1947_v60 = vld [vmem:[%s2558_s0 + $0xf4] ss:$20 sps:$4 sm:$0xff]   ;;  %v1954_v0 = vld [vmem:[%s2558_s0 + $0x11c] ss:$20 sps:$4 sm:$0xff]  }
  0x17   :  { %1489 = vmatpush3.bf16.msra.mxu0 %v1899_v21 }
  0x18   :  { %1490 = vmatprep.subr.bf16.mxu0 %v1902_v24 }
  0x19   :  { %1553 = vmatpush3.bf16.msra.mxu1 %v1901_v23 }
  0x1a   :  { %1554 = vmatprep.subr.bf16.mxu1 %v1904_v26 }
  0x1b   :  { %1491 = vmatpush3.bf16.msra.mxu0 %v1903_v25 }
  0x1c   :  { %1492 = vmatprep.subr.bf16.mxu0 %v1906_v28 }
  0x1d   :  { %1555 = vmatpush3.bf16.msra.mxu1 %v1905_v27 }
  0x1e   :  { %1556 = vmatprep.subr.bf16.mxu1 %v1908_v30 }
  0x1f   :  { %1493 = vmatpush3.bf16.msra.mxu0 %v1907_v29 }
  0x20   :  { %1668 = vmatprep.subr.bf16.mxu0 %v1937_v42 }
  0x21   :  { %1557 = vmatpush3.bf16.msra.mxu1 %v1912_v33 }
  0x22   :  { %627 = vmatmul.mubr.bf16.vlgmr.msra.gmra.mrb[0].mxu0 %v1909_v31 }
  0x23   :  { %634 = vmatprep.mubr.bf16.mxu0 %v1916_v36  ;;  %1669 = vmatpush3.bf16.msra.mxu0 %v1937_v42 }
  0x24   :  { %724 = vmatmul.mubr.bf16.vlgmr.msra.gmra.mrb[0].mxu1 %v1913_v34  ;;  %1670 = vmatprep.subr.bf16.mxu0 %v1950_v47 }
  0x25   :  { %731 = vmatprep.mubr.bf16.mxu1 %v1919_v37 }
  0x27   :  { %1671 = vmatpush3.bf16.msra.mxu0 %v1950_v47 }
  0x28   :  { %1672 = vmatprep.subr.bf16.mxu0 %v1957_v48 }
  0x2a   :  { %635 = vmatmul.mubr.bf16.gmra.mrb[4].mxu0 %v1918_v38 }
  0x2b   :  { %642 = vmatprep.mubr.bf16.mxu0 %v1922_v39  ;;  %1673 = vmatpush3.bf16.msra.mxu0 %v1957_v48 }
  0x2c   :  { %732 = vmatmul.mubr.bf16.gmra.mrb[4].mxu1 %v1921_v40  ;;  %1674 = vmatprep.subr.bf16.mxu0 %v1961_v51 }
  0x2d   :  { %739 = vmatprep.mubr.bf16.mxu1 %v1925_v41 }
  0x2f   :  { %1675 = vmatpush3.bf16.msra.mxu0 %v1961_v51 }
  0x30   :  { %1692 = vmatprep.subr.bf16.mxu0 %v1964_v54 }
  0x32   :  { %643 = vmatmul.mubr.bf16.gmra.mrb[8].mxu0 %v1924_v43 }
  0x33   :  { %650 = vmatprep.mubr.bf16.mxu0 %v1928_v44 }
  0x34   :  { %740 = vmatmul.mubr.bf16.gmra.mrb[8].mxu1 %v1927_v45 }
  0x35   :  { %747 = vmatprep.mubr.bf16.mxu1 %v1931_v46 }
  0x3a   :  { %651 = vmatmul.mubr.bf16.gmra.mrb[12].mxu0 %v1930_v49 }
  0x3b   :  { %658 = vmatprep.mubr.bf16.mxu0 %v1934_v50 }
  0x3c   :  { %748 = vmatmul.mubr.bf16.gmra.mrb[12].mxu1 %v1933_v52 }
  0x3d   :  { %755 = vmatprep.mubr.bf16.mxu1 %v1938_v53 }
  0x42   :  { %659 = vmatmul.mubr.bf16.gmra.mrb[16].mxu0 %v1936_v55 }
  0x43   :  { %666 = vmatprep.mubr.bf16.mxu0 %v1941_v56 }
  0x44   :  { %756 = vmatmul.mubr.bf16.gmra.mrb[16].mxu1 %v1940_v57 }
  0x45   :  { %763 = vmatprep.mubr.bf16.mxu1 %v1944_v58 }
  0x4a   :  { %667 = vmatmul.mubr.bf16.gmra.mrb[20].mxu0 %v1943_v59 }
  0x4b   :  { %674 = vmatprep.mubr.bf16.mxu0 %v1947_v60 }
  0x4c   :  { %764 = vmatmul.mubr.bf16.gmra.mrb[20].mxu1 %v1946_v61 }
  0x4d   :  { %771 = vmatprep.mubr.bf16.mxu1 %v1951_v62 }
  0x4e   :  { %12 = vsyncpa [#allocation3], 0  ;;  %v1953_v1 = vld [vmem:[%s2558_s0 + $0xf8] ss:$20 sps:$4 sm:$0xff]   ;;  %v1962_v4 = vld [vmem:[%s2558_s0 + $0x10] ss:$20 sps:$4 sm:$0xff]   ;;  %v149_v29 = vlaneseq }
  0x4f   :  { %v1958_v2 = vld [vmem:[%s2558_s0 + $0x124] ss:$20 sps:$4 sm:$0xff]   ;;  %vm569_vm0 = vcmask 523264   ;;  %v1960_v5 = vld [vmem:[%s2558_s0 + $0x120] ss:$20 sps:$4 sm:$0xff]   ;;  %v1965_v8 = vld [vmem:[%s2562_s4 + $0x8] sm:$0xff]  }
  0x50   :  { %v1956_v3 = vld [vmem:[%s2558_s0 + $0x118] ss:$20 sps:$4 sm:$0xff]   ;;  %v1966_v7 = vld [vmem:[%s2558_s0 + $0x60] ss:$20 sps:$4 sm:$0xff]   ;;  %v1967_v10 = vld [vmem:[%s2558_s0 + $0x88] ss:$20 sps:$4 sm:$0xff]  }
  0x51   :  { %v1963_v6 = vld [vmem:[%s2558_s0 + $0x38] ss:$20 sps:$4 sm:$0xff]   ;;  %v1968_v9 = vld [vmem:[%s2562_s4 + $0x10] sm:$0xff]   ;;  %v1972_v13 = vld [vmem:[%s2562_s4 + $0x20] sm:$0xff]   ;;  %v2010_v28 = vmov 0.0|0.0   ;;  %v2339_v30 = vshrl.u32 %v149_v29, 7 }
  0x52   :  { %675 = vmatmul.mubr.bf16.gmra.mrb[24].mxu0 %v1949_v63  ;;  %v1970_v11 = vld [vmem:[%s2558_s0 + $0xb0] ss:$20 sps:$4 sm:$0xff]   ;;  %v1969_v12 = vld [vmem:[%s2562_s4 + $0x18] sm:$0xff]   ;;  %v1974_v15 = vld [vmem:[%s2558_s0 + $0x100] ss:$20 sps:$4 sm:$0xff]   ;;  %1794 = vmatprep.subr.bf16.mxu1 %v2010_v28  ;;  %vm2011_vm1 = vmmov 0  }
  0x53   :  { %682 = vmatprep.mubr.bf16.mxu0 %v1954_v0  ;;  %v1971_v14 = vld [vmem:[%s2558_s0 + $0xd8] ss:$20 sps:$4 sm:$0xff]   ;;  %v1976_v17 = vld [vmem:[%s2562_s4 + $0x30] sm:$0xff]   ;;  %v1975_v18 = vld [vmem:[%s2558_s0 + $0x128] ss:$20 sps:$4 sm:$0xff]   ;;  %v151_v31 = vsub.s32 0, %v2339_v30 }
  0x54   :  { %772 = vmatmul.mubr.bf16.gmra.mrb[24].mxu1 %v1953_v1  ;;  %v1973_v16 = vld [vmem:[%s2562_s4 + $0x28] sm:$0xff]   ;;  %v1978_v19 = vld [vmem:[%s2561_s3] sm:$0xff]   ;;  %v1977_v20 = vld [vmem:[%s2562_s4 + $0x38] sm:$0xff]   ;;  %v2012_v61 = vmov 0.0   ;;  %s2013_s23 = smov [#allocation2]  }
  0x55   :  { %779 = vmatprep.mubr.bf16.mxu1 %v1958_v2  ;;  %v1979_v21 = vld [vmem:[%s2561_s3 + $0x8] sm:$0xff]   ;;  %v1980_v22 = vld [vmem:[%s2561_s3 + $0x10] sm:$0xff]   ;;  %v1981_v23 = vld [vmem:[%s2561_s3 + $0x18] sm:$0xff]   ;;  %s1370_s24 = sshll.u32 %s2013_s23, 4  ;;  %s1371_s24 = int_to_ptr.vmem [resolvable:$true] %s1370_s24 }
  0x56   :  { %v1982_v24 = vld [vmem:[%s2561_s3 + $0x20] sm:$0xff]   ;;  %v1983_v25 = vld [vmem:[%s2561_s3 + $0x28] sm:$0xff]   ;;  %v1984_v26 = vld [vmem:[%s2561_s3 + $0x30] sm:$0xff]   ;;  %p1991_p1 = scmp.lt.s32.totalorder %s1371_s24, %s1371_s24 }
  0x57   :  { %v1985_v27 = vld [vmem:[%s2561_s3 + $0x38] sm:$0xff]   ;;  %v2345_v32 = vld [vmem:[%s2560_s2] sm:$0xff] }
  0x58   :  { %v2348_v34 = vrot.slane %v2345_v32, %v151_v31 }
  0x5a   :  { %683 = vmatmul.mubr.bf16.gmra.mrb[28].mxu0 %v1956_v3 }
  0x5b   :  { %1676 = vmatprep.mubr.msk.bf16.mxu0 %vm569_vm0, %v1962_v4 }
  0x5c   :  { %780 = vmatmul.mubr.bf16.gmra.mrb[28].mxu1 %v1960_v5 }
  0x5d   :  { %1756 = vmatprep.mubr.msk.f32.mxu1 %vm2011_vm1, %v2012_v61 }
  0x62   :  { %1677 = vmatmul.mubr.msk.bf16.vlgmr.msra.gmra.mrb[32].mxu0 %vm569_vm0, %v1963_v6 }
  0x63   :  { %1693 = vmatpush3.bf16.msra.mxu0 %v1964_v54  ;;  %1680 = vmatprep.mubr.msk.bf16.mxu0 %vm569_vm0, %v1966_v7 }
  0x64   :  { %1694 = vmatprep.subr.bf16.mxu0 %v1965_v8 }
  0x67   :  { %1695 = vmatpush3.bf16.msra.mxu0 %v1965_v8 }
  0x68   :  { %1696 = vmatprep.subr.bf16.mxu0 %v1968_v9 }
  0x6a   :  { %1681 = vmatmul.mubr.msk.bf16.gmra.mrb[36].mxu0 %vm569_vm0, %v1967_v10 }
  0x6b   :  { %1697 = vmatpush3.bf16.msra.mxu0 %v1968_v9  ;;  %1684 = vmatprep.mubr.msk.bf16.mxu0 %vm569_vm0, %v1970_v11 }
  0x6c   :  { %1698 = vmatprep.subr.bf16.mxu0 %v1969_v12 }
  0x6f   :  { %1699 = vmatpush3.bf16.msra.mxu0 %v1969_v12 }
  0x70   :  { %1700 = vmatprep.subr.bf16.mxu0 %v1972_v13 }
  0x72   :  { %1685 = vmatmul.mubr.msk.bf16.gmra.mrb[40].mxu0 %vm569_vm0, %v1971_v14 }
  0x73   :  { %1701 = vmatpush3.bf16.msra.mxu0 %v1972_v13  ;;  %1688 = vmatprep.mubr.msk.bf16.mxu0 %vm569_vm0, %v1974_v15 }
  0x74   :  { %1702 = vmatprep.subr.bf16.mxu0 %v1973_v16 }
  0x77   :  { %1703 = vmatpush3.bf16.msra.mxu0 %v1973_v16 }
  0x78   :  { %1704 = vmatprep.subr.bf16.mxu0 %v1976_v17 }
  0x7a   :  { %1689 = vmatmul.mubr.msk.bf16.gmra.mrb[44].mxu0 %vm569_vm0, %v1975_v18 }
  0x7b   :  { %1705 = vmatpush3.bf16.msra.mxu0 %v1976_v17  ;;  %1708 = vmatprep.mubr.bf16.mxu0 %v1978_v19 }
  0x7c   :  { %1706 = vmatprep.subr.bf16.mxu0 %v1977_v20 }
  0x7f   :  { %1707 = vmatpush3.bf16.msra.mxu0 %v1977_v20 }
  0x82   :  { %1709 = vmatmul.mubr.bf16.vlgmr.msra.gmra.mrb[32].mxu0 %v1979_v21 }
  0x83   :  { %1712 = vmatprep.mubr.bf16.mxu0 %v1980_v22 }
  0x8a   :  { %1713 = vmatmul.mubr.bf16.gmra.mrb[36].mxu0 %v1981_v23 }
  0x8b   :  { %1716 = vmatprep.mubr.bf16.mxu0 %v1982_v24 }
  0x92   :  { %1717 = vmatmul.mubr.bf16.gmra.mrb[40].mxu0 %v1983_v25 }
  0x93   :  { %1720 = vmatprep.mubr.bf16.mxu0 %v1984_v26 }
  0x9a   :  { %1721 = vmatmul.mubr.bf16.gmra.mrb[44].mxu0 %v1985_v27 }
  0xf5   :  { %v1494_v33 = vpop.f32.mrb[0].mxu0 }
  0xf6   :  { %v1495_v35 = vpop.f32.mrb[1].mxu0 }
  0xf7   :  { %v1496_v36 = vadd.f32 %v1495_v35, %v1494_v33  ;;  %v1497_v37 = vpop.f32.mrb[2].mxu0  ;;  %v1558_v38 = vpop.f32.mrb[0].mxu1 }
  0xf8   :  { %v1498_v39 = vpop.f32.mrb[3].mxu0  ;;  %v1559_v42 = vpop.f32.mrb[1].mxu1 }
  0xf9   :  { %v629_v40 = vadd.f32 %v1496_v36, %v2348_v34  ;;  %v1499_v41 = vadd.f32 %v1498_v39, %v1497_v37  ;;  %v1560_v43 = vadd.f32 %v1559_v42, %v1558_v38  ;;  %v1561_v44 = vpop.f32.mrb[2].mxu1 }
  0xfa   :  { %v1562_v46 = vpop.f32.mrb[3].mxu1 }
  0xfb   :  { %v632_v45 = vadd.f32 %v1499_v41, %v2348_v34  ;;  %v1563_v47 = vadd.f32 %v1562_v46, %v1561_v44  ;;  %v2352_v48 = vadd.f32 %v1560_v43, %v629_v40 }
  0xfd   :  { %v1500_v49 = vpop.f32.mrb[4].mxu0  ;;  %v2354_v51 = vadd.f32 %v1563_v47, %v632_v45 }
  0xfe   :  { %v1501_v50 = vpop.f32.mrb[5].mxu0 }
  0xff   :  { %v1502_v52 = vadd.f32 %v1501_v50, %v1500_v49  ;;  %v1503_v53 = vpop.f32.mrb[6].mxu0  ;;  %v1564_v54 = vpop.f32.mrb[4].mxu1 }
 0x100   :  { %v1504_v55 = vpop.f32.mrb[7].mxu0  ;;  %v1565_v58 = vpop.f32.mrb[5].mxu1 }
 0x101   :  { %v637_v56 = vadd.f32 %v1502_v52, %v2348_v34  ;;  %v1505_v57 = vadd.f32 %v1504_v55, %v1503_v53  ;;  %v1566_v59 = vadd.f32 %v1565_v58, %v1564_v54  ;;  %v1567_v60 = vpop.f32.mrb[6].mxu1 }
 0x102   :  { %v1568_v63 = vpop.f32.mrb[7].mxu1 }
 0x103   :  { %v640_v62 = vadd.f32 %v1505_v57, %v2348_v34  ;;  %v1569_v0 = vadd.f32 %v1568_v63, %v1567_v60  ;;  %v2360_v1 = vadd.f32 %v1566_v59, %v637_v56 }
 0x105   :  { %v1506_v2 = vpop.f32.mrb[8].mxu0  ;;  %v2362_v4 = vadd.f32 %v1569_v0, %v640_v62 }
 0x106   :  { %v1507_v3 = vpop.f32.mrb[9].mxu0 }
 0x107   :  { %v1508_v5 = vadd.f32 %v1507_v3, %v1506_v2  ;;  %v1509_v6 = vpop.f32.mrb[10].mxu0  ;;  %v1570_v7 = vpop.f32.mrb[8].mxu1 }
 0x108   :  { %v1510_v8 = vpop.f32.mrb[11].mxu0  ;;  %v1571_v11 = vpop.f32.mrb[9].mxu1 }
 0x109   :  { %v645_v9 = vadd.f32 %v1508_v5, %v2348_v34  ;;  %v1511_v10 = vadd.f32 %v1510_v8, %v1509_v6  ;;  %v1572_v12 = vadd.f32 %v1571_v11, %v1570_v7  ;;  %v1573_v13 = vpop.f32.mrb[10].mxu1 }
 0x10a   :  { %v1574_v15 = vpop.f32.mrb[11].mxu1 }
 0x10b   :  { %v648_v14 = vadd.f32 %v1511_v10, %v2348_v34  ;;  %v1575_v16 = vadd.f32 %v1574_v15, %v1573_v13  ;;  %v2366_v17 = vadd.f32 %v1572_v12, %v645_v9 }
 0x10d   :  { %v1512_v18 = vpop.f32.mrb[12].mxu0  ;;  %v2368_v20 = vadd.f32 %v1575_v16, %v648_v14 }
 0x10e   :  { %v1513_v19 = vpop.f32.mrb[13].mxu0 }
 0x10f   :  { %v1514_v21 = vadd.f32 %v1513_v19, %v1512_v18  ;;  %v1515_v22 = vpop.f32.mrb[14].mxu0  ;;  %v1576_v23 = vpop.f32.mrb[12].mxu1 }
 0x110   :  { %v1516_v24 = vpop.f32.mrb[15].mxu0  ;;  %v1577_v27 = vpop.f32.mrb[13].mxu1 }
 0x111   :  { %v653_v25 = vadd.f32 %v1514_v21, %v2348_v34  ;;  %v1517_v26 = vadd.f32 %v1516_v24, %v1515_v22  ;;  %v1578_v29 = vadd.f32 %v1577_v27, %v1576_v23  ;;  %v1579_v31 = vpop.f32.mrb[14].mxu1 }
 0x112   :  { %v1580_v35 = vpop.f32.mrb[15].mxu1 }
 0x113   :  { %v656_v33 = vadd.f32 %v1517_v26, %v2348_v34  ;;  %v1581_v36 = vadd.f32 %v1580_v35, %v1579_v31  ;;  %v2372_v37 = vadd.f32 %v1578_v29, %v653_v25 }
 0x115   :  { %v1518_v38 = vpop.f32.mrb[16].mxu0  ;;  %v2374_v40 = vadd.f32 %v1581_v36, %v656_v33 }
 0x116   :  { %v1519_v39 = vpop.f32.mrb[17].mxu0 }
 0x117   :  { %v1520_v41 = vadd.f32 %v1519_v39, %v1518_v38  ;;  %v1521_v42 = vpop.f32.mrb[18].mxu0  ;;  %v1582_v43 = vpop.f32.mrb[16].mxu1 }
 0x118   :  { %v1522_v44 = vpop.f32.mrb[19].mxu0  ;;  %v1583_v47 = vpop.f32.mrb[17].mxu1 }
 0x119   :  { %v661_v45 = vadd.f32 %v1520_v41, %v2348_v34  ;;  %v1523_v46 = vadd.f32 %v1522_v44, %v1521_v42  ;;  %v1584_v49 = vadd.f32 %v1583_v47, %v1582_v43  ;;  %v1585_v50 = vpop.f32.mrb[18].mxu1 }
 0x11a   :  { %v1586_v53 = vpop.f32.mrb[19].mxu1 }
 0x11b   :  { %v664_v52 = vadd.f32 %v1523_v46, %v2348_v34  ;;  %v1587_v54 = vadd.f32 %v1586_v53, %v1585_v50  ;;  %v2378_v55 = vadd.f32 %v1584_v49, %v661_v45 }
 0x11d   :  { %v1524_v56 = vpop.f32.mrb[20].mxu0  ;;  %v2380_v58 = vadd.f32 %v1587_v54, %v664_v52  ;;  %v1128_v54 = vsub.s32 3, %v2339_v30 }
 0x11e   :  { %v1525_v57 = vpop.f32.mrb[21].mxu0 }
 0x11f   :  { %v1526_v59 = vadd.f32 %v1525_v57, %v1524_v56  ;;  %v1527_v60 = vpop.f32.mrb[22].mxu0  ;;  %v1588_v62 = vpop.f32.mrb[20].mxu1  ;;  %v1148_v56 = vsub.s32 1, %v2339_v30  ;;  %v2403_v57 = vrot.slane %v2345_v32, %v1128_v54 }
 0x120   :  { %v1528_v63 = vpop.f32.mrb[23].mxu0  ;;  %v1589_v3 = vpop.f32.mrb[21].mxu1 }
 0x121   :  { %v669_v0 = vadd.f32 %v1526_v59, %v2348_v34  ;;  %v1529_v2 = vadd.f32 %v1528_v63, %v1527_v60  ;;  %v1590_v5 = vadd.f32 %v1589_v3, %v1588_v62  ;;  %v1591_v6 = vpop.f32.mrb[22].mxu1  ;;  %v1168_v59 = vsub.s32 2, %v2339_v30 }
 0x122   :  { %v1592_v8 = vpop.f32.mrb[23].mxu1 }
 0x123   :  { %v672_v7 = vadd.f32 %v1529_v2, %v2348_v34  ;;  %v1593_v9 = vadd.f32 %v1592_v8, %v1591_v6  ;;  %v2384_v10 = vadd.f32 %v1590_v5, %v669_v0  ;;  %v2413_v5 = vrot.slane %v2345_v32, %v1168_v59 }
 0x125   :  { %v1530_v11 = vpop.f32.mrb[24].mxu0  ;;  %v2386_v13 = vadd.f32 %v1593_v9, %v672_v7 }
 0x126   :  { %v1531_v12 = vpop.f32.mrb[25].mxu0 }
 0x127   :  { %v1532_v14 = vadd.f32 %v1531_v12, %v1530_v11  ;;  %v1533_v15 = vpop.f32.mrb[26].mxu0  ;;  %v1594_v16 = vpop.f32.mrb[24].mxu1 }
 0x128   :  { %v1534_v18 = vpop.f32.mrb[27].mxu0  ;;  %v1595_v22 = vpop.f32.mrb[25].mxu1 }
 0x129   :  { %v677_v19 = vadd.f32 %v1532_v14, %v2348_v34  ;;  %v1535_v21 = vadd.f32 %v1534_v18, %v1533_v15  ;;  %v1596_v23 = vadd.f32 %v1595_v22, %v1594_v16  ;;  %v1597_v24 = vpop.f32.mrb[26].mxu1 }
 0x12a   :  { %v1598_v26 = vpop.f32.mrb[27].mxu1 }
 0x12b   :  { %v680_v25 = vadd.f32 %v1535_v21, %v2348_v34  ;;  %v1599_v27 = vadd.f32 %v1598_v26, %v1597_v24  ;;  %v2390_v29 = vadd.f32 %v1596_v23, %v677_v19 }
 0x12d   :  { %v1536_v31 = vpop.f32.mrb[28].mxu0  ;;  %v2392_v35 = vadd.f32 %v1599_v27, %v680_v25 }
 0x12e   :  { %v1537_v33 = vpop.f32.mrb[29].mxu0 }
 0x12f   :  { %v1538_v36 = vadd.f32 %v1537_v33, %v1536_v31  ;;  %v1539_v38 = vpop.f32.mrb[30].mxu0  ;;  %v1600_v39 = vpop.f32.mrb[28].mxu1 }
 0x130   :  { %v1540_v41 = vpop.f32.mrb[31].mxu0  ;;  %v1601_v44 = vpop.f32.mrb[29].mxu1 }
 0x131   :  { %v685_v42 = vadd.f32 %v1538_v36, %v2348_v34  ;;  %v1541_v43 = vadd.f32 %v1540_v41, %v1539_v38  ;;  %v1602_v45 = vadd.f32 %v1601_v44, %v1600_v39  ;;  %v1603_v46 = vpop.f32.mrb[30].mxu1 }
 0x132   :  { %v1604_v49 = vpop.f32.mrb[31].mxu1 }
 0x133   :  { %v688_v47 = vadd.f32 %v1541_v43, %v2348_v34  ;;  %v1605_v50 = vadd.f32 %v1604_v49, %v1603_v46  ;;  %v2396_v52 = vadd.f32 %v1602_v45, %v685_v42  ;;  %v2408_v34 = vrot.slane %v2345_v32, %v1148_v56 }
 0x135   :  { %v2398_v53 = vadd.f32 %v1605_v50, %v688_v47 }
 0x155   :  { %v1710_v60 = vpop.f32.mrb[32].mxu0 }
 0x156   :  { %v1842_v62 = vadd.f32 %v1710_v60, %v2360_v1  ;;  %v1047_v63 = vpop.f32.mrb[33].mxu0 }
 0x157   :  { %v1843_v0 = vadd.f32 %v1047_v63, %v2352_v48  ;;  %v1711_v2 = vpop.f32.mrb[34].mxu0 }
 0x158   :  { %v1132_v3 = vadd.f32 %v1842_v62, %v2403_v57  ;;  %v1844_v6 = vadd.f32 %v1711_v2, %v2362_v4  ;;  %v1050_v7 = vpop.f32.mrb[35].mxu0 }
 0x159   :  { %v1130_v8 = vadd.f32 %v1843_v0, %v2403_v57  ;;  %v1845_v9 = vadd.f32 %v1050_v7, %v2354_v51 }
 0x15a   :  { %v1152_v1 = vmul.f32 %v2408_v34, %v1132_v3  ;;  %v1133_v11 = vadd.f32 %v1844_v6, %v2403_v57 }
 0x15b   :  { %v1150_v12 = vmul.f32 %v2408_v34, %v1130_v8  ;;  %v1131_v48 = vadd.f32 %v1845_v9, %v2403_v57 }
 0x15c   :  { %v1172_v14 = vadd.f32 %v2413_v5, %v1152_v1  ;;  %v1153_v15 = vmul.f32 %v2408_v34, %v1133_v11 }
 0x15d   :  { %v1170_v16 = vadd.f32 %v2413_v5, %v1150_v12  ;;  %v1151_v4 = vmul.f32 %v2408_v34, %v1131_v48  ;;  %v1714_v18 = vpop.f32.mrb[36].mxu0 }
 0x15e   :  { %v1173_v19 = vadd.f32 %v2413_v5, %v1153_v15  ;;  %v1846_v51 = vadd.f32 %v1714_v18, %v2372_v37  ;;  %v1063_v21 = vpop.f32.mrb[37].mxu0  ;;  %v1188_v25 = vmax.f32 %v1172_v14, 0.0 }
 0x15f   :  { %v1171_v22 = vadd.f32 %v2413_v5, %v1151_v4  ;;  %v1847_v23 = vadd.f32 %v1063_v21, %v2366_v17  ;;  %v1715_v24 = vpop.f32.mrb[38].mxu0  ;;  %v1186_v36 = vmax.f32 %v1170_v16, 0.0 }
 0x160   :  { %v1189_v26 = vmax.f32 %v1173_v19, 0.0  ;;  %v1136_v27 = vadd.f32 %v1846_v51, %v2403_v57  ;;  %v1848_v31 = vadd.f32 %v1715_v24, %v2374_v40  ;;  %v1066_v33 = vpop.f32.mrb[39].mxu0 }
 0x161   :  { %v1187_v38 = vmax.f32 %v1171_v22, 0.0  ;;  %v1134_v39 = vadd.f32 %v1847_v23, %v2403_v57  ;;  %v1849_v41 = vadd.f32 %v1066_v33, %v2368_v20 }
 0x162   :  { %v1156_v37 = vmul.f32 %v2408_v34, %v1136_v27  ;;  %v1137_v42 = vadd.f32 %v1848_v31, %v2403_v57  ;;  %v1798_v43 = vpack.c.bf16 %v1189_v26, %v1188_v25 }
 0x163   :  { %v1154_v17 = vmul.f32 %v2408_v34, %v1134_v39  ;;  %v1135_v44 = vadd.f32 %v1849_v41, %v2403_v57  ;;  %v1795_v45 = vpack.c.bf16 %v1187_v38, %v1186_v36 }
 0x164   :  { %v1176_v46 = vadd.f32 %v2413_v5, %v1156_v37  ;;  %v1157_v40 = vmul.f32 %v2408_v34, %v1137_v42 }
 0x165   :  { %v1174_v47 = vadd.f32 %v2413_v5, %v1154_v17  ;;  %v1155_v49 = vmul.f32 %v2408_v34, %v1135_v44  ;;  %v1718_v50 = vpop.f32.mrb[40].mxu0  ;;  %1796 = vmatpush3.bf16.msra.mxu1 %v1795_v45 }
 0x166   :  { %v1177_v20 = vadd.f32 %v2413_v5, %v1157_v40  ;;  %v1850_v54 = vadd.f32 %v1718_v50, %v2384_v10  ;;  %v1079_v56 = vpop.f32.mrb[41].mxu0  ;;  %1797 = vmatprep.subr.bf16.mxu1 %v2010_v28  ;;  %v1192_v63 = vmax.f32 %v1176_v46, 0.0 }
 0x167   :  { %v1175_v59 = vadd.f32 %v2413_v5, %v1155_v49  ;;  %v1851_v60 = vadd.f32 %v1079_v56, %v2378_v55  ;;  %v1719_v62 = vpop.f32.mrb[42].mxu0  ;;  %v1190_v7 = vmax.f32 %v1174_v47, 0.0 }
 0x168   :  { %v1193_v0 = vmax.f32 %v1177_v20, 0.0  ;;  %v1140_v2 = vadd.f32 %v1850_v54, %v2403_v57  ;;  %v1852_v3 = vadd.f32 %v1719_v62, %v2386_v13  ;;  %v1082_v6 = vpop.f32.mrb[43].mxu0  ;;  %v1202_v54 = vld [vmem:[%s2563_s5] sm:$0x3] }
 0x169   :  { %v1191_v8 = vmax.f32 %v1175_v59, 0.0  ;;  %v1138_v9 = vadd.f32 %v1851_v60, %v2403_v57  ;;  %v1853_v10 = vadd.f32 %v1082_v6, %v2380_v58  ;;  %1799 = vmatpush3.bf16.msra.mxu1 %v1798_v43  ;;  %v1275_v59 = vld [vmem:[%s2564_s6 + $0x10] sm:$0xff]  ;;  %v1276_v60 = vld [vmem:[%s2564_s6 + $0x18] sm:$0xff] }
 0x16a   :  { %v1160_v1 = vmul.f32 %v2408_v34, %v1140_v2  ;;  %v1141_v11 = vadd.f32 %v1852_v3, %v2403_v57  ;;  %1800 = vmatprep.subr.bf16.mxu1 %v2010_v28  ;;  %v1804_v55 = vpack.c.bf16 %v1193_v0, %v1192_v63  ;;  %v1822_v62 = vpack.c.bf16 %v1276_v60, %v1275_v59  ;;  %v1277_v63 = vld [vmem:[%s2564_s6 + $0x20] sm:$0xff]  ;;  %v1278_v0 = vld [vmem:[%s2564_s6 + $0x28] sm:$0xff]  ;;  %v1279_v3 = vld [vmem:[%s2564_s6 + $0x30] sm:$0xff] }
 0x16b   :  { %v1158_v12 = vmul.f32 %v2408_v34, %v1138_v9  ;;  %v1139_v48 = vadd.f32 %v1853_v10, %v2403_v57  ;;  %v1801_v13 = vpack.c.bf16 %v1191_v8, %v1190_v7  ;;  %v1825_v2 = vpack.c.bf16 %v1278_v0, %v1277_v63  ;;  %v1281_v7 = vld [vmem:[%s2564_s6 + $0x40] sm:$0xff]  ;;  %v1282_v8 = vld [vmem:[%s2564_s6 + $0x48] sm:$0xff]  ;;  %v1283_v10 = vld [vmem:[%s2564_s6 + $0x50] sm:$0xff] }
 0x16c   :  { %v1180_v14 = vadd.f32 %v2413_v5, %v1160_v1  ;;  %v1161_v15 = vmul.f32 %v2408_v34, %v1141_v11  ;;  %v1831_v9 = vpack.c.bf16 %v1282_v8, %v1281_v7  ;;  %v1284_v1 = vld [vmem:[%s2564_s6 + $0x58] sm:$0xff] }
 0x16d   :  { %v1178_v16 = vadd.f32 %v2413_v5, %v1158_v12  ;;  %v1159_v58 = vmul.f32 %v2408_v34, %v1139_v48  ;;  %v1722_v4 = vpop.f32.mrb[44].mxu0  ;;  %1802 = vmatpush3.bf16.msra.mxu1 %v1801_v13  ;;  %v1834_v11 = vpack.c.bf16 %v1284_v1, %v1283_v10  ;;  %v1286_v12 = vld [vmem:[%s2564_s6 + $0x68] sm:$0xff]  ;;  %v1287_v13 = vld [vmem:[%s2564_s6 + $0x70] sm:$0xff] }
 0x16e   :  { %v1181_v18 = vadd.f32 %v2413_v5, %v1161_v15  ;;  %v1854_v19 = vadd.f32 %v1722_v4, %v2396_v52  ;;  %v1095_v51 = vpop.f32.mrb[45].mxu0  ;;  %1803 = vmatprep.subr.bf16.mxu1 %v2010_v28  ;;  %v1196_v24 = vmax.f32 %v1180_v14, 0.0  ;;  %v1288_v14 = vld [vmem:[%s2564_s6 + $0x78] sm:$0xff]  ;;  %v1291_v4 = vsub.s32 4, %v2339_v30 }
 0x16f   :  { %v1179_v21 = vadd.f32 %v2413_v5, %v1159_v58  ;;  %v1855_v22 = vadd.f32 %v1095_v51, %v2390_v29  ;;  %v1723_v23 = vpop.f32.mrb[46].mxu0  ;;  %v1194_v33 = vmax.f32 %v1178_v16, 0.0  ;;  %v1840_v15 = vpack.c.bf16 %v1288_v14, %v1287_v13 }
 0x170   :  { %v1197_v25 = vmax.f32 %v1181_v18, 0.0  ;;  %v1144_v26 = vadd.f32 %v1854_v19, %v2403_v57  ;;  %v1856_v27 = vadd.f32 %v1723_v23, %v2398_v53  ;;  %v1098_v31 = vpop.f32.mrb[47].mxu0  ;;  %v1292_v18 = vrot.slane %v2345_v32, %v1291_v4 }
 0x171   :  { %v1195_v36 = vmax.f32 %v1179_v21, 0.0  ;;  %v1142_v38 = vadd.f32 %v1855_v22, %v2403_v57  ;;  %v1857_v52 = vadd.f32 %v1098_v31, %v2392_v35  ;;  %1805 = vmatpush3.bf16.msra.mxu1 %v1804_v55  ;;  %v1285_v55 = vld [vmem:[%s2564_s6 + $0x60] sm:$0xff] }
 0x172   :  { %v1164_v39 = vmul.f32 %v2408_v34, %v1144_v26  ;;  %v1145_v41 = vadd.f32 %v1856_v27, %v2403_v57  ;;  %1806 = vmatprep.subr.bf16.mxu1 %v2010_v28  ;;  %v1810_v29 = vpack.c.bf16 %v1197_v25, %v1196_v24  ;;  %v1837_v48 = vpack.c.bf16 %v1286_v12, %v1285_v55 }
 0x173   :  { %v1162_v37 = vmul.f32 %v2408_v34, %v1142_v38  ;;  %v1143_v42 = vadd.f32 %v1857_v52, %v2403_v57  ;;  %v1807_v53 = vpack.c.bf16 %v1195_v36, %v1194_v33 }
 0x174   :  { %v1184_v43 = vadd.f32 %v2413_v5, %v1164_v39  ;;  %v1165_v17 = vmul.f32 %v2408_v34, %v1145_v41 }
 0x175   :  { %v1182_v44 = vadd.f32 %v2413_v5, %v1162_v37  ;;  %v1163_v35 = vmul.f32 %v2408_v34, %v1143_v42  ;;  %1808 = vmatpush3.bf16.msra.mxu1 %v1807_v53  ;;  %v1273_v34 = vld [vmem:[%s2564_s6] sm:$0xff] }
 0x176   :  { %v1185_v45 = vadd.f32 %v2413_v5, %v1165_v17  ;;  %1809 = vmatprep.subr.bf16.mxu1 %v2010_v28  ;;  %v1200_v40 = vmax.f32 %v1184_v43, 0.0 }
 0x177   :  { %v1183_v46 = vadd.f32 %v2413_v5, %v1163_v35  ;;  %v1198_v49 = vmax.f32 %v1182_v44, 0.0  ;;  %v1274_v5 = vld [vmem:[%s2564_s6 + $0x8] sm:$0xff] }
 0x178   :  { %v1201_v47 = vmax.f32 %v1185_v45, 0.0  ;;  %v1819_v56 = vpack.c.bf16 %v1274_v5, %v1273_v34 }
 0x179   :  { %v1199_v57 = vmax.f32 %v1183_v46, 0.0  ;;  %1811 = vmatpush3.bf16.msra.mxu1 %v1810_v29 }
 0x17a   :  { %1812 = vmatprep.subr.bf16.mxu1 %v2010_v28  ;;  %v1816_v50 = vpack.c.bf16 %v1201_v47, %v1200_v40 }
 0x17b   :  { %v1813_v20 = vpack.c.bf16 %v1199_v57, %v1198_v49 }
 0x17d   :  { %1814 = vmatpush3.bf16.msra.mxu1 %v1813_v20 }
 0x17e   :  { %1815 = vmatprep.subr.bf16.mxu1 %v2010_v28 }
 0x181   :  { %1817 = vmatpush3.bf16.msra.mxu1 %v1816_v50 }
 0x182   :  { %1818 = vmatprep.subr.bf16.mxu1 %v2010_v28 }
 0x184   :  { %1757 = vmatmul.mubr.f32.vlgmr.msra.gmra.mrb[32].mxu1 %v1202_v54 }
 0x185   :  { %1820 = vmatpush3.bf16.msra.mxu1 %v1819_v56  ;;  %1791 = vmatprep.mubr.msk.f32.mxu1 %vm2011_vm1, %v2012_v61  ;;  %v1280_v61 = vld [vmem:[%s2564_s6 + $0x38] sm:$0xff]  ;;  %s1986_s6 = scalar_lea.vmem %s1371_s24, 32 }
 0x186   :  { %1821 = vmatprep.subr.bf16.mxu1 %v2010_v28  ;;  %v1828_v6 = vpack.c.bf16 %v1280_v61, %v1279_v3  ;;  %p1987_p0 = scmp.ne.s32.totalorder %s1371_s24, %s1986_s6  ;;  %p1992_p2 = scmp.lt.s32.totalorder %s1986_s6, %s1986_s6 }
 0x188   :  { %p1993_p3 = por %p1992_p2, %p1991_p1 }
 0x189   :  { %1823 = vmatpush3.bf16.msra.mxu1 %v1822_v62 }
 0x18a   :  { %1824 = vmatprep.subr.bf16.mxu1 %v2010_v28  ;;  %p1994_p4 = pnand %p1993_p3, %p1987_p0 }
 0x18d   :  { %1826 = vmatpush3.bf16.msra.mxu1 %v1825_v2 }
 0x18e   :  { %1827 = vmatprep.subr.bf16.mxu1 %v2010_v28 }
 0x191   :  { %1829 = vmatpush3.bf16.msra.mxu1 %v1828_v6 }
 0x192   :  { %1830 = vmatprep.subr.bf16.mxu1 %v2010_v28 }
 0x195   :  { %1832 = vmatpush3.bf16.msra.mxu1 %v1831_v9 }
 0x196   :  { %1833 = vmatprep.subr.bf16.mxu1 %v2010_v28 }
 0x199   :  { %1835 = vmatpush3.bf16.msra.mxu1 %v1834_v11 }
 0x19a   :  { %1836 = vmatprep.subr.bf16.mxu1 %v2010_v28 }
 0x19d   :  { %1838 = vmatpush3.bf16.msra.mxu1 %v1837_v48 }
 0x19e   :  { %1839 = vmatprep.subr.bf16.mxu1 %v2010_v28 }
 0x1a1   :  { %1841 = vmatpush3.bf16.msra.mxu1 %v1840_v15 }
 0x257   :  { %v1269_v16 = vpop.f32.mrb[32].mxu1 }
 0x258   :  { %v1758_v58 = vpop.f32.mrb[33].mxu1  ;;  %1792 = vmatmul.mubr.f32.vlgmr.msra.gmra.mrb[34].mxu1 %v1269_v16 }
 0x32b   :  { %v1359_v19 = vpop.f32.mrb[34].mxu1 }
 0x32c   :  { %v1360_v51 = vadd.f32 %v1359_v19, %v1292_v18  ;;  %v1793_v21 = vpop.f32.mrb[35].mxu1 }
 0x32e   :  { %1363 = vst [vmem:[#allocation2] sm:$0x3] %v1360_v51 }
 0x32f   :  { %1997 = shalt.err (!%p1994_p4)
}
 0x330   :  { %s1998_s27 = scalar_lea.hbm %s2565_s7, 32 }
 0x331   :  { %p1999_p5 = scmp.ne.s32.totalorder %s2565_s7, %s1998_s27  ;;  %p2002_p6 = scmp.lt.u32.totalorder %s1998_s27, %s2565_s7 }
 0x333   :  { %p2004_p7 = pnand %p2002_p6, %p1999_p5 }
 0x335   :  { %2007 = shalt.err (!%p2004_p7)
}
 0x336   :  { %1373 = dma.vmem_to_hbm [thread:$0]  %s1371_s24, 32, %s2565_s7, [#allocation3]  }
 0x337   :  { %2008 = dma.done.wait [#allocation3], 32  }
 0x338   :  { %2009 = vsyncadd [#allocation3], 4294967264 }
 0x339   :  { %1377 = vsyncpa [#allocation3], 1 }

</bundles_post_ra>
